<compile_context>
chip_gen: v7x
topology: tpu7x:2x2x1
jax: 0.10.0
libtpu: 0.0.40
codegen_flags: <defaults>
</compile_context>

<pallas_src>
import math

import jax
import jax.numpy as jnp
from jax.experimental import pallas as pl
from jax.experimental.pallas import tpu as pltpu

# ---------------- model hyper-parameters (small, consistent) ----------------
D = 128        # d_model (and in/out features of the shared linear)
H = 4          # nhead
DH = D // H    # head dim (32)
DFF = 256      # dim_feedforward
S = 8          # src sequence length (x1 rows)
T = 8          # tgt sequence length (x2 rows)
NUM_ENC = 2
NUM_DEC = 2
LN_EPS = 1e-5
_SCALE = 1.0 / math.sqrt(DH)

# ---------------- packed parameter layout (static indices) ------------------
VW = 3 * D                                   # vector-slab row width (384)

LIN_B_ROW = 0
ENC_VBASE = 1
ENC_VROWS = 8                                # qkv_b,o_b,ln1_g,ln1_b,ff1_b,ff2_b,ln2_g,ln2_b
ENC_NORM_ROW = ENC_VBASE + NUM_ENC * ENC_VROWS        # 17
DEC_VBASE = ENC_NORM_ROW + 2                          # 19
DEC_VROWS = 13   # sa_qkv_b,sa_o_b,ln1_g,ln1_b,ca_q_b,ca_kv_b,ca_o_b,ln2_g,ln2_b,ff1_b,ff2_b,ln3_g,ln3_b
DEC_NORM_ROW = DEC_VBASE + NUM_DEC * DEC_VROWS        # 45
NUM_VROWS = DEC_NORM_ROW + 2                          # 47
VROWS_PADDED = ((NUM_VROWS + 7) // 8) * 8             # 48


# ------------------------- single fused Pallas kernel ------------------------
def _fused_transformer_kernel(x1_ref, x2_ref,
                              lin_w_ref, enc_w_ref, dec_w_ref, ff2_w_ref,
                              vecs_ref, out_ref):
    f32 = jnp.float32
    bf16 = jnp.bfloat16

    def vrow(r, w=D):
        # one bias / LN vector, stored as a row of the (48, 384) f32 slab
        return vecs_ref[r:r + 1, 0:w]                       # (1, w) f32

    def linear(x, w_bf16, b=None, relu=False):
        y = jnp.dot(x.astype(bf16), w_bf16, preferred_element_type=f32)
        if b is not None:
            y = y + b
        return jnp.maximum(y, 0.0) if relu else y

    def layer_norm(x, g, b):
        # two independent reductions -> var = E[x^2] - mean^2
        s1 = jnp.sum(x, axis=-1, keepdims=True)
        s2 = jnp.sum(x * x, axis=-1, keepdims=True)
        mean = s1 * (1.0 / D)
        var = s2 * (1.0 / D) - mean * mean
        return (x - mean) * jax.lax.rsqrt(var + LN_EPS) * g + b

    def attention(q, k, v, o_w, o_b):
        # q: (Sq, D) f32; k, v: (Sk, D) f32; o_w: (D, D) bf16; o_b: (1, D) f32
        qb = (q * _SCALE).astype(bf16)
        kb = k.astype(bf16)
        vb = v.astype(bf16)
        # 1) issue all head score matmuls (MXU) first
        s = [jax.lax.dot_general(qb[:, h * DH:(h + 1) * DH],
                                 kb[:, h * DH:(h + 1) * DH],
                                 (((1,), (1,)), ((), ())),
                                 preferred_element_type=f32)
             for h in range(H)]                               # H x (Sq, Sk)
        # 2) independent per-head softmax chains (scheduler interleaves them)
        m = [jnp.max(sh, axis=-1, keepdims=True) for sh in s]
        e = [jnp.exp(sh - mh) for sh, mh in zip(s, m)]
        l = [jnp.sum(eh, axis=-1, keepdims=True) for eh in e]
        r = [pl.reciprocal(lh, approx=True) for lh in l]
        p = [(eh * rh).astype(bf16) for eh, rh in zip(e, r)]
        # 3) head concat fused into the output projection:
        #    out = o_b + sum_h (p_h @ v_h) @ o_w[h*DH:(h+1)*DH, :]
        out = o_b
        for h in range(H):
            ctx = jnp.dot(p[h], vb[:, h * DH:(h + 1) * DH],
                          preferred_element_type=f32)         # (Sq, DH)
            out = out + jnp.dot(ctx.astype(bf16),
                                o_w[h * DH:(h + 1) * DH, :],
                                preferred_element_type=f32)
        return out                                            # (Sq, D) f32

    def enc_layer(x, l):
        w = enc_w_ref[l]                                      # (D, 768) bf16
        base = ENC_VBASE + l * ENC_VROWS
        qkv = linear(x, w[:, 0:3 * D], vrow(base + 0, 3 * D))
        q, k, v = qkv[:, 0:D], qkv[:, D:2 * D], qkv[:, 2 * D:3 * D]
        sa = attention(q, k, v, w[:, 3 * D:4 * D], vrow(base + 1))
        x = layer_norm(x + sa, vrow(base + 2), vrow(base + 3))
        h1 = linear(x, w[:, 4 * D:4 * D + DFF], vrow(base + 4, DFF), relu=True)
        ff = linear(h1, ff2_w_ref[l], vrow(base + 5))
        return layer_norm(x + ff, vrow(base + 6), vrow(base + 7))

    def dec_layer(y, mem, l):
        w = dec_w_ref[l]                                      # (D, 1280) bf16
        base = DEC_VBASE + l * DEC_VROWS
        # self-attention
        qkv = linear(y, w[:, 0:3 * D], vrow(base + 0, 3 * D))
        q, k, v = qkv[:, 0:D], qkv[:, D:2 * D], qkv[:, 2 * D:3 * D]
        sa = attention(q, k, v, w[:, 3 * D:4 * D], vrow(base + 1))
        y = layer_norm(y + sa, vrow(base + 2), vrow(base + 3))
        # cross-attention on encoder memory
        q = linear(y, w[:, 4 * D:5 * D], vrow(base + 4))
        kv = linear(mem, w[:, 5 * D:7 * D], vrow(base + 5, 2 * D))
        k, v = kv[:, 0:D], kv[:, D:2 * D]
        ca = attention(q, k, v, w[:, 7 * D:8 * D], vrow(base + 6))
        y = layer_norm(y + ca, vrow(base + 7), vrow(base + 8))
        # FFN
        h1 = linear(y, w[:, 8 * D:8 * D + DFF], vrow(base + 9, DFF), relu=True)
        ff = linear(h1, ff2_w_ref[NUM_ENC + l], vrow(base + 10))
        return layer_norm(y + ff, vrow(base + 11), vrow(base + 12))

    lin_w = lin_w_ref[...]
    lin_b = vrow(LIN_B_ROW)

    # ---- v1 = shared linear on x1 ----
    mem = linear(x1_ref[...], lin_w, lin_b)                   # (S, D)

    # ---- encoder stack (post-norm, ReLU FFN) ----
    for l in range(NUM_ENC):
        mem = enc_layer(mem, l)
    mem = layer_norm(mem, vrow(ENC_NORM_ROW), vrow(ENC_NORM_ROW + 1))

    # ---- decoder stack ----
    y = x2_ref[...]
    for l in range(NUM_DEC):
        y = dec_layer(y, mem, l)
    y = layer_norm(y, vrow(DEC_NORM_ROW), vrow(DEC_NORM_ROW + 1))

    # ---- v3 = shared linear on the transformer output ----
    out_ref[...] = linear(y, lin_w, lin_b).astype(out_ref.dtype)


def model_forward(params, x1, x2):
    lin_w, enc_w, dec_w, ff2_w, vecs = params
    # Single grid-less pallas_call: 5 packed parameter slabs + 2 activations,
    # everything whole in VMEM (< 3 MiB).
    return pl.pallas_call(
        _fused_transformer_kernel,
        out_shape=jax.ShapeDtypeStruct((T, D), jnp.float32),
        compiler_params=pltpu.CompilerParams(
            vmem_limit_bytes=8 * 1024 * 1024),
    )(x1, x2, lin_w, enc_w, dec_w, ff2_w, vecs)


# ------------------------------ parameter init -------------------------------
def init_params(key):
    keys = iter(jax.random.split(key, 64))

    def dense(d_in, d_out):
        k1, k2 = jax.random.split(next(keys))
        s = 1.0 / math.sqrt(d_in)
        w = jax.random.uniform(k1, (d_in, d_out), jnp.float32, -s, s)
        b = jax.random.uniform(k2, (d_out,), jnp.float32, -s, s)
        return w, b

    ones = lambda: jnp.ones((D,), jnp.float32)
    zeros = lambda: jnp.zeros((D,), jnp.float32)

    vec_rows = [None] * NUM_VROWS

    lin_w, lin_b = dense(D, D)
    vec_rows[LIN_B_ROW] = lin_b

    enc_w_layers, ff2_layers = [], []
    for l in range(NUM_ENC):
        base = ENC_VBASE + l * ENC_VROWS
        qkv_w, qkv_b = dense(D, 3 * D)
        o_w, o_b = dense(D, D)
        ff1_w, ff1_b = dense(D, DFF)
        ff2_w, ff2_b = dense(DFF, D)
        enc_w_layers.append(jnp.concatenate([qkv_w, o_w, ff1_w], axis=1))  # (D,768)
        ff2_layers.append(ff2_w)
        for off, v in enumerate([qkv_b, o_b, ones(), zeros(),
                                 ff1_b, ff2_b, ones(), zeros()]):
            vec_rows[base + off] = v
    vec_rows[ENC_NORM_ROW] = ones()
    vec_rows[ENC_NORM_ROW + 1] = zeros()

    dec_w_layers = []
    for l in range(NUM_DEC):
        base = DEC_VBASE + l * DEC_VROWS
        sa_qkv_w, sa_qkv_b = dense(D, 3 * D)
        sa_o_w, sa_o_b = dense(D, D)
        ca_q_w, ca_q_b = dense(D, D)
        ca_kv_w, ca_kv_b = dense(D, 2 * D)
        ca_o_w, ca_o_b = dense(D, D)
        ff1_w, ff1_b = dense(D, DFF)
        ff2_w, ff2_b = dense(DFF, D)
        dec_w_layers.append(jnp.concatenate(
            [sa_qkv_w, sa_o_w, ca_q_w, ca_kv_w, ca_o_w, ff1_w], axis=1))   # (D,1280)
        ff2_layers.append(ff2_w)
        for off, v in enumerate([sa_qkv_b, sa_o_b, ones(), zeros(),
                                 ca_q_b, ca_kv_b, ca_o_b, ones(), zeros(),
                                 ff1_b, ff2_b, ones(), zeros()]):
            vec_rows[base + off] = v
    vec_rows[DEC_NORM_ROW] = ones()
    vec_rows[DEC_NORM_ROW + 1] = zeros()

    # Pack vector slab: each vector right-padded to VW lanes; pad rows to x8.
    rows = [jnp.pad(v, (0, VW - v.shape[0])) for v in vec_rows]
    rows += [jnp.zeros((VW,), jnp.float32)] * (VROWS_PADDED - NUM_VROWS)
    vecs = jnp.stack(rows)                                    # (48, 384) f32

    lin_w = lin_w.astype(jnp.bfloat16)                        # (128, 128)
    enc_w = jnp.stack(enc_w_layers).astype(jnp.bfloat16)      # (2, 128, 768)
    dec_w = jnp.stack(dec_w_layers).astype(jnp.bfloat16)      # (2, 128, 1280)
    ff2_w = jnp.stack(ff2_layers).astype(jnp.bfloat16)        # (4, 256, 128)

    return lin_w, enc_w, dec_w, ff2_w, vecs


# ----------------------------------- main ------------------------------------
if __name__ == "__main__":
    key = jax.random.PRNGKey(0)
    kx1, kx2, kp = jax.random.split(key, 3)
    x1 = jax.random.normal(kx1, (S, D), jnp.float32)   # src input to shared linear
    x2 = jax.random.normal(kx2, (T, D), jnp.float32)   # tgt input to the decoder
    params = init_params(kp)

    fwd = jax.jit(model_forward)
    out = fwd(params, x1, x2)
    jax.block_until_ready(out)

    assert out.shape == (T, D), out.shape
    assert bool(jnp.isfinite(out).all())
    print("KERNEL_OK")
</pallas_src>

<mosaic_0001>
module attributes {stable_mosaic.version = 11 : i64} {
  func.func @_fused_transformer_kernel(%arg0: memref<8x128xf32, #tpu.memory_space<vmem>>, %arg1: memref<8x128xf32, #tpu.memory_space<vmem>>, %arg2: memref<128x128xbf16, #tpu.memory_space<vmem>>, %arg3: memref<2x128x768xbf16, #tpu.memory_space<vmem>>, %arg4: memref<2x128x1280xbf16, #tpu.memory_space<vmem>>, %arg5: memref<4x256x128xbf16, #tpu.memory_space<vmem>>, %arg6: memref<48x384xf32, #tpu.memory_space<vmem>>, %arg7: memref<8x128xf32, #tpu.memory_space<vmem>>) attributes {dimension_semantics = [], scalar_prefetch = 0 : i64, scratch_operands = 0 : i64, tpu.core_type = #tpu.core_type<tc>} {
    %c0 = arith.constant 0 : index
    %c0_0 = arith.constant 0 : index
    %0 = vector.load %arg2[%c0, %c0_0] : memref<128x128xbf16, #tpu.memory_space<vmem>>, vector<128x128xbf16>
    %c0_1 = arith.constant 0 : index
    %c0_2 = arith.constant 0 : index
    %1 = vector.load %arg6[%c0_1, %c0_2] : memref<48x384xf32, #tpu.memory_space<vmem>>, vector<1x128xf32>
    %c0_3 = arith.constant 0 : index
    %c0_4 = arith.constant 0 : index
    %2 = vector.load %arg0[%c0_3, %c0_4] : memref<8x128xf32, #tpu.memory_space<vmem>>, vector<8x128xf32>
    %3 = arith.truncf %2 : vector<8x128xf32> to vector<8x128xbf16>
    %cst = arith.constant dense<0.000000e+00> : vector<8x128xf32>
    %4 = tpu.matmul %3, %0, %cst {dimension_numbers = #tpu.dot_dimension_numbers<[1], [0], [0], [1], [0, 0, 1, 1], [], []>} : vector<8x128xbf16>, vector<128x128xbf16>, vector<8x128xf32> -> vector<8x128xf32>
    %5 = vector.broadcast %1 : vector<1x128xf32> to vector<8x128xf32>
    %6 = arith.addf %4, %5 : vector<8x128xf32>
    %c0_5 = arith.constant 0 : index
    %c0_6 = arith.constant 0 : index
    %c0_7 = arith.constant 0 : index
    %7 = vector.load %arg3[%c0_5, %c0_6, %c0_7] : memref<2x128x768xbf16, #tpu.memory_space<vmem>>, vector<1x128x768xbf16>
    %8 = vector.shape_cast %7 : vector<1x128x768xbf16> to vector<128x768xbf16>
    %9 = vector.extract_strided_slice %8 {offsets = [0, 0], sizes = [128, 384], strides = [1, 1]} : vector<128x768xbf16> to vector<128x384xbf16>
    %c1 = arith.constant 1 : index
    %c0_8 = arith.constant 0 : index
    %10 = vector.load %arg6[%c1, %c0_8] : memref<48x384xf32, #tpu.memory_space<vmem>>, vector<1x384xf32>
    %11 = arith.truncf %6 : vector<8x128xf32> to vector<8x128xbf16>
    %cst_9 = arith.constant dense<0.000000e+00> : vector<8x384xf32>
    %12 = tpu.matmul %11, %9, %cst_9 {dimension_numbers = #tpu.dot_dimension_numbers<[1], [0], [0], [1], [0, 0, 1, 1], [], []>} : vector<8x128xbf16>, vector<128x384xbf16>, vector<8x384xf32> -> vector<8x384xf32>
    %13 = vector.broadcast %10 : vector<1x384xf32> to vector<8x384xf32>
    %14 = arith.addf %12, %13 : vector<8x384xf32>
    %15 = vector.extract_strided_slice %14 {offsets = [0, 0], sizes = [8, 128], strides = [1, 1]} : vector<8x384xf32> to vector<8x128xf32>
    %16 = vector.extract_strided_slice %14 {offsets = [0, 128], sizes = [8, 128], strides = [1, 1]} : vector<8x384xf32> to vector<8x128xf32>
    %17 = vector.extract_strided_slice %14 {offsets = [0, 256], sizes = [8, 128], strides = [1, 1]} : vector<8x384xf32> to vector<8x128xf32>
    %18 = vector.extract_strided_slice %8 {offsets = [0, 384], sizes = [128, 128], strides = [1, 1]} : vector<128x768xbf16> to vector<128x128xbf16>
    %c2 = arith.constant 2 : index
    %c0_10 = arith.constant 0 : index
    %19 = vector.load %arg6[%c2, %c0_10] : memref<48x384xf32, #tpu.memory_space<vmem>>, vector<1x128xf32>
    %cst_11 = arith.constant 0.176776692 : f32
    %20 = vector.broadcast %cst_11 : f32 to vector<8x128xf32>
    %21 = arith.mulf %15, %20 : vector<8x128xf32>
    %22 = arith.truncf %21 : vector<8x128xf32> to vector<8x128xbf16>
    %23 = arith.truncf %16 : vector<8x128xf32> to vector<8x128xbf16>
    %24 = arith.truncf %17 : vector<8x128xf32> to vector<8x128xbf16>
    %25 = vector.extract_strided_slice %22 {offsets = [0, 0], sizes = [8, 32], strides = [1, 1]} : vector<8x128xbf16> to vector<8x32xbf16>
    %26 = vector.extract_strided_slice %23 {offsets = [0, 0], sizes = [8, 32], strides = [1, 1]} : vector<8x128xbf16> to vector<8x32xbf16>
    %cst_12 = arith.constant dense<0.000000e+00> : vector<8x8xf32>
    %27 = tpu.matmul %25, %26, %cst_12 {dimension_numbers = #tpu.dot_dimension_numbers<[1], [1], [0], [0], [0, 0, 1, 0], [], []>} : vector<8x32xbf16>, vector<8x32xbf16>, vector<8x8xf32> -> vector<8x8xf32>
    %28 = vector.extract_strided_slice %22 {offsets = [0, 32], sizes = [8, 32], strides = [1, 1]} : vector<8x128xbf16> to vector<8x32xbf16>
    %29 = vector.extract_strided_slice %23 {offsets = [0, 32], sizes = [8, 32], strides = [1, 1]} : vector<8x128xbf16> to vector<8x32xbf16>
    %cst_13 = arith.constant dense<0.000000e+00> : vector<8x8xf32>
    %30 = tpu.matmul %28, %29, %cst_13 {dimension_numbers = #tpu.dot_dimension_numbers<[1], [1], [0], [0], [0, 0, 1, 0], [], []>} : vector<8x32xbf16>, vector<8x32xbf16>, vector<8x8xf32> -> vector<8x8xf32>
    %31 = vector.extract_strided_slice %22 {offsets = [0, 64], sizes = [8, 32], strides = [1, 1]} : vector<8x128xbf16> to vector<8x32xbf16>
    %32 = vector.extract_strided_slice %23 {offsets = [0, 64], sizes = [8, 32], strides = [1, 1]} : vector<8x128xbf16> to vector<8x32xbf16>
    %cst_14 = arith.constant dense<0.000000e+00> : vector<8x8xf32>
    %33 = tpu.matmul %31, %32, %cst_14 {dimension_numbers = #tpu.dot_dimension_numbers<[1], [1], [0], [0], [0, 0, 1, 0], [], []>} : vector<8x32xbf16>, vector<8x32xbf16>, vector<8x8xf32> -> vector<8x8xf32>
    %34 = vector.extract_strided_slice %22 {offsets = [0, 96], sizes = [8, 32], strides = [1, 1]} : vector<8x128xbf16> to vector<8x32xbf16>
    %35 = vector.extract_strided_slice %23 {offsets = [0, 96], sizes = [8, 32], strides = [1, 1]} : vector<8x128xbf16> to vector<8x32xbf16>
    %cst_15 = arith.constant dense<0.000000e+00> : vector<8x8xf32>
    %36 = tpu.matmul %34, %35, %cst_15 {dimension_numbers = #tpu.dot_dimension_numbers<[1], [1], [0], [0], [0, 0, 1, 0], [], []>} : vector<8x32xbf16>, vector<8x32xbf16>, vector<8x8xf32> -> vector<8x8xf32>
    %cst_16 = arith.constant dense<0xFF800000> : vector<8xf32>
    %37 = vector.multi_reduction <maximumf>, %27, %cst_16 [1] : vector<8x8xf32> to vector<8xf32>
    %38 = vector.shape_cast %37 : vector<8xf32> to vector<8x1xf32>
    %cst_17 = arith.constant dense<0xFF800000> : vector<8xf32>
    %39 = vector.multi_reduction <maximumf>, %30, %cst_17 [1] : vector<8x8xf32> to vector<8xf32>
    %40 = vector.shape_cast %39 : vector<8xf32> to vector<8x1xf32>
    %cst_18 = arith.constant dense<0xFF800000> : vector<8xf32>
    %41 = vector.multi_reduction <maximumf>, %33, %cst_18 [1] : vector<8x8xf32> to vector<8xf32>
    %42 = vector.shape_cast %41 : vector<8xf32> to vector<8x1xf32>
    %cst_19 = arith.constant dense<0xFF800000> : vector<8xf32>
    %43 = vector.multi_reduction <maximumf>, %36, %cst_19 [1] : vector<8x8xf32> to vector<8xf32>
    %44 = vector.shape_cast %43 : vector<8xf32> to vector<8x1xf32>
    %45 = vector.broadcast %38 : vector<8x1xf32> to vector<8x8xf32>
    %46 = arith.subf %27, %45 : vector<8x8xf32>
    %47 = math.exp %46 : vector<8x8xf32>
    %48 = vector.broadcast %40 : vector<8x1xf32> to vector<8x8xf32>
    %49 = arith.subf %30, %48 : vector<8x8xf32>
    %50 = math.exp %49 : vector<8x8xf32>
    %51 = vector.broadcast %42 : vector<8x1xf32> to vector<8x8xf32>
    %52 = arith.subf %33, %51 : vector<8x8xf32>
    %53 = math.exp %52 : vector<8x8xf32>
    %54 = vector.broadcast %44 : vector<8x1xf32> to vector<8x8xf32>
    %55 = arith.subf %36, %54 : vector<8x8xf32>
    %56 = math.exp %55 : vector<8x8xf32>
    %cst_20 = arith.constant dense<0.000000e+00> : vector<8xf32>
    %57 = vector.multi_reduction <add>, %47, %cst_20 [1] : vector<8x8xf32> to vector<8xf32>
    %58 = vector.shape_cast %57 : vector<8xf32> to vector<8x1xf32>
    %cst_21 = arith.constant dense<0.000000e+00> : vector<8xf32>
    %59 = vector.multi_reduction <add>, %50, %cst_21 [1] : vector<8x8xf32> to vector<8xf32>
    %60 = vector.shape_cast %59 : vector<8xf32> to vector<8x1xf32>
    %cst_22 = arith.constant dense<0.000000e+00> : vector<8xf32>
    %61 = vector.multi_reduction <add>, %53, %cst_22 [1] : vector<8x8xf32> to vector<8xf32>
    %62 = vector.shape_cast %61 : vector<8xf32> to vector<8x1xf32>
    %cst_23 = arith.constant dense<0.000000e+00> : vector<8xf32>
    %63 = vector.multi_reduction <add>, %56, %cst_23 [1] : vector<8x8xf32> to vector<8xf32>
    %64 = vector.shape_cast %63 : vector<8xf32> to vector<8x1xf32>
    %65 = tpu.reciprocal %58 {approx = true} : vector<8x1xf32> -> vector<8x1xf32>
    %66 = tpu.reciprocal %60 {approx = true} : vector<8x1xf32> -> vector<8x1xf32>
    %67 = tpu.reciprocal %62 {approx = true} : vector<8x1xf32> -> vector<8x1xf32>
    %68 = tpu.reciprocal %64 {approx = true} : vector<8x1xf32> -> vector<8x1xf32>
    %69 = vector.broadcast %65 : vector<8x1xf32> to vector<8x8xf32>
    %70 = arith.mulf %47, %69 : vector<8x8xf32>
    %71 = arith.truncf %70 : vector<8x8xf32> to vector<8x8xbf16>
    %72 = vector.broadcast %66 : vector<8x1xf32> to vector<8x8xf32>
    %73 = arith.mulf %50, %72 : vector<8x8xf32>
    %74 = arith.truncf %73 : vector<8x8xf32> to vector<8x8xbf16>
    %75 = vector.broadcast %67 : vector<8x1xf32> to vector<8x8xf32>
    %76 = arith.mulf %53, %75 : vector<8x8xf32>
    %77 = arith.truncf %76 : vector<8x8xf32> to vector<8x8xbf16>
    %78 = vector.broadcast %68 : vector<8x1xf32> to vector<8x8xf32>
    %79 = arith.mulf %56, %78 : vector<8x8xf32>
    %80 = arith.truncf %79 : vector<8x8xf32> to vector<8x8xbf16>
    %81 = vector.extract_strided_slice %24 {offsets = [0, 0], sizes = [8, 32], strides = [1, 1]} : vector<8x128xbf16> to vector<8x32xbf16>
    %cst_24 = arith.constant dense<0.000000e+00> : vector<8x32xf32>
    %82 = tpu.matmul %71, %81, %cst_24 {dimension_numbers = #tpu.dot_dimension_numbers<[1], [0], [0], [1], [0, 0, 1, 1], [], []>} : vector<8x8xbf16>, vector<8x32xbf16>, vector<8x32xf32> -> vector<8x32xf32>
    %83 = arith.truncf %82 : vector<8x32xf32> to vector<8x32xbf16>
    %84 = vector.extract_strided_slice %18 {offsets = [0, 0], sizes = [32, 128], strides = [1, 1]} : vector<128x128xbf16> to vector<32x128xbf16>
    %cst_25 = arith.constant dense<0.000000e+00> : vector<8x128xf32>
    %85 = tpu.matmul %83, %84, %cst_25 {dimension_numbers = #tpu.dot_dimension_numbers<[1], [0], [0], [1], [0, 0, 1, 1], [], []>} : vector<8x32xbf16>, vector<32x128xbf16>, vector<8x128xf32> -> vector<8x128xf32>
    %86 = vector.broadcast %19 : vector<1x128xf32> to vector<8x128xf32>
    %87 = arith.addf %86, %85 : vector<8x128xf32>
    %88 = vector.extract_strided_slice %24 {offsets = [0, 32], sizes = [8, 32], strides = [1, 1]} : vector<8x128xbf16> to vector<8x32xbf16>
    %cst_26 = arith.constant dense<0.000000e+00> : vector<8x32xf32>
    %89 = tpu.matmul %74, %88, %cst_26 {dimension_numbers = #tpu.dot_dimension_numbers<[1], [0], [0], [1], [0, 0, 1, 1], [], []>} : vector<8x8xbf16>, vector<8x32xbf16>, vector<8x32xf32> -> vector<8x32xf32>
    %90 = arith.truncf %89 : vector<8x32xf32> to vector<8x32xbf16>
    %91 = vector.extract_strided_slice %18 {offsets = [32, 0], sizes = [32, 128], strides = [1, 1]} : vector<128x128xbf16> to vector<32x128xbf16>
    %cst_27 = arith.constant dense<0.000000e+00> : vector<8x128xf32>
    %92 = tpu.matmul %90, %91, %cst_27 {dimension_numbers = #tpu.dot_dimension_numbers<[1], [0], [0], [1], [0, 0, 1, 1], [], []>} : vector<8x32xbf16>, vector<32x128xbf16>, vector<8x128xf32> -> vector<8x128xf32>
    %93 = arith.addf %87, %92 : vector<8x128xf32>
    %94 = vector.extract_strided_slice %24 {offsets = [0, 64], sizes = [8, 32], strides = [1, 1]} : vector<8x128xbf16> to vector<8x32xbf16>
    %cst_28 = arith.constant dense<0.000000e+00> : vector<8x32xf32>
    %95 = tpu.matmul %77, %94, %cst_28 {dimension_numbers = #tpu.dot_dimension_numbers<[1], [0], [0], [1], [0, 0, 1, 1], [], []>} : vector<8x8xbf16>, vector<8x32xbf16>, vector<8x32xf32> -> vector<8x32xf32>
    %96 = arith.truncf %95 : vector<8x32xf32> to vector<8x32xbf16>
    %97 = vector.extract_strided_slice %18 {offsets = [64, 0], sizes = [32, 128], strides = [1, 1]} : vector<128x128xbf16> to vector<32x128xbf16>
    %cst_29 = arith.constant dense<0.000000e+00> : vector<8x128xf32>
    %98 = tpu.matmul %96, %97, %cst_29 {dimension_numbers = #tpu.dot_dimension_numbers<[1], [0], [0], [1], [0, 0, 1, 1], [], []>} : vector<8x32xbf16>, vector<32x128xbf16>, vector<8x128xf32> -> vector<8x128xf32>
    %99 = arith.addf %93, %98 : vector<8x128xf32>
    %100 = vector.extract_strided_slice %24 {offsets = [0, 96], sizes = [8, 32], strides = [1, 1]} : vector<8x128xbf16> to vector<8x32xbf16>
    %cst_30 = arith.constant dense<0.000000e+00> : vector<8x32xf32>
    %101 = tpu.matmul %80, %100, %cst_30 {dimension_numbers = #tpu.dot_dimension_numbers<[1], [0], [0], [1], [0, 0, 1, 1], [], []>} : vector<8x8xbf16>, vector<8x32xbf16>, vector<8x32xf32> -> vector<8x32xf32>
    %102 = arith.truncf %101 : vector<8x32xf32> to vector<8x32xbf16>
    %103 = vector.extract_strided_slice %18 {offsets = [96, 0], sizes = [32, 128], strides = [1, 1]} : vector<128x128xbf16> to vector<32x128xbf16>
    %cst_31 = arith.constant dense<0.000000e+00> : vector<8x128xf32>
    %104 = tpu.matmul %102, %103, %cst_31 {dimension_numbers = #tpu.dot_dimension_numbers<[1], [0], [0], [1], [0, 0, 1, 1], [], []>} : vector<8x32xbf16>, vector<32x128xbf16>, vector<8x128xf32> -> vector<8x128xf32>
    %105 = arith.addf %99, %104 : vector<8x128xf32>
    %106 = arith.addf %6, %105 : vector<8x128xf32>
    %c3 = arith.constant 3 : index
    %c0_32 = arith.constant 0 : index
    %107 = vector.load %arg6[%c3, %c0_32] : memref<48x384xf32, #tpu.memory_space<vmem>>, vector<1x128xf32>
    %c4 = arith.constant 4 : index
    %c0_33 = arith.constant 0 : index
    %108 = vector.load %arg6[%c4, %c0_33] : memref<48x384xf32, #tpu.memory_space<vmem>>, vector<1x128xf32>
    %cst_34 = arith.constant dense<0.000000e+00> : vector<8xf32>
    %109 = vector.multi_reduction <add>, %106, %cst_34 [1] : vector<8x128xf32> to vector<8xf32>
    %110 = vector.shape_cast %109 : vector<8xf32> to vector<8x1xf32>
    %111 = arith.mulf %106, %106 : vector<8x128xf32>
    %cst_35 = arith.constant dense<0.000000e+00> : vector<8xf32>
    %112 = vector.multi_reduction <add>, %111, %cst_35 [1] : vector<8x128xf32> to vector<8xf32>
    %113 = vector.shape_cast %112 : vector<8xf32> to vector<8x1xf32>
    %cst_36 = arith.constant 7.812500e-03 : f32
    %114 = vector.broadcast %cst_36 : f32 to vector<8x1xf32>
    %115 = arith.mulf %110, %114 : vector<8x1xf32>
    %cst_37 = arith.constant 7.812500e-03 : f32
    %116 = vector.broadcast %cst_37 : f32 to vector<8x1xf32>
    %117 = arith.mulf %113, %116 : vector<8x1xf32>
    %118 = arith.mulf %115, %115 : vector<8x1xf32>
    %119 = arith.subf %117, %118 : vector<8x1xf32>
    %120 = vector.broadcast %115 : vector<8x1xf32> to vector<8x128xf32>
    %121 = arith.subf %106, %120 : vector<8x128xf32>
    %cst_38 = arith.constant 9.99999974E-6 : f32
    %122 = vector.broadcast %cst_38 : f32 to vector<8x1xf32>
    %123 = arith.addf %119, %122 : vector<8x1xf32>
    %124 = math.rsqrt %123 : vector<8x1xf32>
    %125 = vector.broadcast %124 : vector<8x1xf32> to vector<8x128xf32>
    %126 = arith.mulf %121, %125 : vector<8x128xf32>
    %127 = vector.broadcast %107 : vector<1x128xf32> to vector<8x128xf32>
    %128 = arith.mulf %126, %127 : vector<8x128xf32>
    %129 = vector.broadcast %108 : vector<1x128xf32> to vector<8x128xf32>
    %130 = arith.addf %128, %129 : vector<8x128xf32>
    %131 = vector.extract_strided_slice %8 {offsets = [0, 512], sizes = [128, 256], strides = [1, 1]} : vector<128x768xbf16> to vector<128x256xbf16>
    %c5 = arith.constant 5 : index
    %c0_39 = arith.constant 0 : index
    %132 = vector.load %arg6[%c5, %c0_39] : memref<48x384xf32, #tpu.memory_space<vmem>>, vector<1x256xf32>
    %133 = arith.truncf %130 : vector<8x128xf32> to vector<8x128xbf16>
    %cst_40 = arith.constant dense<0.000000e+00> : vector<8x256xf32>
    %134 = tpu.matmul %133, %131, %cst_40 {dimension_numbers = #tpu.dot_dimension_numbers<[1], [0], [0], [1], [0, 0, 1, 1], [], []>} : vector<8x128xbf16>, vector<128x256xbf16>, vector<8x256xf32> -> vector<8x256xf32>
    %135 = vector.broadcast %132 : vector<1x256xf32> to vector<8x256xf32>
    %136 = arith.addf %134, %135 : vector<8x256xf32>
    %cst_41 = arith.constant 0.000000e+00 : f32
    %137 = vector.broadcast %cst_41 : f32 to vector<8x256xf32>
    %138 = arith.maximumf %136, %137 : vector<8x256xf32>
    %c0_42 = arith.constant 0 : index
    %c0_43 = arith.constant 0 : index
    %c0_44 = arith.constant 0 : index
    %139 = vector.load %arg5[%c0_42, %c0_43, %c0_44] : memref<4x256x128xbf16, #tpu.memory_space<vmem>>, vector<1x256x128xbf16>
    %140 = vector.shape_cast %139 : vector<1x256x128xbf16> to vector<256x128xbf16>
    %c6 = arith.constant 6 : index
    %c0_45 = arith.constant 0 : index
    %141 = vector.load %arg6[%c6, %c0_45] : memref<48x384xf32, #tpu.memory_space<vmem>>, vector<1x128xf32>
    %142 = arith.truncf %138 : vector<8x256xf32> to vector<8x256xbf16>
    %cst_46 = arith.constant dense<0.000000e+00> : vector<8x128xf32>
    %143 = tpu.matmul %142, %140, %cst_46 {dimension_numbers = #tpu.dot_dimension_numbers<[1], [0], [0], [1], [0, 0, 1, 1], [], []>} : vector<8x256xbf16>, vector<256x128xbf16>, vector<8x128xf32> -> vector<8x128xf32>
    %144 = vector.broadcast %141 : vector<1x128xf32> to vector<8x128xf32>
    %145 = arith.addf %143, %144 : vector<8x128xf32>
    %146 = arith.addf %130, %145 : vector<8x128xf32>
    %c7 = arith.constant 7 : index
    %c0_47 = arith.constant 0 : index
    %147 = vector.load %arg6[%c7, %c0_47] : memref<48x384xf32, #tpu.memory_space<vmem>>, vector<1x128xf32>
    %c8 = arith.constant 8 : index
    %c0_48 = arith.constant 0 : index
    %148 = vector.load %arg6[%c8, %c0_48] : memref<48x384xf32, #tpu.memory_space<vmem>>, vector<1x128xf32>
    %cst_49 = arith.constant dense<0.000000e+00> : vector<8xf32>
    %149 = vector.multi_reduction <add>, %146, %cst_49 [1] : vector<8x128xf32> to vector<8xf32>
    %150 = vector.shape_cast %149 : vector<8xf32> to vector<8x1xf32>
    %151 = arith.mulf %146, %146 : vector<8x128xf32>
    %cst_50 = arith.constant dense<0.000000e+00> : vector<8xf32>
    %152 = vector.multi_reduction <add>, %151, %cst_50 [1] : vector<8x128xf32> to vector<8xf32>
    %153 = vector.shape_cast %152 : vector<8xf32> to vector<8x1xf32>
    %cst_51 = arith.constant 7.812500e-03 : f32
    %154 = vector.broadcast %cst_51 : f32 to vector<8x1xf32>
    %155 = arith.mulf %150, %154 : vector<8x1xf32>
    %cst_52 = arith.constant 7.812500e-03 : f32
    %156 = vector.broadcast %cst_52 : f32 to vector<8x1xf32>
    %157 = arith.mulf %153, %156 : vector<8x1xf32>
    %158 = arith.mulf %155, %155 : vector<8x1xf32>
    %159 = arith.subf %157, %158 : vector<8x1xf32>
    %160 = vector.broadcast %155 : vector<8x1xf32> to vector<8x128xf32>
    %161 = arith.subf %146, %160 : vector<8x128xf32>
    %cst_53 = arith.constant 9.99999974E-6 : f32
    %162 = vector.broadcast %cst_53 : f32 to vector<8x1xf32>
    %163 = arith.addf %159, %162 : vector<8x1xf32>
    %164 = math.rsqrt %163 : vector<8x1xf32>
    %165 = vector.broadcast %164 : vector<8x1xf32> to vector<8x128xf32>
    %166 = arith.mulf %161, %165 : vector<8x128xf32>
    %167 = vector.broadcast %147 : vector<1x128xf32> to vector<8x128xf32>
    %168 = arith.mulf %166, %167 : vector<8x128xf32>
    %169 = vector.broadcast %148 : vector<1x128xf32> to vector<8x128xf32>
    %170 = arith.addf %168, %169 : vector<8x128xf32>
    %c1_54 = arith.constant 1 : index
    %c0_55 = arith.constant 0 : index
    %c0_56 = arith.constant 0 : index
    %171 = vector.load %arg3[%c1_54, %c0_55, %c0_56] : memref<2x128x768xbf16, #tpu.memory_space<vmem>>, vector<1x128x768xbf16>
    %172 = vector.shape_cast %171 : vector<1x128x768xbf16> to vector<128x768xbf16>
    %173 = vector.extract_strided_slice %172 {offsets = [0, 0], sizes = [128, 384], strides = [1, 1]} : vector<128x768xbf16> to vector<128x384xbf16>
    %c9 = arith.constant 9 : index
    %c0_57 = arith.constant 0 : index
    %174 = vector.load %arg6[%c9, %c0_57] : memref<48x384xf32, #tpu.memory_space<vmem>>, vector<1x384xf32>
    %175 = arith.truncf %170 : vector<8x128xf32> to vector<8x128xbf16>
    %cst_58 = arith.constant dense<0.000000e+00> : vector<8x384xf32>
    %176 = tpu.matmul %175, %173, %cst_58 {dimension_numbers = #tpu.dot_dimension_numbers<[1], [0], [0], [1], [0, 0, 1, 1], [], []>} : vector<8x128xbf16>, vector<128x384xbf16>, vector<8x384xf32> -> vector<8x384xf32>
    %177 = vector.broadcast %174 : vector<1x384xf32> to vector<8x384xf32>
    %178 = arith.addf %176, %177 : vector<8x384xf32>
    %179 = vector.extract_strided_slice %178 {offsets = [0, 0], sizes = [8, 128], strides = [1, 1]} : vector<8x384xf32> to vector<8x128xf32>
    %180 = vector.extract_strided_slice %178 {offsets = [0, 128], sizes = [8, 128], strides = [1, 1]} : vector<8x384xf32> to vector<8x128xf32>
    %181 = vector.extract_strided_slice %178 {offsets = [0, 256], sizes = [8, 128], strides = [1, 1]} : vector<8x384xf32> to vector<8x128xf32>
    %182 = vector.extract_strided_slice %172 {offsets = [0, 384], sizes = [128, 128], strides = [1, 1]} : vector<128x768xbf16> to vector<128x128xbf16>
    %c10 = arith.constant 10 : index
    %c0_59 = arith.constant 0 : index
    %183 = vector.load %arg6[%c10, %c0_59] : memref<48x384xf32, #tpu.memory_space<vmem>>, vector<1x128xf32>
    %cst_60 = arith.constant 0.176776692 : f32
    %184 = vector.broadcast %cst_60 : f32 to vector<8x128xf32>
    %185 = arith.mulf %179, %184 : vector<8x128xf32>
    %186 = arith.truncf %185 : vector<8x128xf32> to vector<8x128xbf16>
    %187 = arith.truncf %180 : vector<8x128xf32> to vector<8x128xbf16>
    %188 = arith.truncf %181 : vector<8x128xf32> to vector<8x128xbf16>
    %189 = vector.extract_strided_slice %186 {offsets = [0, 0], sizes = [8, 32], strides = [1, 1]} : vector<8x128xbf16> to vector<8x32xbf16>
    %190 = vector.extract_strided_slice %187 {offsets = [0, 0], sizes = [8, 32], strides = [1, 1]} : vector<8x128xbf16> to vector<8x32xbf16>
    %cst_61 = arith.constant dense<0.000000e+00> : vector<8x8xf32>
    %191 = tpu.matmul %189, %190, %cst_61 {dimension_numbers = #tpu.dot_dimension_numbers<[1], [1], [0], [0], [0, 0, 1, 0], [], []>} : vector<8x32xbf16>, vector<8x32xbf16>, vector<8x8xf32> -> vector<8x8xf32>
    %192 = vector.extract_strided_slice %186 {offsets = [0, 32], sizes = [8, 32], strides = [1, 1]} : vector<8x128xbf16> to vector<8x32xbf16>
    %193 = vector.extract_strided_slice %187 {offsets = [0, 32], sizes = [8, 32], strides = [1, 1]} : vector<8x128xbf16> to vector<8x32xbf16>
    %cst_62 = arith.constant dense<0.000000e+00> : vector<8x8xf32>
    %194 = tpu.matmul %192, %193, %cst_62 {dimension_numbers = #tpu.dot_dimension_numbers<[1], [1], [0], [0], [0, 0, 1, 0], [], []>} : vector<8x32xbf16>, vector<8x32xbf16>, vector<8x8xf32> -> vector<8x8xf32>
    %195 = vector.extract_strided_slice %186 {offsets = [0, 64], sizes = [8, 32], strides = [1, 1]} : vector<8x128xbf16> to vector<8x32xbf16>
    %196 = vector.extract_strided_slice %187 {offsets = [0, 64], sizes = [8, 32], strides = [1, 1]} : vector<8x128xbf16> to vector<8x32xbf16>
    %cst_63 = arith.constant dense<0.000000e+00> : vector<8x8xf32>
    %197 = tpu.matmul %195, %196, %cst_63 {dimension_numbers = #tpu.dot_dimension_numbers<[1], [1], [0], [0], [0, 0, 1, 0], [], []>} : vector<8x32xbf16>, vector<8x32xbf16>, vector<8x8xf32> -> vector<8x8xf32>
    %198 = vector.extract_strided_slice %186 {offsets = [0, 96], sizes = [8, 32], strides = [1, 1]} : vector<8x128xbf16> to vector<8x32xbf16>
    %199 = vector.extract_strided_slice %187 {offsets = [0, 96], sizes = [8, 32], strides = [1, 1]} : vector<8x128xbf16> to vector<8x32xbf16>
    %cst_64 = arith.constant dense<0.000000e+00> : vector<8x8xf32>
    %200 = tpu.matmul %198, %199, %cst_64 {dimension_numbers = #tpu.dot_dimension_numbers<[1], [1], [0], [0], [0, 0, 1, 0], [], []>} : vector<8x32xbf16>, vector<8x32xbf16>, vector<8x8xf32> -> vector<8x8xf32>
    %cst_65 = arith.constant dense<0xFF800000> : vector<8xf32>
    %201 = vector.multi_reduction <maximumf>, %191, %cst_65 [1] : vector<8x8xf32> to vector<8xf32>
    %202 = vector.shape_cast %201 : vector<8xf32> to vector<8x1xf32>
    %cst_66 = arith.constant dense<0xFF800000> : vector<8xf32>
    %203 = vector.multi_reduction <maximumf>, %194, %cst_66 [1] : vector<8x8xf32> to vector<8xf32>
    %204 = vector.shape_cast %203 : vector<8xf32> to vector<8x1xf32>
    %cst_67 = arith.constant dense<0xFF800000> : vector<8xf32>
    %205 = vector.multi_reduction <maximumf>, %197, %cst_67 [1] : vector<8x8xf32> to vector<8xf32>
    %206 = vector.shape_cast %205 : vector<8xf32> to vector<8x1xf32>
    %cst_68 = arith.constant dense<0xFF800000> : vector<8xf32>
    %207 = vector.multi_reduction <maximumf>, %200, %cst_68 [1] : vector<8x8xf32> to vector<8xf32>
    %208 = vector.shape_cast %207 : vector<8xf32> to vector<8x1xf32>
    %209 = vector.broadcast %202 : vector<8x1xf32> to vector<8x8xf32>
    %210 = arith.subf %191, %209 : vector<8x8xf32>
    %211 = math.exp %210 : vector<8x8xf32>
    %212 = vector.broadcast %204 : vector<8x1xf32> to vector<8x8xf32>
    %213 = arith.subf %194, %212 : vector<8x8xf32>
    %214 = math.exp %213 : vector<8x8xf32>
    %215 = vector.broadcast %206 : vector<8x1xf32> to vector<8x8xf32>
    %216 = arith.subf %197, %215 : vector<8x8xf32>
    %217 = math.exp %216 : vector<8x8xf32>
    %218 = vector.broadcast %208 : vector<8x1xf32> to vector<8x8xf32>
    %219 = arith.subf %200, %218 : vector<8x8xf32>
    %220 = math.exp %219 : vector<8x8xf32>
    %cst_69 = arith.constant dense<0.000000e+00> : vector<8xf32>
    %221 = vector.multi_reduction <add>, %211, %cst_69 [1] : vector<8x8xf32> to vector<8xf32>
    %222 = vector.shape_cast %221 : vector<8xf32> to vector<8x1xf32>
    %cst_70 = arith.constant dense<0.000000e+00> : vector<8xf32>
    %223 = vector.multi_reduction <add>, %214, %cst_70 [1] : vector<8x8xf32> to vector<8xf32>
    %224 = vector.shape_cast %223 : vector<8xf32> to vector<8x1xf32>
    %cst_71 = arith.constant dense<0.000000e+00> : vector<8xf32>
    %225 = vector.multi_reduction <add>, %217, %cst_71 [1] : vector<8x8xf32> to vector<8xf32>
    %226 = vector.shape_cast %225 : vector<8xf32> to vector<8x1xf32>
    %cst_72 = arith.constant dense<0.000000e+00> : vector<8xf32>
    %227 = vector.multi_reduction <add>, %220, %cst_72 [1] : vector<8x8xf32> to vector<8xf32>
    %228 = vector.shape_cast %227 : vector<8xf32> to vector<8x1xf32>
    %229 = tpu.reciprocal %222 {approx = true} : vector<8x1xf32> -> vector<8x1xf32>
    %230 = tpu.reciprocal %224 {approx = true} : vector<8x1xf32> -> vector<8x1xf32>
    %231 = tpu.reciprocal %226 {approx = true} : vector<8x1xf32> -> vector<8x1xf32>
    %232 = tpu.reciprocal %228 {approx = true} : vector<8x1xf32> -> vector<8x1xf32>
    %233 = vector.broadcast %229 : vector<8x1xf32> to vector<8x8xf32>
    %234 = arith.mulf %211, %233 : vector<8x8xf32>
    %235 = arith.truncf %234 : vector<8x8xf32> to vector<8x8xbf16>
    %236 = vector.broadcast %230 : vector<8x1xf32> to vector<8x8xf32>
    %237 = arith.mulf %214, %236 : vector<8x8xf32>
    %238 = arith.truncf %237 : vector<8x8xf32> to vector<8x8xbf16>
    %239 = vector.broadcast %231 : vector<8x1xf32> to vector<8x8xf32>
    %240 = arith.mulf %217, %239 : vector<8x8xf32>
    %241 = arith.truncf %240 : vector<8x8xf32> to vector<8x8xbf16>
    %242 = vector.broadcast %232 : vector<8x1xf32> to vector<8x8xf32>
    %243 = arith.mulf %220, %242 : vector<8x8xf32>
    %244 = arith.truncf %243 : vector<8x8xf32> to vector<8x8xbf16>
    %245 = vector.extract_strided_slice %188 {offsets = [0, 0], sizes = [8, 32], strides = [1, 1]} : vector<8x128xbf16> to vector<8x32xbf16>
    %cst_73 = arith.constant dense<0.000000e+00> : vector<8x32xf32>
    %246 = tpu.matmul %235, %245, %cst_73 {dimension_numbers = #tpu.dot_dimension_numbers<[1], [0], [0], [1], [0, 0, 1, 1], [], []>} : vector<8x8xbf16>, vector<8x32xbf16>, vector<8x32xf32> -> vector<8x32xf32>
    %247 = arith.truncf %246 : vector<8x32xf32> to vector<8x32xbf16>
    %248 = vector.extract_strided_slice %182 {offsets = [0, 0], sizes = [32, 128], strides = [1, 1]} : vector<128x128xbf16> to vector<32x128xbf16>
    %cst_74 = arith.constant dense<0.000000e+00> : vector<8x128xf32>
    %249 = tpu.matmul %247, %248, %cst_74 {dimension_numbers = #tpu.dot_dimension_numbers<[1], [0], [0], [1], [0, 0, 1, 1], [], []>} : vector<8x32xbf16>, vector<32x128xbf16>, vector<8x128xf32> -> vector<8x128xf32>
    %250 = vector.broadcast %183 : vector<1x128xf32> to vector<8x128xf32>
    %251 = arith.addf %250, %249 : vector<8x128xf32>
    %252 = vector.extract_strided_slice %188 {offsets = [0, 32], sizes = [8, 32], strides = [1, 1]} : vector<8x128xbf16> to vector<8x32xbf16>
    %cst_75 = arith.constant dense<0.000000e+00> : vector<8x32xf32>
    %253 = tpu.matmul %238, %252, %cst_75 {dimension_numbers = #tpu.dot_dimension_numbers<[1], [0], [0], [1], [0, 0, 1, 1], [], []>} : vector<8x8xbf16>, vector<8x32xbf16>, vector<8x32xf32> -> vector<8x32xf32>
    %254 = arith.truncf %253 : vector<8x32xf32> to vector<8x32xbf16>
    %255 = vector.extract_strided_slice %182 {offsets = [32, 0], sizes = [32, 128], strides = [1, 1]} : vector<128x128xbf16> to vector<32x128xbf16>
    %cst_76 = arith.constant dense<0.000000e+00> : vector<8x128xf32>
    %256 = tpu.matmul %254, %255, %cst_76 {dimension_numbers = #tpu.dot_dimension_numbers<[1], [0], [0], [1], [0, 0, 1, 1], [], []>} : vector<8x32xbf16>, vector<32x128xbf16>, vector<8x128xf32> -> vector<8x128xf32>
    %257 = arith.addf %251, %256 : vector<8x128xf32>
    %258 = vector.extract_strided_slice %188 {offsets = [0, 64], sizes = [8, 32], strides = [1, 1]} : vector<8x128xbf16> to vector<8x32xbf16>
    %cst_77 = arith.constant dense<0.000000e+00> : vector<8x32xf32>
    %259 = tpu.matmul %241, %258, %cst_77 {dimension_numbers = #tpu.dot_dimension_numbers<[1], [0], [0], [1], [0, 0, 1, 1], [], []>} : vector<8x8xbf16>, vector<8x32xbf16>, vector<8x32xf32> -> vector<8x32xf32>
    %260 = arith.truncf %259 : vector<8x32xf32> to vector<8x32xbf16>
    %261 = vector.extract_strided_slice %182 {offsets = [64, 0], sizes = [32, 128], strides = [1, 1]} : vector<128x128xbf16> to vector<32x128xbf16>
    %cst_78 = arith.constant dense<0.000000e+00> : vector<8x128xf32>
    %262 = tpu.matmul %260, %261, %cst_78 {dimension_numbers = #tpu.dot_dimension_numbers<[1], [0], [0], [1], [0, 0, 1, 1], [], []>} : vector<8x32xbf16>, vector<32x128xbf16>, vector<8x128xf32> -> vector<8x128xf32>
    %263 = arith.addf %257, %262 : vector<8x128xf32>
    %264 = vector.extract_strided_slice %188 {offsets = [0, 96], sizes = [8, 32], strides = [1, 1]} : vector<8x128xbf16> to vector<8x32xbf16>
    %cst_79 = arith.constant dense<0.000000e+00> : vector<8x32xf32>
    %265 = tpu.matmul %244, %264, %cst_79 {dimension_numbers = #tpu.dot_dimension_numbers<[1], [0], [0], [1], [0, 0, 1, 1], [], []>} : vector<8x8xbf16>, vector<8x32xbf16>, vector<8x32xf32> -> vector<8x32xf32>
    %266 = arith.truncf %265 : vector<8x32xf32> to vector<8x32xbf16>
    %267 = vector.extract_strided_slice %182 {offsets = [96, 0], sizes = [32, 128], strides = [1, 1]} : vector<128x128xbf16> to vector<32x128xbf16>
    %cst_80 = arith.constant dense<0.000000e+00> : vector<8x128xf32>
    %268 = tpu.matmul %266, %267, %cst_80 {dimension_numbers = #tpu.dot_dimension_numbers<[1], [0], [0], [1], [0, 0, 1, 1], [], []>} : vector<8x32xbf16>, vector<32x128xbf16>, vector<8x128xf32> -> vector<8x128xf32>
    %269 = arith.addf %263, %268 : vector<8x128xf32>
    %270 = arith.addf %170, %269 : vector<8x128xf32>
    %c11 = arith.constant 11 : index
    %c0_81 = arith.constant 0 : index
    %271 = vector.load %arg6[%c11, %c0_81] : memref<48x384xf32, #tpu.memory_space<vmem>>, vector<1x128xf32>
    %c12 = arith.constant 12 : index
    %c0_82 = arith.constant 0 : index
    %272 = vector.load %arg6[%c12, %c0_82] : memref<48x384xf32, #tpu.memory_space<vmem>>, vector<1x128xf32>
    %cst_83 = arith.constant dense<0.000000e+00> : vector<8xf32>
    %273 = vector.multi_reduction <add>, %270, %cst_83 [1] : vector<8x128xf32> to vector<8xf32>
    %274 = vector.shape_cast %273 : vector<8xf32> to vector<8x1xf32>
    %275 = arith.mulf %270, %270 : vector<8x128xf32>
    %cst_84 = arith.constant dense<0.000000e+00> : vector<8xf32>
    %276 = vector.multi_reduction <add>, %275, %cst_84 [1] : vector<8x128xf32> to vector<8xf32>
    %277 = vector.shape_cast %276 : vector<8xf32> to vector<8x1xf32>
    %cst_85 = arith.constant 7.812500e-03 : f32
    %278 = vector.broadcast %cst_85 : f32 to vector<8x1xf32>
    %279 = arith.mulf %274, %278 : vector<8x1xf32>
    %cst_86 = arith.constant 7.812500e-03 : f32
    %280 = vector.broadcast %cst_86 : f32 to vector<8x1xf32>
    %281 = arith.mulf %277, %280 : vector<8x1xf32>
    %282 = arith.mulf %279, %279 : vector<8x1xf32>
    %283 = arith.subf %281, %282 : vector<8x1xf32>
    %284 = vector.broadcast %279 : vector<8x1xf32> to vector<8x128xf32>
    %285 = arith.subf %270, %284 : vector<8x128xf32>
    %cst_87 = arith.constant 9.99999974E-6 : f32
    %286 = vector.broadcast %cst_87 : f32 to vector<8x1xf32>
    %287 = arith.addf %283, %286 : vector<8x1xf32>
    %288 = math.rsqrt %287 : vector<8x1xf32>
    %289 = vector.broadcast %288 : vector<8x1xf32> to vector<8x128xf32>
    %290 = arith.mulf %285, %289 : vector<8x128xf32>
    %291 = vector.broadcast %271 : vector<1x128xf32> to vector<8x128xf32>
    %292 = arith.mulf %290, %291 : vector<8x128xf32>
    %293 = vector.broadcast %272 : vector<1x128xf32> to vector<8x128xf32>
    %294 = arith.addf %292, %293 : vector<8x128xf32>
    %295 = vector.extract_strided_slice %172 {offsets = [0, 512], sizes = [128, 256], strides = [1, 1]} : vector<128x768xbf16> to vector<128x256xbf16>
    %c13 = arith.constant 13 : index
    %c0_88 = arith.constant 0 : index
    %296 = vector.load %arg6[%c13, %c0_88] : memref<48x384xf32, #tpu.memory_space<vmem>>, vector<1x256xf32>
    %297 = arith.truncf %294 : vector<8x128xf32> to vector<8x128xbf16>
    %cst_89 = arith.constant dense<0.000000e+00> : vector<8x256xf32>
    %298 = tpu.matmul %297, %295, %cst_89 {dimension_numbers = #tpu.dot_dimension_numbers<[1], [0], [0], [1], [0, 0, 1, 1], [], []>} : vector<8x128xbf16>, vector<128x256xbf16>, vector<8x256xf32> -> vector<8x256xf32>
    %299 = vector.broadcast %296 : vector<1x256xf32> to vector<8x256xf32>
    %300 = arith.addf %298, %299 : vector<8x256xf32>
    %cst_90 = arith.constant 0.000000e+00 : f32
    %301 = vector.broadcast %cst_90 : f32 to vector<8x256xf32>
    %302 = arith.maximumf %300, %301 : vector<8x256xf32>
    %c1_91 = arith.constant 1 : index
    %c0_92 = arith.constant 0 : index
    %c0_93 = arith.constant 0 : index
    %303 = vector.load %arg5[%c1_91, %c0_92, %c0_93] : memref<4x256x128xbf16, #tpu.memory_space<vmem>>, vector<1x256x128xbf16>
    %304 = vector.shape_cast %303 : vector<1x256x128xbf16> to vector<256x128xbf16>
    %c14 = arith.constant 14 : index
    %c0_94 = arith.constant 0 : index
    %305 = vector.load %arg6[%c14, %c0_94] : memref<48x384xf32, #tpu.memory_space<vmem>>, vector<1x128xf32>
    %306 = arith.truncf %302 : vector<8x256xf32> to vector<8x256xbf16>
    %cst_95 = arith.constant dense<0.000000e+00> : vector<8x128xf32>
    %307 = tpu.matmul %306, %304, %cst_95 {dimension_numbers = #tpu.dot_dimension_numbers<[1], [0], [0], [1], [0, 0, 1, 1], [], []>} : vector<8x256xbf16>, vector<256x128xbf16>, vector<8x128xf32> -> vector<8x128xf32>
    %308 = vector.broadcast %305 : vector<1x128xf32> to vector<8x128xf32>
    %309 = arith.addf %307, %308 : vector<8x128xf32>
    %310 = arith.addf %294, %309 : vector<8x128xf32>
    %c15 = arith.constant 15 : index
    %c0_96 = arith.constant 0 : index
    %311 = vector.load %arg6[%c15, %c0_96] : memref<48x384xf32, #tpu.memory_space<vmem>>, vector<1x128xf32>
    %c16 = arith.constant 16 : index
    %c0_97 = arith.constant 0 : index
    %312 = vector.load %arg6[%c16, %c0_97] : memref<48x384xf32, #tpu.memory_space<vmem>>, vector<1x128xf32>
    %cst_98 = arith.constant dense<0.000000e+00> : vector<8xf32>
    %313 = vector.multi_reduction <add>, %310, %cst_98 [1] : vector<8x128xf32> to vector<8xf32>
    %314 = vector.shape_cast %313 : vector<8xf32> to vector<8x1xf32>
    %315 = arith.mulf %310, %310 : vector<8x128xf32>
    %cst_99 = arith.constant dense<0.000000e+00> : vector<8xf32>
    %316 = vector.multi_reduction <add>, %315, %cst_99 [1] : vector<8x128xf32> to vector<8xf32>
    %317 = vector.shape_cast %316 : vector<8xf32> to vector<8x1xf32>
    %cst_100 = arith.constant 7.812500e-03 : f32
    %318 = vector.broadcast %cst_100 : f32 to vector<8x1xf32>
    %319 = arith.mulf %314, %318 : vector<8x1xf32>
    %cst_101 = arith.constant 7.812500e-03 : f32
    %320 = vector.broadcast %cst_101 : f32 to vector<8x1xf32>
    %321 = arith.mulf %317, %320 : vector<8x1xf32>
    %322 = arith.mulf %319, %319 : vector<8x1xf32>
    %323 = arith.subf %321, %322 : vector<8x1xf32>
    %324 = vector.broadcast %319 : vector<8x1xf32> to vector<8x128xf32>
    %325 = arith.subf %310, %324 : vector<8x128xf32>
    %cst_102 = arith.constant 9.99999974E-6 : f32
    %326 = vector.broadcast %cst_102 : f32 to vector<8x1xf32>
    %327 = arith.addf %323, %326 : vector<8x1xf32>
    %328 = math.rsqrt %327 : vector<8x1xf32>
    %329 = vector.broadcast %328 : vector<8x1xf32> to vector<8x128xf32>
    %330 = arith.mulf %325, %329 : vector<8x128xf32>
    %331 = vector.broadcast %311 : vector<1x128xf32> to vector<8x128xf32>
    %332 = arith.mulf %330, %331 : vector<8x128xf32>
    %333 = vector.broadcast %312 : vector<1x128xf32> to vector<8x128xf32>
    %334 = arith.addf %332, %333 : vector<8x128xf32>
    %c17 = arith.constant 17 : index
    %c0_103 = arith.constant 0 : index
    %335 = vector.load %arg6[%c17, %c0_103] : memref<48x384xf32, #tpu.memory_space<vmem>>, vector<1x128xf32>
    %c18 = arith.constant 18 : index
    %c0_104 = arith.constant 0 : index
    %336 = vector.load %arg6[%c18, %c0_104] : memref<48x384xf32, #tpu.memory_space<vmem>>, vector<1x128xf32>
    %cst_105 = arith.constant dense<0.000000e+00> : vector<8xf32>
    %337 = vector.multi_reduction <add>, %334, %cst_105 [1] : vector<8x128xf32> to vector<8xf32>
    %338 = vector.shape_cast %337 : vector<8xf32> to vector<8x1xf32>
    %339 = arith.mulf %334, %334 : vector<8x128xf32>
    %cst_106 = arith.constant dense<0.000000e+00> : vector<8xf32>
    %340 = vector.multi_reduction <add>, %339, %cst_106 [1] : vector<8x128xf32> to vector<8xf32>
    %341 = vector.shape_cast %340 : vector<8xf32> to vector<8x1xf32>
    %cst_107 = arith.constant 7.812500e-03 : f32
    %342 = vector.broadcast %cst_107 : f32 to vector<8x1xf32>
    %343 = arith.mulf %338, %342 : vector<8x1xf32>
    %cst_108 = arith.constant 7.812500e-03 : f32
    %344 = vector.broadcast %cst_108 : f32 to vector<8x1xf32>
    %345 = arith.mulf %341, %344 : vector<8x1xf32>
    %346 = arith.mulf %343, %343 : vector<8x1xf32>
    %347 = arith.subf %345, %346 : vector<8x1xf32>
    %348 = vector.broadcast %343 : vector<8x1xf32> to vector<8x128xf32>
    %349 = arith.subf %334, %348 : vector<8x128xf32>
    %cst_109 = arith.constant 9.99999974E-6 : f32
    %350 = vector.broadcast %cst_109 : f32 to vector<8x1xf32>
    %351 = arith.addf %347, %350 : vector<8x1xf32>
    %352 = math.rsqrt %351 : vector<8x1xf32>
    %353 = vector.broadcast %352 : vector<8x1xf32> to vector<8x128xf32>
    %354 = arith.mulf %349, %353 : vector<8x128xf32>
    %355 = vector.broadcast %335 : vector<1x128xf32> to vector<8x128xf32>
    %356 = arith.mulf %354, %355 : vector<8x128xf32>
    %357 = vector.broadcast %336 : vector<1x128xf32> to vector<8x128xf32>
    %358 = arith.addf %356, %357 : vector<8x128xf32>
    %c0_110 = arith.constant 0 : index
    %c0_111 = arith.constant 0 : index
    %359 = vector.load %arg1[%c0_110, %c0_111] : memref<8x128xf32, #tpu.memory_space<vmem>>, vector<8x128xf32>
    %c0_112 = arith.constant 0 : index
    %c0_113 = arith.constant 0 : index
    %c0_114 = arith.constant 0 : index
    %360 = vector.load %arg4[%c0_112, %c0_113, %c0_114] : memref<2x128x1280xbf16, #tpu.memory_space<vmem>>, vector<1x128x1280xbf16>
    %361 = vector.shape_cast %360 : vector<1x128x1280xbf16> to vector<128x1280xbf16>
    %362 = vector.extract_strided_slice %361 {offsets = [0, 0], sizes = [128, 384], strides = [1, 1]} : vector<128x1280xbf16> to vector<128x384xbf16>
    %c19 = arith.constant 19 : index
    %c0_115 = arith.constant 0 : index
    %363 = vector.load %arg6[%c19, %c0_115] : memref<48x384xf32, #tpu.memory_space<vmem>>, vector<1x384xf32>
    %364 = arith.truncf %359 : vector<8x128xf32> to vector<8x128xbf16>
    %cst_116 = arith.constant dense<0.000000e+00> : vector<8x384xf32>
    %365 = tpu.matmul %364, %362, %cst_116 {dimension_numbers = #tpu.dot_dimension_numbers<[1], [0], [0], [1], [0, 0, 1, 1], [], []>} : vector<8x128xbf16>, vector<128x384xbf16>, vector<8x384xf32> -> vector<8x384xf32>
    %366 = vector.broadcast %363 : vector<1x384xf32> to vector<8x384xf32>
    %367 = arith.addf %365, %366 : vector<8x384xf32>
    %368 = vector.extract_strided_slice %367 {offsets = [0, 0], sizes = [8, 128], strides = [1, 1]} : vector<8x384xf32> to vector<8x128xf32>
    %369 = vector.extract_strided_slice %367 {offsets = [0, 128], sizes = [8, 128], strides = [1, 1]} : vector<8x384xf32> to vector<8x128xf32>
    %370 = vector.extract_strided_slice %367 {offsets = [0, 256], sizes = [8, 128], strides = [1, 1]} : vector<8x384xf32> to vector<8x128xf32>
    %371 = vector.extract_strided_slice %361 {offsets = [0, 384], sizes = [128, 128], strides = [1, 1]} : vector<128x1280xbf16> to vector<128x128xbf16>
    %c20 = arith.constant 20 : index
    %c0_117 = arith.constant 0 : index
    %372 = vector.load %arg6[%c20, %c0_117] : memref<48x384xf32, #tpu.memory_space<vmem>>, vector<1x128xf32>
    %cst_118 = arith.constant 0.176776692 : f32
    %373 = vector.broadcast %cst_118 : f32 to vector<8x128xf32>
    %374 = arith.mulf %368, %373 : vector<8x128xf32>
    %375 = arith.truncf %374 : vector<8x128xf32> to vector<8x128xbf16>
    %376 = arith.truncf %369 : vector<8x128xf32> to vector<8x128xbf16>
    %377 = arith.truncf %370 : vector<8x128xf32> to vector<8x128xbf16>
    %378 = vector.extract_strided_slice %375 {offsets = [0, 0], sizes = [8, 32], strides = [1, 1]} : vector<8x128xbf16> to vector<8x32xbf16>
    %379 = vector.extract_strided_slice %376 {offsets = [0, 0], sizes = [8, 32], strides = [1, 1]} : vector<8x128xbf16> to vector<8x32xbf16>
    %cst_119 = arith.constant dense<0.000000e+00> : vector<8x8xf32>
    %380 = tpu.matmul %378, %379, %cst_119 {dimension_numbers = #tpu.dot_dimension_numbers<[1], [1], [0], [0], [0, 0, 1, 0], [], []>} : vector<8x32xbf16>, vector<8x32xbf16>, vector<8x8xf32> -> vector<8x8xf32>
    %381 = vector.extract_strided_slice %375 {offsets = [0, 32], sizes = [8, 32], strides = [1, 1]} : vector<8x128xbf16> to vector<8x32xbf16>
    %382 = vector.extract_strided_slice %376 {offsets = [0, 32], sizes = [8, 32], strides = [1, 1]} : vector<8x128xbf16> to vector<8x32xbf16>
    %cst_120 = arith.constant dense<0.000000e+00> : vector<8x8xf32>
    %383 = tpu.matmul %381, %382, %cst_120 {dimension_numbers = #tpu.dot_dimension_numbers<[1], [1], [0], [0], [0, 0, 1, 0], [], []>} : vector<8x32xbf16>, vector<8x32xbf16>, vector<8x8xf32> -> vector<8x8xf32>
    %384 = vector.extract_strided_slice %375 {offsets = [0, 64], sizes = [8, 32], strides = [1, 1]} : vector<8x128xbf16> to vector<8x32xbf16>
    %385 = vector.extract_strided_slice %376 {offsets = [0, 64], sizes = [8, 32], strides = [1, 1]} : vector<8x128xbf16> to vector<8x32xbf16>
    %cst_121 = arith.constant dense<0.000000e+00> : vector<8x8xf32>
    %386 = tpu.matmul %384, %385, %cst_121 {dimension_numbers = #tpu.dot_dimension_numbers<[1], [1], [0], [0], [0, 0, 1, 0], [], []>} : vector<8x32xbf16>, vector<8x32xbf16>, vector<8x8xf32> -> vector<8x8xf32>
    %387 = vector.extract_strided_slice %375 {offsets = [0, 96], sizes = [8, 32], strides = [1, 1]} : vector<8x128xbf16> to vector<8x32xbf16>
    %388 = vector.extract_strided_slice %376 {offsets = [0, 96], sizes = [8, 32], strides = [1, 1]} : vector<8x128xbf16> to vector<8x32xbf16>
    %cst_122 = arith.constant dense<0.000000e+00> : vector<8x8xf32>
    %389 = tpu.matmul %387, %388, %cst_122 {dimension_numbers = #tpu.dot_dimension_numbers<[1], [1], [0], [0], [0, 0, 1, 0], [], []>} : vector<8x32xbf16>, vector<8x32xbf16>, vector<8x8xf32> -> vector<8x8xf32>
    %cst_123 = arith.constant dense<0xFF800000> : vector<8xf32>
    %390 = vector.multi_reduction <maximumf>, %380, %cst_123 [1] : vector<8x8xf32> to vector<8xf32>
    %391 = vector.shape_cast %390 : vector<8xf32> to vector<8x1xf32>
    %cst_124 = arith.constant dense<0xFF800000> : vector<8xf32>
    %392 = vector.multi_reduction <maximumf>, %383, %cst_124 [1] : vector<8x8xf32> to vector<8xf32>
    %393 = vector.shape_cast %392 : vector<8xf32> to vector<8x1xf32>
    %cst_125 = arith.constant dense<0xFF800000> : vector<8xf32>
    %394 = vector.multi_reduction <maximumf>, %386, %cst_125 [1] : vector<8x8xf32> to vector<8xf32>
    %395 = vector.shape_cast %394 : vector<8xf32> to vector<8x1xf32>
    %cst_126 = arith.constant dense<0xFF800000> : vector<8xf32>
    %396 = vector.multi_reduction <maximumf>, %389, %cst_126 [1] : vector<8x8xf32> to vector<8xf32>
    %397 = vector.shape_cast %396 : vector<8xf32> to vector<8x1xf32>
    %398 = vector.broadcast %391 : vector<8x1xf32> to vector<8x8xf32>
    %399 = arith.subf %380, %398 : vector<8x8xf32>
    %400 = math.exp %399 : vector<8x8xf32>
    %401 = vector.broadcast %393 : vector<8x1xf32> to vector<8x8xf32>
    %402 = arith.subf %383, %401 : vector<8x8xf32>
    %403 = math.exp %402 : vector<8x8xf32>
    %404 = vector.broadcast %395 : vector<8x1xf32> to vector<8x8xf32>
    %405 = arith.subf %386, %404 : vector<8x8xf32>
    %406 = math.exp %405 : vector<8x8xf32>
    %407 = vector.broadcast %397 : vector<8x1xf32> to vector<8x8xf32>
    %408 = arith.subf %389, %407 : vector<8x8xf32>
    %409 = math.exp %408 : vector<8x8xf32>
    %cst_127 = arith.constant dense<0.000000e+00> : vector<8xf32>
    %410 = vector.multi_reduction <add>, %400, %cst_127 [1] : vector<8x8xf32> to vector<8xf32>
    %411 = vector.shape_cast %410 : vector<8xf32> to vector<8x1xf32>
    %cst_128 = arith.constant dense<0.000000e+00> : vector<8xf32>
    %412 = vector.multi_reduction <add>, %403, %cst_128 [1] : vector<8x8xf32> to vector<8xf32>
    %413 = vector.shape_cast %412 : vector<8xf32> to vector<8x1xf32>
    %cst_129 = arith.constant dense<0.000000e+00> : vector<8xf32>
    %414 = vector.multi_reduction <add>, %406, %cst_129 [1] : vector<8x8xf32> to vector<8xf32>
    %415 = vector.shape_cast %414 : vector<8xf32> to vector<8x1xf32>
    %cst_130 = arith.constant dense<0.000000e+00> : vector<8xf32>
    %416 = vector.multi_reduction <add>, %409, %cst_130 [1] : vector<8x8xf32> to vector<8xf32>
    %417 = vector.shape_cast %416 : vector<8xf32> to vector<8x1xf32>
    %418 = tpu.reciprocal %411 {approx = true} : vector<8x1xf32> -> vector<8x1xf32>
    %419 = tpu.reciprocal %413 {approx = true} : vector<8x1xf32> -> vector<8x1xf32>
    %420 = tpu.reciprocal %415 {approx = true} : vector<8x1xf32> -> vector<8x1xf32>
    %421 = tpu.reciprocal %417 {approx = true} : vector<8x1xf32> -> vector<8x1xf32>
    %422 = vector.broadcast %418 : vector<8x1xf32> to vector<8x8xf32>
    %423 = arith.mulf %400, %422 : vector<8x8xf32>
    %424 = arith.truncf %423 : vector<8x8xf32> to vector<8x8xbf16>
    %425 = vector.broadcast %419 : vector<8x1xf32> to vector<8x8xf32>
    %426 = arith.mulf %403, %425 : vector<8x8xf32>
    %427 = arith.truncf %426 : vector<8x8xf32> to vector<8x8xbf16>
    %428 = vector.broadcast %420 : vector<8x1xf32> to vector<8x8xf32>
    %429 = arith.mulf %406, %428 : vector<8x8xf32>
    %430 = arith.truncf %429 : vector<8x8xf32> to vector<8x8xbf16>
    %431 = vector.broadcast %421 : vector<8x1xf32> to vector<8x8xf32>
    %432 = arith.mulf %409, %431 : vector<8x8xf32>
    %433 = arith.truncf %432 : vector<8x8xf32> to vector<8x8xbf16>
    %434 = vector.extract_strided_slice %377 {offsets = [0, 0], sizes = [8, 32], strides = [1, 1]} : vector<8x128xbf16> to vector<8x32xbf16>
    %cst_131 = arith.constant dense<0.000000e+00> : vector<8x32xf32>
    %435 = tpu.matmul %424, %434, %cst_131 {dimension_numbers = #tpu.dot_dimension_numbers<[1], [0], [0], [1], [0, 0, 1, 1], [], []>} : vector<8x8xbf16>, vector<8x32xbf16>, vector<8x32xf32> -> vector<8x32xf32>
    %436 = arith.truncf %435 : vector<8x32xf32> to vector<8x32xbf16>
    %437 = vector.extract_strided_slice %371 {offsets = [0, 0], sizes = [32, 128], strides = [1, 1]} : vector<128x128xbf16> to vector<32x128xbf16>
    %cst_132 = arith.constant dense<0.000000e+00> : vector<8x128xf32>
    %438 = tpu.matmul %436, %437, %cst_132 {dimension_numbers = #tpu.dot_dimension_numbers<[1], [0], [0], [1], [0, 0, 1, 1], [], []>} : vector<8x32xbf16>, vector<32x128xbf16>, vector<8x128xf32> -> vector<8x128xf32>
    %439 = vector.broadcast %372 : vector<1x128xf32> to vector<8x128xf32>
    %440 = arith.addf %439, %438 : vector<8x128xf32>
    %441 = vector.extract_strided_slice %377 {offsets = [0, 32], sizes = [8, 32], strides = [1, 1]} : vector<8x128xbf16> to vector<8x32xbf16>
    %cst_133 = arith.constant dense<0.000000e+00> : vector<8x32xf32>
    %442 = tpu.matmul %427, %441, %cst_133 {dimension_numbers = #tpu.dot_dimension_numbers<[1], [0], [0], [1], [0, 0, 1, 1], [], []>} : vector<8x8xbf16>, vector<8x32xbf16>, vector<8x32xf32> -> vector<8x32xf32>
    %443 = arith.truncf %442 : vector<8x32xf32> to vector<8x32xbf16>
    %444 = vector.extract_strided_slice %371 {offsets = [32, 0], sizes = [32, 128], strides = [1, 1]} : vector<128x128xbf16> to vector<32x128xbf16>
    %cst_134 = arith.constant dense<0.000000e+00> : vector<8x128xf32>
    %445 = tpu.matmul %443, %444, %cst_134 {dimension_numbers = #tpu.dot_dimension_numbers<[1], [0], [0], [1], [0, 0, 1, 1], [], []>} : vector<8x32xbf16>, vector<32x128xbf16>, vector<8x128xf32> -> vector<8x128xf32>
    %446 = arith.addf %440, %445 : vector<8x128xf32>
    %447 = vector.extract_strided_slice %377 {offsets = [0, 64], sizes = [8, 32], strides = [1, 1]} : vector<8x128xbf16> to vector<8x32xbf16>
    %cst_135 = arith.constant dense<0.000000e+00> : vector<8x32xf32>
    %448 = tpu.matmul %430, %447, %cst_135 {dimension_numbers = #tpu.dot_dimension_numbers<[1], [0], [0], [1], [0, 0, 1, 1], [], []>} : vector<8x8xbf16>, vector<8x32xbf16>, vector<8x32xf32> -> vector<8x32xf32>
    %449 = arith.truncf %448 : vector<8x32xf32> to vector<8x32xbf16>
    %450 = vector.extract_strided_slice %371 {offsets = [64, 0], sizes = [32, 128], strides = [1, 1]} : vector<128x128xbf16> to vector<32x128xbf16>
    %cst_136 = arith.constant dense<0.000000e+00> : vector<8x128xf32>
    %451 = tpu.matmul %449, %450, %cst_136 {dimension_numbers = #tpu.dot_dimension_numbers<[1], [0], [0], [1], [0, 0, 1, 1], [], []>} : vector<8x32xbf16>, vector<32x128xbf16>, vector<8x128xf32> -> vector<8x128xf32>
    %452 = arith.addf %446, %451 : vector<8x128xf32>
    %453 = vector.extract_strided_slice %377 {offsets = [0, 96], sizes = [8, 32], strides = [1, 1]} : vector<8x128xbf16> to vector<8x32xbf16>
    %cst_137 = arith.constant dense<0.000000e+00> : vector<8x32xf32>
    %454 = tpu.matmul %433, %453, %cst_137 {dimension_numbers = #tpu.dot_dimension_numbers<[1], [0], [0], [1], [0, 0, 1, 1], [], []>} : vector<8x8xbf16>, vector<8x32xbf16>, vector<8x32xf32> -> vector<8x32xf32>
    %455 = arith.truncf %454 : vector<8x32xf32> to vector<8x32xbf16>
    %456 = vector.extract_strided_slice %371 {offsets = [96, 0], sizes = [32, 128], strides = [1, 1]} : vector<128x128xbf16> to vector<32x128xbf16>
    %cst_138 = arith.constant dense<0.000000e+00> : vector<8x128xf32>
    %457 = tpu.matmul %455, %456, %cst_138 {dimension_numbers = #tpu.dot_dimension_numbers<[1], [0], [0], [1], [0, 0, 1, 1], [], []>} : vector<8x32xbf16>, vector<32x128xbf16>, vector<8x128xf32> -> vector<8x128xf32>
    %458 = arith.addf %452, %457 : vector<8x128xf32>
    %459 = arith.addf %359, %458 : vector<8x128xf32>
    %c21 = arith.constant 21 : index
    %c0_139 = arith.constant 0 : index
    %460 = vector.load %arg6[%c21, %c0_139] : memref<48x384xf32, #tpu.memory_space<vmem>>, vector<1x128xf32>
    %c22 = arith.constant 22 : index
    %c0_140 = arith.constant 0 : index
    %461 = vector.load %arg6[%c22, %c0_140] : memref<48x384xf32, #tpu.memory_space<vmem>>, vector<1x128xf32>
    %cst_141 = arith.constant dense<0.000000e+00> : vector<8xf32>
    %462 = vector.multi_reduction <add>, %459, %cst_141 [1] : vector<8x128xf32> to vector<8xf32>
    %463 = vector.shape_cast %462 : vector<8xf32> to vector<8x1xf32>
    %464 = arith.mulf %459, %459 : vector<8x128xf32>
    %cst_142 = arith.constant dense<0.000000e+00> : vector<8xf32>
    %465 = vector.multi_reduction <add>, %464, %cst_142 [1] : vector<8x128xf32> to vector<8xf32>
    %466 = vector.shape_cast %465 : vector<8xf32> to vector<8x1xf32>
    %cst_143 = arith.constant 7.812500e-03 : f32
    %467 = vector.broadcast %cst_143 : f32 to vector<8x1xf32>
    %468 = arith.mulf %463, %467 : vector<8x1xf32>
    %cst_144 = arith.constant 7.812500e-03 : f32
    %469 = vector.broadcast %cst_144 : f32 to vector<8x1xf32>
    %470 = arith.mulf %466, %469 : vector<8x1xf32>
    %471 = arith.mulf %468, %468 : vector<8x1xf32>
    %472 = arith.subf %470, %471 : vector<8x1xf32>
    %473 = vector.broadcast %468 : vector<8x1xf32> to vector<8x128xf32>
    %474 = arith.subf %459, %473 : vector<8x128xf32>
    %cst_145 = arith.constant 9.99999974E-6 : f32
    %475 = vector.broadcast %cst_145 : f32 to vector<8x1xf32>
    %476 = arith.addf %472, %475 : vector<8x1xf32>
    %477 = math.rsqrt %476 : vector<8x1xf32>
    %478 = vector.broadcast %477 : vector<8x1xf32> to vector<8x128xf32>
    %479 = arith.mulf %474, %478 : vector<8x128xf32>
    %480 = vector.broadcast %460 : vector<1x128xf32> to vector<8x128xf32>
    %481 = arith.mulf %479, %480 : vector<8x128xf32>
    %482 = vector.broadcast %461 : vector<1x128xf32> to vector<8x128xf32>
    %483 = arith.addf %481, %482 : vector<8x128xf32>
    %484 = vector.extract_strided_slice %361 {offsets = [0, 512], sizes = [128, 128], strides = [1, 1]} : vector<128x1280xbf16> to vector<128x128xbf16>
    %c23 = arith.constant 23 : index
    %c0_146 = arith.constant 0 : index
    %485 = vector.load %arg6[%c23, %c0_146] : memref<48x384xf32, #tpu.memory_space<vmem>>, vector<1x128xf32>
    %486 = arith.truncf %483 : vector<8x128xf32> to vector<8x128xbf16>
    %cst_147 = arith.constant dense<0.000000e+00> : vector<8x128xf32>
    %487 = tpu.matmul %486, %484, %cst_147 {dimension_numbers = #tpu.dot_dimension_numbers<[1], [0], [0], [1], [0, 0, 1, 1], [], []>} : vector<8x128xbf16>, vector<128x128xbf16>, vector<8x128xf32> -> vector<8x128xf32>
    %488 = vector.broadcast %485 : vector<1x128xf32> to vector<8x128xf32>
    %489 = arith.addf %487, %488 : vector<8x128xf32>
    %490 = vector.extract_strided_slice %361 {offsets = [0, 640], sizes = [128, 256], strides = [1, 1]} : vector<128x1280xbf16> to vector<128x256xbf16>
    %c24 = arith.constant 24 : index
    %c0_148 = arith.constant 0 : index
    %491 = vector.load %arg6[%c24, %c0_148] : memref<48x384xf32, #tpu.memory_space<vmem>>, vector<1x256xf32>
    %492 = arith.truncf %358 : vector<8x128xf32> to vector<8x128xbf16>
    %cst_149 = arith.constant dense<0.000000e+00> : vector<8x256xf32>
    %493 = tpu.matmul %492, %490, %cst_149 {dimension_numbers = #tpu.dot_dimension_numbers<[1], [0], [0], [1], [0, 0, 1, 1], [], []>} : vector<8x128xbf16>, vector<128x256xbf16>, vector<8x256xf32> -> vector<8x256xf32>
    %494 = vector.broadcast %491 : vector<1x256xf32> to vector<8x256xf32>
    %495 = arith.addf %493, %494 : vector<8x256xf32>
    %496 = vector.extract_strided_slice %495 {offsets = [0, 0], sizes = [8, 128], strides = [1, 1]} : vector<8x256xf32> to vector<8x128xf32>
    %497 = vector.extract_strided_slice %495 {offsets = [0, 128], sizes = [8, 128], strides = [1, 1]} : vector<8x256xf32> to vector<8x128xf32>
    %498 = vector.extract_strided_slice %361 {offsets = [0, 896], sizes = [128, 128], strides = [1, 1]} : vector<128x1280xbf16> to vector<128x128xbf16>
    %c25 = arith.constant 25 : index
    %c0_150 = arith.constant 0 : index
    %499 = vector.load %arg6[%c25, %c0_150] : memref<48x384xf32, #tpu.memory_space<vmem>>, vector<1x128xf32>
    %cst_151 = arith.constant 0.176776692 : f32
    %500 = vector.broadcast %cst_151 : f32 to vector<8x128xf32>
    %501 = arith.mulf %489, %500 : vector<8x128xf32>
    %502 = arith.truncf %501 : vector<8x128xf32> to vector<8x128xbf16>
    %503 = arith.truncf %496 : vector<8x128xf32> to vector<8x128xbf16>
    %504 = arith.truncf %497 : vector<8x128xf32> to vector<8x128xbf16>
    %505 = vector.extract_strided_slice %502 {offsets = [0, 0], sizes = [8, 32], strides = [1, 1]} : vector<8x128xbf16> to vector<8x32xbf16>
    %506 = vector.extract_strided_slice %503 {offsets = [0, 0], sizes = [8, 32], strides = [1, 1]} : vector<8x128xbf16> to vector<8x32xbf16>
    %cst_152 = arith.constant dense<0.000000e+00> : vector<8x8xf32>
    %507 = tpu.matmul %505, %506, %cst_152 {dimension_numbers = #tpu.dot_dimension_numbers<[1], [1], [0], [0], [0, 0, 1, 0], [], []>} : vector<8x32xbf16>, vector<8x32xbf16>, vector<8x8xf32> -> vector<8x8xf32>
    %508 = vector.extract_strided_slice %502 {offsets = [0, 32], sizes = [8, 32], strides = [1, 1]} : vector<8x128xbf16> to vector<8x32xbf16>
    %509 = vector.extract_strided_slice %503 {offsets = [0, 32], sizes = [8, 32], strides = [1, 1]} : vector<8x128xbf16> to vector<8x32xbf16>
    %cst_153 = arith.constant dense<0.000000e+00> : vector<8x8xf32>
    %510 = tpu.matmul %508, %509, %cst_153 {dimension_numbers = #tpu.dot_dimension_numbers<[1], [1], [0], [0], [0, 0, 1, 0], [], []>} : vector<8x32xbf16>, vector<8x32xbf16>, vector<8x8xf32> -> vector<8x8xf32>
    %511 = vector.extract_strided_slice %502 {offsets = [0, 64], sizes = [8, 32], strides = [1, 1]} : vector<8x128xbf16> to vector<8x32xbf16>
    %512 = vector.extract_strided_slice %503 {offsets = [0, 64], sizes = [8, 32], strides = [1, 1]} : vector<8x128xbf16> to vector<8x32xbf16>
    %cst_154 = arith.constant dense<0.000000e+00> : vector<8x8xf32>
    %513 = tpu.matmul %511, %512, %cst_154 {dimension_numbers = #tpu.dot_dimension_numbers<[1], [1], [0], [0], [0, 0, 1, 0], [], []>} : vector<8x32xbf16>, vector<8x32xbf16>, vector<8x8xf32> -> vector<8x8xf32>
    %514 = vector.extract_strided_slice %502 {offsets = [0, 96], sizes = [8, 32], strides = [1, 1]} : vector<8x128xbf16> to vector<8x32xbf16>
    %515 = vector.extract_strided_slice %503 {offsets = [0, 96], sizes = [8, 32], strides = [1, 1]} : vector<8x128xbf16> to vector<8x32xbf16>
    %cst_155 = arith.constant dense<0.000000e+00> : vector<8x8xf32>
    %516 = tpu.matmul %514, %515, %cst_155 {dimension_numbers = #tpu.dot_dimension_numbers<[1], [1], [0], [0], [0, 0, 1, 0], [], []>} : vector<8x32xbf16>, vector<8x32xbf16>, vector<8x8xf32> -> vector<8x8xf32>
    %cst_156 = arith.constant dense<0xFF800000> : vector<8xf32>
    %517 = vector.multi_reduction <maximumf>, %507, %cst_156 [1] : vector<8x8xf32> to vector<8xf32>
    %518 = vector.shape_cast %517 : vector<8xf32> to vector<8x1xf32>
    %cst_157 = arith.constant dense<0xFF800000> : vector<8xf32>
    %519 = vector.multi_reduction <maximumf>, %510, %cst_157 [1] : vector<8x8xf32> to vector<8xf32>
    %520 = vector.shape_cast %519 : vector<8xf32> to vector<8x1xf32>
    %cst_158 = arith.constant dense<0xFF800000> : vector<8xf32>
    %521 = vector.multi_reduction <maximumf>, %513, %cst_158 [1] : vector<8x8xf32> to vector<8xf32>
    %522 = vector.shape_cast %521 : vector<8xf32> to vector<8x1xf32>
    %cst_159 = arith.constant dense<0xFF800000> : vector<8xf32>
    %523 = vector.multi_reduction <maximumf>, %516, %cst_159 [1] : vector<8x8xf32> to vector<8xf32>
    %524 = vector.shape_cast %523 : vector<8xf32> to vector<8x1xf32>
    %525 = vector.broadcast %518 : vector<8x1xf32> to vector<8x8xf32>
    %526 = arith.subf %507, %525 : vector<8x8xf32>
    %527 = math.exp %526 : vector<8x8xf32>
    %528 = vector.broadcast %520 : vector<8x1xf32> to vector<8x8xf32>
    %529 = arith.subf %510, %528 : vector<8x8xf32>
    %530 = math.exp %529 : vector<8x8xf32>
    %531 = vector.broadcast %522 : vector<8x1xf32> to vector<8x8xf32>
    %532 = arith.subf %513, %531 : vector<8x8xf32>
    %533 = math.exp %532 : vector<8x8xf32>
    %534 = vector.broadcast %524 : vector<8x1xf32> to vector<8x8xf32>
    %535 = arith.subf %516, %534 : vector<8x8xf32>
    %536 = math.exp %535 : vector<8x8xf32>
    %cst_160 = arith.constant dense<0.000000e+00> : vector<8xf32>
    %537 = vector.multi_reduction <add>, %527, %cst_160 [1] : vector<8x8xf32> to vector<8xf32>
    %538 = vector.shape_cast %537 : vector<8xf32> to vector<8x1xf32>
    %cst_161 = arith.constant dense<0.000000e+00> : vector<8xf32>
    %539 = vector.multi_reduction <add>, %530, %cst_161 [1] : vector<8x8xf32> to vector<8xf32>
    %540 = vector.shape_cast %539 : vector<8xf32> to vector<8x1xf32>
    %cst_162 = arith.constant dense<0.000000e+00> : vector<8xf32>
    %541 = vector.multi_reduction <add>, %533, %cst_162 [1] : vector<8x8xf32> to vector<8xf32>
    %542 = vector.shape_cast %541 : vector<8xf32> to vector<8x1xf32>
    %cst_163 = arith.constant dense<0.000000e+00> : vector<8xf32>
    %543 = vector.multi_reduction <add>, %536, %cst_163 [1] : vector<8x8xf32> to vector<8xf32>
    %544 = vector.shape_cast %543 : vector<8xf32> to vector<8x1xf32>
    %545 = tpu.reciprocal %538 {approx = true} : vector<8x1xf32> -> vector<8x1xf32>
    %546 = tpu.reciprocal %540 {approx = true} : vector<8x1xf32> -> vector<8x1xf32>
    %547 = tpu.reciprocal %542 {approx = true} : vector<8x1xf32> -> vector<8x1xf32>
    %548 = tpu.reciprocal %544 {approx = true} : vector<8x1xf32> -> vector<8x1xf32>
    %549 = vector.broadcast %545 : vector<8x1xf32> to vector<8x8xf32>
    %550 = arith.mulf %527, %549 : vector<8x8xf32>
    %551 = arith.truncf %550 : vector<8x8xf32> to vector<8x8xbf16>
    %552 = vector.broadcast %546 : vector<8x1xf32> to vector<8x8xf32>
    %553 = arith.mulf %530, %552 : vector<8x8xf32>
    %554 = arith.truncf %553 : vector<8x8xf32> to vector<8x8xbf16>
    %555 = vector.broadcast %547 : vector<8x1xf32> to vector<8x8xf32>
    %556 = arith.mulf %533, %555 : vector<8x8xf32>
    %557 = arith.truncf %556 : vector<8x8xf32> to vector<8x8xbf16>
    %558 = vector.broadcast %548 : vector<8x1xf32> to vector<8x8xf32>
    %559 = arith.mulf %536, %558 : vector<8x8xf32>
    %560 = arith.truncf %559 : vector<8x8xf32> to vector<8x8xbf16>
    %561 = vector.extract_strided_slice %504 {offsets = [0, 0], sizes = [8, 32], strides = [1, 1]} : vector<8x128xbf16> to vector<8x32xbf16>
    %cst_164 = arith.constant dense<0.000000e+00> : vector<8x32xf32>
    %562 = tpu.matmul %551, %561, %cst_164 {dimension_numbers = #tpu.dot_dimension_numbers<[1], [0], [0], [1], [0, 0, 1, 1], [], []>} : vector<8x8xbf16>, vector<8x32xbf16>, vector<8x32xf32> -> vector<8x32xf32>
    %563 = arith.truncf %562 : vector<8x32xf32> to vector<8x32xbf16>
    %564 = vector.extract_strided_slice %498 {offsets = [0, 0], sizes = [32, 128], strides = [1, 1]} : vector<128x128xbf16> to vector<32x128xbf16>
    %cst_165 = arith.constant dense<0.000000e+00> : vector<8x128xf32>
    %565 = tpu.matmul %563, %564, %cst_165 {dimension_numbers = #tpu.dot_dimension_numbers<[1], [0], [0], [1], [0, 0, 1, 1], [], []>} : vector<8x32xbf16>, vector<32x128xbf16>, vector<8x128xf32> -> vector<8x128xf32>
    %566 = vector.broadcast %499 : vector<1x128xf32> to vector<8x128xf32>
    %567 = arith.addf %566, %565 : vector<8x128xf32>
    %568 = vector.extract_strided_slice %504 {offsets = [0, 32], sizes = [8, 32], strides = [1, 1]} : vector<8x128xbf16> to vector<8x32xbf16>
    %cst_166 = arith.constant dense<0.000000e+00> : vector<8x32xf32>
    %569 = tpu.matmul %554, %568, %cst_166 {dimension_numbers = #tpu.dot_dimension_numbers<[1], [0], [0], [1], [0, 0, 1, 1], [], []>} : vector<8x8xbf16>, vector<8x32xbf16>, vector<8x32xf32> -> vector<8x32xf32>
    %570 = arith.truncf %569 : vector<8x32xf32> to vector<8x32xbf16>
    %571 = vector.extract_strided_slice %498 {offsets = [32, 0], sizes = [32, 128], strides = [1, 1]} : vector<128x128xbf16> to vector<32x128xbf16>
    %cst_167 = arith.constant dense<0.000000e+00> : vector<8x128xf32>
    %572 = tpu.matmul %570, %571, %cst_167 {dimension_numbers = #tpu.dot_dimension_numbers<[1], [0], [0], [1], [0, 0, 1, 1], [], []>} : vector<8x32xbf16>, vector<32x128xbf16>, vector<8x128xf32> -> vector<8x128xf32>
    %573 = arith.addf %567, %572 : vector<8x128xf32>
    %574 = vector.extract_strided_slice %504 {offsets = [0, 64], sizes = [8, 32], strides = [1, 1]} : vector<8x128xbf16> to vector<8x32xbf16>
    %cst_168 = arith.constant dense<0.000000e+00> : vector<8x32xf32>
    %575 = tpu.matmul %557, %574, %cst_168 {dimension_numbers = #tpu.dot_dimension_numbers<[1], [0], [0], [1], [0, 0, 1, 1], [], []>} : vector<8x8xbf16>, vector<8x32xbf16>, vector<8x32xf32> -> vector<8x32xf32>
    %576 = arith.truncf %575 : vector<8x32xf32> to vector<8x32xbf16>
    %577 = vector.extract_strided_slice %498 {offsets = [64, 0], sizes = [32, 128], strides = [1, 1]} : vector<128x128xbf16> to vector<32x128xbf16>
    %cst_169 = arith.constant dense<0.000000e+00> : vector<8x128xf32>
    %578 = tpu.matmul %576, %577, %cst_169 {dimension_numbers = #tpu.dot_dimension_numbers<[1], [0], [0], [1], [0, 0, 1, 1], [], []>} : vector<8x32xbf16>, vector<32x128xbf16>, vector<8x128xf32> -> vector<8x128xf32>
    %579 = arith.addf %573, %578 : vector<8x128xf32>
    %580 = vector.extract_strided_slice %504 {offsets = [0, 96], sizes = [8, 32], strides = [1, 1]} : vector<8x128xbf16> to vector<8x32xbf16>
    %cst_170 = arith.constant dense<0.000000e+00> : vector<8x32xf32>
    %581 = tpu.matmul %560, %580, %cst_170 {dimension_numbers = #tpu.dot_dimension_numbers<[1], [0], [0], [1], [0, 0, 1, 1], [], []>} : vector<8x8xbf16>, vector<8x32xbf16>, vector<8x32xf32> -> vector<8x32xf32>
    %582 = arith.truncf %581 : vector<8x32xf32> to vector<8x32xbf16>
    %583 = vector.extract_strided_slice %498 {offsets = [96, 0], sizes = [32, 128], strides = [1, 1]} : vector<128x128xbf16> to vector<32x128xbf16>
    %cst_171 = arith.constant dense<0.000000e+00> : vector<8x128xf32>
    %584 = tpu.matmul %582, %583, %cst_171 {dimension_numbers = #tpu.dot_dimension_numbers<[1], [0], [0], [1], [0, 0, 1, 1], [], []>} : vector<8x32xbf16>, vector<32x128xbf16>, vector<8x128xf32> -> vector<8x128xf32>
    %585 = arith.addf %579, %584 : vector<8x128xf32>
    %586 = arith.addf %483, %585 : vector<8x128xf32>
    %c26 = arith.constant 26 : index
    %c0_172 = arith.constant 0 : index
    %587 = vector.load %arg6[%c26, %c0_172] : memref<48x384xf32, #tpu.memory_space<vmem>>, vector<1x128xf32>
    %c27 = arith.constant 27 : index
    %c0_173 = arith.constant 0 : index
    %588 = vector.load %arg6[%c27, %c0_173] : memref<48x384xf32, #tpu.memory_space<vmem>>, vector<1x128xf32>
    %cst_174 = arith.constant dense<0.000000e+00> : vector<8xf32>
    %589 = vector.multi_reduction <add>, %586, %cst_174 [1] : vector<8x128xf32> to vector<8xf32>
    %590 = vector.shape_cast %589 : vector<8xf32> to vector<8x1xf32>
    %591 = arith.mulf %586, %586 : vector<8x128xf32>
    %cst_175 = arith.constant dense<0.000000e+00> : vector<8xf32>
    %592 = vector.multi_reduction <add>, %591, %cst_175 [1] : vector<8x128xf32> to vector<8xf32>
    %593 = vector.shape_cast %592 : vector<8xf32> to vector<8x1xf32>
    %cst_176 = arith.constant 7.812500e-03 : f32
    %594 = vector.broadcast %cst_176 : f32 to vector<8x1xf32>
    %595 = arith.mulf %590, %594 : vector<8x1xf32>
    %cst_177 = arith.constant 7.812500e-03 : f32
    %596 = vector.broadcast %cst_177 : f32 to vector<8x1xf32>
    %597 = arith.mulf %593, %596 : vector<8x1xf32>
    %598 = arith.mulf %595, %595 : vector<8x1xf32>
    %599 = arith.subf %597, %598 : vector<8x1xf32>
    %600 = vector.broadcast %595 : vector<8x1xf32> to vector<8x128xf32>
    %601 = arith.subf %586, %600 : vector<8x128xf32>
    %cst_178 = arith.constant 9.99999974E-6 : f32
    %602 = vector.broadcast %cst_178 : f32 to vector<8x1xf32>
    %603 = arith.addf %599, %602 : vector<8x1xf32>
    %604 = math.rsqrt %603 : vector<8x1xf32>
    %605 = vector.broadcast %604 : vector<8x1xf32> to vector<8x128xf32>
    %606 = arith.mulf %601, %605 : vector<8x128xf32>
    %607 = vector.broadcast %587 : vector<1x128xf32> to vector<8x128xf32>
    %608 = arith.mulf %606, %607 : vector<8x128xf32>
    %609 = vector.broadcast %588 : vector<1x128xf32> to vector<8x128xf32>
    %610 = arith.addf %608, %609 : vector<8x128xf32>
    %611 = vector.extract_strided_slice %361 {offsets = [0, 1024], sizes = [128, 256], strides = [1, 1]} : vector<128x1280xbf16> to vector<128x256xbf16>
    %c28 = arith.constant 28 : index
    %c0_179 = arith.constant 0 : index
    %612 = vector.load %arg6[%c28, %c0_179] : memref<48x384xf32, #tpu.memory_space<vmem>>, vector<1x256xf32>
    %613 = arith.truncf %610 : vector<8x128xf32> to vector<8x128xbf16>
    %cst_180 = arith.constant dense<0.000000e+00> : vector<8x256xf32>
    %614 = tpu.matmul %613, %611, %cst_180 {dimension_numbers = #tpu.dot_dimension_numbers<[1], [0], [0], [1], [0, 0, 1, 1], [], []>} : vector<8x128xbf16>, vector<128x256xbf16>, vector<8x256xf32> -> vector<8x256xf32>
    %615 = vector.broadcast %612 : vector<1x256xf32> to vector<8x256xf32>
    %616 = arith.addf %614, %615 : vector<8x256xf32>
    %cst_181 = arith.constant 0.000000e+00 : f32
    %617 = vector.broadcast %cst_181 : f32 to vector<8x256xf32>
    %618 = arith.maximumf %616, %617 : vector<8x256xf32>
    %c2_182 = arith.constant 2 : index
    %c0_183 = arith.constant 0 : index
    %c0_184 = arith.constant 0 : index
    %619 = vector.load %arg5[%c2_182, %c0_183, %c0_184] : memref<4x256x128xbf16, #tpu.memory_space<vmem>>, vector<1x256x128xbf16>
    %620 = vector.shape_cast %619 : vector<1x256x128xbf16> to vector<256x128xbf16>
    %c29 = arith.constant 29 : index
    %c0_185 = arith.constant 0 : index
    %621 = vector.load %arg6[%c29, %c0_185] : memref<48x384xf32, #tpu.memory_space<vmem>>, vector<1x128xf32>
    %622 = arith.truncf %618 : vector<8x256xf32> to vector<8x256xbf16>
    %cst_186 = arith.constant dense<0.000000e+00> : vector<8x128xf32>
    %623 = tpu.matmul %622, %620, %cst_186 {dimension_numbers = #tpu.dot_dimension_numbers<[1], [0], [0], [1], [0, 0, 1, 1], [], []>} : vector<8x256xbf16>, vector<256x128xbf16>, vector<8x128xf32> -> vector<8x128xf32>
    %624 = vector.broadcast %621 : vector<1x128xf32> to vector<8x128xf32>
    %625 = arith.addf %623, %624 : vector<8x128xf32>
    %626 = arith.addf %610, %625 : vector<8x128xf32>
    %c30 = arith.constant 30 : index
    %c0_187 = arith.constant 0 : index
    %627 = vector.load %arg6[%c30, %c0_187] : memref<48x384xf32, #tpu.memory_space<vmem>>, vector<1x128xf32>
    %c31 = arith.constant 31 : index
    %c0_188 = arith.constant 0 : index
    %628 = vector.load %arg6[%c31, %c0_188] : memref<48x384xf32, #tpu.memory_space<vmem>>, vector<1x128xf32>
    %cst_189 = arith.constant dense<0.000000e+00> : vector<8xf32>
    %629 = vector.multi_reduction <add>, %626, %cst_189 [1] : vector<8x128xf32> to vector<8xf32>
    %630 = vector.shape_cast %629 : vector<8xf32> to vector<8x1xf32>
    %631 = arith.mulf %626, %626 : vector<8x128xf32>
    %cst_190 = arith.constant dense<0.000000e+00> : vector<8xf32>
    %632 = vector.multi_reduction <add>, %631, %cst_190 [1] : vector<8x128xf32> to vector<8xf32>
    %633 = vector.shape_cast %632 : vector<8xf32> to vector<8x1xf32>
    %cst_191 = arith.constant 7.812500e-03 : f32
    %634 = vector.broadcast %cst_191 : f32 to vector<8x1xf32>
    %635 = arith.mulf %630, %634 : vector<8x1xf32>
    %cst_192 = arith.constant 7.812500e-03 : f32
    %636 = vector.broadcast %cst_192 : f32 to vector<8x1xf32>
    %637 = arith.mulf %633, %636 : vector<8x1xf32>
    %638 = arith.mulf %635, %635 : vector<8x1xf32>
    %639 = arith.subf %637, %638 : vector<8x1xf32>
    %640 = vector.broadcast %635 : vector<8x1xf32> to vector<8x128xf32>
    %641 = arith.subf %626, %640 : vector<8x128xf32>
    %cst_193 = arith.constant 9.99999974E-6 : f32
    %642 = vector.broadcast %cst_193 : f32 to vector<8x1xf32>
    %643 = arith.addf %639, %642 : vector<8x1xf32>
    %644 = math.rsqrt %643 : vector<8x1xf32>
    %645 = vector.broadcast %644 : vector<8x1xf32> to vector<8x128xf32>
    %646 = arith.mulf %641, %645 : vector<8x128xf32>
    %647 = vector.broadcast %627 : vector<1x128xf32> to vector<8x128xf32>
    %648 = arith.mulf %646, %647 : vector<8x128xf32>
    %649 = vector.broadcast %628 : vector<1x128xf32> to vector<8x128xf32>
    %650 = arith.addf %648, %649 : vector<8x128xf32>
    %c1_194 = arith.constant 1 : index
    %c0_195 = arith.constant 0 : index
    %c0_196 = arith.constant 0 : index
    %651 = vector.load %arg4[%c1_194, %c0_195, %c0_196] : memref<2x128x1280xbf16, #tpu.memory_space<vmem>>, vector<1x128x1280xbf16>
    %652 = vector.shape_cast %651 : vector<1x128x1280xbf16> to vector<128x1280xbf16>
    %653 = vector.extract_strided_slice %652 {offsets = [0, 0], sizes = [128, 384], strides = [1, 1]} : vector<128x1280xbf16> to vector<128x384xbf16>
    %c32 = arith.constant 32 : index
    %c0_197 = arith.constant 0 : index
    %654 = vector.load %arg6[%c32, %c0_197] : memref<48x384xf32, #tpu.memory_space<vmem>>, vector<1x384xf32>
    %655 = arith.truncf %650 : vector<8x128xf32> to vector<8x128xbf16>
    %cst_198 = arith.constant dense<0.000000e+00> : vector<8x384xf32>
    %656 = tpu.matmul %655, %653, %cst_198 {dimension_numbers = #tpu.dot_dimension_numbers<[1], [0], [0], [1], [0, 0, 1, 1], [], []>} : vector<8x128xbf16>, vector<128x384xbf16>, vector<8x384xf32> -> vector<8x384xf32>
    %657 = vector.broadcast %654 : vector<1x384xf32> to vector<8x384xf32>
    %658 = arith.addf %656, %657 : vector<8x384xf32>
    %659 = vector.extract_strided_slice %658 {offsets = [0, 0], sizes = [8, 128], strides = [1, 1]} : vector<8x384xf32> to vector<8x128xf32>
    %660 = vector.extract_strided_slice %658 {offsets = [0, 128], sizes = [8, 128], strides = [1, 1]} : vector<8x384xf32> to vector<8x128xf32>
    %661 = vector.extract_strided_slice %658 {offsets = [0, 256], sizes = [8, 128], strides = [1, 1]} : vector<8x384xf32> to vector<8x128xf32>
    %662 = vector.extract_strided_slice %652 {offsets = [0, 384], sizes = [128, 128], strides = [1, 1]} : vector<128x1280xbf16> to vector<128x128xbf16>
    %c33 = arith.constant 33 : index
    %c0_199 = arith.constant 0 : index
    %663 = vector.load %arg6[%c33, %c0_199] : memref<48x384xf32, #tpu.memory_space<vmem>>, vector<1x128xf32>
    %cst_200 = arith.constant 0.176776692 : f32
    %664 = vector.broadcast %cst_200 : f32 to vector<8x128xf32>
    %665 = arith.mulf %659, %664 : vector<8x128xf32>
    %666 = arith.truncf %665 : vector<8x128xf32> to vector<8x128xbf16>
    %667 = arith.truncf %660 : vector<8x128xf32> to vector<8x128xbf16>
    %668 = arith.truncf %661 : vector<8x128xf32> to vector<8x128xbf16>
    %669 = vector.extract_strided_slice %666 {offsets = [0, 0], sizes = [8, 32], strides = [1, 1]} : vector<8x128xbf16> to vector<8x32xbf16>
    %670 = vector.extract_strided_slice %667 {offsets = [0, 0], sizes = [8, 32], strides = [1, 1]} : vector<8x128xbf16> to vector<8x32xbf16>
    %cst_201 = arith.constant dense<0.000000e+00> : vector<8x8xf32>
    %671 = tpu.matmul %669, %670, %cst_201 {dimension_numbers = #tpu.dot_dimension_numbers<[1], [1], [0], [0], [0, 0, 1, 0], [], []>} : vector<8x32xbf16>, vector<8x32xbf16>, vector<8x8xf32> -> vector<8x8xf32>
    %672 = vector.extract_strided_slice %666 {offsets = [0, 32], sizes = [8, 32], strides = [1, 1]} : vector<8x128xbf16> to vector<8x32xbf16>
    %673 = vector.extract_strided_slice %667 {offsets = [0, 32], sizes = [8, 32], strides = [1, 1]} : vector<8x128xbf16> to vector<8x32xbf16>
    %cst_202 = arith.constant dense<0.000000e+00> : vector<8x8xf32>
    %674 = tpu.matmul %672, %673, %cst_202 {dimension_numbers = #tpu.dot_dimension_numbers<[1], [1], [0], [0], [0, 0, 1, 0], [], []>} : vector<8x32xbf16>, vector<8x32xbf16>, vector<8x8xf32> -> vector<8x8xf32>
    %675 = vector.extract_strided_slice %666 {offsets = [0, 64], sizes = [8, 32], strides = [1, 1]} : vector<8x128xbf16> to vector<8x32xbf16>
    %676 = vector.extract_strided_slice %667 {offsets = [0, 64], sizes = [8, 32], strides = [1, 1]} : vector<8x128xbf16> to vector<8x32xbf16>
    %cst_203 = arith.constant dense<0.000000e+00> : vector<8x8xf32>
    %677 = tpu.matmul %675, %676, %cst_203 {dimension_numbers = #tpu.dot_dimension_numbers<[1], [1], [0], [0], [0, 0, 1, 0], [], []>} : vector<8x32xbf16>, vector<8x32xbf16>, vector<8x8xf32> -> vector<8x8xf32>
    %678 = vector.extract_strided_slice %666 {offsets = [0, 96], sizes = [8, 32], strides = [1, 1]} : vector<8x128xbf16> to vector<8x32xbf16>
    %679 = vector.extract_strided_slice %667 {offsets = [0, 96], sizes = [8, 32], strides = [1, 1]} : vector<8x128xbf16> to vector<8x32xbf16>
    %cst_204 = arith.constant dense<0.000000e+00> : vector<8x8xf32>
    %680 = tpu.matmul %678, %679, %cst_204 {dimension_numbers = #tpu.dot_dimension_numbers<[1], [1], [0], [0], [0, 0, 1, 0], [], []>} : vector<8x32xbf16>, vector<8x32xbf16>, vector<8x8xf32> -> vector<8x8xf32>
    %cst_205 = arith.constant dense<0xFF800000> : vector<8xf32>
    %681 = vector.multi_reduction <maximumf>, %671, %cst_205 [1] : vector<8x8xf32> to vector<8xf32>
    %682 = vector.shape_cast %681 : vector<8xf32> to vector<8x1xf32>
    %cst_206 = arith.constant dense<0xFF800000> : vector<8xf32>
    %683 = vector.multi_reduction <maximumf>, %674, %cst_206 [1] : vector<8x8xf32> to vector<8xf32>
    %684 = vector.shape_cast %683 : vector<8xf32> to vector<8x1xf32>
    %cst_207 = arith.constant dense<0xFF800000> : vector<8xf32>
    %685 = vector.multi_reduction <maximumf>, %677, %cst_207 [1] : vector<8x8xf32> to vector<8xf32>
    %686 = vector.shape_cast %685 : vector<8xf32> to vector<8x1xf32>
    %cst_208 = arith.constant dense<0xFF800000> : vector<8xf32>
    %687 = vector.multi_reduction <maximumf>, %680, %cst_208 [1] : vector<8x8xf32> to vector<8xf32>
    %688 = vector.shape_cast %687 : vector<8xf32> to vector<8x1xf32>
    %689 = vector.broadcast %682 : vector<8x1xf32> to vector<8x8xf32>
    %690 = arith.subf %671, %689 : vector<8x8xf32>
    %691 = math.exp %690 : vector<8x8xf32>
    %692 = vector.broadcast %684 : vector<8x1xf32> to vector<8x8xf32>
    %693 = arith.subf %674, %692 : vector<8x8xf32>
    %694 = math.exp %693 : vector<8x8xf32>
    %695 = vector.broadcast %686 : vector<8x1xf32> to vector<8x8xf32>
    %696 = arith.subf %677, %695 : vector<8x8xf32>
    %697 = math.exp %696 : vector<8x8xf32>
    %698 = vector.broadcast %688 : vector<8x1xf32> to vector<8x8xf32>
    %699 = arith.subf %680, %698 : vector<8x8xf32>
    %700 = math.exp %699 : vector<8x8xf32>
    %cst_209 = arith.constant dense<0.000000e+00> : vector<8xf32>
    %701 = vector.multi_reduction <add>, %691, %cst_209 [1] : vector<8x8xf32> to vector<8xf32>
    %702 = vector.shape_cast %701 : vector<8xf32> to vector<8x1xf32>
    %cst_210 = arith.constant dense<0.000000e+00> : vector<8xf32>
    %703 = vector.multi_reduction <add>, %694, %cst_210 [1] : vector<8x8xf32> to vector<8xf32>
    %704 = vector.shape_cast %703 : vector<8xf32> to vector<8x1xf32>
    %cst_211 = arith.constant dense<0.000000e+00> : vector<8xf32>
    %705 = vector.multi_reduction <add>, %697, %cst_211 [1] : vector<8x8xf32> to vector<8xf32>
    %706 = vector.shape_cast %705 : vector<8xf32> to vector<8x1xf32>
    %cst_212 = arith.constant dense<0.000000e+00> : vector<8xf32>
    %707 = vector.multi_reduction <add>, %700, %cst_212 [1] : vector<8x8xf32> to vector<8xf32>
    %708 = vector.shape_cast %707 : vector<8xf32> to vector<8x1xf32>
    %709 = tpu.reciprocal %702 {approx = true} : vector<8x1xf32> -> vector<8x1xf32>
    %710 = tpu.reciprocal %704 {approx = true} : vector<8x1xf32> -> vector<8x1xf32>
    %711 = tpu.reciprocal %706 {approx = true} : vector<8x1xf32> -> vector<8x1xf32>
    %712 = tpu.reciprocal %708 {approx = true} : vector<8x1xf32> -> vector<8x1xf32>
    %713 = vector.broadcast %709 : vector<8x1xf32> to vector<8x8xf32>
    %714 = arith.mulf %691, %713 : vector<8x8xf32>
    %715 = arith.truncf %714 : vector<8x8xf32> to vector<8x8xbf16>
    %716 = vector.broadcast %710 : vector<8x1xf32> to vector<8x8xf32>
    %717 = arith.mulf %694, %716 : vector<8x8xf32>
    %718 = arith.truncf %717 : vector<8x8xf32> to vector<8x8xbf16>
    %719 = vector.broadcast %711 : vector<8x1xf32> to vector<8x8xf32>
    %720 = arith.mulf %697, %719 : vector<8x8xf32>
    %721 = arith.truncf %720 : vector<8x8xf32> to vector<8x8xbf16>
    %722 = vector.broadcast %712 : vector<8x1xf32> to vector<8x8xf32>
    %723 = arith.mulf %700, %722 : vector<8x8xf32>
    %724 = arith.truncf %723 : vector<8x8xf32> to vector<8x8xbf16>
    %725 = vector.extract_strided_slice %668 {offsets = [0, 0], sizes = [8, 32], strides = [1, 1]} : vector<8x128xbf16> to vector<8x32xbf16>
    %cst_213 = arith.constant dense<0.000000e+00> : vector<8x32xf32>
    %726 = tpu.matmul %715, %725, %cst_213 {dimension_numbers = #tpu.dot_dimension_numbers<[1], [0], [0], [1], [0, 0, 1, 1], [], []>} : vector<8x8xbf16>, vector<8x32xbf16>, vector<8x32xf32> -> vector<8x32xf32>
    %727 = arith.truncf %726 : vector<8x32xf32> to vector<8x32xbf16>
    %728 = vector.extract_strided_slice %662 {offsets = [0, 0], sizes = [32, 128], strides = [1, 1]} : vector<128x128xbf16> to vector<32x128xbf16>
    %cst_214 = arith.constant dense<0.000000e+00> : vector<8x128xf32>
    %729 = tpu.matmul %727, %728, %cst_214 {dimension_numbers = #tpu.dot_dimension_numbers<[1], [0], [0], [1], [0, 0, 1, 1], [], []>} : vector<8x32xbf16>, vector<32x128xbf16>, vector<8x128xf32> -> vector<8x128xf32>
    %730 = vector.broadcast %663 : vector<1x128xf32> to vector<8x128xf32>
    %731 = arith.addf %730, %729 : vector<8x128xf32>
    %732 = vector.extract_strided_slice %668 {offsets = [0, 32], sizes = [8, 32], strides = [1, 1]} : vector<8x128xbf16> to vector<8x32xbf16>
    %cst_215 = arith.constant dense<0.000000e+00> : vector<8x32xf32>
    %733 = tpu.matmul %718, %732, %cst_215 {dimension_numbers = #tpu.dot_dimension_numbers<[1], [0], [0], [1], [0, 0, 1, 1], [], []>} : vector<8x8xbf16>, vector<8x32xbf16>, vector<8x32xf32> -> vector<8x32xf32>
    %734 = arith.truncf %733 : vector<8x32xf32> to vector<8x32xbf16>
    %735 = vector.extract_strided_slice %662 {offsets = [32, 0], sizes = [32, 128], strides = [1, 1]} : vector<128x128xbf16> to vector<32x128xbf16>
    %cst_216 = arith.constant dense<0.000000e+00> : vector<8x128xf32>
    %736 = tpu.matmul %734, %735, %cst_216 {dimension_numbers = #tpu.dot_dimension_numbers<[1], [0], [0], [1], [0, 0, 1, 1], [], []>} : vector<8x32xbf16>, vector<32x128xbf16>, vector<8x128xf32> -> vector<8x128xf32>
    %737 = arith.addf %731, %736 : vector<8x128xf32>
    %738 = vector.extract_strided_slice %668 {offsets = [0, 64], sizes = [8, 32], strides = [1, 1]} : vector<8x128xbf16> to vector<8x32xbf16>
    %cst_217 = arith.constant dense<0.000000e+00> : vector<8x32xf32>
    %739 = tpu.matmul %721, %738, %cst_217 {dimension_numbers = #tpu.dot_dimension_numbers<[1], [0], [0], [1], [0, 0, 1, 1], [], []>} : vector<8x8xbf16>, vector<8x32xbf16>, vector<8x32xf32> -> vector<8x32xf32>
    %740 = arith.truncf %739 : vector<8x32xf32> to vector<8x32xbf16>
    %741 = vector.extract_strided_slice %662 {offsets = [64, 0], sizes = [32, 128], strides = [1, 1]} : vector<128x128xbf16> to vector<32x128xbf16>
    %cst_218 = arith.constant dense<0.000000e+00> : vector<8x128xf32>
    %742 = tpu.matmul %740, %741, %cst_218 {dimension_numbers = #tpu.dot_dimension_numbers<[1], [0], [0], [1], [0, 0, 1, 1], [], []>} : vector<8x32xbf16>, vector<32x128xbf16>, vector<8x128xf32> -> vector<8x128xf32>
    %743 = arith.addf %737, %742 : vector<8x128xf32>
    %744 = vector.extract_strided_slice %668 {offsets = [0, 96], sizes = [8, 32], strides = [1, 1]} : vector<8x128xbf16> to vector<8x32xbf16>
    %cst_219 = arith.constant dense<0.000000e+00> : vector<8x32xf32>
    %745 = tpu.matmul %724, %744, %cst_219 {dimension_numbers = #tpu.dot_dimension_numbers<[1], [0], [0], [1], [0, 0, 1, 1], [], []>} : vector<8x8xbf16>, vector<8x32xbf16>, vector<8x32xf32> -> vector<8x32xf32>
    %746 = arith.truncf %745 : vector<8x32xf32> to vector<8x32xbf16>
    %747 = vector.extract_strided_slice %662 {offsets = [96, 0], sizes = [32, 128], strides = [1, 1]} : vector<128x128xbf16> to vector<32x128xbf16>
    %cst_220 = arith.constant dense<0.000000e+00> : vector<8x128xf32>
    %748 = tpu.matmul %746, %747, %cst_220 {dimension_numbers = #tpu.dot_dimension_numbers<[1], [0], [0], [1], [0, 0, 1, 1], [], []>} : vector<8x32xbf16>, vector<32x128xbf16>, vector<8x128xf32> -> vector<8x128xf32>
    %749 = arith.addf %743, %748 : vector<8x128xf32>
    %750 = arith.addf %650, %749 : vector<8x128xf32>
    %c34 = arith.constant 34 : index
    %c0_221 = arith.constant 0 : index
    %751 = vector.load %arg6[%c34, %c0_221] : memref<48x384xf32, #tpu.memory_space<vmem>>, vector<1x128xf32>
    %c35 = arith.constant 35 : index
    %c0_222 = arith.constant 0 : index
    %752 = vector.load %arg6[%c35, %c0_222] : memref<48x384xf32, #tpu.memory_space<vmem>>, vector<1x128xf32>
    %cst_223 = arith.constant dense<0.000000e+00> : vector<8xf32>
    %753 = vector.multi_reduction <add>, %750, %cst_223 [1] : vector<8x128xf32> to vector<8xf32>
    %754 = vector.shape_cast %753 : vector<8xf32> to vector<8x1xf32>
    %755 = arith.mulf %750, %750 : vector<8x128xf32>
    %cst_224 = arith.constant dense<0.000000e+00> : vector<8xf32>
    %756 = vector.multi_reduction <add>, %755, %cst_224 [1] : vector<8x128xf32> to vector<8xf32>
    %757 = vector.shape_cast %756 : vector<8xf32> to vector<8x1xf32>
    %cst_225 = arith.constant 7.812500e-03 : f32
    %758 = vector.broadcast %cst_225 : f32 to vector<8x1xf32>
    %759 = arith.mulf %754, %758 : vector<8x1xf32>
    %cst_226 = arith.constant 7.812500e-03 : f32
    %760 = vector.broadcast %cst_226 : f32 to vector<8x1xf32>
    %761 = arith.mulf %757, %760 : vector<8x1xf32>
    %762 = arith.mulf %759, %759 : vector<8x1xf32>
    %763 = arith.subf %761, %762 : vector<8x1xf32>
    %764 = vector.broadcast %759 : vector<8x1xf32> to vector<8x128xf32>
    %765 = arith.subf %750, %764 : vector<8x128xf32>
    %cst_227 = arith.constant 9.99999974E-6 : f32
    %766 = vector.broadcast %cst_227 : f32 to vector<8x1xf32>
    %767 = arith.addf %763, %766 : vector<8x1xf32>
    %768 = math.rsqrt %767 : vector<8x1xf32>
    %769 = vector.broadcast %768 : vector<8x1xf32> to vector<8x128xf32>
    %770 = arith.mulf %765, %769 : vector<8x128xf32>
    %771 = vector.broadcast %751 : vector<1x128xf32> to vector<8x128xf32>
    %772 = arith.mulf %770, %771 : vector<8x128xf32>
    %773 = vector.broadcast %752 : vector<1x128xf32> to vector<8x128xf32>
    %774 = arith.addf %772, %773 : vector<8x128xf32>
    %775 = vector.extract_strided_slice %652 {offsets = [0, 512], sizes = [128, 128], strides = [1, 1]} : vector<128x1280xbf16> to vector<128x128xbf16>
    %c36 = arith.constant 36 : index
    %c0_228 = arith.constant 0 : index
    %776 = vector.load %arg6[%c36, %c0_228] : memref<48x384xf32, #tpu.memory_space<vmem>>, vector<1x128xf32>
    %777 = arith.truncf %774 : vector<8x128xf32> to vector<8x128xbf16>
    %cst_229 = arith.constant dense<0.000000e+00> : vector<8x128xf32>
    %778 = tpu.matmul %777, %775, %cst_229 {dimension_numbers = #tpu.dot_dimension_numbers<[1], [0], [0], [1], [0, 0, 1, 1], [], []>} : vector<8x128xbf16>, vector<128x128xbf16>, vector<8x128xf32> -> vector<8x128xf32>
    %779 = vector.broadcast %776 : vector<1x128xf32> to vector<8x128xf32>
    %780 = arith.addf %778, %779 : vector<8x128xf32>
    %781 = vector.extract_strided_slice %652 {offsets = [0, 640], sizes = [128, 256], strides = [1, 1]} : vector<128x1280xbf16> to vector<128x256xbf16>
    %c37 = arith.constant 37 : index
    %c0_230 = arith.constant 0 : index
    %782 = vector.load %arg6[%c37, %c0_230] : memref<48x384xf32, #tpu.memory_space<vmem>>, vector<1x256xf32>
    %783 = arith.truncf %358 : vector<8x128xf32> to vector<8x128xbf16>
    %cst_231 = arith.constant dense<0.000000e+00> : vector<8x256xf32>
    %784 = tpu.matmul %783, %781, %cst_231 {dimension_numbers = #tpu.dot_dimension_numbers<[1], [0], [0], [1], [0, 0, 1, 1], [], []>} : vector<8x128xbf16>, vector<128x256xbf16>, vector<8x256xf32> -> vector<8x256xf32>
    %785 = vector.broadcast %782 : vector<1x256xf32> to vector<8x256xf32>
    %786 = arith.addf %784, %785 : vector<8x256xf32>
    %787 = vector.extract_strided_slice %786 {offsets = [0, 0], sizes = [8, 128], strides = [1, 1]} : vector<8x256xf32> to vector<8x128xf32>
    %788 = vector.extract_strided_slice %786 {offsets = [0, 128], sizes = [8, 128], strides = [1, 1]} : vector<8x256xf32> to vector<8x128xf32>
    %789 = vector.extract_strided_slice %652 {offsets = [0, 896], sizes = [128, 128], strides = [1, 1]} : vector<128x1280xbf16> to vector<128x128xbf16>
    %c38 = arith.constant 38 : index
    %c0_232 = arith.constant 0 : index
    %790 = vector.load %arg6[%c38, %c0_232] : memref<48x384xf32, #tpu.memory_space<vmem>>, vector<1x128xf32>
    %cst_233 = arith.constant 0.176776692 : f32
    %791 = vector.broadcast %cst_233 : f32 to vector<8x128xf32>
    %792 = arith.mulf %780, %791 : vector<8x128xf32>
    %793 = arith.truncf %792 : vector<8x128xf32> to vector<8x128xbf16>
    %794 = arith.truncf %787 : vector<8x128xf32> to vector<8x128xbf16>
    %795 = arith.truncf %788 : vector<8x128xf32> to vector<8x128xbf16>
    %796 = vector.extract_strided_slice %793 {offsets = [0, 0], sizes = [8, 32], strides = [1, 1]} : vector<8x128xbf16> to vector<8x32xbf16>
    %797 = vector.extract_strided_slice %794 {offsets = [0, 0], sizes = [8, 32], strides = [1, 1]} : vector<8x128xbf16> to vector<8x32xbf16>
    %cst_234 = arith.constant dense<0.000000e+00> : vector<8x8xf32>
    %798 = tpu.matmul %796, %797, %cst_234 {dimension_numbers = #tpu.dot_dimension_numbers<[1], [1], [0], [0], [0, 0, 1, 0], [], []>} : vector<8x32xbf16>, vector<8x32xbf16>, vector<8x8xf32> -> vector<8x8xf32>
    %799 = vector.extract_strided_slice %793 {offsets = [0, 32], sizes = [8, 32], strides = [1, 1]} : vector<8x128xbf16> to vector<8x32xbf16>
    %800 = vector.extract_strided_slice %794 {offsets = [0, 32], sizes = [8, 32], strides = [1, 1]} : vector<8x128xbf16> to vector<8x32xbf16>
    %cst_235 = arith.constant dense<0.000000e+00> : vector<8x8xf32>
    %801 = tpu.matmul %799, %800, %cst_235 {dimension_numbers = #tpu.dot_dimension_numbers<[1], [1], [0], [0], [0, 0, 1, 0], [], []>} : vector<8x32xbf16>, vector<8x32xbf16>, vector<8x8xf32> -> vector<8x8xf32>
    %802 = vector.extract_strided_slice %793 {offsets = [0, 64], sizes = [8, 32], strides = [1, 1]} : vector<8x128xbf16> to vector<8x32xbf16>
    %803 = vector.extract_strided_slice %794 {offsets = [0, 64], sizes = [8, 32], strides = [1, 1]} : vector<8x128xbf16> to vector<8x32xbf16>
    %cst_236 = arith.constant dense<0.000000e+00> : vector<8x8xf32>
    %804 = tpu.matmul %802, %803, %cst_236 {dimension_numbers = #tpu.dot_dimension_numbers<[1], [1], [0], [0], [0, 0, 1, 0], [], []>} : vector<8x32xbf16>, vector<8x32xbf16>, vector<8x8xf32> -> vector<8x8xf32>
    %805 = vector.extract_strided_slice %793 {offsets = [0, 96], sizes = [8, 32], strides = [1, 1]} : vector<8x128xbf16> to vector<8x32xbf16>
    %806 = vector.extract_strided_slice %794 {offsets = [0, 96], sizes = [8, 32], strides = [1, 1]} : vector<8x128xbf16> to vector<8x32xbf16>
    %cst_237 = arith.constant dense<0.000000e+00> : vector<8x8xf32>
    %807 = tpu.matmul %805, %806, %cst_237 {dimension_numbers = #tpu.dot_dimension_numbers<[1], [1], [0], [0], [0, 0, 1, 0], [], []>} : vector<8x32xbf16>, vector<8x32xbf16>, vector<8x8xf32> -> vector<8x8xf32>
    %cst_238 = arith.constant dense<0xFF800000> : vector<8xf32>
    %808 = vector.multi_reduction <maximumf>, %798, %cst_238 [1] : vector<8x8xf32> to vector<8xf32>
    %809 = vector.shape_cast %808 : vector<8xf32> to vector<8x1xf32>
    %cst_239 = arith.constant dense<0xFF800000> : vector<8xf32>
    %810 = vector.multi_reduction <maximumf>, %801, %cst_239 [1] : vector<8x8xf32> to vector<8xf32>
    %811 = vector.shape_cast %810 : vector<8xf32> to vector<8x1xf32>
    %cst_240 = arith.constant dense<0xFF800000> : vector<8xf32>
    %812 = vector.multi_reduction <maximumf>, %804, %cst_240 [1] : vector<8x8xf32> to vector<8xf32>
    %813 = vector.shape_cast %812 : vector<8xf32> to vector<8x1xf32>
    %cst_241 = arith.constant dense<0xFF800000> : vector<8xf32>
    %814 = vector.multi_reduction <maximumf>, %807, %cst_241 [1] : vector<8x8xf32> to vector<8xf32>
    %815 = vector.shape_cast %814 : vector<8xf32> to vector<8x1xf32>
    %816 = vector.broadcast %809 : vector<8x1xf32> to vector<8x8xf32>
    %817 = arith.subf %798, %816 : vector<8x8xf32>
    %818 = math.exp %817 : vector<8x8xf32>
    %819 = vector.broadcast %811 : vector<8x1xf32> to vector<8x8xf32>
    %820 = arith.subf %801, %819 : vector<8x8xf32>
    %821 = math.exp %820 : vector<8x8xf32>
    %822 = vector.broadcast %813 : vector<8x1xf32> to vector<8x8xf32>
    %823 = arith.subf %804, %822 : vector<8x8xf32>
    %824 = math.exp %823 : vector<8x8xf32>
    %825 = vector.broadcast %815 : vector<8x1xf32> to vector<8x8xf32>
    %826 = arith.subf %807, %825 : vector<8x8xf32>
    %827 = math.exp %826 : vector<8x8xf32>
    %cst_242 = arith.constant dense<0.000000e+00> : vector<8xf32>
    %828 = vector.multi_reduction <add>, %818, %cst_242 [1] : vector<8x8xf32> to vector<8xf32>
    %829 = vector.shape_cast %828 : vector<8xf32> to vector<8x1xf32>
    %cst_243 = arith.constant dense<0.000000e+00> : vector<8xf32>
    %830 = vector.multi_reduction <add>, %821, %cst_243 [1] : vector<8x8xf32> to vector<8xf32>
    %831 = vector.shape_cast %830 : vector<8xf32> to vector<8x1xf32>
    %cst_244 = arith.constant dense<0.000000e+00> : vector<8xf32>
    %832 = vector.multi_reduction <add>, %824, %cst_244 [1] : vector<8x8xf32> to vector<8xf32>
    %833 = vector.shape_cast %832 : vector<8xf32> to vector<8x1xf32>
    %cst_245 = arith.constant dense<0.000000e+00> : vector<8xf32>
    %834 = vector.multi_reduction <add>, %827, %cst_245 [1] : vector<8x8xf32> to vector<8xf32>
    %835 = vector.shape_cast %834 : vector<8xf32> to vector<8x1xf32>
    %836 = tpu.reciprocal %829 {approx = true} : vector<8x1xf32> -> vector<8x1xf32>
    %837 = tpu.reciprocal %831 {approx = true} : vector<8x1xf32> -> vector<8x1xf32>
    %838 = tpu.reciprocal %833 {approx = true} : vector<8x1xf32> -> vector<8x1xf32>
    %839 = tpu.reciprocal %835 {approx = true} : vector<8x1xf32> -> vector<8x1xf32>
    %840 = vector.broadcast %836 : vector<8x1xf32> to vector<8x8xf32>
    %841 = arith.mulf %818, %840 : vector<8x8xf32>
    %842 = arith.truncf %841 : vector<8x8xf32> to vector<8x8xbf16>
    %843 = vector.broadcast %837 : vector<8x1xf32> to vector<8x8xf32>
    %844 = arith.mulf %821, %843 : vector<8x8xf32>
    %845 = arith.truncf %844 : vector<8x8xf32> to vector<8x8xbf16>
    %846 = vector.broadcast %838 : vector<8x1xf32> to vector<8x8xf32>
    %847 = arith.mulf %824, %846 : vector<8x8xf32>
    %848 = arith.truncf %847 : vector<8x8xf32> to vector<8x8xbf16>
    %849 = vector.broadcast %839 : vector<8x1xf32> to vector<8x8xf32>
    %850 = arith.mulf %827, %849 : vector<8x8xf32>
    %851 = arith.truncf %850 : vector<8x8xf32> to vector<8x8xbf16>
    %852 = vector.extract_strided_slice %795 {offsets = [0, 0], sizes = [8, 32], strides = [1, 1]} : vector<8x128xbf16> to vector<8x32xbf16>
    %cst_246 = arith.constant dense<0.000000e+00> : vector<8x32xf32>
    %853 = tpu.matmul %842, %852, %cst_246 {dimension_numbers = #tpu.dot_dimension_numbers<[1], [0], [0], [1], [0, 0, 1, 1], [], []>} : vector<8x8xbf16>, vector<8x32xbf16>, vector<8x32xf32> -> vector<8x32xf32>
    %854 = arith.truncf %853 : vector<8x32xf32> to vector<8x32xbf16>
    %855 = vector.extract_strided_slice %789 {offsets = [0, 0], sizes = [32, 128], strides = [1, 1]} : vector<128x128xbf16> to vector<32x128xbf16>
    %cst_247 = arith.constant dense<0.000000e+00> : vector<8x128xf32>
    %856 = tpu.matmul %854, %855, %cst_247 {dimension_numbers = #tpu.dot_dimension_numbers<[1], [0], [0], [1], [0, 0, 1, 1], [], []>} : vector<8x32xbf16>, vector<32x128xbf16>, vector<8x128xf32> -> vector<8x128xf32>
    %857 = vector.broadcast %790 : vector<1x128xf32> to vector<8x128xf32>
    %858 = arith.addf %857, %856 : vector<8x128xf32>
    %859 = vector.extract_strided_slice %795 {offsets = [0, 32], sizes = [8, 32], strides = [1, 1]} : vector<8x128xbf16> to vector<8x32xbf16>
    %cst_248 = arith.constant dense<0.000000e+00> : vector<8x32xf32>
    %860 = tpu.matmul %845, %859, %cst_248 {dimension_numbers = #tpu.dot_dimension_numbers<[1], [0], [0], [1], [0, 0, 1, 1], [], []>} : vector<8x8xbf16>, vector<8x32xbf16>, vector<8x32xf32> -> vector<8x32xf32>
    %861 = arith.truncf %860 : vector<8x32xf32> to vector<8x32xbf16>
    %862 = vector.extract_strided_slice %789 {offsets = [32, 0], sizes = [32, 128], strides = [1, 1]} : vector<128x128xbf16> to vector<32x128xbf16>
    %cst_249 = arith.constant dense<0.000000e+00> : vector<8x128xf32>
    %863 = tpu.matmul %861, %862, %cst_249 {dimension_numbers = #tpu.dot_dimension_numbers<[1], [0], [0], [1], [0, 0, 1, 1], [], []>} : vector<8x32xbf16>, vector<32x128xbf16>, vector<8x128xf32> -> vector<8x128xf32>
    %864 = arith.addf %858, %863 : vector<8x128xf32>
    %865 = vector.extract_strided_slice %795 {offsets = [0, 64], sizes = [8, 32], strides = [1, 1]} : vector<8x128xbf16> to vector<8x32xbf16>
    %cst_250 = arith.constant dense<0.000000e+00> : vector<8x32xf32>
    %866 = tpu.matmul %848, %865, %cst_250 {dimension_numbers = #tpu.dot_dimension_numbers<[1], [0], [0], [1], [0, 0, 1, 1], [], []>} : vector<8x8xbf16>, vector<8x32xbf16>, vector<8x32xf32> -> vector<8x32xf32>
    %867 = arith.truncf %866 : vector<8x32xf32> to vector<8x32xbf16>
    %868 = vector.extract_strided_slice %789 {offsets = [64, 0], sizes = [32, 128], strides = [1, 1]} : vector<128x128xbf16> to vector<32x128xbf16>
    %cst_251 = arith.constant dense<0.000000e+00> : vector<8x128xf32>
    %869 = tpu.matmul %867, %868, %cst_251 {dimension_numbers = #tpu.dot_dimension_numbers<[1], [0], [0], [1], [0, 0, 1, 1], [], []>} : vector<8x32xbf16>, vector<32x128xbf16>, vector<8x128xf32> -> vector<8x128xf32>
    %870 = arith.addf %864, %869 : vector<8x128xf32>
    %871 = vector.extract_strided_slice %795 {offsets = [0, 96], sizes = [8, 32], strides = [1, 1]} : vector<8x128xbf16> to vector<8x32xbf16>
    %cst_252 = arith.constant dense<0.000000e+00> : vector<8x32xf32>
    %872 = tpu.matmul %851, %871, %cst_252 {dimension_numbers = #tpu.dot_dimension_numbers<[1], [0], [0], [1], [0, 0, 1, 1], [], []>} : vector<8x8xbf16>, vector<8x32xbf16>, vector<8x32xf32> -> vector<8x32xf32>
    %873 = arith.truncf %872 : vector<8x32xf32> to vector<8x32xbf16>
    %874 = vector.extract_strided_slice %789 {offsets = [96, 0], sizes = [32, 128], strides = [1, 1]} : vector<128x128xbf16> to vector<32x128xbf16>
    %cst_253 = arith.constant dense<0.000000e+00> : vector<8x128xf32>
    %875 = tpu.matmul %873, %874, %cst_253 {dimension_numbers = #tpu.dot_dimension_numbers<[1], [0], [0], [1], [0, 0, 1, 1], [], []>} : vector<8x32xbf16>, vector<32x128xbf16>, vector<8x128xf32> -> vector<8x128xf32>
    %876 = arith.addf %870, %875 : vector<8x128xf32>
    %877 = arith.addf %774, %876 : vector<8x128xf32>
    %c39 = arith.constant 39 : index
    %c0_254 = arith.constant 0 : index
    %878 = vector.load %arg6[%c39, %c0_254] : memref<48x384xf32, #tpu.memory_space<vmem>>, vector<1x128xf32>
    %c40 = arith.constant 40 : index
    %c0_255 = arith.constant 0 : index
    %879 = vector.load %arg6[%c40, %c0_255] : memref<48x384xf32, #tpu.memory_space<vmem>>, vector<1x128xf32>
    %cst_256 = arith.constant dense<0.000000e+00> : vector<8xf32>
    %880 = vector.multi_reduction <add>, %877, %cst_256 [1] : vector<8x128xf32> to vector<8xf32>
    %881 = vector.shape_cast %880 : vector<8xf32> to vector<8x1xf32>
    %882 = arith.mulf %877, %877 : vector<8x128xf32>
    %cst_257 = arith.constant dense<0.000000e+00> : vector<8xf32>
    %883 = vector.multi_reduction <add>, %882, %cst_257 [1] : vector<8x128xf32> to vector<8xf32>
    %884 = vector.shape_cast %883 : vector<8xf32> to vector<8x1xf32>
    %cst_258 = arith.constant 7.812500e-03 : f32
    %885 = vector.broadcast %cst_258 : f32 to vector<8x1xf32>
    %886 = arith.mulf %881, %885 : vector<8x1xf32>
    %cst_259 = arith.constant 7.812500e-03 : f32
    %887 = vector.broadcast %cst_259 : f32 to vector<8x1xf32>
    %888 = arith.mulf %884, %887 : vector<8x1xf32>
    %889 = arith.mulf %886, %886 : vector<8x1xf32>
    %890 = arith.subf %888, %889 : vector<8x1xf32>
    %891 = vector.broadcast %886 : vector<8x1xf32> to vector<8x128xf32>
    %892 = arith.subf %877, %891 : vector<8x128xf32>
    %cst_260 = arith.constant 9.99999974E-6 : f32
    %893 = vector.broadcast %cst_260 : f32 to vector<8x1xf32>
    %894 = arith.addf %890, %893 : vector<8x1xf32>
    %895 = math.rsqrt %894 : vector<8x1xf32>
    %896 = vector.broadcast %895 : vector<8x1xf32> to vector<8x128xf32>
    %897 = arith.mulf %892, %896 : vector<8x128xf32>
    %898 = vector.broadcast %878 : vector<1x128xf32> to vector<8x128xf32>
    %899 = arith.mulf %897, %898 : vector<8x128xf32>
    %900 = vector.broadcast %879 : vector<1x128xf32> to vector<8x128xf32>
    %901 = arith.addf %899, %900 : vector<8x128xf32>
    %902 = vector.extract_strided_slice %652 {offsets = [0, 1024], sizes = [128, 256], strides = [1, 1]} : vector<128x1280xbf16> to vector<128x256xbf16>
    %c41 = arith.constant 41 : index
    %c0_261 = arith.constant 0 : index
    %903 = vector.load %arg6[%c41, %c0_261] : memref<48x384xf32, #tpu.memory_space<vmem>>, vector<1x256xf32>
    %904 = arith.truncf %901 : vector<8x128xf32> to vector<8x128xbf16>
    %cst_262 = arith.constant dense<0.000000e+00> : vector<8x256xf32>
    %905 = tpu.matmul %904, %902, %cst_262 {dimension_numbers = #tpu.dot_dimension_numbers<[1], [0], [0], [1], [0, 0, 1, 1], [], []>} : vector<8x128xbf16>, vector<128x256xbf16>, vector<8x256xf32> -> vector<8x256xf32>
    %906 = vector.broadcast %903 : vector<1x256xf32> to vector<8x256xf32>
    %907 = arith.addf %905, %906 : vector<8x256xf32>
    %cst_263 = arith.constant 0.000000e+00 : f32
    %908 = vector.broadcast %cst_263 : f32 to vector<8x256xf32>
    %909 = arith.maximumf %907, %908 : vector<8x256xf32>
    %c3_264 = arith.constant 3 : index
    %c0_265 = arith.constant 0 : index
    %c0_266 = arith.constant 0 : index
    %910 = vector.load %arg5[%c3_264, %c0_265, %c0_266] : memref<4x256x128xbf16, #tpu.memory_space<vmem>>, vector<1x256x128xbf16>
    %911 = vector.shape_cast %910 : vector<1x256x128xbf16> to vector<256x128xbf16>
    %c42 = arith.constant 42 : index
    %c0_267 = arith.constant 0 : index
    %912 = vector.load %arg6[%c42, %c0_267] : memref<48x384xf32, #tpu.memory_space<vmem>>, vector<1x128xf32>
    %913 = arith.truncf %909 : vector<8x256xf32> to vector<8x256xbf16>
    %cst_268 = arith.constant dense<0.000000e+00> : vector<8x128xf32>
    %914 = tpu.matmul %913, %911, %cst_268 {dimension_numbers = #tpu.dot_dimension_numbers<[1], [0], [0], [1], [0, 0, 1, 1], [], []>} : vector<8x256xbf16>, vector<256x128xbf16>, vector<8x128xf32> -> vector<8x128xf32>
    %915 = vector.broadcast %912 : vector<1x128xf32> to vector<8x128xf32>
    %916 = arith.addf %914, %915 : vector<8x128xf32>
    %917 = arith.addf %901, %916 : vector<8x128xf32>
    %c43 = arith.constant 43 : index
    %c0_269 = arith.constant 0 : index
    %918 = vector.load %arg6[%c43, %c0_269] : memref<48x384xf32, #tpu.memory_space<vmem>>, vector<1x128xf32>
    %c44 = arith.constant 44 : index
    %c0_270 = arith.constant 0 : index
    %919 = vector.load %arg6[%c44, %c0_270] : memref<48x384xf32, #tpu.memory_space<vmem>>, vector<1x128xf32>
    %cst_271 = arith.constant dense<0.000000e+00> : vector<8xf32>
    %920 = vector.multi_reduction <add>, %917, %cst_271 [1] : vector<8x128xf32> to vector<8xf32>
    %921 = vector.shape_cast %920 : vector<8xf32> to vector<8x1xf32>
    %922 = arith.mulf %917, %917 : vector<8x128xf32>
    %cst_272 = arith.constant dense<0.000000e+00> : vector<8xf32>
    %923 = vector.multi_reduction <add>, %922, %cst_272 [1] : vector<8x128xf32> to vector<8xf32>
    %924 = vector.shape_cast %923 : vector<8xf32> to vector<8x1xf32>
    %cst_273 = arith.constant 7.812500e-03 : f32
    %925 = vector.broadcast %cst_273 : f32 to vector<8x1xf32>
    %926 = arith.mulf %921, %925 : vector<8x1xf32>
    %cst_274 = arith.constant 7.812500e-03 : f32
    %927 = vector.broadcast %cst_274 : f32 to vector<8x1xf32>
    %928 = arith.mulf %924, %927 : vector<8x1xf32>
    %929 = arith.mulf %926, %926 : vector<8x1xf32>
    %930 = arith.subf %928, %929 : vector<8x1xf32>
    %931 = vector.broadcast %926 : vector<8x1xf32> to vector<8x128xf32>
    %932 = arith.subf %917, %931 : vector<8x128xf32>
    %cst_275 = arith.constant 9.99999974E-6 : f32
    %933 = vector.broadcast %cst_275 : f32 to vector<8x1xf32>
    %934 = arith.addf %930, %933 : vector<8x1xf32>
    %935 = math.rsqrt %934 : vector<8x1xf32>
    %936 = vector.broadcast %935 : vector<8x1xf32> to vector<8x128xf32>
    %937 = arith.mulf %932, %936 : vector<8x128xf32>
    %938 = vector.broadcast %918 : vector<1x128xf32> to vector<8x128xf32>
    %939 = arith.mulf %937, %938 : vector<8x128xf32>
    %940 = vector.broadcast %919 : vector<1x128xf32> to vector<8x128xf32>
    %941 = arith.addf %939, %940 : vector<8x128xf32>
    %c45 = arith.constant 45 : index
    %c0_276 = arith.constant 0 : index
    %942 = vector.load %arg6[%c45, %c0_276] : memref<48x384xf32, #tpu.memory_space<vmem>>, vector<1x128xf32>
    %c46 = arith.constant 46 : index
    %c0_277 = arith.constant 0 : index
    %943 = vector.load %arg6[%c46, %c0_277] : memref<48x384xf32, #tpu.memory_space<vmem>>, vector<1x128xf32>
    %cst_278 = arith.constant dense<0.000000e+00> : vector<8xf32>
    %944 = vector.multi_reduction <add>, %941, %cst_278 [1] : vector<8x128xf32> to vector<8xf32>
    %945 = vector.shape_cast %944 : vector<8xf32> to vector<8x1xf32>
    %946 = arith.mulf %941, %941 : vector<8x128xf32>
    %cst_279 = arith.constant dense<0.000000e+00> : vector<8xf32>
    %947 = vector.multi_reduction <add>, %946, %cst_279 [1] : vector<8x128xf32> to vector<8xf32>
    %948 = vector.shape_cast %947 : vector<8xf32> to vector<8x1xf32>
    %cst_280 = arith.constant 7.812500e-03 : f32
    %949 = vector.broadcast %cst_280 : f32 to vector<8x1xf32>
    %950 = arith.mulf %945, %949 : vector<8x1xf32>
    %cst_281 = arith.constant 7.812500e-03 : f32
    %951 = vector.broadcast %cst_281 : f32 to vector<8x1xf32>
    %952 = arith.mulf %948, %951 : vector<8x1xf32>
    %953 = arith.mulf %950, %950 : vector<8x1xf32>
    %954 = arith.subf %952, %953 : vector<8x1xf32>
    %955 = vector.broadcast %950 : vector<8x1xf32> to vector<8x128xf32>
    %956 = arith.subf %941, %955 : vector<8x128xf32>
    %cst_282 = arith.constant 9.99999974E-6 : f32
    %957 = vector.broadcast %cst_282 : f32 to vector<8x1xf32>
    %958 = arith.addf %954, %957 : vector<8x1xf32>
    %959 = math.rsqrt %958 : vector<8x1xf32>
    %960 = vector.broadcast %959 : vector<8x1xf32> to vector<8x128xf32>
    %961 = arith.mulf %956, %960 : vector<8x128xf32>
    %962 = vector.broadcast %942 : vector<1x128xf32> to vector<8x128xf32>
    %963 = arith.mulf %961, %962 : vector<8x128xf32>
    %964 = vector.broadcast %943 : vector<1x128xf32> to vector<8x128xf32>
    %965 = arith.addf %963, %964 : vector<8x128xf32>
    %966 = arith.truncf %965 : vector<8x128xf32> to vector<8x128xbf16>
    %cst_283 = arith.constant dense<0.000000e+00> : vector<8x128xf32>
    %967 = tpu.matmul %966, %0, %cst_283 {dimension_numbers = #tpu.dot_dimension_numbers<[1], [0], [0], [1], [0, 0, 1, 1], [], []>} : vector<8x128xbf16>, vector<128x128xbf16>, vector<8x128xf32> -> vector<8x128xf32>
    %968 = vector.broadcast %1 : vector<1x128xf32> to vector<8x128xf32>
    %969 = arith.addf %967, %968 : vector<8x128xf32>
    %c0_284 = arith.constant 0 : index
    %c0_285 = arith.constant 0 : index
    %970 = vector.load %arg7[%c0_284, %c0_285] : memref<8x128xf32, #tpu.memory_space<vmem>>, vector<8x128xf32>
    tpu.vector_store %arg7[%c0_284, %c0_285], %969 {strides = array<i32>} : memref<8x128xf32, #tpu.memory_space<vmem>>, vector<8x128xf32>,
    return
  }
}

</mosaic_0001>

<bundles_post_ra>
// kernel: model_forward.1
= control target key start
LH: loop header
LB: loop body
LE: loop exit
PB: predicated region body
PF: predicated region fallthrough
CT: control target
= control target key end

     0   :  { %12 = vsyncpa [#allocation3], 0  ;;  %s10212_s0 = inlined_call_operand.vmem [shape: f32[8,128], index: 0, kind: input, shape index: {}]   ;;  %s10213_s1 = inlined_call_operand.vmem [shape: f32[8,128], index: 1, kind: input, shape index: {}]   ;;  %s10214_s2 = inlined_call_operand.hbm [shape: bf16[128,128], index: 2, kind: input, shape index: {}]   ;;  %s10215_s3 = inlined_call_operand.hbm [shape: bf16[2,128,768], index: 3, kind: input, shape index: {}]   ;;  %s10216_s4 = inlined_call_operand.hbm [shape: bf16[2,128,1280], index: 4, kind: input, shape index: {}]   ;;  %s10217_s5 = inlined_call_operand.hbm [shape: bf16[4,256,128], index: 5, kind: input, shape index: {}]   ;;  %s10218_s6 = inlined_call_operand.hbm [shape: f32[48,384], index: 6, kind: input, shape index: {}]   ;;  %s10219_s7 = inlined_call_operand.hbm [shape: f32[8,128], index: 7, kind: output, shape index: {}]  }
   0x1   :  { %13 = vsyncpa [#allocation6], 0 }
   0x2   :  { %14 = vsyncpa [#allocation9], 0 }
   0x3   :  { %15 = vsyncpa [#allocation4], 0  ;;  %s9368_s24 = smov [#allocation5]   ;;  %s9228_s28 = scalar_lea.hbm %s10215_s3, 12288 }
   0x4   :  { %s37_s25 = sshll.u32 %s9368_s24, 4  ;;  %p9229_p0 = scmp.ne.s32.totalorder %s10215_s3, %s9228_s28  ;;  %s38_s25 = int_to_ptr.vmem [resolvable:$true] %s37_s25 }
   0x5   :  { %p9232_p1 = scmp.lt.u32.totalorder %s9228_s28, %s10215_s3 }
   0x7   :  { %p9234_p2 = pnand %p9232_p1, %p9229_p0 }
   0x9   :  { %9237 = shalt.err (!%p9234_p2)
}
   0xa   :  { %s9238_s10 = scalar_lea.vmem %s38_s25, 12288  ;;  %p9243_p4 = scmp.lt.s32.totalorder %s38_s25, %s38_s25 }
   0xb   :  { %p9239_p3 = scmp.ne.s32.totalorder %s38_s25, %s9238_s10  ;;  %p9244_p5 = scmp.lt.s32.totalorder %s9238_s10, %s9238_s10 }
   0xd   :  { %p9245_p6 = por %p9244_p5, %p9243_p4 }
   0xf   :  { %p9246_p7 = pnand %p9245_p6, %p9239_p3 }
  0x11   :  { %9249 = shalt.err (!%p9246_p7)
}
  0x12   :  { %s9369_s11 = smov 384   ;;  %s9370_s12 = smov 24  }
  0x13   :  { %43 = dma.hbm_to_vmem [thread:$0]  %s10215_s3, 12288, %s38_s25, [#allocation6], %s9369_s11, %s9369_s11, %s9370_s12  }
  0x14   :  { %s9371_s15 = smov [#allocation8]   ;;  %s9372_s17 = smov [#allocation2]  }
  0x15   :  { %s61_s16 = sshll.u32 %s9371_s15, 4  ;;  %s25_s18 = sshll.u32 %s9372_s17, 4  ;;  %s62_s16 = int_to_ptr.vmem [resolvable:$true] %s61_s16  ;;  %s26_s18 = int_to_ptr.vmem [resolvable:$true] %s25_s18 }
  0x16   :  { %s9250_s21 = scalar_lea.hbm %s10217_s5, 8192 }
  0x17   :  { %p9251_p8 = scmp.ne.s32.totalorder %s10217_s5, %s9250_s21  ;;  %p9254_p9 = scmp.lt.u32.totalorder %s9250_s21, %s10217_s5 }
  0x19   :  { %p9256_p10 = pnand %p9254_p9, %p9251_p8 }
  0x1b   :  { %9259 = shalt.err (!%p9256_p10)
}
  0x1c   :  { %s9260_s3 = scalar_lea.vmem %s62_s16, 8192  ;;  %p9265_p12 = scmp.lt.s32.totalorder %s62_s16, %s62_s16 }
  0x1d   :  { %p9261_p11 = scmp.ne.s32.totalorder %s62_s16, %s9260_s3  ;;  %p9266_p13 = scmp.lt.s32.totalorder %s9260_s3, %s9260_s3 }
  0x1f   :  { %p9267_p0 = por %p9266_p13, %p9265_p12 }
  0x21   :  { %p9268_p1 = pnand %p9267_p0, %p9261_p11 }
  0x23   :  { %9271 = shalt.err (!%p9268_p1)
}
  0x24   :  { %s9373_s25 = smov 64   ;;  %s9374_s27 = smov 4  }
  0x25   :  { %67 = dma.hbm_to_vmem [thread:$0]  %s10217_s5, 8192, %s62_s16, [#allocation9], %s9373_s25, %s9373_s25, %s9374_s27  }
  0x26   :  { %s9272_s9 = scalar_lea.hbm %s10214_s2, 1024 }
  0x27   :  { %p9273_p2 = scmp.ne.s32.totalorder %s10214_s2, %s9272_s9  ;;  %p9276_p3 = scmp.lt.u32.totalorder %s9272_s9, %s10214_s2 }
  0x29   :  { %p9278_p4 = pnand %p9276_p3, %p9273_p2 }
  0x2b   :  { %9281 = shalt.err (!%p9278_p4)
}
  0x2c   :  { %s9282_s17 = scalar_lea.vmem %s26_s18, 1024  ;;  %p9287_p6 = scmp.lt.s32.totalorder %s26_s18, %s26_s18 }
  0x2d   :  { %p9283_p5 = scmp.ne.s32.totalorder %s26_s18, %s9282_s17  ;;  %p9288_p7 = scmp.lt.s32.totalorder %s9282_s17, %s9282_s17 }
  0x2f   :  { %p9289_p8 = por %p9288_p7, %p9287_p6 }
  0x31   :  { %p9290_p9 = pnand %p9289_p8, %p9283_p5 }
  0x33   :  { %9293 = shalt.err (!%p9290_p9)
}
  0x34   :  { %31 = dma.hbm_to_vmem [thread:$0]  %s10214_s2, 1024, %s26_s18, [#allocation3], %s9373_s25, %s9373_s25, %s9374_s27  }
  0x35   :  { %s9375_s19 = smov [#allocation7]   ;;  %s9294_s23 = scalar_lea.hbm %s10216_s4, 20480 }
  0x36   :  { %s49_s20 = sshll.u32 %s9375_s19, 4  ;;  %p9295_p10 = scmp.ne.s32.totalorder %s10216_s4, %s9294_s23  ;;  %s50_s20 = int_to_ptr.vmem [resolvable:$true] %s49_s20 }
  0x37   :  { %p9298_p11 = scmp.lt.u32.totalorder %s9294_s23, %s10216_s4 }
  0x39   :  { %p9300_p12 = pnand %p9298_p11, %p9295_p10 }
  0x3b   :  { %9303 = shalt.err (!%p9300_p12)
}
  0x3c   :  { %s9304_s29 = scalar_lea.vmem %s50_s20, 20480  ;;  %p9309_p0 = scmp.lt.s32.totalorder %s50_s20, %s50_s20 }
  0x3d   :  { %p9305_p13 = scmp.ne.s32.totalorder %s50_s20, %s9304_s29  ;;  %p9310_p1 = scmp.lt.s32.totalorder %s9304_s29, %s9304_s29 }
  0x3f   :  { %p9311_p2 = por %p9310_p1, %p9309_p0 }
  0x41   :  { %p9312_p3 = pnand %p9311_p2, %p9305_p13 }
  0x43   :  { %9315 = shalt.err (!%p9312_p3)
}
  0x44   :  { %s9376_s2 = smov 640   ;;  %s9377_s18 = smov 40  }
  0x45   :  { %55 = dma.hbm_to_vmem [thread:$0]  %s10216_s4, 20480, %s50_s20, [#allocation6], %s9376_s2, %s9376_s2, %s9377_s18  }
  0x46   :  { %s9378_s8 = smov [#allocation10]   ;;  %s9316_s14 = scalar_lea.hbm %s10218_s6, 2304 }
  0x47   :  { %s73_s9 = sshll.u32 %s9378_s8, 4  ;;  %p9317_p4 = scmp.ne.s32.totalorder %s10218_s6, %s9316_s14  ;;  %s74_s9 = int_to_ptr.vmem [resolvable:$true] %s73_s9 }
  0x48   :  { %p9320_p5 = scmp.lt.u32.totalorder %s9316_s14, %s10218_s6 }
  0x4a   :  { %p9322_p6 = pnand %p9320_p5, %p9317_p4 }
  0x4c   :  { %9325 = shalt.err (!%p9322_p6)
}
  0x4d   :  { %s9326_s19 = scalar_lea.vmem %s74_s9, 2304  ;;  %p9331_p8 = scmp.lt.s32.totalorder %s74_s9, %s74_s9 }
  0x4e   :  { %p9327_p7 = scmp.ne.s32.totalorder %s74_s9, %s9326_s19  ;;  %p9332_p9 = scmp.lt.s32.totalorder %s9326_s19, %s9326_s19 }
  0x50   :  { %p9333_p10 = por %p9332_p9, %p9331_p8 }
  0x52   :  { %p9334_p11 = pnand %p9333_p10, %p9327_p7 }
  0x54   :  { %9337 = shalt.err (!%p9334_p11)
}
  0x55   :  { %79 = dma.hbm_to_vmem [thread:$0]  %s10218_s6, 2304, %s74_s9, [#allocation9], %s9369_s11, %s9369_s11, %s9370_s12  }
  0x56   :  { %9360 = dma.done.wait [#allocation3], 1024  }
  0x57   :  { %9361 = vsyncadd [#allocation3], 4294966272 }
  0x58   :  { %9362 = dma.done.wait [#allocation6], 32768  }
  0x59   :  { %9363 = vsyncadd [#allocation6], 4294934528 }
  0x5a   :  { %9364 = dma.done.wait [#allocation9], 10496  }
  0x5b   :  { %9365 = vsyncadd [#allocation9], 4294956800  ;;  %v9379_v0 = vmov 0.0   ;;  %vm9380_vm0 = vmmov 0   ;;  %v8643_v1 = vld [vmem:[#allocation2] sm:$0xff]   ;;  %v8644_v2 = vld [vmem:[#allocation2 + $0x8] sm:$0xff]   ;;  %v255_v43 = vlaneseq }
  0x5c   :  { %7986 = vmatprep.subr.bf16.mxu0 %v9379_v0  ;;  %8002 = vmatprep.mubr.msk.bf16.mxu0 %vm9380_vm0, %v9379_v0  ;;  %v8645_v3 = vld [vmem:[#allocation2 + $0x10] sm:$0xff]   ;;  %v8651_v4 = vld [vmem:[#allocation5 + $0x4] ss:$24 sps:$4 sm:$0xff]   ;;  %v8653_v5 = vld [vmem:[#allocation5] ss:$24 sps:$4 sm:$0xff]   ;;  %v9381_v35 = vmov 0  }
  0x5d   :  { %7987 = vmatpush3.bf16.msra.mxu0 %v8643_v1  ;;  %v8646_v6 = vld [vmem:[#allocation2 + $0x18] sm:$0xff]   ;;  %398 = vmatprep.subr.bf16.mxu1 %v8651_v4  ;;  %v8656_v7 = vld [vmem:[#allocation5 + $0x34] ss:$24 sps:$4 sm:$0xff]   ;;  %v8658_v8 = vld [vmem:[#allocation5 + $0x30] ss:$24 sps:$4 sm:$0xff]   ;;  %v256_v44 = vshrl.u32 %v255_v43, 7 }
  0x5e   :  { %7988 = vmatprep.subr.bf16.mxu0 %v9379_v0  ;;  %399 = vmatpush1.bf16.msra.mxu1 %v8653_v5  ;;  %v8661_v9 = vld [vmem:[#allocation5 + $0x64] ss:$24 sps:$4 sm:$0xff]   ;;  %v8663_v11 = vld [vmem:[#allocation5 + $0x60] ss:$24 sps:$4 sm:$0xff]   ;;  %v8666_v12 = vld [vmem:[#allocation5 + $0x94] ss:$24 sps:$4 sm:$0xff]  }
  0x5f   :  { %400 = vmatprep.subr.bf16.mxu1 %v8656_v7  ;;  %v8647_v10 = vld [vmem:[#allocation2 + $0x20] sm:$0xff]   ;;  %v8648_v13 = vld [vmem:[#allocation2 + $0x28] sm:$0xff]   ;;  %v8649_v16 = vld [vmem:[#allocation2 + $0x30] sm:$0xff]   ;;  %430 = vmatprep.mubr.bf16.mxu1 %v9381_v35  ;;  %v9529_v45 = vsub.s32 0, %v256_v44  ;;  %v9531_v47 = vsub.s32 1, %v256_v44  ;;  %vm484_vm1 = vcmask 261120  }
  0x60   :  { %v8668_v14 = vld [vmem:[#allocation5 + $0x90] ss:$24 sps:$4 sm:$0xff]   ;;  %v8671_v15 = vld [vmem:[#allocation5 + $0xc4] ss:$24 sps:$4 sm:$0xff]   ;;  %v8673_v19 = vld [vmem:[#allocation5 + $0xc0] ss:$24 sps:$4 sm:$0xff]  }
  0x61   :  { %7989 = vmatpush3.bf16.msra.mxu0 %v8644_v2  ;;  %v8650_v17 = vld [vmem:[#allocation2 + $0x38] sm:$0xff]   ;;  %v113_v18 = vld [vmem:[%s10212_s0] sm:$0xff]  ;;  %v8676_v20 = vld [vmem:[#allocation5 + $0xf4] ss:$24 sps:$4 sm:$0xff]   ;;  %s9382_s0 = smov 96   ;;  %s9383_s12 = smov 32  }
  0x62   :  { %7990 = vmatprep.subr.bf16.mxu0 %v9379_v0  ;;  %401 = vmatpush1.bf16.msra.mxu1 %v8658_v8  ;;  %v8678_v21 = vld [vmem:[#allocation5 + $0xf0] ss:$24 sps:$4 sm:$0xff]   ;;  %v8681_v22 = vld [vmem:[#allocation5 + $0x124] ss:$24 sps:$4 sm:$0xff]   ;;  %v114_v24 = vpack.c.bf16 %v113_v18, %v113_v18  ;;  %v8683_v25 = vld [vmem:[#allocation5 + $0x120] ss:$24 sps:$4 sm:$0xff]  }
  0x63   :  { %402 = vmatprep.subr.bf16.mxu1 %v8661_v9  ;;  %v8654_v23 = vld [vmem:[#allocation5 + $0x8] ss:$24 sps:$4 sm:$0xff]   ;;  %v8659_v26 = vld [vmem:[#allocation5 + $0x38] ss:$24 sps:$4 sm:$0xff]   ;;  %v8686_v32 = vld [vmem:[#allocation5 + $0x154] ss:$24 sps:$4 sm:$0xff]  }
  0x64   :  { %v8664_v27 = vld [vmem:[#allocation5 + $0x68] ss:$24 sps:$4 sm:$0xff]   ;;  %v8669_v28 = vld [vmem:[#allocation5 + $0x98] ss:$24 sps:$4 sm:$0xff]   ;;  %v9548_v5 = vsub.s32 2, %v256_v44  ;;  %vm735_vm2 = vcmask 1043456  }
  0x65   :  { %7991 = vmatpush3.bf16.msra.mxu0 %v8645_v3  ;;  %v8674_v29 = vld [vmem:[#allocation5 + $0xc8] ss:$24 sps:$4 sm:$0xff]   ;;  %v8679_v30 = vld [vmem:[#allocation5 + $0xf8] ss:$24 sps:$4 sm:$0xff]   ;;  %vm683_vm3 = vcmask 64512  }
  0x66   :  { %7992 = vmatprep.subr.bf16.mxu0 %v9379_v0  ;;  %403 = vmatpush1.bf16.msra.mxu1 %v8663_v11  ;;  %v8684_v31 = vld [vmem:[#allocation5 + $0x128] ss:$24 sps:$4 sm:$0xff]   ;;  %v8689_v34 = vld [vmem:[#allocation5 + $0x158] ss:$24 sps:$4 sm:$0xff]  }
  0x67   :  { %404 = vmatprep.subr.bf16.mxu1 %v8666_v12  ;;  %v8688_v33 = vld [vmem:[#allocation5 + $0x150] ss:$24 sps:$4 sm:$0xff]   ;;  %v112_v36 = vld [vmem:[#allocation10] ss:$0 sm:$0xff] }
  0x68   :  { %v252_v46 = vld [vmem:[#allocation10 + $0x1] ss:$8 sm:$0x7] }
  0x69   :  { %7993 = vmatpush3.bf16.msra.mxu0 %v8646_v6  ;;  %v258_v48 = vrot.slane %v252_v46, %v9529_v45  ;;  %v262_v49 = vrot.slane %v252_v46, %v9531_v47  ;;  %v266_v7 = vrot.slane %v252_v46, %v9548_v5 }
  0x6a   :  { %7994 = vmatprep.subr.bf16.mxu0 %v9379_v0  ;;  %405 = vmatpush1.bf16.msra.mxu1 %v8668_v14 }
  0x6b   :  { %406 = vmatprep.subr.bf16.mxu1 %v8671_v15 }
  0x6d   :  { %7995 = vmatpush3.bf16.msra.mxu0 %v8647_v10 }
  0x6e   :  { %7996 = vmatprep.subr.bf16.mxu0 %v9379_v0  ;;  %407 = vmatpush1.bf16.msra.mxu1 %v8673_v19 }
  0x6f   :  { %408 = vmatprep.subr.bf16.mxu1 %v8676_v20 }
  0x71   :  { %7997 = vmatpush3.bf16.msra.mxu0 %v8648_v13 }
  0x72   :  { %7998 = vmatprep.subr.bf16.mxu0 %v9379_v0  ;;  %409 = vmatpush1.bf16.msra.mxu1 %v8678_v21 }
  0x73   :  { %410 = vmatprep.subr.bf16.mxu1 %v8681_v22 }
  0x75   :  { %7999 = vmatpush3.bf16.msra.mxu0 %v8649_v16 }
  0x76   :  { %8000 = vmatprep.subr.bf16.mxu0 %v9379_v0  ;;  %411 = vmatpush1.bf16.msra.mxu1 %v8683_v25 }
  0x77   :  { %412 = vmatprep.subr.bf16.mxu1 %v8686_v32 }
  0x79   :  { %8001 = vmatpush3.bf16.msra.mxu0 %v8650_v17 }
  0x7a   :  { %8006 = vmatprep.subr.bf16.mxu0 %v9379_v0  ;;  %413 = vmatpush1.bf16.msra.mxu1 %v8688_v33 }
  0x7b   :  { %8026 = vmatprep.subr.bf16.mxu1 %v9379_v0 }
  0x7c   :  { %8003 = vmatmul.mubr.bf16.vlgmr.msra.gmra.mrb[0].mxu0 %v114_v24 }
  0x7d   :  { %8007 = vmatpush3.bf16.msra.mxu0 %v8654_v23  ;;  %8022 = vmatprep.mubr.msk.bf16.mxu0 %vm9380_vm0, %v9379_v0 }
  0x7e   :  { %8008 = vmatprep.subr.bf16.mxu0 %v9379_v0 }
  0x81   :  { %8009 = vmatpush3.bf16.msra.mxu0 %v8659_v26 }
  0x82   :  { %8010 = vmatprep.subr.bf16.mxu0 %v9379_v0 }
  0x85   :  { %8011 = vmatpush3.bf16.msra.mxu0 %v8664_v27 }
  0x86   :  { %8012 = vmatprep.subr.bf16.mxu0 %v9379_v0 }
  0x89   :  { %8013 = vmatpush3.bf16.msra.mxu0 %v8669_v28 }
  0x8a   :  { %8014 = vmatprep.subr.bf16.mxu0 %v9379_v0 }
  0x8d   :  { %8015 = vmatpush3.bf16.msra.mxu0 %v8674_v29 }
  0x8e   :  { %8016 = vmatprep.subr.bf16.mxu0 %v9379_v0 }
  0x91   :  { %8017 = vmatpush3.bf16.msra.mxu0 %v8679_v30 }
  0x92   :  { %8018 = vmatprep.subr.bf16.mxu0 %v9379_v0 }
  0x95   :  { %8019 = vmatpush3.bf16.msra.mxu0 %v8684_v31 }
  0x96   :  { %8020 = vmatprep.subr.bf16.mxu0 %v9379_v0 }
  0x99   :  { %8021 = vmatpush3.bf16.msra.mxu0 %v8689_v34 }
  0x9a   :  { %8078 = vmatprep.subr.bf16.mxu0 %v9379_v0 }
 0x14f   :  { %v197_v37 = vpop.f32.mrb[0].mxu0 }
 0x150   :  { %v9521_v38 = vadd.f32 %v197_v37, %v112_v36  ;;  %v8004_v39 = vpop.f32.mrb[1].mxu0 }
 0x151   :  { %v200_v40 = vpop.f32.mrb[2].mxu0 }
 0x152   :  { %v253_v41 = vpack.c.bf16 %v9521_v38, %v9521_v38  ;;  %v8005_v42 = vpop.f32.mrb[3].mxu0 }
 0x154   :  { %431 = vmatmul.mubr.bf16.vlgmr.msra.gmra.mrb[0].mxu1 %v253_v41  ;;  %8023 = vmatmul.mubr.bf16.vlgmr.msra.gmra.mrb[4].mxu0 %v253_v41 }
 0x155   :  { %8028 = vmatprep.mubr.msk.bf16.mxu1 %vm9380_vm0, %v9379_v0  ;;  %8080 = vmatprep.mubr.msk.bf16.mxu0 %vm9380_vm0, %v9379_v0 }
 0x227   :  { %v432_v50 = vpop.f32.mrb[0].mxu1  ;;  %v473_v51 = vpop.f32.mrb[4].mxu0 }
 0x228   :  { %v433_v52 = vadd.f32 %v432_v50, %v258_v48  ;;  %v434_v53 = vpop.f32.mrb[1].mxu1  ;;  %v8024_v54 = vpop.f32.mrb[5].mxu0  ;;  %v474_v10 = vadd.f32 %v473_v51, %v266_v7 }
 0x229   :  { %v435_v55 = vadd.f32 %v434_v53, %v262_v49  ;;  %v436_v56 = vpop.f32.mrb[2].mxu1  ;;  %v476_v57 = vpop.f32.mrb[6].mxu0 }
 0x22a   :  { %v437_v58 = vpop.f32.mrb[3].mxu1  ;;  %v8025_v59 = vpop.f32.mrb[7].mxu0  ;;  %v480_v60 = vmul.f32 0.17677669, %v433_v52  ;;  %v9561_v12 = vpack.c.bf16 %v474_v10, %v474_v10 }
 0x22b   :  { %v482_v61 = vpack.c.bf16 %v435_v55, %v435_v55 }
 0x22c   :  { %v481_v63 = vpack.c.bf16 %v480_v60, %v480_v60  ;;  %v737_v14 = vsel %vm735_vm2, %v9561_v12, 0 }
 0x22d   :  { %585 = vrot.lane.b32.xlu1 %v482_v61, %s9373_s25  ;;  %535 = vrot.lane.b32.xlu0 %v482_v61, %s9382_s0  ;;  %v489_v62 = vsel %vm484_vm1, %v482_v61, 0 }
 0x22e   :  { %8027 = vmatpush3.bf16.xpose.msra.mxu1 %v489_v62 }
 0x22f   :  { %8032 = vmatprep.subr.bf16.mxu1 %v9379_v0 }
 0x231   :  { %583 = vrot.lane.b32.xlu1 %v481_v63, %s9373_s25  ;;  %532 = vrot.lane.b32.xlu0 %v481_v63, %s9382_s0 }
 0x235   :  { %633 = vrot.lane.b32.xlu1 %v481_v63, %s9383_s12  ;;  %635 = vrot.lane.b32.xlu0 %v482_v61, %s9383_s12 }
 0x236   :  { %8029 = vmatmul.mubr.msk.bf16.vlgmr.msra.gmra.mrb[4].mxu1 %vm484_vm1, %v481_v63  ;;  %v8691_v63 = vld [vmem:[#allocation5 + $0xc] ss:$24 sps:$4 sm:$0xff]  }
 0x237   :  { %8034 = vmatprep.mubr.msk.bf16.mxu1 %vm9380_vm0, %v9379_v0 }
 0x29f   :  { %v536_v1 = vpop.permute.xlu0 %535  ;;  %v586_v3 = vpop.permute.xlu1 %585 }
 0x2a0   :  { %v541_v2 = vsel %vm484_vm1, %v536_v1, 0  ;;  %v591_v6 = vsel %vm484_vm1, %v586_v3, 0  ;;  %v8692_v1 = vld [vmem:[#allocation5 + $0x3c] ss:$24 sps:$4 sm:$0xff]  }
 0x2a1   :  { %8033 = vmatpush3.bf16.xpose.msra.mxu1 %v541_v2 }
 0x2a2   :  { %8038 = vmatprep.subr.bf16.mxu1 %v9379_v0 }
 0x2a3   :  { %v533_v4 = vpop.permute.xlu0 %532  ;;  %v584_v9 = vpop.permute.xlu1 %583 }
 0x2a7   :  { %v636_v8 = vpop.permute.xlu0 %635  ;;  %v634_v13 = vpop.permute.xlu1 %633 }
 0x2a8   :  { %8035 = vmatmul.mubr.msk.bf16.vlgmr.msra.gmra.mrb[8].mxu1 %vm484_vm1, %v533_v4  ;;  %v641_v11 = vsel %vm484_vm1, %v636_v8, 0 }
 0x2a9   :  { %8039 = vmatpush3.bf16.xpose.msra.mxu1 %v591_v6  ;;  %8040 = vmatprep.mubr.msk.bf16.mxu1 %vm9380_vm0, %v9379_v0 }
 0x2aa   :  { %8044 = vmatprep.subr.bf16.mxu1 %v9379_v0 }
 0x2b0   :  { %8041 = vmatmul.mubr.msk.bf16.vlgmr.msra.gmra.mrb[12].mxu1 %vm484_vm1, %v584_v9 }
 0x2b1   :  { %8045 = vmatpush3.bf16.xpose.msra.mxu1 %v641_v11  ;;  %8046 = vmatprep.mubr.msk.bf16.mxu1 %vm9380_vm0, %v9379_v0 }
 0x2b2   :  { %8050 = vmatprep.subr.bf16.mxu1 %v9379_v0 }
 0x2b8   :  { %8047 = vmatmul.mubr.msk.bf16.vlgmr.msra.gmra.mrb[16].mxu1 %vm484_vm1, %v634_v13 }
 0x2b9   :  { %8051 = vmatpush3.bf16.msra.mxu1 %v737_v14  ;;  %8052 = vmatprep.mubr.msk.bf16.mxu1 %vm9380_vm0, %v9379_v0 }
 0x2ba   :  { %8056 = vmatprep.subr.bf16.mxu1 %v9379_v0 }
 0x309   :  { %v525_v15 = vpop.f32.mrb[4].mxu1 }
 0x30a   :  { %v8030_v16 = vpop.f32.mrb[5].mxu1  ;;  %v684_v17 = vsel %vm683_vm3, %v525_v15, -inf }
 0x30b   :  { %685 = vmax.xlane.f32.xlu0 %v684_v17  ;;  %v528_v18 = vpop.f32.mrb[6].mxu1 }
 0x30c   :  { %v8031_v19 = vpop.f32.mrb[7].mxu1 }
 0x37b   :  { %v577_v20 = vpop.f32.mrb[8].mxu1 }
 0x37c   :  { %v8036_v21 = vpop.f32.mrb[9].mxu1  ;;  %v687_v22 = vsel %vm683_vm3, %v577_v20, -inf }
 0x37d   :  { %688 = vmax.xlane.f32.xlu0 %v687_v22  ;;  %v580_v23 = vpop.f32.mrb[10].mxu1 }
 0x37e   :  { %v8037_v24 = vpop.f32.mrb[11].mxu1 }
 0x383   :  { %v627_v25 = vpop.f32.mrb[12].mxu1 }
 0x384   :  { %v8042_v26 = vpop.f32.mrb[13].mxu1  ;;  %v690_v27 = vsel %vm683_vm3, %v627_v25, -inf }
 0x385   :  { %691 = vmax.xlane.f32.xlu0 %v690_v27  ;;  %v630_v28 = vpop.f32.mrb[14].mxu1  ;;  %v8693_v26 = vld [vmem:[#allocation5 + $0x6c] ss:$24 sps:$4 sm:$0xff]   ;;  %v8694_v27 = vld [vmem:[#allocation5 + $0x9c] ss:$24 sps:$4 sm:$0xff]  }
 0x386   :  { %v8043_v29 = vpop.f32.mrb[15].mxu1 }
 0x38b   :  { %v677_v30 = vpop.f32.mrb[16].mxu1 }
 0x38c   :  { %v8048_v31 = vpop.f32.mrb[17].mxu1  ;;  %v693_v41 = vsel %vm683_vm3, %v677_v30, -inf }
 0x38d   :  { %v680_v32 = vpop.f32.mrb[18].mxu1 }
 0x38e   :  { %v8049_v33 = vpop.f32.mrb[19].mxu1 }
 0x398   :  { %v686_v34 = vpop.xlane.xlu0 %685 }
 0x399   :  { %v696_v36 = vsub.f32 %v525_v15, %v686_v34 }
 0x39b   :  { %v697_v37 = vmul.f32 1.442695, %v696_v36 }
 0x39d   :  { %9099 = vpow2.f32 %v697_v37 }
 0x3a7   :  { %v9100_v39 = vpop.eup %9099 }
 0x3a8   :  { %v708_v40 = vsel %vm683_vm3, %v9100_v39, 0.0 }
 0x3a9   :  { %709 = vadd.xlane.f32.xlu1 %v708_v40 }
 0x3ad   :  { %694 = vmax.xlane.f32.xlu1 %v693_v41 }
 0x3be   :  { %833 = vrot.lane.b32.xlu1 %v9561_v12, %s9382_s0 }
 0x40a   :  { %v689_v42 = vpop.xlane.xlu0 %688 }
 0x40b   :  { %v699_v43 = vsub.f32 %v577_v20, %v689_v42 }
 0x40d   :  { %v700_v44 = vmul.f32 1.442695, %v699_v43  ;;  %v8695_v43 = vld [vmem:[#allocation5 + $0xcc] ss:$24 sps:$4 sm:$0xff]  }
 0x40f   :  { %9101 = vpow2.f32 %v700_v44 }
 0x412   :  { %v692_v46 = vpop.xlane.xlu0 %691 }
 0x413   :  { %v702_v48 = vsub.f32 %v627_v25, %v692_v46 }
 0x415   :  { %v703_v49 = vmul.f32 1.442695, %v702_v48 }
 0x417   :  { %9103 = vpow2.f32 %v703_v49 }
 0x419   :  { %v9102_v50 = vpop.eup %9101 }
 0x41a   :  { %v711_v51 = vsel %vm683_vm3, %v9102_v50, 0.0 }
 0x41b   :  { %712 = vadd.xlane.f32.xlu0 %v711_v51  ;;  %v8697_v51 = vld [vmem:[#allocation5 + $0x12c] ss:$24 sps:$4 sm:$0xff]  }
 0x421   :  { %v9104_v52 = vpop.eup %9103 }
 0x422   :  { %v714_v53 = vsel %vm683_vm3, %v9104_v52, 0.0 }
 0x423   :  { %715 = vadd.xlane.f32.xlu1 %v714_v53  ;;  %v8698_v53 = vld [vmem:[#allocation5 + $0x15c] ss:$24 sps:$4 sm:$0xff]  }
 0x434   :  { %1035 = vrot.lane.b32.xlu1 %v9561_v12, %s9383_s12 }
 0x436   :  { %v710_v54 = vpop.xlane.xlu1 %709 }
 0x437   :  { %9105 = vrcp.f32 %v710_v54 }
 0x43a   :  { %v695_v55 = vpop.xlane.xlu1 %694 }
 0x43b   :  { %v705_v56 = vsub.f32 %v677_v30, %v695_v55  ;;  %v8699_v55 = vld [vmem:[#allocation5 + $0x10] ss:$24 sps:$4 sm:$0xff]  }
 0x43d   :  { %v706_v57 = vmul.f32 1.442695, %v705_v56  ;;  %v8701_v56 = vld [vmem:[#allocation5 + $0x14] ss:$24 sps:$4 sm:$0xff]  }
 0x43e   :  { %v834_v2 = vpop.permute.xlu1 %833 }
 0x43f   :  { %9107 = vpow2.f32 %v706_v57  ;;  %v839_v22 = vsel %vm735_vm2, %v834_v2, 0  ;;  %v8704_v57 = vld [vmem:[#allocation5 + $0x44] ss:$24 sps:$4 sm:$0xff]  }
 0x441   :  { %v9106_v58 = vpop.eup %9105 }
 0x442   :  { %v724_v59 = vmul.f32 %v9106_v58, %v9100_v39  ;;  %v8702_v58 = vld [vmem:[#allocation5 + $0x40] ss:$24 sps:$4 sm:$0xff]  }
 0x444   :  { %v725_v60 = vpack.c.bf16 %v724_v59, %v724_v59  ;;  %v479_v59 = vld [vmem:[#allocation10 + $0x2] ss:$0 sm:$0xff] }
 0x446   :  { %8053 = vmatmul.mubr.msk.bf16.vlgmr.msra.gmra.mrb[20].mxu1 %vm683_vm3, %v725_v60 }
 0x447   :  { %8060 = vmatprep.mubr.msk.bf16.mxu1 %vm9380_vm0, %v9379_v0  ;;  %8057 = vmatpush3.bf16.msra.mxu1 %v8691_v63 }
 0x448   :  { %8058 = vmatprep.subr.bf16.mxu1 %v9379_v0 }
 0x449   :  { %v9108_v61 = vpop.eup %9107 }
 0x44a   :  { %v717_v62 = vsel %vm683_vm3, %v9108_v61, 0.0 }
 0x44b   :  { %718 = vadd.xlane.f32.xlu0 %v717_v62  ;;  %8059 = vmatpush3.bf16.msra.mxu1 %v8692_v1 }
 0x44c   :  { %8064 = vmatprep.subr.bf16.mxu1 %v9379_v0 }
 0x461   :  { %934 = vrot.lane.b32.xlu0 %v9561_v12, %s9373_s25 }
 0x4a8   :  { %v713_v4 = vpop.xlane.xlu0 %712 }
 0x4b0   :  { %v716_v3 = vpop.xlane.xlu1 %715 }
 0x4b1   :  { %9109 = vrcp.f32 %v716_v3 }
 0x4b4   :  { %v1036_v11 = vpop.permute.xlu1 %1035 }
 0x4b5   :  { %v1041_v13 = vsel %vm735_vm2, %v1036_v11, 0 }
 0x4bb   :  { %v9110_v6 = vpop.eup %9109 }
 0x4bc   :  { %v728_v8 = vmul.f32 %v9110_v6, %v9104_v52 }
 0x4be   :  { %v729_v12 = vpack.c.bf16 %v728_v8, %v728_v8 }
 0x4d8   :  { %v719_v7 = vpop.xlane.xlu0 %718 }
 0x4d9   :  { %9111 = vrcp.f32 %v719_v7 }
 0x4da   :  { %9113 = vrcp.f32 %v713_v4 }
 0x4dc   :  { %v935_v9 = vpop.permute.xlu0 %934 }
 0x4dd   :  { %v940_v10 = vsel %vm735_vm2, %v935_v9, 0 }
 0x4de   :  { %8079 = vmatpush3.bf16.msra.mxu0 %v940_v10 }
 0x4df   :  { %8092 = vmatprep.subr.bf16.mxu0 %v9379_v0 }
 0x4e1   :  { %8081 = vmatmul.mubr.msk.bf16.vlgmr.msra.gmra.mrb[8].mxu0 %vm683_vm3, %v729_v12 }
 0x4e2   :  { %8093 = vmatpush3.bf16.msra.mxu0 %v1041_v13  ;;  %8094 = vmatprep.mubr.msk.bf16.mxu0 %vm9380_vm0, %v9379_v0 }
 0x4e3   :  { %v9112_v14 = vpop.eup %9111  ;;  %1248 = vmatprep.subr.bf16.mxu0 %v8701_v56 }
 0x4e4   :  { %v730_v15 = vmul.f32 %v9112_v14, %v9108_v61  ;;  %v9114_v20 = vpop.eup %9113 }
 0x4e5   :  { %v726_v24 = vmul.f32 %v9114_v20, %v9102_v50  ;;  %v8696_v50 = vld [vmem:[#allocation5 + $0xfc] ss:$24 sps:$4 sm:$0xff]  }
 0x4e6   :  { %v731_v16 = vpack.c.bf16 %v730_v15, %v730_v15  ;;  %v8713_v20 = vld [vmem:[#allocation5 + $0xd4] ss:$24 sps:$4 sm:$0xff]  }
 0x4e7   :  { %v727_v25 = vpack.c.bf16 %v726_v24, %v726_v24  ;;  %v8717_v24 = vld [vmem:[#allocation5 + $0x130] ss:$24 sps:$4 sm:$0xff]  }
 0x4e9   :  { %8095 = vmatmul.mubr.msk.bf16.vlgmr.msra.gmra.mrb[12].mxu0 %vm683_vm3, %v731_v16  ;;  %v8707_v16 = vld [vmem:[#allocation5 + $0x74] ss:$24 sps:$4 sm:$0xff]  }
 0x4ea   :  { %1280 = vmatprep.mubr.bf16.mxu0 %v9381_v35  ;;  %1249 = vmatpush1.bf16.msra.mxu0 %v8699_v55 }
 0x4eb   :  { %1250 = vmatprep.subr.bf16.mxu0 %v8704_v57 }
 0x4ee   :  { %1251 = vmatpush1.bf16.msra.mxu0 %v8702_v58  ;;  %v8735_v58 = vld [vmem:[#allocation8 + $0x70] sm:$0xff]  }
 0x4ef   :  { %1252 = vmatprep.subr.bf16.mxu0 %v8707_v16  ;;  %v8746_v16 = vld [vmem:[#allocation5 + $0x1b4] ss:$24 sps:$4 sm:$0xff]  }
 0x519   :  { %v773_v17 = vpop.f32.mrb[20].mxu1 }
 0x51a   :  { %v779_v18 = vpack.c.bf16 %v773_v17, %v773_v17  ;;  %v8054_v19 = vpop.f32.mrb[21].mxu1  ;;  %v8705_v17 = vld [vmem:[#allocation5 + $0x70] ss:$24 sps:$4 sm:$0xff]  }
 0x51b   :  { %v776_v21 = vpop.f32.mrb[22].mxu1  ;;  %1253 = vmatpush1.bf16.msra.mxu0 %v8705_v17  ;;  %v8708_v19 = vld [vmem:[#allocation5 + $0xa0] ss:$24 sps:$4 sm:$0xff]   ;;  %v8744_v17 = vld [vmem:[#allocation5 + $0x1b0] ss:$24 sps:$4 sm:$0xff]  }
 0x51c   :  { %v8055_v23 = vpop.f32.mrb[23].mxu1  ;;  %8061 = vmatmul.mubr.msk.bf16.vlgmr.msra.gmra.mrb[24].mxu1 %vm484_vm1, %v779_v18  ;;  %v8710_v18 = vld [vmem:[#allocation5 + $0xa4] ss:$24 sps:$4 sm:$0xff]   ;;  %v8711_v21 = vld [vmem:[#allocation5 + $0xd0] ss:$24 sps:$4 sm:$0xff]  }
 0x51d   :  { %8065 = vmatpush3.bf16.msra.mxu1 %v839_v22  ;;  %8066 = vmatprep.mubr.msk.bf16.mxu1 %vm9380_vm0, %v9379_v0  ;;  %v8714_v22 = vld [vmem:[#allocation5 + $0x100] ss:$24 sps:$4 sm:$0xff]   ;;  %v8719_v23 = vld [vmem:[#allocation5 + $0x134] ss:$24 sps:$4 sm:$0xff]  }
 0x51e   :  { %8070 = vmatprep.subr.bf16.mxu1 %v9379_v0  ;;  %1254 = vmatprep.subr.bf16.mxu0 %v8710_v18 }
 0x51f   :  { %1255 = vmatpush1.bf16.msra.mxu0 %v8708_v19  ;;  %v1323_v19 = vld [vmem:[#allocation10 + $0x6] ss:$0 sm:$0xff] }
 0x520   :  { %1256 = vmatprep.subr.bf16.mxu0 %v8713_v20 }
 0x523   :  { %1257 = vmatpush1.bf16.msra.mxu0 %v8711_v21 }
 0x524   :  { %8067 = vmatmul.mubr.msk.bf16.vlgmr.msra.gmra.mrb[28].mxu1 %vm683_vm3, %v727_v25  ;;  %v8722_v25 = vld [vmem:[#allocation5 + $0x164] ss:$24 sps:$4 sm:$0xff]  }
 0x525   :  { %8074 = vmatprep.mubr.msk.bf16.mxu1 %vm9380_vm0, %v9379_v0  ;;  %8071 = vmatpush3.bf16.msra.mxu1 %v8693_v26  ;;  %v8720_v26 = vld [vmem:[#allocation5 + $0x160] ss:$24 sps:$4 sm:$0xff]  }
 0x526   :  { %8072 = vmatprep.subr.bf16.mxu1 %v9379_v0 }
 0x529   :  { %8073 = vmatpush3.bf16.msra.mxu1 %v8694_v27  ;;  %v8723_v27 = vld [vmem:[#allocation8 + $0x40] sm:$0xff]  }
 0x52a   :  { %8084 = vmatprep.subr.bf16.mxu1 %v9379_v0 }
 0x5b4   :  { %v976_v28 = vpop.f32.mrb[8].mxu0 }
 0x5b5   :  { %v8082_v29 = vpop.f32.mrb[9].mxu0  ;;  %v982_v52 = vpack.c.bf16 %v976_v28, %v976_v28  ;;  %v8724_v28 = vld [vmem:[#allocation8] sm:$0xff]  }
 0x5b6   :  { %v979_v30 = vpop.f32.mrb[10].mxu0  ;;  %v8725_v29 = vld [vmem:[#allocation8 + $0x48] sm:$0xff]  }
 0x5b7   :  { %v8083_v31 = vpop.f32.mrb[11].mxu0  ;;  %v8726_v30 = vld [vmem:[#allocation8 + $0x8] sm:$0xff]  }
 0x5b8   :  { %v8727_v31 = vld [vmem:[#allocation8 + $0x50] sm:$0xff]  }
 0x5bc   :  { %v1077_v32 = vpop.f32.mrb[12].mxu0 }
 0x5bd   :  { %v8096_v33 = vpop.f32.mrb[13].mxu0  ;;  %v1083_v54 = vpack.c.bf16 %v1077_v32, %v1077_v32  ;;  %v8728_v32 = vld [vmem:[#allocation8 + $0x10] sm:$0xff]  }
 0x5be   :  { %v1080_v34 = vpop.f32.mrb[14].mxu0  ;;  %v8729_v33 = vld [vmem:[#allocation8 + $0x58] sm:$0xff]  }
 0x5bf   :  { %v8097_v36 = vpop.f32.mrb[15].mxu0  ;;  %v8730_v34 = vld [vmem:[#allocation8 + $0x18] sm:$0xff]  }
 0x5c0   :  { %v8731_v36 = vld [vmem:[#allocation8 + $0x60] sm:$0xff]  }
 0x5ef   :  { %v825_v37 = vpop.f32.mrb[24].mxu1 }
 0x5f0   :  { %v8062_v39 = vpop.f32.mrb[25].mxu1  ;;  %v831_v60 = vadd.f32 %v825_v37, %v479_v59  ;;  %v8732_v37 = vld [vmem:[#allocation8 + $0x20] sm:$0xff]   ;;  %v8736_v59 = vld [vmem:[#allocation8 + $0x30] sm:$0xff]  }
 0x5f1   :  { %v828_v40 = vpop.f32.mrb[26].mxu1  ;;  %v8733_v39 = vld [vmem:[#allocation8 + $0x68] sm:$0xff]  }
 0x5f2   :  { %v8063_v41 = vpop.f32.mrb[27].mxu1  ;;  %v8734_v40 = vld [vmem:[#allocation8 + $0x28] sm:$0xff]  }
 0x5f7   :  { %v875_v42 = vpop.f32.mrb[28].mxu1 }
 0x5f8   :  { %v881_v44 = vpack.c.bf16 %v875_v42, %v875_v42  ;;  %v8068_v46 = vpop.f32.mrb[29].mxu1 }
 0x5f9   :  { %v878_v48 = vpop.f32.mrb[30].mxu1 }
 0x5fa   :  { %v8069_v49 = vpop.f32.mrb[31].mxu1  ;;  %8075 = vmatmul.mubr.msk.bf16.vlgmr.msra.gmra.mrb[32].mxu1 %vm484_vm1, %v881_v44 }
 0x5fb   :  { %8085 = vmatpush3.bf16.msra.mxu1 %v8695_v43  ;;  %8088 = vmatprep.mubr.msk.bf16.mxu1 %vm9380_vm0, %v9379_v0 }
 0x5fc   :  { %8086 = vmatprep.subr.bf16.mxu1 %v9379_v0 }
 0x5ff   :  { %8087 = vmatpush3.bf16.msra.mxu1 %v8696_v50 }
 0x600   :  { %8098 = vmatprep.subr.bf16.mxu1 %v9379_v0 }
 0x602   :  { %8089 = vmatmul.mubr.msk.bf16.vlgmr.msra.gmra.mrb[36].mxu1 %vm484_vm1, %v982_v52  ;;  %v1137_v52 = vld [vmem:[#allocation10 + $0x3] ss:$0 sm:$0xff] }
 0x603   :  { %8099 = vmatpush3.bf16.msra.mxu1 %v8697_v51  ;;  %8102 = vmatprep.mubr.msk.bf16.mxu1 %vm9380_vm0, %v9379_v0 }
 0x604   :  { %8100 = vmatprep.subr.bf16.mxu1 %v9379_v0 }
 0x607   :  { %8101 = vmatpush3.bf16.msra.mxu1 %v8698_v53 }
 0x608   :  { %7704 = vmatprep.subr.bf16.mxu1 %v8723_v27  ;;  %v8751_v27 = vld [vmem:[#allocation5 + $0x1e4] ss:$24 sps:$4 sm:$0xff]  }
 0x60a   :  { %8103 = vmatmul.mubr.msk.bf16.vlgmr.msra.gmra.mrb[40].mxu1 %vm484_vm1, %v1083_v54  ;;  %v1138_v54 = vld [vmem:[#allocation10 + $0x4] ss:$0 sm:$0xff] }
 0x60b   :  { %7705 = vmatpush3.bf16.msra.mxu1 %v8724_v28  ;;  %v8749_v28 = vld [vmem:[#allocation5 + $0x1e0] ss:$24 sps:$4 sm:$0xff]  }
 0x60c   :  { %7706 = vmatprep.subr.bf16.mxu1 %v8725_v29  ;;  %v8752_v29 = vld [vmem:[#allocation5 + $0x1e8] ss:$24 sps:$4 sm:$0xff]  }
 0x60f   :  { %7707 = vmatpush3.bf16.msra.mxu1 %v8726_v30  ;;  %v8756_v30 = vld [vmem:[#allocation5 + $0x214] ss:$24 sps:$4 sm:$0xff]  }
 0x610   :  { %7708 = vmatprep.subr.bf16.mxu1 %v8727_v31  ;;  %v8754_v31 = vld [vmem:[#allocation5 + $0x210] ss:$24 sps:$4 sm:$0xff]  }
 0x613   :  { %7709 = vmatpush3.bf16.msra.mxu1 %v8728_v32  ;;  %v8757_v32 = vld [vmem:[#allocation5 + $0x218] ss:$24 sps:$4 sm:$0xff]  }
 0x614   :  { %7710 = vmatprep.subr.bf16.mxu1 %v8729_v33  ;;  %v8761_v33 = vld [vmem:[#allocation5 + $0x244] ss:$24 sps:$4 sm:$0xff]  }
 0x617   :  { %7711 = vmatpush3.bf16.msra.mxu1 %v8730_v34  ;;  %v8759_v34 = vld [vmem:[#allocation5 + $0x240] ss:$24 sps:$4 sm:$0xff]  }
 0x618   :  { %7712 = vmatprep.subr.bf16.mxu1 %v8731_v36  ;;  %v8762_v36 = vld [vmem:[#allocation5 + $0x248] ss:$24 sps:$4 sm:$0xff]  }
 0x61b   :  { %7713 = vmatpush3.bf16.msra.mxu1 %v8732_v37  ;;  %v8766_v37 = vld [vmem:[#allocation5 + $0x274] ss:$24 sps:$4 sm:$0xff]  }
 0x61c   :  { %7714 = vmatprep.subr.bf16.mxu1 %v8733_v39  ;;  %v8764_v39 = vld [vmem:[#allocation5 + $0x270] ss:$24 sps:$4 sm:$0xff]  }
 0x61f   :  { %7715 = vmatpush3.bf16.msra.mxu1 %v8734_v40  ;;  %v8767_v40 = vld [vmem:[#allocation5 + $0x278] ss:$24 sps:$4 sm:$0xff]  }
 0x620   :  { %7716 = vmatprep.subr.bf16.mxu1 %v8735_v58  ;;  %v1463_v58 = vld [vmem:[#allocation10 + $0x7] ss:$0 sm:$0xff] }
 0x623   :  { %7717 = vmatpush3.bf16.msra.mxu1 %v8736_v59 }
 0x6cd   :  { %v927_v61 = vpop.f32.mrb[32].mxu1 }
 0x6ce   :  { %v933_v62 = vadd.f32 %v927_v61, %v831_v60  ;;  %v8076_v63 = vpop.f32.mrb[33].mxu1  ;;  %v8737_v60 = vld [vmem:[#allocation8 + $0x78] sm:$0xff]  }
 0x6cf   :  { %v930_v1 = vpop.f32.mrb[34].mxu1  ;;  %v8738_v61 = vld [vmem:[#allocation8 + $0x38] sm:$0xff]   ;;  %7718 = vmatprep.subr.bf16.mxu1 %v8737_v60 }
 0x6d0   :  { %v8077_v2 = vpop.f32.mrb[35].mxu1  ;;  %7719 = vmatpush3.bf16.msra.mxu1 %v8738_v61  ;;  %v1464_v60 = vld [vmem:[#allocation10 + $0x18] ss:$0 sm:$0xff] }
 0x6d1   :  { %8106 = vmatprep.subr.bf16.mxu1 %v9379_v0 }
 0x6d5   :  { %v1028_v3 = vpop.f32.mrb[36].mxu1 }
 0x6d6   :  { %v1034_v4 = vadd.f32 %v1028_v3, %v933_v62  ;;  %v8090_v6 = vpop.f32.mrb[37].mxu1  ;;  %v1155_v62 = vld [vmem:[#allocation10 + $0x5] ss:$8 sm:$0x3] }
 0x6d7   :  { %v1031_v7 = vpop.f32.mrb[38].mxu1  ;;  %v1161_v63 = vrot.slane %v1155_v62, %v9529_v45  ;;  %v1165_v1 = vrot.slane %v1155_v62, %v9531_v47 }
 0x6d8   :  { %v8091_v8 = vpop.f32.mrb[39].mxu1 }
 0x6dd   :  { %v1129_v9 = vpop.f32.mrb[40].mxu1 }
 0x6de   :  { %v1135_v10 = vadd.f32 %v1129_v9, %v1034_v4  ;;  %v8104_v11 = vpop.f32.mrb[41].mxu1 }
 0x6df   :  { %v1132_v12 = vpop.f32.mrb[42].mxu1 }
 0x6e0   :  { %v9617_v13 = vadd.f32 %v1135_v10, %v9521_v38  ;;  %v8105_v14 = vpop.f32.mrb[43].mxu1  ;;  %v8716_v38 = vld [vmem:[#allocation5 + $0x104] ss:$24 sps:$4 sm:$0xff]  }
 0x6e1   :  { %1258 = vmatprep.subr.bf16.mxu0 %v8716_v38  ;;  %v8741_v14 = vld [vmem:[#allocation5 + $0x184] ss:$24 sps:$4 sm:$0xff]  }
 0x6e2   :  { %1139 = vadd.xlane.f32.xlu1 %v9617_v13  ;;  %v1141_v15 = vmul.f32 %v9617_v13, %v9617_v13  ;;  %1259 = vmatpush1.bf16.msra.mxu0 %v8714_v22 }
 0x6e3   :  { %1260 = vmatprep.subr.bf16.mxu0 %v8719_v23 }
 0x6e4   :  { %1142 = vadd.xlane.f32.xlu0 %v1141_v15  ;;  %v8742_v15 = vld [vmem:[#allocation5 + $0x188] ss:$24 sps:$4 sm:$0xff]  }
 0x6e6   :  { %1261 = vmatpush1.bf16.msra.mxu0 %v8717_v24 }
 0x6e7   :  { %1262 = vmatprep.subr.bf16.mxu0 %v8722_v25 }
 0x6ea   :  { %1263 = vmatpush1.bf16.msra.mxu0 %v8720_v26  ;;  %v8747_v26 = vld [vmem:[#allocation5 + $0x1b8] ss:$24 sps:$4 sm:$0xff]  }
 0x6eb   :  { %1676 = vmatprep.subr.bf16.mxu0 %v8741_v14 }
 0x76f   :  { %v1140_v41 = vpop.xlane.xlu1 %1139 }
 0x770   :  { %v1144_v42 = vmul.f32 0.0078125, %v1140_v41  ;;  %v8771_v41 = vld [vmem:[#allocation5 + $0x2a4] ss:$24 sps:$4 sm:$0xff]  }
 0x771   :  { %v1143_v43 = vpop.xlane.xlu0 %1142 }
 0x772   :  { %v1146_v44 = vmul.f32 %v1144_v42, %v1144_v42  ;;  %v1145_v46 = vmul.f32 0.0078125, %v1143_v43  ;;  %v1148_v50 = vsub.f32 %v9617_v13, %v1144_v42  ;;  %v8739_v13 = vld [vmem:[#allocation5 + $0x180] ss:$24 sps:$4 sm:$0xff]  }
 0x773   :  { %v8769_v42 = vld [vmem:[#allocation5 + $0x2a0] ss:$24 sps:$4 sm:$0xff]  }
 0x774   :  { %v1147_v48 = vsub.f32 %v1145_v46, %v1146_v44  ;;  %v8772_v43 = vld [vmem:[#allocation5 + $0x2a8] ss:$24 sps:$4 sm:$0xff]   ;;  %v8776_v44 = vld [vmem:[#allocation5 + $0x2d4] ss:$24 sps:$4 sm:$0xff]  }
 0x775   :  { %v8774_v46 = vld [vmem:[#allocation5 + $0x2d0] ss:$24 sps:$4 sm:$0xff]  }
 0x776   :  { %v1149_v49 = vadd.f32 1e-05, %v1147_v48  ;;  %v8777_v48 = vld [vmem:[#allocation5 + $0x2d8] ss:$24 sps:$4 sm:$0xff]  }
 0x778   :  { %9115 = vrsqrt.f32 %v1149_v49 }
 0x782   :  { %v9116_v51 = vpop.eup %9115 }
 0x783   :  { %v1151_v53 = vmul.f32 %v9116_v51, %v1148_v50 }
 0x785   :  { %v1152_v55 = vmul.f32 %v1151_v53, %v1137_v52 }
 0x787   :  { %v1153_v56 = vadd.f32 %v1152_v55, %v1138_v54 }
 0x789   :  { %v1156_v57 = vpack.c.bf16 %v1153_v56, %v1153_v56 }
 0x78b   :  { %1281 = vmatmul.mubr.bf16.vlgmr.msra.gmra.mrb[16].mxu0 %v1156_v57 }
 0x78c   :  { %1708 = vmatprep.mubr.bf16.mxu0 %v9381_v35  ;;  %1677 = vmatpush1.bf16.msra.mxu0 %v8739_v13 }
 0x78d   :  { %1678 = vmatprep.subr.bf16.mxu0 %v8746_v16 }
 0x790   :  { %1679 = vmatpush1.bf16.msra.mxu0 %v8744_v17 }
 0x791   :  { %1680 = vmatprep.subr.bf16.mxu0 %v8751_v27 }
 0x794   :  { %1681 = vmatpush1.bf16.msra.mxu0 %v8749_v28 }
 0x795   :  { %1682 = vmatprep.subr.bf16.mxu0 %v8756_v30 }
 0x798   :  { %1683 = vmatpush1.bf16.msra.mxu0 %v8754_v31 }
 0x799   :  { %1684 = vmatprep.subr.bf16.mxu0 %v8761_v33 }
 0x79c   :  { %1685 = vmatpush1.bf16.msra.mxu0 %v8759_v34 }
 0x79d   :  { %1686 = vmatprep.subr.bf16.mxu0 %v8766_v37 }
 0x7a0   :  { %1687 = vmatpush1.bf16.msra.mxu0 %v8764_v39 }
 0x7a1   :  { %1688 = vmatprep.subr.bf16.mxu0 %v8771_v41 }
 0x7a4   :  { %1689 = vmatpush1.bf16.msra.mxu0 %v8769_v42 }
 0x7a5   :  { %1690 = vmatprep.subr.bf16.mxu0 %v8776_v44 }
 0x7a8   :  { %1691 = vmatpush1.bf16.msra.mxu0 %v8774_v46 }
 0x7a9   :  { %8126 = vmatprep.subr.bf16.mxu0 %v9379_v0 }
 0x85e   :  { %v1282_v2 = vpop.f32.mrb[16].mxu0 }
 0x85f   :  { %v1283_v3 = vadd.f32 %v1282_v2, %v1161_v63  ;;  %v1284_v4 = vpop.f32.mrb[17].mxu0 }
 0x860   :  { %v1285_v6 = vadd.f32 %v1284_v4, %v1165_v1  ;;  %v1286_v7 = vpop.f32.mrb[18].mxu0  ;;  %v1530_v1 = vld [vmem:[#allocation10 + $0x19] ss:$8 sm:$0x7] }
 0x861   :  { %v1289_v8 = vmax.f32 %v1283_v3, 0.0  ;;  %v1287_v9 = vpop.f32.mrb[19].mxu0  ;;  %v1536_v2 = vrot.slane %v1530_v1, %v9529_v45  ;;  %v1540_v3 = vrot.slane %v1530_v1, %v9531_v47 }
 0x862   :  { %v1290_v10 = vmax.f32 %v1285_v6, 0.0 }
 0x863   :  { %v1324_v12 = vpack.c.bf16 %v1289_v8, %v1289_v8 }
 0x864   :  { %v1325_v11 = vpack.c.bf16 %v1290_v10, %v1290_v10 }
 0x866   :  { %1454 = vmatprep.mubr.bf16.mxu1 %v1325_v11 }
 0x867   :  { %1455 = vmatmul.mubr.bf16.vlgmr.msra.gmra.mrb[44].mxu1 %v1324_v12 }
 0x868   :  { %8122 = vmatprep.mubr.msk.bf16.mxu1 %vm9380_vm0, %v9379_v0  ;;  %8107 = vmatpush3.bf16.msra.mxu1 %v8742_v15 }
 0x869   :  { %8108 = vmatprep.subr.bf16.mxu1 %v9379_v0 }
 0x86c   :  { %8109 = vmatpush3.bf16.msra.mxu1 %v8747_v26 }
 0x86d   :  { %8110 = vmatprep.subr.bf16.mxu1 %v9379_v0 }
 0x870   :  { %8111 = vmatpush3.bf16.msra.mxu1 %v8752_v29 }
 0x871   :  { %8112 = vmatprep.subr.bf16.mxu1 %v9379_v0 }
 0x874   :  { %8113 = vmatpush3.bf16.msra.mxu1 %v8757_v32 }
 0x875   :  { %8114 = vmatprep.subr.bf16.mxu1 %v9379_v0 }
 0x878   :  { %8115 = vmatpush3.bf16.msra.mxu1 %v8762_v36 }
 0x879   :  { %8116 = vmatprep.subr.bf16.mxu1 %v9379_v0 }
 0x87c   :  { %8117 = vmatpush3.bf16.msra.mxu1 %v8767_v40 }
 0x87d   :  { %8118 = vmatprep.subr.bf16.mxu1 %v9379_v0 }
 0x880   :  { %8119 = vmatpush3.bf16.msra.mxu1 %v8772_v43 }
 0x881   :  { %8120 = vmatprep.subr.bf16.mxu1 %v9379_v0 }
 0x884   :  { %8121 = vmatpush3.bf16.msra.mxu1 %v8777_v48 }
 0x885   :  { %8132 = vmatprep.subr.bf16.mxu1 %v9379_v0 }
 0x93a   :  { %v7720_v18 = vpop.f32.mrb[44].mxu1 }
 0x93b   :  { %v7721_v20 = vpop.f32.mrb[45].mxu1 }
 0x93c   :  { %v7722_v21 = vadd.f32 %v7721_v20, %v7720_v18  ;;  %v7723_v38 = vpop.f32.mrb[46].mxu1 }
 0x93d   :  { %v7724_v22 = vpop.f32.mrb[47].mxu1  ;;  %v1544_v38 = vrot.slane %v1530_v1, %v9548_v5 }
 0x93e   :  { %v1457_v23 = vadd.f32 %v7722_v21, %v1323_v19 }
 0x940   :  { %v1462_v24 = vadd.f32 %v1457_v23, %v1153_v56 }
 0x942   :  { %1465 = vadd.xlane.f32.xlu0 %v1462_v24  ;;  %v1467_v25 = vmul.f32 %v1462_v24, %v1462_v24 }
 0x944   :  { %1468 = vadd.xlane.f32.xlu1 %v1467_v25 }
 0x9cf   :  { %v1466_v49 = vpop.xlane.xlu0 %1465 }
 0x9d0   :  { %v1470_v50 = vmul.f32 0.0078125, %v1466_v49 }
 0x9d1   :  { %v1469_v51 = vpop.xlane.xlu1 %1468 }
 0x9d2   :  { %v1472_v52 = vmul.f32 %v1470_v50, %v1470_v50  ;;  %v1471_v53 = vmul.f32 0.0078125, %v1469_v51  ;;  %v1474_v56 = vsub.f32 %v1462_v24, %v1470_v50 }
 0x9d4   :  { %v1473_v54 = vsub.f32 %v1471_v53, %v1472_v52 }
 0x9d6   :  { %v1475_v55 = vadd.f32 1e-05, %v1473_v54 }
 0x9d8   :  { %9117 = vrsqrt.f32 %v1475_v55 }
 0x9e2   :  { %v9118_v57 = vpop.eup %9117 }
 0x9e3   :  { %v1477_v59 = vmul.f32 %v9118_v57, %v1474_v56 }
 0x9e5   :  { %v1478_v61 = vmul.f32 %v1477_v59, %v1463_v58 }
 0x9e7   :  { %v9638_v62 = vadd.f32 %v1478_v61, %v1464_v60 }
 0x9e9   :  { %v1531_v63 = vpack.c.bf16 %v9638_v62, %v9638_v62 }
 0x9eb   :  { %1709 = vmatmul.mubr.bf16.vlgmr.msra.gmra.mrb[20].mxu0 %v1531_v63  ;;  %8123 = vmatmul.mubr.bf16.vlgmr.msra.gmra.mrb[48].mxu1 %v1531_v63 }
 0x9ec   :  { %8128 = vmatprep.mubr.msk.bf16.mxu0 %vm9380_vm0, %v9379_v0  ;;  %8134 = vmatprep.mubr.msk.bf16.mxu1 %vm9380_vm0, %v9379_v0 }
 0xabe   :  { %v1710_v4 = vpop.f32.mrb[20].mxu0  ;;  %v1751_v6 = vpop.f32.mrb[48].mxu1 }
 0xabf   :  { %v1711_v7 = vadd.f32 %v1710_v4, %v1536_v2  ;;  %v1712_v8 = vpop.f32.mrb[21].mxu0  ;;  %v8124_v9 = vpop.f32.mrb[49].mxu1  ;;  %v1752_v23 = vadd.f32 %v1751_v6, %v1544_v38 }
 0xac0   :  { %v1713_v10 = vadd.f32 %v1712_v8, %v1540_v3  ;;  %v1714_v11 = vpop.f32.mrb[22].mxu0  ;;  %v1754_v12 = vpop.f32.mrb[50].mxu1 }
 0xac1   :  { %v1758_v13 = vmul.f32 0.17677669, %v1711_v7  ;;  %v1715_v14 = vpop.f32.mrb[23].mxu0  ;;  %v8125_v15 = vpop.f32.mrb[51].mxu1  ;;  %v9665_v26 = vpack.c.bf16 %v1752_v23, %v1752_v23 }
 0xac2   :  { %v1760_v16 = vpack.c.bf16 %v1713_v10, %v1713_v10 }
 0xac3   :  { %v1759_v17 = vpack.c.bf16 %v1758_v13, %v1758_v13  ;;  %v2012_v29 = vsel %vm735_vm2, %v9665_v26, 0 }
 0xac4   :  { %1812 = vrot.lane.b32.xlu0 %v1760_v16, %s9382_s0  ;;  %v1766_v18 = vsel %vm484_vm1, %v1760_v16, 0 }
 0xac5   :  { %8127 = vmatpush3.bf16.xpose.msra.mxu0 %v1766_v18  ;;  %1809 = vrot.lane.b32.xlu1 %v1759_v17, %s9382_s0  ;;  %v8779_v18 = vld [vmem:[#allocation5 + $0x18c] ss:$24 sps:$4 sm:$0xff]  }
 0xac6   :  { %8138 = vmatprep.subr.bf16.mxu0 %v9379_v0 }
 0xac8   :  { %1860 = vrot.lane.b32.xlu0 %v1759_v17, %s9373_s25 }
 0xac9   :  { %1862 = vrot.lane.b32.xlu1 %v1760_v16, %s9373_s25 }
 0xacc   :  { %1910 = vrot.lane.b32.xlu0 %v1759_v17, %s9383_s12  ;;  %8129 = vmatmul.mubr.msk.bf16.vlgmr.msra.gmra.mrb[24].mxu0 %vm484_vm1, %v1759_v17 }
 0xacd   :  { %1912 = vrot.lane.b32.xlu1 %v1760_v16, %s9383_s12  ;;  %8140 = vmatprep.mubr.msk.bf16.mxu0 %vm9380_vm0, %v9379_v0 }
 0xb36   :  { %v1813_v19 = vpop.permute.xlu0 %1812 }
 0xb37   :  { %v1818_v20 = vsel %vm484_vm1, %v1813_v19, 0  ;;  %v1810_v21 = vpop.permute.xlu1 %1809  ;;  %v8780_v19 = vld [vmem:[#allocation5 + $0x1bc] ss:$24 sps:$4 sm:$0xff]  }
 0xb38   :  { %8133 = vmatpush3.bf16.xpose.msra.mxu1 %v1818_v20 }
 0xb39   :  { %8144 = vmatprep.subr.bf16.mxu1 %v9379_v0 }
 0xb3a   :  { %v1861_v28 = vpop.permute.xlu0 %1860 }
 0xb3b   :  { %v1863_v22 = vpop.permute.xlu1 %1862 }
 0xb3c   :  { %v1868_v24 = vsel %vm484_vm1, %v1863_v22, 0 }
 0xb3d   :  { %8139 = vmatpush3.bf16.xpose.msra.mxu0 %v1868_v24 }
 0xb3e   :  { %8150 = vmatprep.subr.bf16.mxu0 %v9379_v0  ;;  %v1911_v30 = vpop.permute.xlu0 %1910 }
 0xb3f   :  { %8135 = vmatmul.mubr.msk.bf16.vlgmr.msra.gmra.mrb[52].mxu1 %vm484_vm1, %v1810_v21  ;;  %v1913_v25 = vpop.permute.xlu1 %1912 }
 0xb40   :  { %v1918_v27 = vsel %vm484_vm1, %v1913_v25, 0  ;;  %8146 = vmatprep.mubr.msk.bf16.mxu1 %vm9380_vm0, %v9379_v0 }
 0xb41   :  { %8145 = vmatpush3.bf16.xpose.msra.mxu1 %v1918_v27 }
 0xb42   :  { %8156 = vmatprep.subr.bf16.mxu1 %v9379_v0 }
 0xb44   :  { %8141 = vmatmul.mubr.msk.bf16.vlgmr.msra.gmra.mrb[28].mxu0 %vm484_vm1, %v1861_v28 }
 0xb45   :  { %8151 = vmatpush3.bf16.msra.mxu0 %v2012_v29  ;;  %8152 = vmatprep.mubr.msk.bf16.mxu0 %vm9380_vm0, %v9379_v0 }
 0xb46   :  { %8164 = vmatprep.subr.bf16.mxu0 %v9379_v0 }
 0xb48   :  { %8147 = vmatmul.mubr.msk.bf16.vlgmr.msra.gmra.mrb[56].mxu1 %vm484_vm1, %v1911_v30 }
 0xb49   :  { %8160 = vmatprep.mubr.msk.bf16.mxu1 %vm9380_vm0, %v9379_v0  ;;  %8157 = vmatpush3.bf16.msra.mxu1 %v8779_v18 }
 0xb4a   :  { %8158 = vmatprep.subr.bf16.mxu1 %v9379_v0 }
 0xb4d   :  { %8159 = vmatpush3.bf16.msra.mxu1 %v8780_v19 }
 0xb4e   :  { %8170 = vmatprep.subr.bf16.mxu1 %v9379_v0 }
 0xb9f   :  { %v1802_v31 = vpop.f32.mrb[24].mxu0 }
 0xba0   :  { %v8130_v32 = vpop.f32.mrb[25].mxu0  ;;  %v1960_v33 = vsel %vm683_vm3, %v1802_v31, -inf }
 0xba1   :  { %1961 = vmax.xlane.f32.xlu1 %v1960_v33  ;;  %v1805_v34 = vpop.f32.mrb[26].mxu0 }
 0xba2   :  { %v8131_v36 = vpop.f32.mrb[27].mxu0 }
 0xc12   :  { %v1854_v37 = vpop.f32.mrb[52].mxu1 }
 0xc13   :  { %v8136_v39 = vpop.f32.mrb[53].mxu1  ;;  %v1963_v40 = vsel %vm683_vm3, %v1854_v37, -inf }
 0xc14   :  { %1964 = vmax.xlane.f32.xlu0 %v1963_v40  ;;  %v1857_v41 = vpop.f32.mrb[54].mxu1  ;;  %v8781_v40 = vld [vmem:[#allocation5 + $0x1ec] ss:$24 sps:$4 sm:$0xff]  }
 0xc15   :  { %v8137_v42 = vpop.f32.mrb[55].mxu1 }
 0xc17   :  { %v1904_v43 = vpop.f32.mrb[28].mxu0 }
 0xc18   :  { %v8142_v44 = vpop.f32.mrb[29].mxu0  ;;  %v1966_v46 = vsel %vm683_vm3, %v1904_v43, -inf }
 0xc19   :  { %1967 = vmax.xlane.f32.xlu0 %v1966_v46  ;;  %v1907_v48 = vpop.f32.mrb[30].mxu0  ;;  %v8782_v46 = vld [vmem:[#allocation5 + $0x21c] ss:$24 sps:$4 sm:$0xff]  }
 0xc1a   :  { %v8143_v49 = vpop.f32.mrb[31].mxu0 }
 0xc1b   :  { %v1954_v50 = vpop.f32.mrb[56].mxu1  ;;  %v8783_v49 = vld [vmem:[#allocation5 + $0x24c] ss:$24 sps:$4 sm:$0xff]  }
 0xc1c   :  { %v8148_v51 = vpop.f32.mrb[57].mxu1  ;;  %v1969_v52 = vsel %vm683_vm3, %v1954_v50, -inf }
 0xc1d   :  { %v1957_v53 = vpop.f32.mrb[58].mxu1  ;;  %1970 = vmax.xlane.f32.xlu1 %v1969_v52 }
 0xc1e   :  { %v8149_v54 = vpop.f32.mrb[59].mxu1 }
 0xc1f   :  { %v8784_v54 = vld [vmem:[#allocation5 + $0x27c] ss:$24 sps:$4 sm:$0xff]  }
 0xc2e   :  { %v1962_v55 = vpop.xlane.xlu1 %1961 }
 0xc2f   :  { %v1972_v56 = vsub.f32 %v1802_v31, %v1962_v55 }
 0xc31   :  { %v1973_v57 = vmul.f32 1.442695, %v1972_v56  ;;  %v8785_v56 = vld [vmem:[#allocation5 + $0x2ac] ss:$24 sps:$4 sm:$0xff]  }
 0xc33   :  { %9119 = vpow2.f32 %v1973_v57 }
 0xc3d   :  { %v9120_v58 = vpop.eup %9119 }
 0xc3e   :  { %v1984_v59 = vsel %vm683_vm3, %v9120_v58, 0.0 }
 0xc3f   :  { %1985 = vadd.xlane.f32.xlu0 %v1984_v59 }
 0xca1   :  { %v1965_v60 = vpop.xlane.xlu0 %1964 }
 0xca2   :  { %v1975_v61 = vsub.f32 %v1854_v37, %v1965_v60 }
 0xca4   :  { %v1976_v63 = vmul.f32 1.442695, %v1975_v61  ;;  %v8786_v61 = vld [vmem:[#allocation5 + $0x2dc] ss:$24 sps:$4 sm:$0xff]  }
 0xca6   :  { %9121 = vpow2.f32 %v1976_v63  ;;  %v1968_v1 = vpop.xlane.xlu0 %1967 }
 0xca7   :  { %v1978_v2 = vsub.f32 %v1904_v43, %v1968_v1 }
 0xca9   :  { %v1979_v3 = vmul.f32 1.442695, %v1978_v2 }
 0xcaa   :  { %v1971_v10 = vpop.xlane.xlu1 %1970 }
 0xcab   :  { %9123 = vpow2.f32 %v1979_v3  ;;  %v1981_v11 = vsub.f32 %v1954_v50, %v1971_v10  ;;  %v8787_v10 = vld [vmem:[#allocation5 + $0x190] ss:$24 sps:$4 sm:$0xff]  }
 0xcad   :  { %v1982_v12 = vmul.f32 1.442695, %v1981_v11  ;;  %v8789_v11 = vld [vmem:[#allocation5 + $0x194] ss:$24 sps:$4 sm:$0xff]  }
 0xcb0   :  { %v9122_v4 = vpop.eup %9121 }
 0xcb1   :  { %v1987_v6 = vsel %vm683_vm3, %v9122_v4, 0.0 }
 0xcb2   :  { %1988 = vadd.xlane.f32.xlu1 %v1987_v6 }
 0xcb5   :  { %v9124_v7 = vpop.eup %9123 }
 0xcb6   :  { %v1990_v8 = vsel %vm683_vm3, %v9124_v7, 0.0 }
 0xcb7   :  { %1991 = vadd.xlane.f32.xlu0 %v1990_v8 }
 0xcc3   :  { %2209 = vrot.lane.b32.xlu1 %v9665_v26, %s9373_s25 }
 0xccc   :  { %v1986_v9 = vpop.xlane.xlu0 %1985 }
 0xccd   :  { %9125 = vrcp.f32 %v1986_v9  ;;  %2108 = vrot.lane.b32.xlu0 %v9665_v26, %s9382_s0 }
 0xcce   :  { %9127 = vpow2.f32 %v1982_v12  ;;  %v8792_v12 = vld [vmem:[#allocation5 + $0x1c4] ss:$24 sps:$4 sm:$0xff]  }
 0xcd7   :  { %v9126_v13 = vpop.eup %9125 }
 0xcd8   :  { %v2000_v14 = vmul.f32 %v9126_v13, %v9120_v58  ;;  %v9128_v16 = vpop.eup %9127  ;;  %v8790_v13 = vld [vmem:[#allocation5 + $0x1c0] ss:$24 sps:$4 sm:$0xff]  }
 0xcd9   :  { %v1993_v17 = vsel %vm683_vm3, %v9128_v16, 0.0 }
 0xcda   :  { %v2001_v15 = vpack.c.bf16 %v2000_v14, %v2000_v14  ;;  %v1757_v14 = vld [vmem:[#allocation10 + $0x1a] ss:$0 sm:$0xff] }
 0xcdc   :  { %8153 = vmatmul.mubr.msk.bf16.vlgmr.msra.gmra.mrb[32].mxu0 %vm683_vm3, %v2001_v15 }
 0xcdd   :  { %8166 = vmatprep.mubr.msk.bf16.mxu0 %vm9380_vm0, %v9379_v0 }
 0xce7   :  { %1994 = vadd.xlane.f32.xlu1 %v1993_v17 }
 0xcf8   :  { %2310 = vrot.lane.b32.xlu1 %v9665_v26, %s9383_s12 }
 0xd3f   :  { %v1989_v20 = vpop.xlane.xlu1 %1988 }
 0xd40   :  { %9129 = vrcp.f32 %v1989_v20 }
 0xd43   :  { %v2210_v25 = vpop.permute.xlu1 %2209 }
 0xd44   :  { %v1992_v21 = vpop.xlane.xlu0 %1991  ;;  %v2215_v28 = vsel %vm735_vm2, %v2210_v25, 0 }
 0xd45   :  { %9131 = vrcp.f32 %v1992_v21 }
 0xd48   :  { %v2109_v38 = vpop.permute.xlu0 %2108 }
 0xd49   :  { %v2114_v22 = vsel %vm735_vm2, %v2109_v38, 0 }
 0xd4a   :  { %v9130_v23 = vpop.eup %9129  ;;  %8165 = vmatpush3.bf16.msra.mxu0 %v2114_v22 }
 0xd4b   :  { %v2002_v24 = vmul.f32 %v9130_v23, %v9122_v4  ;;  %8178 = vmatprep.subr.bf16.mxu0 %v9379_v0 }
 0xd4d   :  { %v2003_v26 = vpack.c.bf16 %v2002_v24, %v2002_v24 }
 0xd4f   :  { %v9132_v27 = vpop.eup %9131  ;;  %8167 = vmatmul.mubr.msk.bf16.vlgmr.msra.gmra.mrb[36].mxu0 %vm683_vm3, %v2003_v26 }
 0xd50   :  { %8179 = vmatpush3.bf16.msra.mxu0 %v2215_v28  ;;  %8180 = vmatprep.mubr.msk.bf16.mxu0 %vm9380_vm0, %v9379_v0  ;;  %v2004_v29 = vmul.f32 %v9132_v27, %v9124_v7 }
 0xd51   :  { %8192 = vmatprep.subr.bf16.mxu0 %v9379_v0 }
 0xd52   :  { %v2005_v30 = vpack.c.bf16 %v2004_v29, %v2004_v29 }
 0xd57   :  { %8181 = vmatmul.mubr.msk.bf16.vlgmr.msra.gmra.mrb[40].mxu0 %vm683_vm3, %v2005_v30 }
 0xd58   :  { %8194 = vmatprep.mubr.msk.bf16.mxu0 %vm9380_vm0, %v9379_v0 }
 0xd74   :  { %v1995_v31 = vpop.xlane.xlu1 %1994 }
 0xd75   :  { %9133 = vrcp.f32 %v1995_v31 }
 0xd78   :  { %v2311_v32 = vpop.permute.xlu1 %2310 }
 0xd79   :  { %v2316_v33 = vsel %vm735_vm2, %v2311_v32, 0  ;;  %v8795_v32 = vld [vmem:[#allocation5 + $0x1f4] ss:$24 sps:$4 sm:$0xff]  }
 0xd7a   :  { %8193 = vmatpush3.bf16.msra.mxu0 %v2316_v33  ;;  %v8793_v33 = vld [vmem:[#allocation5 + $0x1f0] ss:$24 sps:$4 sm:$0xff]  }
 0xd7b   :  { %2523 = vmatprep.subr.bf16.mxu0 %v8789_v11 }
 0xd7f   :  { %v9134_v34 = vpop.eup %9133 }
 0xd80   :  { %v2006_v36 = vmul.f32 %v9134_v34, %v9128_v16  ;;  %v8798_v34 = vld [vmem:[#allocation5 + $0x224] ss:$24 sps:$4 sm:$0xff]  }
 0xd82   :  { %v2007_v37 = vpack.c.bf16 %v2006_v36, %v2006_v36  ;;  %v8796_v36 = vld [vmem:[#allocation5 + $0x220] ss:$24 sps:$4 sm:$0xff]  }
 0xd84   :  { %8195 = vmatmul.mubr.msk.bf16.vlgmr.msra.gmra.mrb[44].mxu0 %vm683_vm3, %v2007_v37  ;;  %v8799_v37 = vld [vmem:[#allocation5 + $0x250] ss:$24 sps:$4 sm:$0xff]  }
 0xd85   :  { %2555 = vmatprep.mubr.bf16.mxu0 %v9381_v35  ;;  %2524 = vmatpush1.bf16.msra.mxu0 %v8787_v10  ;;  %v2413_v10 = vld [vmem:[#allocation10 + $0x1c] ss:$0 sm:$0xff] }
 0xd86   :  { %2525 = vmatprep.subr.bf16.mxu0 %v8792_v12 }
 0xd89   :  { %2526 = vmatpush1.bf16.msra.mxu0 %v8790_v13  ;;  %v8811_v13 = vld [vmem:[#allocation7] ss:$40 sps:$4 sm:$0xff]  }
 0xd8a   :  { %2527 = vmatprep.subr.bf16.mxu0 %v8795_v32  ;;  %v8849_v32 = vld [vmem:[#allocation8 + $0xf8] sm:$0xff]  }
 0xd8d   :  { %2528 = vmatpush1.bf16.msra.mxu0 %v8793_v33  ;;  %v8850_v33 = vld [vmem:[#allocation8 + $0xb8] sm:$0xff]  }
 0xd8e   :  { %2529 = vmatprep.subr.bf16.mxu0 %v8798_v34  ;;  %v2430_v34 = vld [vmem:[#allocation10 + $0x1d] ss:$8 sm:$0x3] }
 0xd91   :  { %2530 = vmatpush1.bf16.msra.mxu0 %v8796_v36  ;;  %v2436_v36 = vrot.slane %v2430_v34, %v9529_v45 }
 0xdaf   :  { %v2048_v39 = vpop.f32.mrb[32].mxu0 }
 0xdb0   :  { %v2054_v41 = vpack.c.bf16 %v2048_v39, %v2048_v39  ;;  %v8154_v42 = vpop.f32.mrb[33].mxu0  ;;  %v8801_v39 = vld [vmem:[#allocation5 + $0x254] ss:$24 sps:$4 sm:$0xff]  }
 0xdb1   :  { %v2051_v43 = vpop.f32.mrb[34].mxu0  ;;  %2531 = vmatprep.subr.bf16.mxu0 %v8801_v39  ;;  %v8805_v42 = vld [vmem:[#allocation5 + $0x2b0] ss:$24 sps:$4 sm:$0xff]  }
 0xdb2   :  { %v8155_v44 = vpop.f32.mrb[35].mxu0  ;;  %8161 = vmatmul.mubr.msk.bf16.vlgmr.msra.gmra.mrb[60].mxu1 %vm484_vm1, %v2054_v41  ;;  %2532 = vmatpush1.bf16.msra.mxu0 %v8799_v37  ;;  %v8807_v41 = vld [vmem:[#allocation5 + $0x2b4] ss:$24 sps:$4 sm:$0xff]   ;;  %v8810_v43 = vld [vmem:[#allocation5 + $0x2e4] ss:$24 sps:$4 sm:$0xff]   ;;  %v2440_v37 = vrot.slane %v2430_v34, %v9531_v47 }
 0xdb3   :  { %8171 = vmatpush3.bf16.msra.mxu1 %v8781_v40  ;;  %8174 = vmatprep.mubr.msk.bf16.mxu1 %vm9380_vm0, %v9379_v0  ;;  %v8804_v40 = vld [vmem:[#allocation5 + $0x284] ss:$24 sps:$4 sm:$0xff]   ;;  %v8808_v44 = vld [vmem:[#allocation5 + $0x2e0] ss:$24 sps:$4 sm:$0xff]  }
 0xdb4   :  { %8172 = vmatprep.subr.bf16.mxu1 %v9379_v0  ;;  %2533 = vmatprep.subr.bf16.mxu0 %v8804_v40 }
 0xdb7   :  { %8173 = vmatpush3.bf16.msra.mxu1 %v8782_v46  ;;  %v8813_v46 = vld [vmem:[#allocation7 + $0x4] ss:$40 sps:$4 sm:$0xff]  }
 0xdb8   :  { %8184 = vmatprep.subr.bf16.mxu1 %v9379_v0 }
 0xe22   :  { %v2150_v48 = vpop.f32.mrb[36].mxu0 }
 0xe23   :  { %v2156_v50 = vpack.c.bf16 %v2150_v48, %v2150_v48  ;;  %v8168_v51 = vpop.f32.mrb[37].mxu0  ;;  %v8835_v48 = vld [vmem:[#allocation8 + $0xc0] sm:$0xff]  }
 0xe24   :  { %v2153_v52 = vpop.f32.mrb[38].mxu0  ;;  %v8838_v51 = vld [vmem:[#allocation8 + $0x88] sm:$0xff]  }
 0xe25   :  { %v8169_v53 = vpop.f32.mrb[39].mxu0  ;;  %8175 = vmatmul.mubr.msk.bf16.vlgmr.msra.gmra.mrb[64].mxu1 %vm484_vm1, %v2156_v50  ;;  %v8837_v50 = vld [vmem:[#allocation8 + $0xc8] sm:$0xff]   ;;  %v8839_v52 = vld [vmem:[#allocation8 + $0xd0] sm:$0xff]  }
 0xe26   :  { %8185 = vmatpush3.bf16.msra.mxu1 %v8783_v49  ;;  %8188 = vmatprep.mubr.msk.bf16.mxu1 %vm9380_vm0, %v9379_v0  ;;  %v8836_v49 = vld [vmem:[#allocation8 + $0x80] sm:$0xff]   ;;  %v8840_v53 = vld [vmem:[#allocation8 + $0x90] sm:$0xff]  }
 0xe27   :  { %8186 = vmatprep.subr.bf16.mxu1 %v9379_v0 }
 0xe2a   :  { %v2251_v55 = vpop.f32.mrb[40].mxu0  ;;  %8187 = vmatpush3.bf16.msra.mxu1 %v8784_v54  ;;  %v8841_v54 = vld [vmem:[#allocation8 + $0xd8] sm:$0xff]  }
 0xe2b   :  { %v2257_v57 = vpack.c.bf16 %v2251_v55, %v2251_v55  ;;  %v8182_v58 = vpop.f32.mrb[41].mxu0  ;;  %8198 = vmatprep.subr.bf16.mxu1 %v9379_v0  ;;  %v8842_v55 = vld [vmem:[#allocation8 + $0x98] sm:$0xff]  }
 0xe2c   :  { %v2254_v59 = vpop.f32.mrb[42].mxu0  ;;  %v8845_v58 = vld [vmem:[#allocation8 + $0xe8] sm:$0xff]  }
 0xe2d   :  { %v8183_v60 = vpop.f32.mrb[43].mxu0  ;;  %8189 = vmatmul.mubr.msk.bf16.vlgmr.msra.gmra.mrb[68].mxu1 %vm484_vm1, %v2257_v57  ;;  %v8844_v57 = vld [vmem:[#allocation8 + $0xa0] sm:$0xff]   ;;  %v8846_v59 = vld [vmem:[#allocation8 + $0xa8] sm:$0xff]  }
 0xe2e   :  { %8199 = vmatpush3.bf16.msra.mxu1 %v8785_v56  ;;  %8202 = vmatprep.mubr.msk.bf16.mxu1 %vm9380_vm0, %v9379_v0  ;;  %v8843_v56 = vld [vmem:[#allocation8 + $0xe0] sm:$0xff]  }
 0xe2f   :  { %8200 = vmatprep.subr.bf16.mxu1 %v9379_v0 }
 0xe32   :  { %8201 = vmatpush3.bf16.msra.mxu1 %v8786_v61 }
 0xe33   :  { %7763 = vmatprep.subr.bf16.mxu1 %v8835_v48 }
 0xe57   :  { %v2352_v63 = vpop.f32.mrb[44].mxu0 }
 0xe58   :  { %v2358_v1 = vpack.c.bf16 %v2352_v63, %v2352_v63  ;;  %v8196_v2 = vpop.f32.mrb[45].mxu0 }
 0xe59   :  { %v2355_v3 = vpop.f32.mrb[46].mxu0 }
 0xe5a   :  { %v8197_v4 = vpop.f32.mrb[47].mxu0  ;;  %8203 = vmatmul.mubr.msk.bf16.vlgmr.msra.gmra.mrb[72].mxu1 %vm484_vm1, %v2358_v1 }
 0xe5b   :  { %7764 = vmatpush3.bf16.msra.mxu1 %v8836_v49  ;;  %v8851_v49 = vld [vmem:[#allocation7 + $0x8] ss:$40 sps:$4 sm:$0xff]  }
 0xe5c   :  { %7765 = vmatprep.subr.bf16.mxu1 %v8837_v50 }
 0xe5f   :  { %7766 = vmatpush3.bf16.msra.mxu1 %v8838_v51  ;;  %v8853_v51 = vld [vmem:[#allocation7 + $0x58] ss:$40 sps:$4 sm:$0xff]  }
 0xe60   :  { %7767 = vmatprep.subr.bf16.mxu1 %v8839_v52  ;;  %v8855_v52 = vld [vmem:[#allocation7 + $0xa8] ss:$40 sps:$4 sm:$0xff]  }
 0xe63   :  { %7768 = vmatpush3.bf16.msra.mxu1 %v8840_v53  ;;  %v8857_v53 = vld [vmem:[#allocation7 + $0xf8] ss:$40 sps:$4 sm:$0xff]  }
 0xe64   :  { %7769 = vmatprep.subr.bf16.mxu1 %v8841_v54  ;;  %v8859_v54 = vld [vmem:[#allocation7 + $0x148] ss:$40 sps:$4 sm:$0xff]  }
 0xe67   :  { %7770 = vmatpush3.bf16.msra.mxu1 %v8842_v55  ;;  %v9761_v55 = vld [vmem:[#allocation10 + $0x33] ss:$8 sm:$0x7] }
 0xe68   :  { %7771 = vmatprep.subr.bf16.mxu1 %v8843_v56  ;;  %v8861_v56 = vld [vmem:[#allocation7 + $0x198] ss:$40 sps:$4 sm:$0xff]  }
 0xe6b   :  { %7772 = vmatpush3.bf16.msra.mxu1 %v8844_v57  ;;  %v2861_v57 = vrot.slane %v9761_v55, %v9529_v45 }
 0xe6c   :  { %7773 = vmatprep.subr.bf16.mxu1 %v8845_v58  ;;  %v2865_v58 = vrot.slane %v9761_v55, %v9531_v47 }
 0xe6f   :  { %7774 = vmatpush3.bf16.msra.mxu1 %v8846_v59  ;;  %v8863_v59 = vld [vmem:[#allocation7 + $0x1e8] ss:$40 sps:$4 sm:$0xff]  }
 0xe85   :  { %v2100_v6 = vpop.f32.mrb[60].mxu1 }
 0xe86   :  { %v8162_v7 = vpop.f32.mrb[61].mxu1  ;;  %v2106_v15 = vadd.f32 %v2100_v6, %v1757_v14 }
 0xe87   :  { %v2103_v8 = vpop.f32.mrb[62].mxu1 }
 0xe88   :  { %v8163_v9 = vpop.f32.mrb[63].mxu1  ;;  %v2412_v8 = vld [vmem:[#allocation10 + $0x1b] ss:$0 sm:$0xff] }
 0xef8   :  { %v2202_v16 = vpop.f32.mrb[64].mxu1 }
 0xef9   :  { %v2208_v17 = vadd.f32 %v2202_v16, %v2106_v15  ;;  %v8176_v18 = vpop.f32.mrb[65].mxu1  ;;  %v8816_v15 = vld [vmem:[#allocation7 + $0x54] ss:$40 sps:$4 sm:$0xff]   ;;  %v8814_v16 = vld [vmem:[#allocation7 + $0x50] ss:$40 sps:$4 sm:$0xff]  }
 0xefa   :  { %v2205_v19 = vpop.f32.mrb[66].mxu1  ;;  %v8817_v18 = vld [vmem:[#allocation7 + $0xa0] ss:$40 sps:$4 sm:$0xff]  }
 0xefb   :  { %v8177_v20 = vpop.f32.mrb[67].mxu1  ;;  %v8822_v19 = vld [vmem:[#allocation7 + $0xf4] ss:$40 sps:$4 sm:$0xff]  }
 0xefc   :  { %v8820_v20 = vld [vmem:[#allocation7 + $0xf0] ss:$40 sps:$4 sm:$0xff]  }
 0xf00   :  { %v2303_v21 = vpop.f32.mrb[68].mxu1 }
 0xf01   :  { %v2309_v38 = vadd.f32 %v2303_v21, %v2208_v17  ;;  %v8190_v22 = vpop.f32.mrb[69].mxu1  ;;  %v8819_v17 = vld [vmem:[#allocation7 + $0xa4] ss:$40 sps:$4 sm:$0xff]  }
 0xf02   :  { %v2306_v23 = vpop.f32.mrb[70].mxu1  ;;  %v8825_v21 = vld [vmem:[#allocation7 + $0x144] ss:$40 sps:$4 sm:$0xff]   ;;  %v8828_v22 = vld [vmem:[#allocation7 + $0x194] ss:$40 sps:$4 sm:$0xff]  }
 0xf03   :  { %v8191_v24 = vpop.f32.mrb[71].mxu1  ;;  %v8826_v23 = vld [vmem:[#allocation7 + $0x190] ss:$40 sps:$4 sm:$0xff]  }
 0xf04   :  { %v8831_v24 = vld [vmem:[#allocation7 + $0x1e4] ss:$40 sps:$4 sm:$0xff]  }
 0xf2d   :  { %v2404_v25 = vpop.f32.mrb[72].mxu1 }
 0xf2e   :  { %v2410_v26 = vadd.f32 %v2404_v25, %v2309_v38  ;;  %v8204_v27 = vpop.f32.mrb[73].mxu1  ;;  %v8823_v38 = vld [vmem:[#allocation7 + $0x140] ss:$40 sps:$4 sm:$0xff]  }
 0xf2f   :  { %v2407_v28 = vpop.f32.mrb[74].mxu1  ;;  %v8829_v25 = vld [vmem:[#allocation7 + $0x1e0] ss:$40 sps:$4 sm:$0xff]   ;;  %v8832_v27 = vld [vmem:[#allocation7 + $0x230] ss:$40 sps:$4 sm:$0xff]  }
 0xf30   :  { %v9728_v29 = vadd.f32 %v2410_v26, %v9638_v62  ;;  %v8205_v30 = vpop.f32.mrb[75].mxu1  ;;  %v8802_v62 = vld [vmem:[#allocation5 + $0x280] ss:$24 sps:$4 sm:$0xff]   ;;  %v8834_v26 = vld [vmem:[#allocation7 + $0x234] ss:$40 sps:$4 sm:$0xff]  }
 0xf31   :  { %2534 = vmatpush1.bf16.msra.mxu0 %v8802_v62  ;;  %v9742_v28 = vld [vmem:[%s10213_s1] sm:$0xff]  ;;  %v8847_v30 = vld [vmem:[#allocation8 + $0xf0] sm:$0xff]   ;;  %s9384_s1 = smov [#allocation11]  }
 0xf32   :  { %2414 = vadd.xlane.f32.xlu0 %v9728_v29  ;;  %v2416_v31 = vmul.f32 %v9728_v29, %v9728_v29  ;;  %2535 = vmatprep.subr.bf16.mxu0 %v8807_v41 }
 0xf33   :  { %7775 = vmatprep.subr.bf16.mxu1 %v8847_v30 }
 0xf34   :  { %2417 = vadd.xlane.f32.xlu1 %v2416_v31  ;;  %v8848_v31 = vld [vmem:[#allocation8 + $0xb0] sm:$0xff]  }
 0xf35   :  { %2536 = vmatpush1.bf16.msra.mxu0 %v8805_v42  ;;  %7776 = vmatpush3.bf16.msra.mxu1 %v8848_v31 }
 0xf36   :  { %2537 = vmatprep.subr.bf16.mxu0 %v8810_v43  ;;  %7777 = vmatprep.subr.bf16.mxu1 %v8849_v32 }
 0xf39   :  { %2538 = vmatpush1.bf16.msra.mxu0 %v8808_v44  ;;  %7778 = vmatpush3.bf16.msra.mxu1 %v8850_v33 }
 0xf3a   :  { %3001 = vmatprep.subr.bf16.mxu0 %v8813_v46  ;;  %8206 = vmatprep.subr.bf16.mxu1 %v9379_v0 }
 0xfbf   :  { %v2415_v60 = vpop.xlane.xlu0 %2414 }
 0xfc0   :  { %v2419_v61 = vmul.f32 0.0078125, %v2415_v60 }
 0xfc1   :  { %v2418_v63 = vpop.xlane.xlu1 %2417 }
 0xfc2   :  { %v2421_v1 = vmul.f32 %v2419_v61, %v2419_v61  ;;  %v2420_v2 = vmul.f32 0.0078125, %v2418_v63  ;;  %v2423_v6 = vsub.f32 %v9728_v29, %v2419_v61  ;;  %v9746_v29 = vpack.c.bf16 %v9742_v28, %v9742_v28 }
 0xfc4   :  { %v2422_v3 = vsub.f32 %v2420_v2, %v2421_v1 }
 0xfc6   :  { %v2424_v4 = vadd.f32 1e-05, %v2422_v3  ;;  %v8865_v3 = vld [vmem:[#allocation7 + $0x238] ss:$40 sps:$4 sm:$0xff]  }
 0xfc8   :  { %9135 = vrsqrt.f32 %v2424_v4 }
 0xfd2   :  { %v9136_v7 = vpop.eup %9135 }
 0xfd3   :  { %v2426_v9 = vmul.f32 %v9136_v7, %v2423_v6 }
 0xfd5   :  { %v2427_v11 = vmul.f32 %v2426_v9, %v2412_v8 }
 0xfd7   :  { %v9734_v12 = vadd.f32 %v2427_v11, %v2413_v10 }
 0xfd9   :  { %v2431_v14 = vpack.c.bf16 %v9734_v12, %v9734_v12 }
 0xfdb   :  { %2556 = vmatmul.mubr.bf16.vlgmr.msra.gmra.mrb[48].mxu0 %v2431_v14 }
 0xfdc   :  { %3002 = vmatpush1.bf16.msra.mxu0 %v8811_v13  ;;  %3033 = vmatprep.mubr.bf16.mxu0 %v9381_v35 }
 0xfdd   :  { %3003 = vmatprep.subr.bf16.mxu0 %v8816_v15 }
 0xfe0   :  { %3004 = vmatpush1.bf16.msra.mxu0 %v8814_v16 }
 0xfe1   :  { %3005 = vmatprep.subr.bf16.mxu0 %v8819_v17 }
 0xfe4   :  { %3006 = vmatpush1.bf16.msra.mxu0 %v8817_v18 }
 0xfe5   :  { %3007 = vmatprep.subr.bf16.mxu0 %v8822_v19 }
 0xfe8   :  { %3008 = vmatpush1.bf16.msra.mxu0 %v8820_v20 }
 0xfe9   :  { %3009 = vmatprep.subr.bf16.mxu0 %v8825_v21 }
 0xfec   :  { %3010 = vmatpush1.bf16.msra.mxu0 %v8823_v38 }
 0xfed   :  { %3011 = vmatprep.subr.bf16.mxu0 %v8828_v22 }
 0xff0   :  { %3012 = vmatpush1.bf16.msra.mxu0 %v8826_v23 }
 0xff1   :  { %3013 = vmatprep.subr.bf16.mxu0 %v8831_v24  ;;  %v2869_v24 = vrot.slane %v9761_v55, %v9548_v5 }
 0xff4   :  { %3014 = vmatpush1.bf16.msra.mxu0 %v8829_v25 }
 0xff5   :  { %3015 = vmatprep.subr.bf16.mxu0 %v8834_v26 }
 0xff8   :  { %3016 = vmatpush1.bf16.msra.mxu0 %v8832_v27 }
 0xff9   :  { %8226 = vmatprep.subr.bf16.mxu0 %v9379_v0 }
 0xffb   :  { %3034 = vmatmul.mubr.bf16.vlgmr.msra.gmra.mrb[52].mxu0 %v9746_v29 }
 0xffc   :  { %8228 = vmatprep.mubr.msk.bf16.mxu0 %vm9380_vm0, %v9379_v0 }
0x10ae   :  { %v2557_v39 = vpop.f32.mrb[48].mxu0 }
0x10af   :  { %v2558_v40 = vadd.f32 %v2557_v39, %v2436_v36  ;;  %v2559_v62 = vpop.f32.mrb[49].mxu0 }
0x10b0   :  { %v2560_v41 = vadd.f32 %v2559_v62, %v2440_v37  ;;  %v2561_v42 = vpop.f32.mrb[50].mxu0 }
0x10b1   :  { %v2564_v43 = vmax.f32 %v2558_v40, 0.0  ;;  %v2562_v44 = vpop.f32.mrb[51].mxu0 }
0x10b2   :  { %v2565_v46 = vmax.f32 %v2560_v41, 0.0 }
0x10b3   :  { %v2600_v50 = vpack.c.bf16 %v2564_v43, %v2564_v43 }
0x10b4   :  { %v2601_v48 = vpack.c.bf16 %v2565_v46, %v2565_v46 }
0x10b6   :  { %2730 = vmatprep.mubr.bf16.mxu1 %v2601_v48 }
0x10b7   :  { %2731 = vmatmul.mubr.bf16.vlgmr.msra.gmra.mrb[76].mxu1 %v2600_v50 }
0x10b8   :  { %8207 = vmatpush3.bf16.msra.mxu1 %v8851_v49  ;;  %8222 = vmatprep.mubr.msk.bf16.mxu1 %vm9380_vm0, %v9379_v0 }
0x10b9   :  { %8208 = vmatprep.subr.bf16.mxu1 %v9379_v0 }
0x10bc   :  { %8209 = vmatpush3.bf16.msra.mxu1 %v8853_v51 }
0x10bd   :  { %8210 = vmatprep.subr.bf16.mxu1 %v9379_v0 }
0x10c0   :  { %8211 = vmatpush3.bf16.msra.mxu1 %v8855_v52 }
0x10c1   :  { %8212 = vmatprep.subr.bf16.mxu1 %v9379_v0 }
0x10c4   :  { %8213 = vmatpush3.bf16.msra.mxu1 %v8857_v53 }
0x10c5   :  { %8214 = vmatprep.subr.bf16.mxu1 %v9379_v0 }
0x10c8   :  { %8215 = vmatpush3.bf16.msra.mxu1 %v8859_v54 }
0x10c9   :  { %8216 = vmatprep.subr.bf16.mxu1 %v9379_v0 }
0x10cc   :  { %8217 = vmatpush3.bf16.msra.mxu1 %v8861_v56 }
0x10cd   :  { %8218 = vmatprep.subr.bf16.mxu1 %v9379_v0 }
0x10ce   :  { %v3035_v60 = vpop.f32.mrb[52].mxu0 }
0x10cf   :  { %v3036_v61 = vadd.f32 %v3035_v60, %v2861_v57  ;;  %v3037_v63 = vpop.f32.mrb[53].mxu0 }
0x10d0   :  { %v3038_v1 = vadd.f32 %v3037_v63, %v2865_v58  ;;  %v3039_v2 = vpop.f32.mrb[54].mxu0  ;;  %8219 = vmatpush3.bf16.msra.mxu1 %v8863_v59 }
0x10d1   :  { %v3083_v4 = vmul.f32 0.17677669, %v3036_v61  ;;  %v3040_v6 = vpop.f32.mrb[55].mxu0  ;;  %8220 = vmatprep.subr.bf16.mxu1 %v9379_v0 }
0x10d2   :  { %v3085_v7 = vpack.c.bf16 %v3038_v1, %v3038_v1 }
0x10d3   :  { %v3084_v8 = vpack.c.bf16 %v3083_v4, %v3083_v4 }
0x10d4   :  { %3137 = vrot.lane.b32.xlu0 %v3085_v7, %s9382_s0  ;;  %v3091_v9 = vsel %vm484_vm1, %v3085_v7, 0  ;;  %8221 = vmatpush3.bf16.msra.mxu1 %v8865_v3 }
0x10d5   :  { %8227 = vmatpush3.bf16.xpose.msra.mxu0 %v3091_v9  ;;  %3134 = vrot.lane.b32.xlu1 %v3084_v8, %s9382_s0 }
0x10d6   :  { %8232 = vmatprep.subr.bf16.mxu1 %v9379_v0  ;;  %8238 = vmatprep.subr.bf16.mxu0 %v9379_v0 }
0x10d7   :  { %8223 = vmatmul.mubr.bf16.vlgmr.msra.gmra.mrb[80].mxu1 %v9746_v29 }
0x10d8   :  { %3187 = vrot.lane.b32.xlu0 %v3085_v7, %s9373_s25  ;;  %8234 = vmatprep.mubr.msk.bf16.mxu1 %vm9380_vm0, %v9379_v0 }
0x10d9   :  { %3185 = vrot.lane.b32.xlu1 %v3084_v8, %s9373_s25 }
0x10dc   :  { %3237 = vrot.lane.b32.xlu0 %v3085_v7, %s9383_s12  ;;  %8229 = vmatmul.mubr.msk.bf16.vlgmr.msra.gmra.mrb[56].mxu0 %vm484_vm1, %v3084_v8 }
0x10dd   :  { %3235 = vrot.lane.b32.xlu1 %v3084_v8, %s9383_s12  ;;  %8240 = vmatprep.mubr.msk.bf16.mxu0 %vm9380_vm0, %v9379_v0 }
0x1146   :  { %v3138_v10 = vpop.permute.xlu0 %3137 }
0x1147   :  { %v3143_v11 = vsel %vm484_vm1, %v3138_v10, 0  ;;  %v3135_v13 = vpop.permute.xlu1 %3134 }
0x1148   :  { %8233 = vmatpush3.bf16.xpose.msra.mxu1 %v3143_v11 }
0x1149   :  { %8244 = vmatprep.subr.bf16.mxu1 %v9379_v0 }
0x114a   :  { %v3188_v14 = vpop.permute.xlu0 %3187 }
0x114b   :  { %v3193_v15 = vsel %vm484_vm1, %v3188_v14, 0  ;;  %v3186_v18 = vpop.permute.xlu1 %3185 }
0x114c   :  { %8239 = vmatpush3.bf16.xpose.msra.mxu0 %v3193_v15 }
0x114d   :  { %8250 = vmatprep.subr.bf16.mxu0 %v9379_v0 }
0x114e   :  { %v3238_v16 = vpop.permute.xlu0 %3237 }
0x114f   :  { %v3243_v17 = vsel %vm484_vm1, %v3238_v16, 0  ;;  %8235 = vmatmul.mubr.msk.bf16.vlgmr.msra.gmra.mrb[84].mxu1 %vm484_vm1, %v3135_v13  ;;  %v3236_v19 = vpop.permute.xlu1 %3235 }
0x1150   :  { %8245 = vmatpush3.bf16.xpose.msra.mxu1 %v3243_v17  ;;  %8246 = vmatprep.mubr.msk.bf16.mxu1 %vm9380_vm0, %v9379_v0 }
0x1151   :  { %8256 = vmatprep.subr.bf16.mxu1 %v9379_v0 }
0x1153   :  { %8241 = vmatmul.mubr.msk.bf16.vlgmr.msra.gmra.mrb[60].mxu0 %vm484_vm1, %v3186_v18 }
0x1154   :  { %8252 = vmatprep.mubr.msk.bf16.mxu0 %vm9380_vm0, %v9379_v0 }
0x1157   :  { %8247 = vmatmul.mubr.msk.bf16.vlgmr.msra.gmra.mrb[88].mxu1 %vm484_vm1, %v3236_v19 }
0x1158   :  { %8260 = vmatprep.mubr.msk.bf16.mxu1 %vm9380_vm0, %v9379_v0 }
0x118a   :  { %v7779_v20 = vpop.f32.mrb[76].mxu1 }
0x118b   :  { %v7780_v21 = vpop.f32.mrb[77].mxu1 }
0x118c   :  { %v9800_v38 = vadd.f32 %v7780_v21, %v7779_v20  ;;  %v7782_v22 = vpop.f32.mrb[78].mxu1 }
0x118d   :  { %v7783_v23 = vpop.f32.mrb[79].mxu1  ;;  %v2599_v22 = vld [vmem:[#allocation10 + $0x1e] ss:$0 sm:$0xff] }
0x118e   :  { %v2733_v23 = vadd.f32 %v9800_v38, %v2599_v22 }
0x11aa   :  { %v3076_v25 = vpop.f32.mrb[80].mxu1 }
0x11ab   :  { %v3077_v26 = vadd.f32 %v3076_v25, %v2869_v24  ;;  %v8224_v27 = vpop.f32.mrb[81].mxu1  ;;  %v2738_v24 = vadd.f32 %v2733_v23, %v9734_v12 }
0x11ac   :  { %v3079_v29 = vpop.f32.mrb[82].mxu1  ;;  %v8868_v27 = vld [vmem:[#allocation7 + $0x5c] ss:$40 sps:$4 sm:$0xff]  }
0x11ad   :  { %v3086_v30 = vpack.c.bf16 %v3077_v26, %v3077_v26  ;;  %v8225_v31 = vpop.f32.mrb[83].mxu1  ;;  %v2743_v25 = vmul.f32 %v2738_v24, %v2738_v24  ;;  %v8867_v26 = vld [vmem:[#allocation7 + $0xc] ss:$40 sps:$4 sm:$0xff]  }
0x11ae   :  { %8257 = vmatpush3.bf16.msra.mxu1 %v8867_v26  ;;  %v8874_v26 = vld [vmem:[#allocation7 + $0x23c] ss:$40 sps:$4 sm:$0xff]  }
0x11af   :  { %v3127_v32 = vpop.f32.mrb[56].mxu0  ;;  %v3337_v33 = vsel %vm735_vm2, %v3086_v30, 0  ;;  %8258 = vmatprep.subr.bf16.mxu1 %v9379_v0 }
0x11b0   :  { %v8230_v34 = vpop.f32.mrb[57].mxu0  ;;  %v3285_v36 = vsel %vm683_vm3, %v3127_v32, -inf  ;;  %8251 = vmatpush3.bf16.msra.mxu0 %v3337_v33 }
0x11b1   :  { %3286 = vmax.xlane.f32.xlu0 %v3285_v36  ;;  %v3130_v37 = vpop.f32.mrb[58].mxu0  ;;  %8264 = vmatprep.subr.bf16.mxu0 %v9379_v0 }
0x11b2   :  { %v8231_v39 = vpop.f32.mrb[59].mxu0  ;;  %8259 = vmatpush3.bf16.msra.mxu1 %v8868_v27  ;;  %v8875_v27 = vld [vmem:[#allocation7 + $0x18] ss:$40 sps:$4 sm:$0xff]  }
0x11b3   :  { %8270 = vmatprep.subr.bf16.mxu1 %v9379_v0 }
0x1222   :  { %v3179_v40 = vpop.f32.mrb[84].mxu1 }
0x1223   :  { %v8236_v62 = vpop.f32.mrb[85].mxu1  ;;  %v3288_v41 = vsel %vm683_vm3, %v3179_v40, -inf }
0x1224   :  { %3289 = vmax.xlane.f32.xlu1 %v3288_v41  ;;  %v3182_v42 = vpop.f32.mrb[86].mxu1 }
0x1225   :  { %v8237_v43 = vpop.f32.mrb[87].mxu1 }
0x1226   :  { %v3229_v44 = vpop.f32.mrb[60].mxu0 }
0x1227   :  { %v8242_v46 = vpop.f32.mrb[61].mxu0  ;;  %v3291_v48 = vsel %vm683_vm3, %v3229_v44, -inf }
0x1228   :  { %3292 = vmax.xlane.f32.xlu0 %v3291_v48  ;;  %v3232_v49 = vpop.f32.mrb[62].mxu0 }
0x1229   :  { %v8243_v50 = vpop.f32.mrb[63].mxu0 }
0x122a   :  { %v3279_v51 = vpop.f32.mrb[88].mxu1 }
0x122b   :  { %v8248_v52 = vpop.f32.mrb[89].mxu1  ;;  %v3294_v53 = vsel %vm683_vm3, %v3279_v51, -inf }
0x122c   :  { %3295 = vmax.xlane.f32.xlu0 %v3294_v53  ;;  %v3282_v54 = vpop.f32.mrb[90].mxu1 }
0x122d   :  { %v8249_v55 = vpop.f32.mrb[91].mxu1 }
0x122e   :  { %v2739_v55 = vld [vmem:[#allocation10 + $0x1f] ss:$0 sm:$0xff] }
0x123e   :  { %v3287_v56 = vpop.xlane.xlu0 %3286 }
0x123f   :  { %v3297_v57 = vsub.f32 %v3127_v32, %v3287_v56 }
0x1241   :  { %v3298_v58 = vmul.f32 1.442695, %v3297_v57  ;;  %v2740_v57 = vld [vmem:[#allocation10 + $0x30] ss:$0 sm:$0xff] }
0x1243   :  { %9137 = vpow2.f32 %v3298_v58 }
0x124d   :  { %v9138_v59 = vpop.eup %9137 }
0x124e   :  { %v3309_v60 = vsel %vm683_vm3, %v9138_v59, 0.0 }
0x124f   :  { %3310 = vadd.xlane.f32.xlu1 %v3309_v60 }
0x1260   :  { %3433 = vrot.lane.b32.xlu1 %v3086_v30, %s9382_s0 }
0x12b1   :  { %v3290_v61 = vpop.xlane.xlu1 %3289 }
0x12b2   :  { %v3300_v63 = vsub.f32 %v3179_v40, %v3290_v61 }
0x12b4   :  { %v3301_v1 = vmul.f32 1.442695, %v3300_v63  ;;  %v8869_v63 = vld [vmem:[#allocation7 + $0xac] ss:$40 sps:$4 sm:$0xff]  }
0x12b5   :  { %v3293_v2 = vpop.xlane.xlu0 %3292 }
0x12b6   :  { %9139 = vpow2.f32 %v3301_v1  ;;  %v3303_v3 = vsub.f32 %v3229_v44, %v3293_v2 }
0x12b8   :  { %v3304_v4 = vmul.f32 1.442695, %v3303_v3 }
0x12b9   :  { %v3296_v6 = vpop.xlane.xlu0 %3295 }
0x12ba   :  { %9141 = vpow2.f32 %v3304_v4  ;;  %v3306_v7 = vsub.f32 %v3279_v51, %v3296_v6  ;;  %v8870_v6 = vld [vmem:[#allocation7 + $0xfc] ss:$40 sps:$4 sm:$0xff]  }
0x12bc   :  { %v3307_v8 = vmul.f32 1.442695, %v3306_v7 }
0x12be   :  { %9143 = vpow2.f32 %v3307_v8  ;;  %v8871_v8 = vld [vmem:[#allocation7 + $0x14c] ss:$40 sps:$4 sm:$0xff]  }
0x12c0   :  { %v9140_v9 = vpop.eup %9139 }
0x12c1   :  { %v3312_v10 = vsel %vm683_vm3, %v9140_v9, 0.0 }
0x12c2   :  { %3313 = vadd.xlane.f32.xlu0 %v3312_v10 }
0x12c4   :  { %v9142_v11 = vpop.eup %9141 }
0x12c5   :  { %v3315_v13 = vsel %vm683_vm3, %v9142_v11, 0.0 }
0x12c6   :  { %3316 = vadd.xlane.f32.xlu1 %v3315_v13 }
0x12c8   :  { %v9144_v14 = vpop.eup %9143 }
0x12c9   :  { %v3318_v15 = vsel %vm683_vm3, %v9144_v14, 0.0 }
0x12ca   :  { %3319 = vadd.xlane.f32.xlu0 %v3318_v15 }
0x12d7   :  { %3635 = vrot.lane.b32.xlu1 %v3086_v30, %s9383_s12 }
0x12dc   :  { %v3311_v16 = vpop.xlane.xlu1 %3310 }
0x12dd   :  { %9145 = vrcp.f32 %v3311_v16 }
0x12e0   :  { %3534 = vrot.lane.b32.xlu0 %v3086_v30, %s9373_s25  ;;  %v3434_v19 = vpop.permute.xlu1 %3433 }
0x12e1   :  { %v3439_v21 = vsel %vm735_vm2, %v3434_v19, 0 }
0x12e7   :  { %v9146_v17 = vpop.eup %9145 }
0x12e8   :  { %v3325_v18 = vmul.f32 %v9146_v17, %v9138_v59 }
0x12ea   :  { %v3326_v20 = vpack.c.bf16 %v3325_v18, %v3325_v18  ;;  %v8873_v18 = vld [vmem:[#allocation7 + $0x1ec] ss:$40 sps:$4 sm:$0xff]  }
0x12ec   :  { %8253 = vmatmul.mubr.msk.bf16.vlgmr.msra.gmra.mrb[64].mxu0 %vm683_vm3, %v3326_v20 }
0x12ed   :  { %8265 = vmatpush3.bf16.msra.mxu0 %v3439_v21  ;;  %8266 = vmatprep.mubr.msk.bf16.mxu0 %vm9380_vm0, %v9379_v0 }
0x12ee   :  { %8278 = vmatprep.subr.bf16.mxu0 %v9379_v0 }
0x12fb   :  { %2741 = vadd.xlane.f32.xlu1 %v2738_v24 }
0x12ff   :  { %2744 = vadd.xlane.f32.xlu0 %v2743_v25 }
0x134f   :  { %v3314_v29 = vpop.xlane.xlu0 %3313 }
0x1350   :  { %9147 = vrcp.f32 %v3314_v29 }
0x1353   :  { %v3317_v30 = vpop.xlane.xlu1 %3316 }
0x1354   :  { %9149 = vrcp.f32 %v3317_v30 }
0x1357   :  { %v3320_v31 = vpop.xlane.xlu0 %3319  ;;  %v3636_v39 = vpop.permute.xlu1 %3635 }
0x1358   :  { %9151 = vrcp.f32 %v3320_v31  ;;  %v3641_v41 = vsel %vm735_vm2, %v3636_v39, 0  ;;  %v8878_v31 = vld [vmem:[#allocation7 + $0x14] ss:$40 sps:$4 sm:$0xff]   ;;  %v8885_v39 = vld [vmem:[#allocation7 + $0xb8] ss:$40 sps:$4 sm:$0xff]  }
0x135a   :  { %v9148_v32 = vpop.eup %9147 }
0x135b   :  { %v3327_v38 = vmul.f32 %v9148_v32, %v9140_v9  ;;  %v3535_v12 = vpop.permute.xlu0 %3534 }
0x135c   :  { %v3540_v36 = vsel %vm735_vm2, %v3535_v12, 0  ;;  %v8880_v12 = vld [vmem:[#allocation7 + $0x68] ss:$40 sps:$4 sm:$0xff]  }
0x135d   :  { %v3328_v33 = vpack.c.bf16 %v3327_v38, %v3327_v38 }
0x135e   :  { %v9150_v34 = vpop.eup %9149 }
0x135f   :  { %8267 = vmatmul.mubr.msk.bf16.vlgmr.msra.gmra.mrb[68].mxu0 %vm683_vm3, %v3328_v33  ;;  %v3329_v37 = vmul.f32 %v9150_v34, %v9142_v11 }
0x1360   :  { %8279 = vmatpush3.bf16.msra.mxu0 %v3540_v36  ;;  %8280 = vmatprep.mubr.msk.bf16.mxu0 %vm9380_vm0, %v9379_v0 }
0x1361   :  { %8292 = vmatprep.subr.bf16.mxu0 %v9379_v0  ;;  %v3330_v40 = vpack.c.bf16 %v3329_v37, %v3329_v37  ;;  %v8883_v37 = vld [vmem:[#allocation7 + $0x64] ss:$40 sps:$4 sm:$0xff]  }
0x1362   :  { %v9152_v62 = vpop.eup %9151 }
0x1363   :  { %v3331_v42 = vmul.f32 %v9152_v62, %v9144_v14  ;;  %v8872_v14 = vld [vmem:[#allocation7 + $0x19c] ss:$40 sps:$4 sm:$0xff]   ;;  %v8890_v62 = vld [vmem:[#allocation7 + $0x108] ss:$40 sps:$4 sm:$0xff]  }
0x1365   :  { %v3332_v43 = vpack.c.bf16 %v3331_v42, %v3331_v42  ;;  %v8895_v42 = vld [vmem:[#allocation7 + $0x158] ss:$40 sps:$4 sm:$0xff]  }
0x1367   :  { %8281 = vmatmul.mubr.msk.bf16.vlgmr.msra.gmra.mrb[72].mxu0 %vm683_vm3, %v3330_v40  ;;  %v8888_v40 = vld [vmem:[#allocation7 + $0xb4] ss:$40 sps:$4 sm:$0xff]  }
0x1368   :  { %8293 = vmatpush3.bf16.msra.mxu0 %v3641_v41  ;;  %8294 = vmatprep.mubr.msk.bf16.mxu0 %vm9380_vm0, %v9379_v0  ;;  %v8893_v41 = vld [vmem:[#allocation7 + $0x104] ss:$40 sps:$4 sm:$0xff]  }
0x1369   :  { %8306 = vmatprep.subr.bf16.mxu0 %v9379_v0 }
0x136f   :  { %8295 = vmatmul.mubr.msk.bf16.vlgmr.msra.gmra.mrb[76].mxu0 %vm683_vm3, %v3332_v43  ;;  %v8898_v43 = vld [vmem:[#allocation7 + $0x154] ss:$40 sps:$4 sm:$0xff]  }
0x1370   :  { %8322 = vmatprep.mubr.msk.bf16.mxu0 %vm9380_vm0, %v9379_v0 }
0x1388   :  { %v2742_v44 = vpop.xlane.xlu1 %2741 }
0x1389   :  { %v2746_v46 = vmul.f32 0.0078125, %v2742_v44  ;;  %v8900_v44 = vld [vmem:[#allocation7 + $0x1a8] ss:$40 sps:$4 sm:$0xff]  }
0x138b   :  { %v2748_v49 = vmul.f32 %v2746_v46, %v2746_v46  ;;  %v2750_v53 = vsub.f32 %v2738_v24, %v2746_v46 }
0x138c   :  { %v2745_v48 = vpop.xlane.xlu0 %2744 }
0x138d   :  { %v2747_v50 = vmul.f32 0.0078125, %v2745_v48 }
0x138f   :  { %v2749_v51 = vsub.f32 %v2747_v50, %v2748_v49  ;;  %v8903_v49 = vld [vmem:[#allocation7 + $0x1a4] ss:$40 sps:$4 sm:$0xff]   ;;  %v8905_v50 = vld [vmem:[#allocation7 + $0x1f8] ss:$40 sps:$4 sm:$0xff]  }
0x1391   :  { %v2751_v52 = vadd.f32 1e-05, %v2749_v51 }
0x1393   :  { %9153 = vrsqrt.f32 %v2751_v52  ;;  %v2756_v52 = vld [vmem:[#allocation10 + $0x31] ss:$0 sm:$0xff] }
0x139d   :  { %v9154_v54 = vpop.eup %9153 }
0x139e   :  { %v2753_v56 = vmul.f32 %v9154_v54, %v2750_v53  ;;  %v8908_v53 = vld [vmem:[#allocation7 + $0x1f4] ss:$40 sps:$4 sm:$0xff]   ;;  %v8910_v54 = vld [vmem:[#allocation7 + $0x248] ss:$40 sps:$4 sm:$0xff]  }
0x13a0   :  { %v2754_v58 = vmul.f32 %v2753_v56, %v2739_v55  ;;  %v2757_v56 = vld [vmem:[#allocation10 + $0x32] ss:$0 sm:$0xff] }
0x13a2   :  { %v9839_v59 = vadd.f32 %v2754_v58, %v2740_v57  ;;  %v8913_v57 = vld [vmem:[#allocation7 + $0x244] ss:$40 sps:$4 sm:$0xff]  }
0x13a4   :  { %2758 = vadd.xlane.f32.xlu0 %v9839_v59  ;;  %v2760_v60 = vmul.f32 %v9839_v59, %v9839_v59 }
0x13a6   :  { %2761 = vadd.xlane.f32.xlu1 %v2760_v60 }
0x13bf   :  { %v3373_v61 = vpop.f32.mrb[64].mxu0 }
0x13c0   :  { %v3379_v1 = vpack.c.bf16 %v3373_v61, %v3373_v61  ;;  %v8254_v2 = vpop.f32.mrb[65].mxu0 }
0x13c1   :  { %v3376_v3 = vpop.f32.mrb[66].mxu0  ;;  %v8915_v2 = vld [vmem:[#allocation7 + $0x10] ss:$40 sps:$4 sm:$0xff]  }
0x13c2   :  { %v8255_v4 = vpop.f32.mrb[67].mxu0  ;;  %8261 = vmatmul.mubr.msk.bf16.vlgmr.msra.gmra.mrb[92].mxu1 %vm484_vm1, %v3379_v1  ;;  %8307 = vmatpush3.bf16.msra.mxu0 %v8915_v2  ;;  %v8916_v3 = vld [vmem:[#allocation7 + $0x60] ss:$40 sps:$4 sm:$0xff]  }
0x13c3   :  { %8271 = vmatpush3.bf16.msra.mxu1 %v8869_v63  ;;  %8274 = vmatprep.mubr.msk.bf16.mxu1 %vm9380_vm0, %v9379_v0  ;;  %v8917_v4 = vld [vmem:[#allocation7 + $0xb0] ss:$40 sps:$4 sm:$0xff]  }
0x13c4   :  { %8272 = vmatprep.subr.bf16.mxu1 %v9379_v0  ;;  %8308 = vmatprep.subr.bf16.mxu0 %v9379_v0 }
0x13c6   :  { %8309 = vmatpush3.bf16.msra.mxu0 %v8916_v3 }
0x13c7   :  { %8273 = vmatpush3.bf16.msra.mxu1 %v8870_v6  ;;  %8310 = vmatprep.subr.bf16.mxu0 %v9379_v0  ;;  %v3082_v6 = vld [vmem:[#allocation10 + $0x34] ss:$0 sm:$0xff] }
0x13c8   :  { %8284 = vmatprep.subr.bf16.mxu1 %v9379_v0 }
0x13ca   :  { %8311 = vmatpush3.bf16.msra.mxu0 %v8917_v4 }
0x13cb   :  { %8312 = vmatprep.subr.bf16.mxu0 %v9379_v0 }
0x1431   :  { %v2759_v15 = vpop.xlane.xlu0 %2758 }
0x1432   :  { %v3475_v7 = vpop.f32.mrb[68].mxu0  ;;  %v2763_v16 = vmul.f32 0.0078125, %v2759_v15 }
0x1433   :  { %v3481_v9 = vpack.c.bf16 %v3475_v7, %v3475_v7  ;;  %v8268_v10 = vpop.f32.mrb[69].mxu0  ;;  %v2762_v19 = vpop.xlane.xlu1 %2761 }
0x1434   :  { %v3478_v11 = vpop.f32.mrb[70].mxu0  ;;  %v2765_v24 = vmul.f32 %v2763_v16, %v2763_v16  ;;  %v2764_v25 = vmul.f32 0.0078125, %v2762_v19  ;;  %v2767_v48 = vsub.f32 %v9839_v59, %v2763_v16 }
0x1435   :  { %v8269_v13 = vpop.f32.mrb[71].mxu0  ;;  %8275 = vmatmul.mubr.msk.bf16.vlgmr.msra.gmra.mrb[96].mxu1 %vm484_vm1, %v3481_v9 }
0x1436   :  { %8285 = vmatpush3.bf16.msra.mxu1 %v8871_v8  ;;  %8288 = vmatprep.mubr.msk.bf16.mxu1 %vm9380_vm0, %v9379_v0  ;;  %v2766_v29 = vsub.f32 %v2764_v25, %v2765_v24 }
0x1437   :  { %8286 = vmatprep.subr.bf16.mxu1 %v9379_v0 }
0x1438   :  { %v2768_v36 = vadd.f32 1e-05, %v2766_v29  ;;  %v3845_v29 = vld [vmem:[#allocation10 + $0x48] ss:$8 sm:$0x3] }
0x143a   :  { %8287 = vmatpush3.bf16.msra.mxu1 %v8872_v14  ;;  %v3576_v17 = vpop.f32.mrb[72].mxu0  ;;  %9155 = vrsqrt.f32 %v2768_v36 }
0x143b   :  { %v3582_v20 = vpack.c.bf16 %v3576_v17, %v3576_v17  ;;  %v8282_v21 = vpop.f32.mrb[73].mxu0  ;;  %8298 = vmatprep.subr.bf16.mxu1 %v9379_v0 }
0x143c   :  { %v3579_v22 = vpop.f32.mrb[74].mxu0 }
0x143d   :  { %v8283_v23 = vpop.f32.mrb[75].mxu0  ;;  %8289 = vmatmul.mubr.msk.bf16.vlgmr.msra.gmra.mrb[100].mxu1 %vm484_vm1, %v3582_v20 }
0x143e   :  { %8299 = vmatpush3.bf16.msra.mxu1 %v8873_v18  ;;  %8302 = vmatprep.mubr.msk.bf16.mxu1 %vm9380_vm0, %v9379_v0 }
0x143f   :  { %8300 = vmatprep.subr.bf16.mxu1 %v9379_v0 }
0x1442   :  { %8301 = vmatpush3.bf16.msra.mxu1 %v8874_v26  ;;  %v3677_v30 = vpop.f32.mrb[76].mxu0  ;;  %v8918_v26 = vld [vmem:[#allocation7 + $0x100] ss:$40 sps:$4 sm:$0xff]  }
0x1443   :  { %v3683_v32 = vpack.c.bf16 %v3677_v30, %v3677_v30  ;;  %v8296_v38 = vpop.f32.mrb[77].mxu0  ;;  %3938 = vmatprep.subr.bf16.mxu1 %v8875_v27  ;;  %8313 = vmatpush3.bf16.msra.mxu0 %v8918_v26  ;;  %v8919_v27 = vld [vmem:[#allocation7 + $0x150] ss:$40 sps:$4 sm:$0xff]   ;;  %v8920_v30 = vld [vmem:[#allocation7 + $0x1a0] ss:$40 sps:$4 sm:$0xff]  }
0x1444   :  { %v3680_v33 = vpop.f32.mrb[78].mxu0  ;;  %v9156_v46 = vpop.eup %9155  ;;  %8314 = vmatprep.subr.bf16.mxu0 %v9379_v0 }
0x1445   :  { %v8297_v34 = vpop.f32.mrb[79].mxu0  ;;  %8303 = vmatmul.mubr.msk.bf16.vlgmr.msra.gmra.mrb[104].mxu1 %vm484_vm1, %v3683_v32  ;;  %v2770_v51 = vmul.f32 %v9156_v46, %v2767_v48  ;;  %v3855_v32 = vrot.slane %v3845_v29, %v9531_v47 }
0x1446   :  { %3939 = vmatpush1.bf16.msra.mxu1 %v8878_v31  ;;  %3970 = vmatprep.mubr.bf16.mxu1 %v9381_v35  ;;  %v3851_v31 = vrot.slane %v3845_v29, %v9529_v45 }
0x1447   :  { %3940 = vmatprep.subr.bf16.mxu1 %v8880_v12  ;;  %v2771_v55 = vmul.f32 %v2770_v51, %v2756_v52  ;;  %8315 = vmatpush3.bf16.msra.mxu0 %v8919_v27 }
0x1448   :  { %8316 = vmatprep.subr.bf16.mxu0 %v9379_v0 }
0x1449   :  { %v2772_v58 = vadd.f32 %v2771_v55, %v2757_v56  ;;  %v3738_v55 = vld [vmem:[#allocation10 + $0x36] ss:$0 sm:$0xff] }
0x144a   :  { %3941 = vmatpush1.bf16.msra.mxu1 %v8883_v37  ;;  %v8922_v37 = vld [vmem:[#allocation7 + $0x240] ss:$40 sps:$4 sm:$0xff]  }
0x144b   :  { %3942 = vmatprep.subr.bf16.mxu1 %v8885_v39  ;;  %v9861_v60 = vpack.c.bf16 %v2772_v58, %v2772_v58  ;;  %8317 = vmatpush3.bf16.msra.mxu0 %v8920_v30 }
0x144c   :  { %8318 = vmatprep.subr.bf16.mxu0 %v9379_v0 }
0x144e   :  { %3943 = vmatpush1.bf16.msra.mxu1 %v8888_v40 }
0x144f   :  { %3944 = vmatprep.subr.bf16.mxu1 %v8890_v62 }
0x1452   :  { %3945 = vmatpush1.bf16.msra.mxu1 %v8893_v41 }
0x1453   :  { %3946 = vmatprep.subr.bf16.mxu1 %v8895_v42 }
0x1456   :  { %3947 = vmatpush1.bf16.msra.mxu1 %v8898_v43 }
0x1457   :  { %3948 = vmatprep.subr.bf16.mxu1 %v8900_v44 }
0x145a   :  { %3949 = vmatpush1.bf16.msra.mxu1 %v8903_v49 }
0x145b   :  { %3950 = vmatprep.subr.bf16.mxu1 %v8905_v50 }
0x145e   :  { %3951 = vmatpush1.bf16.msra.mxu1 %v8908_v53  ;;  %v3737_v53 = vld [vmem:[#allocation10 + $0x35] ss:$0 sm:$0xff] }
0x145f   :  { %3952 = vmatprep.subr.bf16.mxu1 %v8910_v54 }
0x1462   :  { %3953 = vmatpush1.bf16.msra.mxu1 %v8913_v57 }
0x1463   :  { %8332 = vmatprep.subr.bf16.mxu1 %v9379_v0 }
0x1465   :  { %3971 = vmatmul.mubr.bf16.vlgmr.msra.gmra.mrb[108].mxu1 %v9861_v60 }
0x1466   :  { %8334 = vmatprep.mubr.msk.bf16.mxu1 %vm9380_vm0, %v9379_v0 }
0x1495   :  { %v3425_v59 = vpop.f32.mrb[92].mxu1 }
0x1496   :  { %v8262_v61 = vpop.f32.mrb[93].mxu1  ;;  %v3431_v7 = vadd.f32 %v3425_v59, %v3082_v6 }
0x1497   :  { %v3428_v63 = vpop.f32.mrb[94].mxu1  ;;  %v3754_v61 = vld [vmem:[#allocation10 + $0x37] ss:$0 sm:$0xff] }
0x1498   :  { %v8263_v1 = vpop.f32.mrb[95].mxu1 }
0x1508   :  { %v3527_v8 = vpop.f32.mrb[96].mxu1 }
0x1509   :  { %v3533_v9 = vadd.f32 %v3527_v8, %v3431_v7  ;;  %v8276_v10 = vpop.f32.mrb[97].mxu1 }
0x150a   :  { %v3530_v11 = vpop.f32.mrb[98].mxu1 }
0x150b   :  { %v8277_v13 = vpop.f32.mrb[99].mxu1 }
0x1510   :  { %v3628_v14 = vpop.f32.mrb[100].mxu1 }
0x1511   :  { %v3634_v15 = vadd.f32 %v3628_v14, %v3533_v9  ;;  %v8290_v16 = vpop.f32.mrb[101].mxu1 }
0x1512   :  { %v3631_v17 = vpop.f32.mrb[102].mxu1 }
0x1513   :  { %v8291_v18 = vpop.f32.mrb[103].mxu1  ;;  %v8877_v17 = vld [vmem:[#allocation7 + $0x1c] ss:$40 sps:$4 sm:$0xff]  }
0x1518   :  { %v3729_v19 = vpop.f32.mrb[104].mxu1 }
0x1519   :  { %v3735_v20 = vadd.f32 %v3729_v19, %v3634_v15  ;;  %v8304_v21 = vpop.f32.mrb[105].mxu1  ;;  %v8882_v19 = vld [vmem:[#allocation7 + $0x6c] ss:$40 sps:$4 sm:$0xff]  }
0x151a   :  { %v3732_v22 = vpop.f32.mrb[106].mxu1 }
0x151b   :  { %v3736_v23 = vadd.f32 %v3735_v20, %v9742_v28  ;;  %v8305_v24 = vpop.f32.mrb[107].mxu1  ;;  %v8921_v28 = vld [vmem:[#allocation7 + $0x1f0] ss:$40 sps:$4 sm:$0xff]  }
0x151c   :  { %8319 = vmatpush3.bf16.msra.mxu0 %v8921_v28 }
0x151d   :  { %3739 = vadd.xlane.f32.xlu0 %v3736_v23  ;;  %v3741_v25 = vmul.f32 %v3736_v23, %v3736_v23  ;;  %8320 = vmatprep.subr.bf16.mxu0 %v9379_v0 }
0x151f   :  { %3742 = vadd.xlane.f32.xlu1 %v3741_v25 }
0x1520   :  { %8321 = vmatpush3.bf16.msra.mxu0 %v8922_v37 }
0x1521   :  { %8326 = vmatprep.subr.bf16.mxu0 %v9379_v0 }
0x1538   :  { %v3972_v38 = vpop.f32.mrb[108].mxu1 }
0x1539   :  { %v3973_v12 = vadd.f32 %v3972_v38, %v3851_v31  ;;  %v3974_v33 = vpop.f32.mrb[109].mxu1 }
0x153a   :  { %v3975_v34 = vadd.f32 %v3974_v33, %v3855_v32  ;;  %v3976_v36 = vpop.f32.mrb[110].mxu1 }
0x153b   :  { %v3982_v39 = vpack.c.bf16 %v3973_v12, %v3973_v12  ;;  %v3977_v40 = vpop.f32.mrb[111].mxu1 }
0x153c   :  { %v9902_v13 = vpack.c.bf16 %v3975_v34, %v3975_v34 }
0x153d   :  { %4034 = vrot.lane.b32.xlu0 %v3982_v39, %s9382_s0  ;;  %v3988_v59 = vsel %vm484_vm1, %v3982_v39, 0 }
0x153e   :  { %v4234_v16 = vsel %vm735_vm2, %v9902_v13, 0 }
0x15aa   :  { %v3740_v62 = vpop.xlane.xlu0 %3739 }
0x15ab   :  { %v3744_v41 = vmul.f32 0.0078125, %v3740_v62 }
0x15ac   :  { %v3743_v42 = vpop.xlane.xlu1 %3742 }
0x15ad   :  { %v3746_v43 = vmul.f32 %v3744_v41, %v3744_v41  ;;  %v3745_v44 = vmul.f32 0.0078125, %v3743_v42  ;;  %v3748_v51 = vsub.f32 %v3736_v23, %v3744_v41 }
0x15af   :  { %v3747_v46 = vsub.f32 %v3745_v44, %v3746_v43  ;;  %v4035_v48 = vpop.permute.xlu0 %4034 }
0x15b0   :  { %v4040_v49 = vsel %vm484_vm1, %v4035_v48, 0 }
0x15b1   :  { %v3749_v50 = vadd.f32 1e-05, %v3747_v46  ;;  %8333 = vmatpush3.bf16.xpose.msra.mxu1 %v4040_v49 }
0x15b2   :  { %8344 = vmatprep.subr.bf16.mxu1 %v9379_v0 }
0x15b3   :  { %9157 = vrsqrt.f32 %v3749_v50 }
0x15bd   :  { %v9158_v52 = vpop.eup %9157 }
0x15be   :  { %v3751_v54 = vmul.f32 %v9158_v52, %v3748_v51 }
0x15c0   :  { %v3752_v56 = vmul.f32 %v3751_v54, %v3737_v53 }
0x15c2   :  { %v9881_v57 = vadd.f32 %v3752_v56, %v3738_v55 }
0x15c4   :  { %v3755_v58 = vpack.c.bf16 %v9881_v57, %v9881_v57 }
0x15c6   :  { %8323 = vmatmul.mubr.bf16.vlgmr.msra.gmra.mrb[80].mxu0 %v3755_v58 }
0x15c7   :  { %8327 = vmatpush3.bf16.xpose.msra.mxu0 %v3988_v59  ;;  %8328 = vmatprep.mubr.msk.bf16.mxu0 %vm9380_vm0, %v9379_v0 }
0x15c8   :  { %8338 = vmatprep.subr.bf16.mxu0 %v9379_v0 }
0x1699   :  { %v3838_v63 = vpop.f32.mrb[80].mxu0 }
0x169a   :  { %v3839_v1 = vadd.f32 %v3838_v63, %v3754_v61  ;;  %v8324_v2 = vpop.f32.mrb[81].mxu0 }
0x169b   :  { %v3841_v3 = vpop.f32.mrb[82].mxu0 }
0x169c   :  { %v3980_v4 = vmul.f32 0.17677669, %v3839_v1  ;;  %v8325_v6 = vpop.f32.mrb[83].mxu0 }
0x169e   :  { %v3981_v7 = vpack.c.bf16 %v3980_v4, %v3980_v4 }
0x16a0   :  { %4082 = vrot.lane.b32.xlu0 %v3981_v7, %s9373_s25  ;;  %4031 = vrot.lane.b32.xlu1 %v3981_v7, %s9382_s0 }
0x16a1   :  { %8329 = vmatmul.mubr.msk.bf16.vlgmr.msra.gmra.mrb[84].mxu0 %vm484_vm1, %v3981_v7 }
0x16a2   :  { %8340 = vmatprep.mubr.msk.bf16.mxu0 %vm9380_vm0, %v9379_v0 }
0x16a4   :  { %4132 = vrot.lane.b32.xlu0 %v3981_v7, %s9383_s12  ;;  %4084 = vrot.lane.b32.xlu1 %v3982_v39, %s9373_s25 }
0x16a8   :  { %4134 = vrot.lane.b32.xlu1 %v3982_v39, %s9383_s12 }
0x1712   :  { %v4032_v8 = vpop.permute.xlu1 %4031  ;;  %v4083_v15 = vpop.permute.xlu0 %4082 }
0x1713   :  { %8335 = vmatmul.mubr.msk.bf16.vlgmr.msra.gmra.mrb[112].mxu1 %vm484_vm1, %v4032_v8 }
0x1714   :  { %8346 = vmatprep.mubr.msk.bf16.mxu1 %vm9380_vm0, %v9379_v0 }
0x1716   :  { %v4085_v9 = vpop.permute.xlu1 %4084  ;;  %v4133_v18 = vpop.permute.xlu0 %4132 }
0x1717   :  { %v4090_v10 = vsel %vm484_vm1, %v4085_v9, 0 }
0x1718   :  { %8339 = vmatpush3.bf16.xpose.msra.mxu0 %v4090_v10 }
0x1719   :  { %8350 = vmatprep.subr.bf16.mxu0 %v9379_v0 }
0x171a   :  { %v4135_v11 = vpop.permute.xlu1 %4134 }
0x171b   :  { %v4140_v14 = vsel %vm484_vm1, %v4135_v11, 0 }
0x171c   :  { %8345 = vmatpush3.bf16.xpose.msra.mxu1 %v4140_v14 }
0x171d   :  { %8356 = vmatprep.subr.bf16.mxu1 %v9379_v0 }
0x171f   :  { %8341 = vmatmul.mubr.msk.bf16.vlgmr.msra.gmra.mrb[88].mxu0 %vm484_vm1, %v4083_v15 }
0x1720   :  { %8351 = vmatpush3.bf16.msra.mxu0 %v4234_v16  ;;  %8352 = vmatprep.mubr.msk.bf16.mxu0 %vm9380_vm0, %v9379_v0 }
0x1721   :  { %8364 = vmatprep.subr.bf16.mxu0 %v9379_v0 }
0x1723   :  { %8347 = vmatmul.mubr.msk.bf16.vlgmr.msra.gmra.mrb[116].mxu1 %vm484_vm1, %v4133_v18 }
0x1724   :  { %8357 = vmatpush3.bf16.msra.mxu1 %v8877_v17  ;;  %8360 = vmatprep.mubr.msk.bf16.mxu1 %vm9380_vm0, %v9379_v0 }
0x1725   :  { %8358 = vmatprep.subr.bf16.mxu1 %v9379_v0 }
0x1728   :  { %8359 = vmatpush3.bf16.msra.mxu1 %v8882_v19 }
0x1729   :  { %8370 = vmatprep.subr.bf16.mxu1 %v9379_v0 }
0x1774   :  { %v4024_v20 = vpop.f32.mrb[84].mxu0 }
0x1775   :  { %v8330_v21 = vpop.f32.mrb[85].mxu0  ;;  %v4182_v22 = vsel %vm683_vm3, %v4024_v20, -inf }
0x1776   :  { %4183 = vmax.xlane.f32.xlu1 %v4182_v22  ;;  %v4027_v23 = vpop.f32.mrb[86].mxu0 }
0x1777   :  { %v8331_v24 = vpop.f32.mrb[87].mxu0 }
0x17e6   :  { %v4076_v25 = vpop.f32.mrb[112].mxu1 }
0x17e7   :  { %v8336_v26 = vpop.f32.mrb[113].mxu1  ;;  %v4185_v27 = vsel %vm683_vm3, %v4076_v25, -inf }
0x17e8   :  { %4186 = vmax.xlane.f32.xlu0 %v4185_v27  ;;  %v4079_v29 = vpop.f32.mrb[114].mxu1 }
0x17e9   :  { %v8337_v30 = vpop.f32.mrb[115].mxu1 }
0x17f2   :  { %v4126_v31 = vpop.f32.mrb[88].mxu0 }
0x17f3   :  { %v8342_v32 = vpop.f32.mrb[89].mxu0  ;;  %v4188_v28 = vsel %vm683_vm3, %v4126_v31, -inf }
0x17f4   :  { %4189 = vmax.xlane.f32.xlu0 %v4188_v28  ;;  %v4129_v38 = vpop.f32.mrb[90].mxu0  ;;  %v8892_v32 = vld [vmem:[#allocation7 + $0x10c] ss:$40 sps:$4 sm:$0xff]   ;;  %v8897_v28 = vld [vmem:[#allocation7 + $0x15c] ss:$40 sps:$4 sm:$0xff]  }
0x17f5   :  { %v8343_v12 = vpop.f32.mrb[91].mxu0 }
0x17f6   :  { %v4176_v33 = vpop.f32.mrb[116].mxu1 }
0x17f7   :  { %v8348_v34 = vpop.f32.mrb[117].mxu1  ;;  %v4191_v36 = vsel %vm683_vm3, %v4176_v33, -inf }
0x17f8   :  { %v4179_v37 = vpop.f32.mrb[118].mxu1  ;;  %4192 = vmax.xlane.f32.xlu1 %v4191_v36 }
0x17f9   :  { %v8349_v39 = vpop.f32.mrb[119].mxu1  ;;  %v8902_v37 = vld [vmem:[#allocation7 + $0x1ac] ss:$40 sps:$4 sm:$0xff]  }
0x17fa   :  { %v8907_v39 = vld [vmem:[#allocation7 + $0x1fc] ss:$40 sps:$4 sm:$0xff]  }
0x1803   :  { %v4184_v40 = vpop.xlane.xlu1 %4183 }
0x1804   :  { %v4194_v62 = vsub.f32 %v4024_v20, %v4184_v40 }
0x1806   :  { %v4195_v41 = vmul.f32 1.442695, %v4194_v62 }
0x1808   :  { %9159 = vpow2.f32 %v4195_v41 }
0x1812   :  { %v9160_v42 = vpop.eup %9159 }
0x1813   :  { %v4206_v43 = vsel %vm683_vm3, %v9160_v42, 0.0 }
0x1814   :  { %4207 = vadd.xlane.f32.xlu0 %v4206_v43 }
0x1875   :  { %v4187_v44 = vpop.xlane.xlu0 %4186 }
0x1876   :  { %v4197_v46 = vsub.f32 %v4076_v25, %v4187_v44  ;;  %v8887_v25 = vld [vmem:[#allocation7 + $0xbc] ss:$40 sps:$4 sm:$0xff]   ;;  %v8912_v44 = vld [vmem:[#allocation7 + $0x24c] ss:$40 sps:$4 sm:$0xff]  }
0x1878   :  { %v4198_v48 = vmul.f32 1.442695, %v4197_v46 }
0x187a   :  { %9161 = vpow2.f32 %v4198_v48 }
0x1881   :  { %v4190_v49 = vpop.xlane.xlu0 %4189 }
0x1882   :  { %v4200_v50 = vsub.f32 %v4126_v31, %v4190_v49 }
0x1884   :  { %v9162_v51 = vpop.eup %9161  ;;  %v4201_v52 = vmul.f32 1.442695, %v4200_v50 }
0x1885   :  { %v4209_v53 = vsel %vm683_vm3, %v9162_v51, 0.0  ;;  %v4193_v58 = vpop.xlane.xlu1 %4192 }
0x1886   :  { %9163 = vpow2.f32 %v4201_v52  ;;  %4210 = vadd.xlane.f32.xlu1 %v4209_v53  ;;  %v4203_v59 = vsub.f32 %v4176_v33, %v4193_v58  ;;  %v8925_v58 = vld [vmem:[#allocation7 + $0x24] ss:$40 sps:$4 sm:$0xff]  }
0x1888   :  { %v4204_v61 = vmul.f32 1.442695, %v4203_v59  ;;  %v8928_v59 = vld [vmem:[#allocation7 + $0x74] ss:$40 sps:$4 sm:$0xff]  }
0x1890   :  { %v9164_v54 = vpop.eup %9163 }
0x1891   :  { %v4212_v55 = vsel %vm683_vm3, %v9164_v54, 0.0 }
0x1892   :  { %4213 = vadd.xlane.f32.xlu0 %v4212_v55 }
0x1897   :  { %4431 = vrot.lane.b32.xlu1 %v9902_v13, %s9373_s25 }
0x18a1   :  { %v4208_v56 = vpop.xlane.xlu0 %4207 }
0x18a2   :  { %9165 = vrcp.f32 %v4208_v56  ;;  %v8923_v56 = vld [vmem:[#allocation7 + $0x20] ss:$40 sps:$4 sm:$0xff]  }
0x18a3   :  { %9167 = vpow2.f32 %v4204_v61  ;;  %v8926_v61 = vld [vmem:[#allocation7 + $0x70] ss:$40 sps:$4 sm:$0xff]  }
0x18a8   :  { %4330 = vrot.lane.b32.xlu0 %v9902_v13, %s9382_s0 }
0x18ac   :  { %v9166_v63 = vpop.eup %9165 }
0x18ad   :  { %v4222_v1 = vmul.f32 %v9166_v63, %v9160_v42  ;;  %v9168_v3 = vpop.eup %9167  ;;  %v3979_v63 = vld [vmem:[#allocation10 + $0x49] ss:$0 sm:$0xff] }
0x18ae   :  { %v4215_v4 = vsel %vm683_vm3, %v9168_v3, 0.0 }
0x18af   :  { %v4223_v2 = vpack.c.bf16 %v4222_v1, %v4222_v1 }
0x18b1   :  { %8353 = vmatmul.mubr.msk.bf16.vlgmr.msra.gmra.mrb[92].mxu0 %vm683_vm3, %v4223_v2 }
0x18b2   :  { %8366 = vmatprep.mubr.msk.bf16.mxu0 %vm9380_vm0, %v9379_v0 }
0x18bb   :  { %4216 = vadd.xlane.f32.xlu1 %v4215_v4 }
0x18cc   :  { %4532 = vrot.lane.b32.xlu1 %v9902_v13, %s9383_s12 }
0x1913   :  { %v4211_v6 = vpop.xlane.xlu1 %4210 }
0x1914   :  { %9169 = vrcp.f32 %v4211_v6 }
0x1917   :  { %v4432_v14 = vpop.permute.xlu1 %4431 }
0x1918   :  { %v4437_v16 = vsel %vm735_vm2, %v4432_v14, 0 }
0x191e   :  { %v9170_v7 = vpop.eup %9169 }
0x191f   :  { %v4214_v8 = vpop.xlane.xlu0 %4213  ;;  %v4224_v9 = vmul.f32 %v9170_v7, %v9162_v51 }
0x1920   :  { %9171 = vrcp.f32 %v4214_v8 }
0x1921   :  { %v4225_v15 = vpack.c.bf16 %v4224_v9, %v4224_v9 }
0x1923   :  { %v4331_v10 = vpop.permute.xlu0 %4330 }
0x1924   :  { %v4336_v11 = vsel %vm735_vm2, %v4331_v10, 0 }
0x1925   :  { %8365 = vmatpush3.bf16.msra.mxu0 %v4336_v11 }
0x1926   :  { %8378 = vmatprep.subr.bf16.mxu0 %v9379_v0 }
0x1928   :  { %8367 = vmatmul.mubr.msk.bf16.vlgmr.msra.gmra.mrb[96].mxu0 %vm683_vm3, %v4225_v15 }
0x1929   :  { %8379 = vmatpush3.bf16.msra.mxu0 %v4437_v16  ;;  %8380 = vmatprep.mubr.msk.bf16.mxu0 %vm9380_vm0, %v9379_v0 }
0x192a   :  { %v9172_v13 = vpop.eup %9171  ;;  %8392 = vmatprep.subr.bf16.mxu0 %v9379_v0 }
0x192b   :  { %v4226_v17 = vmul.f32 %v9172_v13, %v9164_v54 }
0x192d   :  { %v4227_v18 = vpack.c.bf16 %v4226_v17, %v4226_v17 }
0x1930   :  { %8381 = vmatmul.mubr.msk.bf16.vlgmr.msra.gmra.mrb[100].mxu0 %vm683_vm3, %v4227_v18 }
0x1931   :  { %8394 = vmatprep.mubr.msk.bf16.mxu0 %vm9380_vm0, %v9379_v0 }
0x1948   :  { %v4217_v19 = vpop.xlane.xlu1 %4216 }
0x1949   :  { %9173 = vrcp.f32 %v4217_v19 }
0x194c   :  { %v4533_v20 = vpop.permute.xlu1 %4532 }
0x194d   :  { %v4538_v21 = vsel %vm735_vm2, %v4533_v20, 0 }
0x194e   :  { %8393 = vmatpush3.bf16.msra.mxu0 %v4538_v21  ;;  %v8931_v21 = vld [vmem:[#allocation7 + $0xc4] ss:$40 sps:$4 sm:$0xff]  }
0x194f   :  { %4745 = vmatprep.subr.bf16.mxu0 %v8925_v58 }
0x1953   :  { %v9174_v22 = vpop.eup %9173 }
0x1954   :  { %v4228_v23 = vmul.f32 %v9174_v22, %v9168_v3  ;;  %v8929_v22 = vld [vmem:[#allocation7 + $0xc0] ss:$40 sps:$4 sm:$0xff]  }
0x1956   :  { %v4229_v24 = vpack.c.bf16 %v4228_v23, %v4228_v23  ;;  %v8934_v23 = vld [vmem:[#allocation7 + $0x114] ss:$40 sps:$4 sm:$0xff]  }
0x1958   :  { %8395 = vmatmul.mubr.msk.bf16.vlgmr.msra.gmra.mrb[104].mxu0 %vm683_vm3, %v4229_v24  ;;  %v8932_v24 = vld [vmem:[#allocation7 + $0x110] ss:$40 sps:$4 sm:$0xff]  }
0x1959   :  { %4777 = vmatprep.mubr.bf16.mxu0 %v9381_v35  ;;  %4746 = vmatpush1.bf16.msra.mxu0 %v8923_v56  ;;  %v4635_v56 = vld [vmem:[#allocation10 + $0x4b] ss:$0 sm:$0xff] }
0x195a   :  { %4747 = vmatprep.subr.bf16.mxu0 %v8928_v59 }
0x195d   :  { %4748 = vmatpush1.bf16.msra.mxu0 %v8926_v61 }
0x195e   :  { %4749 = vmatprep.subr.bf16.mxu0 %v8931_v21  ;;  %v8966_v21 = vld [vmem:[#allocation7 + $0x288] ss:$40 sps:$4 sm:$0xff]  }
0x1961   :  { %4750 = vmatpush1.bf16.msra.mxu0 %v8929_v22 }
0x1962   :  { %4751 = vmatprep.subr.bf16.mxu0 %v8934_v23  ;;  %v4821_v23 = vld [vmem:[#allocation10 + $0x4d] ss:$0 sm:$0xff] }
0x1965   :  { %4752 = vmatpush1.bf16.msra.mxu0 %v8932_v24 }
0x1984   :  { %v4270_v26 = vpop.f32.mrb[92].mxu0 }
0x1985   :  { %v4276_v27 = vpack.c.bf16 %v4270_v26, %v4270_v26  ;;  %v8354_v29 = vpop.f32.mrb[93].mxu0  ;;  %v8935_v26 = vld [vmem:[#allocation7 + $0x160] ss:$40 sps:$4 sm:$0xff]  }
0x1986   :  { %v4273_v30 = vpop.f32.mrb[94].mxu0  ;;  %v8943_v29 = vld [vmem:[#allocation7 + $0x204] ss:$40 sps:$4 sm:$0xff]  }
0x1987   :  { %v8355_v31 = vpop.f32.mrb[95].mxu0  ;;  %8361 = vmatmul.mubr.msk.bf16.vlgmr.msra.gmra.mrb[120].mxu1 %vm484_vm1, %v4276_v27  ;;  %v8938_v27 = vld [vmem:[#allocation7 + $0x1b0] ss:$40 sps:$4 sm:$0xff]   ;;  %v8941_v30 = vld [vmem:[#allocation7 + $0x200] ss:$40 sps:$4 sm:$0xff]  }
0x1988   :  { %8371 = vmatpush3.bf16.msra.mxu1 %v8887_v25  ;;  %8374 = vmatprep.mubr.msk.bf16.mxu1 %vm9380_vm0, %v9379_v0  ;;  %v8937_v25 = vld [vmem:[#allocation7 + $0x164] ss:$40 sps:$4 sm:$0xff]   ;;  %v8946_v31 = vld [vmem:[#allocation7 + $0x254] ss:$40 sps:$4 sm:$0xff]  }
0x1989   :  { %8372 = vmatprep.subr.bf16.mxu1 %v9379_v0  ;;  %4753 = vmatprep.subr.bf16.mxu0 %v8937_v25 }
0x198a   :  { %4754 = vmatpush1.bf16.msra.mxu0 %v8935_v26 }
0x198c   :  { %8373 = vmatpush3.bf16.msra.mxu1 %v8892_v32  ;;  %v8944_v32 = vld [vmem:[#allocation7 + $0x250] ss:$40 sps:$4 sm:$0xff]  }
0x198d   :  { %8384 = vmatprep.subr.bf16.mxu1 %v9379_v0 }
0x19fb   :  { %v4372_v38 = vpop.f32.mrb[96].mxu0 }
0x19fc   :  { %v4378_v12 = vpack.c.bf16 %v4372_v38, %v4372_v38  ;;  %v8368_v33 = vpop.f32.mrb[97].mxu0  ;;  %v8948_v38 = vld [vmem:[#allocation8 + $0x100] sm:$0xff]  }
0x19fd   :  { %v4375_v34 = vpop.f32.mrb[98].mxu0  ;;  %v8950_v33 = vld [vmem:[#allocation8 + $0x108] sm:$0xff]  }
0x19fe   :  { %v8369_v36 = vpop.f32.mrb[99].mxu0  ;;  %8375 = vmatmul.mubr.msk.bf16.vlgmr.msra.gmra.mrb[124].mxu1 %vm484_vm1, %v4378_v12  ;;  %v8949_v12 = vld [vmem:[#allocation8 + $0x148] sm:$0xff]   ;;  %v8951_v34 = vld [vmem:[#allocation8 + $0x150] sm:$0xff]  }
0x19ff   :  { %8385 = vmatpush3.bf16.msra.mxu1 %v8897_v28  ;;  %8388 = vmatprep.mubr.msk.bf16.mxu1 %vm9380_vm0, %v9379_v0  ;;  %v8947_v28 = vld [vmem:[#allocation8 + $0x140] sm:$0xff]   ;;  %v8952_v36 = vld [vmem:[#allocation8 + $0x110] sm:$0xff]  }
0x1a00   :  { %8386 = vmatprep.subr.bf16.mxu1 %v9379_v0 }
0x1a03   :  { %v4473_v40 = vpop.f32.mrb[100].mxu0  ;;  %8387 = vmatpush3.bf16.msra.mxu1 %v8902_v37  ;;  %v8953_v37 = vld [vmem:[#allocation8 + $0x158] sm:$0xff]  }
0x1a04   :  { %v4479_v62 = vpack.c.bf16 %v4473_v40, %v4473_v40  ;;  %v8382_v41 = vpop.f32.mrb[101].mxu0  ;;  %8398 = vmatprep.subr.bf16.mxu1 %v9379_v0  ;;  %v8955_v40 = vld [vmem:[#allocation8 + $0x160] sm:$0xff]  }
0x1a05   :  { %v4476_v42 = vpop.f32.mrb[102].mxu0  ;;  %v8957_v41 = vld [vmem:[#allocation8 + $0x168] sm:$0xff]  }
0x1a06   :  { %v8383_v43 = vpop.f32.mrb[103].mxu0  ;;  %8389 = vmatmul.mubr.msk.bf16.vlgmr.msra.gmra.mrb[128].mxu1 %vm484_vm1, %v4479_v62  ;;  %v8956_v62 = vld [vmem:[#allocation8 + $0x120] sm:$0xff]   ;;  %v8958_v42 = vld [vmem:[#allocation8 + $0x128] sm:$0xff]  }
0x1a07   :  { %8399 = vmatpush3.bf16.msra.mxu1 %v8907_v39  ;;  %8402 = vmatprep.mubr.msk.bf16.mxu1 %vm9380_vm0, %v9379_v0  ;;  %v8954_v39 = vld [vmem:[#allocation8 + $0x118] sm:$0xff]  }
0x1a08   :  { %8400 = vmatprep.subr.bf16.mxu1 %v9379_v0 }
0x1a0b   :  { %8401 = vmatpush3.bf16.msra.mxu1 %v8912_v44 }
0x1a0c   :  { %7859 = vmatprep.subr.bf16.mxu1 %v8947_v28  ;;  %v8971_v28 = vld [vmem:[#allocation7 + $0x2d8] ss:$40 sps:$4 sm:$0xff]  }
0x1a2b   :  { %v4574_v46 = vpop.f32.mrb[104].mxu0 }
0x1a2c   :  { %v4580_v48 = vpack.c.bf16 %v4574_v46, %v4574_v46  ;;  %v8396_v49 = vpop.f32.mrb[105].mxu0 }
0x1a2d   :  { %v4577_v50 = vpop.f32.mrb[106].mxu0 }
0x1a2e   :  { %v8397_v51 = vpop.f32.mrb[107].mxu0  ;;  %8403 = vmatmul.mubr.msk.bf16.vlgmr.msra.gmra.mrb[132].mxu1 %vm484_vm1, %v4580_v48 }
0x1a2f   :  { %7860 = vmatpush3.bf16.msra.mxu1 %v8948_v38  ;;  %v8975_v38 = vld [vmem:[#allocation7 + $0x324] ss:$40 sps:$4 sm:$0xff]  }
0x1a30   :  { %7861 = vmatprep.subr.bf16.mxu1 %v8949_v12  ;;  %v8973_v12 = vld [vmem:[#allocation7 + $0x320] ss:$40 sps:$4 sm:$0xff]  }
0x1a33   :  { %7862 = vmatpush3.bf16.msra.mxu1 %v8950_v33  ;;  %v8976_v33 = vld [vmem:[#allocation7 + $0x328] ss:$40 sps:$4 sm:$0xff]  }
0x1a34   :  { %7863 = vmatprep.subr.bf16.mxu1 %v8951_v34  ;;  %v8980_v34 = vld [vmem:[#allocation7 + $0x374] ss:$40 sps:$4 sm:$0xff]  }
0x1a37   :  { %7864 = vmatpush3.bf16.msra.mxu1 %v8952_v36  ;;  %v8978_v36 = vld [vmem:[#allocation7 + $0x370] ss:$40 sps:$4 sm:$0xff]  }
0x1a38   :  { %7865 = vmatprep.subr.bf16.mxu1 %v8953_v37  ;;  %v8981_v37 = vld [vmem:[#allocation7 + $0x378] ss:$40 sps:$4 sm:$0xff]  }
0x1a3b   :  { %7866 = vmatpush3.bf16.msra.mxu1 %v8954_v39  ;;  %v8985_v39 = vld [vmem:[#allocation7 + $0x3c4] ss:$40 sps:$4 sm:$0xff]  }
0x1a3c   :  { %7867 = vmatprep.subr.bf16.mxu1 %v8955_v40  ;;  %v8983_v40 = vld [vmem:[#allocation7 + $0x3c0] ss:$40 sps:$4 sm:$0xff]  }
0x1a3f   :  { %7868 = vmatpush3.bf16.msra.mxu1 %v8956_v62  ;;  %v8986_v62 = vld [vmem:[#allocation7 + $0x3c8] ss:$40 sps:$4 sm:$0xff]  }
0x1a40   :  { %7869 = vmatprep.subr.bf16.mxu1 %v8957_v41  ;;  %v8990_v41 = vld [vmem:[#allocation7 + $0x414] ss:$40 sps:$4 sm:$0xff]  }
0x1a43   :  { %7870 = vmatpush3.bf16.msra.mxu1 %v8958_v42  ;;  %v8988_v42 = vld [vmem:[#allocation7 + $0x410] ss:$40 sps:$4 sm:$0xff]  }
0x1a5a   :  { %v4322_v52 = vpop.f32.mrb[120].mxu1 }
0x1a5b   :  { %v8362_v53 = vpop.f32.mrb[121].mxu1  ;;  %v4328_v1 = vadd.f32 %v4322_v52, %v3979_v63  ;;  %v8959_v63 = vld [vmem:[#allocation8 + $0x170] sm:$0xff]  }
0x1a5c   :  { %v4325_v54 = vpop.f32.mrb[122].mxu1  ;;  %7871 = vmatprep.subr.bf16.mxu1 %v8959_v63 }
0x1a5d   :  { %v8363_v55 = vpop.f32.mrb[123].mxu1  ;;  %v4634_v54 = vld [vmem:[#allocation10 + $0x4a] ss:$0 sm:$0xff] }
0x1ad1   :  { %v4424_v2 = vpop.f32.mrb[124].mxu1 }
0x1ad2   :  { %v4430_v3 = vadd.f32 %v4424_v2, %v4328_v1  ;;  %v8376_v4 = vpop.f32.mrb[125].mxu1  ;;  %v8960_v1 = vld [vmem:[#allocation8 + $0x130] sm:$0xff]   ;;  %v8961_v2 = vld [vmem:[#allocation8 + $0x178] sm:$0xff]  }
0x1ad3   :  { %v4427_v6 = vpop.f32.mrb[126].mxu1  ;;  %7872 = vmatpush3.bf16.msra.mxu1 %v8960_v1  ;;  %v4652_v4 = vld [vmem:[#allocation10 + $0x4c] ss:$8 sm:$0x3]  ;;  %v4961_v1 = vld [vmem:[#allocation10 + $0x4e] ss:$0 sm:$0xff] }
0x1ad4   :  { %v8377_v7 = vpop.f32.mrb[127].mxu1  ;;  %7873 = vmatprep.subr.bf16.mxu1 %v8961_v2  ;;  %v4658_v6 = vrot.slane %v4652_v4, %v9529_v45 }
0x1ad5   :  { %v4662_v7 = vrot.slane %v4652_v4, %v9531_v47 }
0x1ad9   :  { %v4525_v8 = vpop.f32.mrb[128].mxu1 }
0x1ada   :  { %v4531_v9 = vadd.f32 %v4525_v8, %v4430_v3  ;;  %v8390_v10 = vpop.f32.mrb[129].mxu1  ;;  %v8962_v3 = vld [vmem:[#allocation8 + $0x138] sm:$0xff]  }
0x1adb   :  { %v4528_v11 = vpop.f32.mrb[130].mxu1  ;;  %7874 = vmatpush3.bf16.msra.mxu1 %v8962_v3  ;;  %v4962_v3 = vld [vmem:[#allocation10 + $0x4f] ss:$0 sm:$0xff] }
0x1adc   :  { %v8391_v14 = vpop.f32.mrb[131].mxu1  ;;  %8406 = vmatprep.subr.bf16.mxu1 %v9379_v0 }
0x1b01   :  { %v4626_v15 = vpop.f32.mrb[132].mxu1 }
0x1b02   :  { %v4632_v16 = vadd.f32 %v4626_v15, %v4531_v9  ;;  %v8404_v13 = vpop.f32.mrb[133].mxu1 }
0x1b03   :  { %v4629_v17 = vpop.f32.mrb[134].mxu1 }
0x1b04   :  { %v9963_v18 = vadd.f32 %v4632_v16, %v9881_v57  ;;  %v8405_v19 = vpop.f32.mrb[135].mxu1  ;;  %v8940_v57 = vld [vmem:[#allocation7 + $0x1b4] ss:$40 sps:$4 sm:$0xff]  }
0x1b05   :  { %4755 = vmatprep.subr.bf16.mxu0 %v8940_v57  ;;  %v8963_v19 = vld [vmem:[#allocation7 + $0x280] ss:$40 sps:$4 sm:$0xff]  }
0x1b06   :  { %4636 = vadd.xlane.f32.xlu0 %v9963_v18  ;;  %v4638_v20 = vmul.f32 %v9963_v18, %v9963_v18  ;;  %4756 = vmatpush1.bf16.msra.mxu0 %v8938_v27 }
0x1b07   :  { %4757 = vmatprep.subr.bf16.mxu0 %v8943_v29 }
0x1b08   :  { %4639 = vadd.xlane.f32.xlu1 %v4638_v20  ;;  %v8965_v20 = vld [vmem:[#allocation7 + $0x284] ss:$40 sps:$4 sm:$0xff]  }
0x1b0a   :  { %4758 = vmatpush1.bf16.msra.mxu0 %v8941_v30 }
0x1b0b   :  { %4759 = vmatprep.subr.bf16.mxu0 %v8946_v31  ;;  %v8970_v31 = vld [vmem:[#allocation7 + $0x2d4] ss:$40 sps:$4 sm:$0xff]  }
0x1b0e   :  { %4760 = vmatpush1.bf16.msra.mxu0 %v8944_v32  ;;  %v8968_v32 = vld [vmem:[#allocation7 + $0x2d0] ss:$40 sps:$4 sm:$0xff]  }
0x1b0f   :  { %5206 = vmatprep.subr.bf16.mxu0 %v8965_v20 }
0x1b93   :  { %v4637_v43 = vpop.xlane.xlu0 %4636 }
0x1b94   :  { %v4641_v44 = vmul.f32 0.0078125, %v4637_v43  ;;  %v8991_v43 = vld [vmem:[#allocation7 + $0x418] ss:$40 sps:$4 sm:$0xff]  }
0x1b95   :  { %v4640_v46 = vpop.xlane.xlu1 %4639 }
0x1b96   :  { %v4643_v48 = vmul.f32 %v4641_v44, %v4641_v44  ;;  %v4642_v49 = vmul.f32 0.0078125, %v4640_v46  ;;  %v4645_v52 = vsub.f32 %v9963_v18, %v4641_v44  ;;  %v8995_v44 = vld [vmem:[#allocation7 + $0x464] ss:$40 sps:$4 sm:$0xff]   ;;  %v8993_v46 = vld [vmem:[#allocation7 + $0x460] ss:$40 sps:$4 sm:$0xff]  }
0x1b98   :  { %v4644_v50 = vsub.f32 %v4642_v49, %v4643_v48  ;;  %v8996_v48 = vld [vmem:[#allocation7 + $0x468] ss:$40 sps:$4 sm:$0xff]   ;;  %v9000_v49 = vld [vmem:[#allocation7 + $0x4b4] ss:$40 sps:$4 sm:$0xff]  }
0x1b9a   :  { %v4646_v51 = vadd.f32 1e-05, %v4644_v50  ;;  %v8998_v50 = vld [vmem:[#allocation7 + $0x4b0] ss:$40 sps:$4 sm:$0xff]  }
0x1b9c   :  { %9175 = vrsqrt.f32 %v4646_v51  ;;  %v9001_v51 = vld [vmem:[#allocation7 + $0x4b8] ss:$40 sps:$4 sm:$0xff]  }
0x1ba6   :  { %v9176_v53 = vpop.eup %9175 }
0x1ba7   :  { %v4648_v55 = vmul.f32 %v9176_v53, %v4645_v52 }
0x1ba9   :  { %v4649_v58 = vmul.f32 %v4648_v55, %v4634_v54 }
0x1bab   :  { %v4650_v59 = vadd.f32 %v4649_v58, %v4635_v56 }
0x1bad   :  { %v4653_v61 = vpack.c.bf16 %v4650_v59, %v4650_v59 }
0x1baf   :  { %4778 = vmatmul.mubr.bf16.vlgmr.msra.gmra.mrb[108].mxu0 %v4653_v61 }
0x1bb0   :  { %5238 = vmatprep.mubr.bf16.mxu0 %v9381_v35  ;;  %5207 = vmatpush1.bf16.msra.mxu0 %v8963_v19 }
0x1bb1   :  { %5208 = vmatprep.subr.bf16.mxu0 %v8970_v31 }
0x1bb4   :  { %5209 = vmatpush1.bf16.msra.mxu0 %v8968_v32 }
0x1bb5   :  { %5210 = vmatprep.subr.bf16.mxu0 %v8975_v38 }
0x1bb8   :  { %5211 = vmatpush1.bf16.msra.mxu0 %v8973_v12 }
0x1bb9   :  { %5212 = vmatprep.subr.bf16.mxu0 %v8980_v34 }
0x1bbc   :  { %5213 = vmatpush1.bf16.msra.mxu0 %v8978_v36 }
0x1bbd   :  { %5214 = vmatprep.subr.bf16.mxu0 %v8985_v39 }
0x1bc0   :  { %5215 = vmatpush1.bf16.msra.mxu0 %v8983_v40 }
0x1bc1   :  { %5216 = vmatprep.subr.bf16.mxu0 %v8990_v41 }
0x1bc4   :  { %5217 = vmatpush1.bf16.msra.mxu0 %v8988_v42 }
0x1bc5   :  { %5218 = vmatprep.subr.bf16.mxu0 %v8995_v44 }
0x1bc8   :  { %5219 = vmatpush1.bf16.msra.mxu0 %v8993_v46 }
0x1bc9   :  { %5220 = vmatprep.subr.bf16.mxu0 %v9000_v49 }
0x1bcc   :  { %5221 = vmatpush1.bf16.msra.mxu0 %v8998_v50 }
0x1bcd   :  { %8426 = vmatprep.subr.bf16.mxu0 %v9379_v0 }
0x1c82   :  { %v4779_v8 = vpop.f32.mrb[108].mxu0 }
0x1c83   :  { %v4780_v9 = vadd.f32 %v4779_v8, %v4658_v6  ;;  %v4781_v10 = vpop.f32.mrb[109].mxu0  ;;  %v5060_v8 = vld [vmem:[#allocation10 + $0x60] ss:$8 sm:$0x7] }
0x1c84   :  { %v4782_v11 = vadd.f32 %v4781_v10, %v4662_v7  ;;  %v4783_v14 = vpop.f32.mrb[110].mxu0  ;;  %v5070_v10 = vrot.slane %v5060_v8, %v9531_v47 }
0x1c85   :  { %v4786_v15 = vmax.f32 %v4780_v9, 0.0  ;;  %v4784_v16 = vpop.f32.mrb[111].mxu0  ;;  %v5066_v9 = vrot.slane %v5060_v8, %v9529_v45 }
0x1c86   :  { %v4787_v13 = vmax.f32 %v4782_v11, 0.0 }
0x1c87   :  { %v4822_v18 = vpack.c.bf16 %v4786_v15, %v4786_v15 }
0x1c88   :  { %v4823_v17 = vpack.c.bf16 %v4787_v13, %v4787_v13 }
0x1c8a   :  { %4952 = vmatprep.mubr.bf16.mxu1 %v4823_v17 }
0x1c8b   :  { %4953 = vmatmul.mubr.bf16.vlgmr.msra.gmra.mrb[136].mxu1 %v4822_v18 }
0x1c8c   :  { %8422 = vmatprep.mubr.msk.bf16.mxu1 %vm9380_vm0, %v9379_v0  ;;  %8407 = vmatpush3.bf16.msra.mxu1 %v8966_v21 }
0x1c8d   :  { %8408 = vmatprep.subr.bf16.mxu1 %v9379_v0 }
0x1c90   :  { %8409 = vmatpush3.bf16.msra.mxu1 %v8971_v28 }
0x1c91   :  { %8410 = vmatprep.subr.bf16.mxu1 %v9379_v0 }
0x1c94   :  { %8411 = vmatpush3.bf16.msra.mxu1 %v8976_v33 }
0x1c95   :  { %8412 = vmatprep.subr.bf16.mxu1 %v9379_v0 }
0x1c98   :  { %8413 = vmatpush3.bf16.msra.mxu1 %v8981_v37 }
0x1c99   :  { %8414 = vmatprep.subr.bf16.mxu1 %v9379_v0 }
0x1c9c   :  { %8415 = vmatpush3.bf16.msra.mxu1 %v8986_v62 }
0x1c9d   :  { %8416 = vmatprep.subr.bf16.mxu1 %v9379_v0 }
0x1ca0   :  { %8417 = vmatpush3.bf16.msra.mxu1 %v8991_v43 }
0x1ca1   :  { %8418 = vmatprep.subr.bf16.mxu1 %v9379_v0 }
0x1ca4   :  { %8419 = vmatpush3.bf16.msra.mxu1 %v8996_v48 }
0x1ca5   :  { %8420 = vmatprep.subr.bf16.mxu1 %v9379_v0 }
0x1ca8   :  { %8421 = vmatpush3.bf16.msra.mxu1 %v9001_v51 }
0x1ca9   :  { %8432 = vmatprep.subr.bf16.mxu1 %v9379_v0 }
0x1d5e   :  { %v7875_v22 = vpop.f32.mrb[136].mxu1 }
0x1d5f   :  { %v7876_v24 = vpop.f32.mrb[137].mxu1 }
0x1d60   :  { %v7877_v25 = vadd.f32 %v7876_v24, %v7875_v22  ;;  %v7878_v26 = vpop.f32.mrb[138].mxu1 }
0x1d61   :  { %v7879_v57 = vpop.f32.mrb[139].mxu1 }
0x1d62   :  { %v4955_v27 = vadd.f32 %v7877_v25, %v4821_v23  ;;  %v5074_v57 = vrot.slane %v5060_v8, %v9548_v5 }
0x1d64   :  { %v9976_v29 = vadd.f32 %v4955_v27, %v4650_v59 }
0x1d66   :  { %4963 = vadd.xlane.f32.xlu0 %v9976_v29  ;;  %v4965_v30 = vmul.f32 %v9976_v29, %v9976_v29 }
0x1d6a   :  { %4966 = vadd.xlane.f32.xlu0 %v4965_v30 }
0x1df3   :  { %v4964_v52 = vpop.xlane.xlu0 %4963 }
0x1df4   :  { %v4968_v53 = vmul.f32 0.0078125, %v4964_v52 }
0x1df6   :  { %v4970_v55 = vmul.f32 %v4968_v53, %v4968_v53  ;;  %v4972_v61 = vsub.f32 %v9976_v29, %v4968_v53 }
0x1df7   :  { %v4967_v54 = vpop.xlane.xlu0 %4966 }
0x1df8   :  { %v4969_v56 = vmul.f32 0.0078125, %v4967_v54 }
0x1dfa   :  { %v4971_v58 = vsub.f32 %v4969_v56, %v4970_v55 }
0x1dfc   :  { %v4973_v59 = vadd.f32 1e-05, %v4971_v58 }
0x1dfe   :  { %9177 = vrsqrt.f32 %v4973_v59 }
0x1e08   :  { %v9178_v63 = vpop.eup %9177 }
0x1e09   :  { %v4975_v2 = vmul.f32 %v9178_v63, %v4972_v61 }
0x1e0b   :  { %v4976_v4 = vmul.f32 %v4975_v2, %v4961_v1 }
0x1e0d   :  { %v9990_v6 = vadd.f32 %v4976_v4, %v4962_v3 }
0x1e0f   :  { %v5061_v7 = vpack.c.bf16 %v9990_v6, %v9990_v6 }
0x1e11   :  { %5239 = vmatmul.mubr.bf16.vlgmr.msra.gmra.mrb[112].mxu0 %v5061_v7  ;;  %8423 = vmatmul.mubr.bf16.vlgmr.msra.gmra.mrb[140].mxu1 %v5061_v7 }
0x1e12   :  { %8428 = vmatprep.mubr.msk.bf16.mxu0 %vm9380_vm0, %v9379_v0  ;;  %8434 = vmatprep.mubr.msk.bf16.mxu1 %vm9380_vm0, %v9379_v0 }
0x1ee4   :  { %v5240_v11 = vpop.f32.mrb[112].mxu0  ;;  %v5281_v14 = vpop.f32.mrb[140].mxu1 }
0x1ee5   :  { %v5241_v15 = vadd.f32 %v5240_v11, %v5066_v9  ;;  %v5242_v16 = vpop.f32.mrb[113].mxu0  ;;  %v8424_v13 = vpop.f32.mrb[141].mxu1  ;;  %v5282_v31 = vadd.f32 %v5281_v14, %v5074_v57  ;;  %v9003_v57 = vld [vmem:[#allocation7 + $0x28c] ss:$40 sps:$4 sm:$0xff]  }
0x1ee6   :  { %v5243_v17 = vadd.f32 %v5242_v16, %v5070_v10  ;;  %v5244_v18 = vpop.f32.mrb[114].mxu0  ;;  %v5284_v19 = vpop.f32.mrb[142].mxu1 }
0x1ee7   :  { %v5288_v20 = vmul.f32 0.17677669, %v5241_v15  ;;  %v5245_v21 = vpop.f32.mrb[115].mxu0  ;;  %v8425_v22 = vpop.f32.mrb[143].mxu1  ;;  %v10016_v38 = vpack.c.bf16 %v5282_v31, %v5282_v31 }
0x1ee8   :  { %v5290_v23 = vpack.c.bf16 %v5243_v17, %v5243_v17 }
0x1ee9   :  { %v5289_v24 = vpack.c.bf16 %v5288_v20, %v5288_v20  ;;  %v5542_v33 = vsel %vm735_vm2, %v10016_v38, 0 }
0x1eea   :  { %5342 = vrot.lane.b32.xlu1 %v5290_v23, %s9382_s0  ;;  %v5296_v25 = vsel %vm484_vm1, %v5290_v23, 0 }
0x1eeb   :  { %8427 = vmatpush3.bf16.xpose.msra.mxu0 %v5296_v25  ;;  %5339 = vrot.lane.b32.xlu0 %v5289_v24, %s9382_s0 }
0x1eec   :  { %8438 = vmatprep.subr.bf16.mxu0 %v9379_v0 }
0x1eee   :  { %5392 = vrot.lane.b32.xlu1 %v5290_v23, %s9373_s25 }
0x1eef   :  { %5442 = vrot.lane.b32.xlu0 %v5290_v23, %s9383_s12 }
0x1ef2   :  { %5390 = vrot.lane.b32.xlu1 %v5289_v24, %s9373_s25  ;;  %8429 = vmatmul.mubr.msk.bf16.vlgmr.msra.gmra.mrb[116].mxu0 %vm484_vm1, %v5289_v24 }
0x1ef3   :  { %8440 = vmatprep.mubr.msk.bf16.mxu0 %vm9380_vm0, %v9379_v0 }
0x1ef6   :  { %5440 = vrot.lane.b32.xlu1 %v5289_v24, %s9383_s12 }
0x1f5c   :  { %v5343_v26 = vpop.permute.xlu1 %5342 }
0x1f5d   :  { %v5348_v27 = vsel %vm484_vm1, %v5343_v26, 0  ;;  %v5340_v29 = vpop.permute.xlu0 %5339 }
0x1f5e   :  { %8433 = vmatpush3.bf16.xpose.msra.mxu1 %v5348_v27  ;;  %v9004_v27 = vld [vmem:[#allocation7 + $0x2dc] ss:$40 sps:$4 sm:$0xff]  }
0x1f5f   :  { %8444 = vmatprep.subr.bf16.mxu1 %v9379_v0 }
0x1f60   :  { %v5393_v30 = vpop.permute.xlu1 %5392 }
0x1f61   :  { %v5398_v32 = vsel %vm484_vm1, %v5393_v30, 0  ;;  %v5443_v28 = vpop.permute.xlu0 %5442 }
0x1f62   :  { %8439 = vmatpush3.bf16.xpose.msra.mxu0 %v5398_v32  ;;  %v5448_v12 = vsel %vm484_vm1, %v5443_v28, 0 }
0x1f63   :  { %8450 = vmatprep.subr.bf16.mxu0 %v9379_v0 }
0x1f64   :  { %v5391_v5 = vpop.permute.xlu1 %5390 }
0x1f65   :  { %8435 = vmatmul.mubr.msk.bf16.vlgmr.msra.gmra.mrb[144].mxu1 %vm484_vm1, %v5340_v29 }
0x1f66   :  { %8445 = vmatpush3.bf16.xpose.msra.mxu1 %v5448_v12  ;;  %8446 = vmatprep.mubr.msk.bf16.mxu1 %vm9380_vm0, %v9379_v0 }
0x1f67   :  { %8456 = vmatprep.subr.bf16.mxu1 %v9379_v0 }
0x1f68   :  { %v5441_v34 = vpop.permute.xlu1 %5440 }
0x1f69   :  { %8441 = vmatmul.mubr.msk.bf16.vlgmr.msra.gmra.mrb[120].mxu0 %vm484_vm1, %v5391_v5 }
0x1f6a   :  { %8451 = vmatpush3.bf16.msra.mxu0 %v5542_v33  ;;  %8452 = vmatprep.mubr.msk.bf16.mxu0 %vm9380_vm0, %v9379_v0 }
0x1f6b   :  { %8464 = vmatprep.subr.bf16.mxu0 %v9379_v0 }
0x1f6d   :  { %8447 = vmatmul.mubr.msk.bf16.vlgmr.msra.gmra.mrb[148].mxu1 %vm484_vm1, %v5441_v34 }
0x1f6e   :  { %8460 = vmatprep.mubr.msk.bf16.mxu1 %vm9380_vm0, %v9379_v0  ;;  %8457 = vmatpush3.bf16.msra.mxu1 %v9003_v57  ;;  %v9046_v57 = vld [vmem:[#allocation7 + $0x4c8] ss:$40 sps:$4 sm:$0xff]  }
0x1f6f   :  { %8458 = vmatprep.subr.bf16.mxu1 %v9379_v0 }
0x1f72   :  { %8459 = vmatpush3.bf16.msra.mxu1 %v9004_v27  ;;  %v9049_v27 = vld [vmem:[#allocation7 + $0x4c4] ss:$40 sps:$4 sm:$0xff]  }
0x1f73   :  { %8470 = vmatprep.subr.bf16.mxu1 %v9379_v0 }
0x1fc5   :  { %v5332_v36 = vpop.f32.mrb[116].mxu0 }
0x1fc6   :  { %v8430_v37 = vpop.f32.mrb[117].mxu0  ;;  %v5490_v39 = vsel %vm683_vm3, %v5332_v36, -inf }
0x1fc7   :  { %5491 = vmax.xlane.f32.xlu0 %v5490_v39  ;;  %v5335_v40 = vpop.f32.mrb[118].mxu0 }
0x1fc8   :  { %v8431_v62 = vpop.f32.mrb[119].mxu0 }
0x2038   :  { %v5384_v41 = vpop.f32.mrb[144].mxu1 }
0x2039   :  { %v8436_v42 = vpop.f32.mrb[145].mxu1  ;;  %v5493_v43 = vsel %vm683_vm3, %v5384_v41, -inf }
0x203a   :  { %5494 = vmax.xlane.f32.xlu1 %v5493_v43  ;;  %v5387_v44 = vpop.f32.mrb[146].mxu1  ;;  %v9005_v43 = vld [vmem:[#allocation7 + $0x32c] ss:$40 sps:$4 sm:$0xff]  }
0x203b   :  { %v8437_v46 = vpop.f32.mrb[147].mxu1 }
0x203c   :  { %v5434_v48 = vpop.f32.mrb[120].mxu0 }
0x203d   :  { %v8442_v49 = vpop.f32.mrb[121].mxu0  ;;  %v5496_v50 = vsel %vm683_vm3, %v5434_v48, -inf }
0x203e   :  { %5497 = vmax.xlane.f32.xlu0 %v5496_v50  ;;  %v5437_v51 = vpop.f32.mrb[122].mxu0  ;;  %v9006_v50 = vld [vmem:[#allocation7 + $0x37c] ss:$40 sps:$4 sm:$0xff]  }
0x203f   :  { %v8443_v52 = vpop.f32.mrb[123].mxu0 }
0x2040   :  { %v5484_v53 = vpop.f32.mrb[148].mxu1  ;;  %v9007_v52 = vld [vmem:[#allocation7 + $0x3cc] ss:$40 sps:$4 sm:$0xff]  }
0x2041   :  { %v8448_v54 = vpop.f32.mrb[149].mxu1  ;;  %v5499_v55 = vsel %vm683_vm3, %v5484_v53, -inf }
0x2042   :  { %v5487_v56 = vpop.f32.mrb[150].mxu1  ;;  %5500 = vmax.xlane.f32.xlu0 %v5499_v55 }
0x2043   :  { %v8449_v58 = vpop.f32.mrb[151].mxu1 }
0x2044   :  { %v9008_v58 = vld [vmem:[#allocation7 + $0x41c] ss:$40 sps:$4 sm:$0xff]  }
0x2054   :  { %v5492_v59 = vpop.xlane.xlu0 %5491 }
0x2055   :  { %v5502_v61 = vsub.f32 %v5332_v36, %v5492_v59 }
0x2057   :  { %v5503_v63 = vmul.f32 1.442695, %v5502_v61  ;;  %v9009_v61 = vld [vmem:[#allocation7 + $0x46c] ss:$40 sps:$4 sm:$0xff]  }
0x2059   :  { %9179 = vpow2.f32 %v5503_v63 }
0x2063   :  { %v9180_v1 = vpop.eup %9179 }
0x2064   :  { %v5514_v2 = vsel %vm683_vm3, %v9180_v1, 0.0 }
0x2065   :  { %5515 = vadd.xlane.f32.xlu1 %v5514_v2 }
0x2076   :  { %5638 = vrot.lane.b32.xlu1 %v10016_v38, %s9382_s0 }
0x20c7   :  { %v5495_v3 = vpop.xlane.xlu1 %5494 }
0x20c8   :  { %v5505_v4 = vsub.f32 %v5384_v41, %v5495_v3 }
0x20ca   :  { %v5506_v7 = vmul.f32 1.442695, %v5505_v4  ;;  %v9010_v4 = vld [vmem:[#allocation7 + $0x4bc] ss:$40 sps:$4 sm:$0xff]  }
0x20cb   :  { %v5498_v8 = vpop.xlane.xlu0 %5497 }
0x20cc   :  { %9181 = vpow2.f32 %v5506_v7  ;;  %v5508_v9 = vsub.f32 %v5434_v48, %v5498_v8  ;;  %v9011_v7 = vld [vmem:[#allocation7 + $0x298] ss:$40 sps:$4 sm:$0xff]  }
0x20ce   :  { %v5509_v10 = vmul.f32 1.442695, %v5508_v9  ;;  %v9014_v9 = vld [vmem:[#allocation7 + $0x294] ss:$40 sps:$4 sm:$0xff]  }
0x20cf   :  { %v5501_v11 = vpop.xlane.xlu0 %5500 }
0x20d0   :  { %9183 = vpow2.f32 %v5509_v10  ;;  %v5511_v14 = vsub.f32 %v5484_v53, %v5501_v11 }
0x20d2   :  { %v5512_v15 = vmul.f32 1.442695, %v5511_v14  ;;  %v9016_v14 = vld [vmem:[#allocation7 + $0x2e8] ss:$40 sps:$4 sm:$0xff]  }
0x20d4   :  { %9185 = vpow2.f32 %v5512_v15 }
0x20d6   :  { %v9182_v16 = vpop.eup %9181 }
0x20d7   :  { %v5517_v13 = vsel %vm683_vm3, %v9182_v16, 0.0 }
0x20d8   :  { %5518 = vadd.xlane.f32.xlu0 %v5517_v13  ;;  %v9019_v13 = vld [vmem:[#allocation7 + $0x2e4] ss:$40 sps:$4 sm:$0xff]  }
0x20da   :  { %v9184_v17 = vpop.eup %9183 }
0x20db   :  { %v5520_v18 = vsel %vm683_vm3, %v9184_v17, 0.0 }
0x20dc   :  { %5521 = vadd.xlane.f32.xlu1 %v5520_v18  ;;  %v9024_v18 = vld [vmem:[#allocation7 + $0x334] ss:$40 sps:$4 sm:$0xff]  }
0x20de   :  { %v9186_v19 = vpop.eup %9185 }
0x20df   :  { %v5523_v20 = vsel %vm683_vm3, %v9186_v19, 0.0 }
0x20e0   :  { %5524 = vadd.xlane.f32.xlu0 %v5523_v20  ;;  %v9029_v20 = vld [vmem:[#allocation7 + $0x384] ss:$40 sps:$4 sm:$0xff]  }
0x20ed   :  { %5840 = vrot.lane.b32.xlu1 %v10016_v38, %s9383_s12 }
0x20f2   :  { %v5516_v21 = vpop.xlane.xlu1 %5515 }
0x20f3   :  { %9187 = vrcp.f32 %v5516_v21  ;;  %v9031_v21 = vld [vmem:[#allocation7 + $0x3d8] ss:$40 sps:$4 sm:$0xff]  }
0x20f6   :  { %5739 = vrot.lane.b32.xlu0 %v10016_v38, %s9373_s25  ;;  %v5639_v24 = vpop.permute.xlu1 %5638 }
0x20f7   :  { %v5644_v26 = vsel %vm735_vm2, %v5639_v24, 0  ;;  %v9039_v24 = vld [vmem:[#allocation7 + $0x424] ss:$40 sps:$4 sm:$0xff]  }
0x20fd   :  { %v9188_v22 = vpop.eup %9187 }
0x20fe   :  { %v5530_v23 = vmul.f32 %v9188_v22, %v9180_v1  ;;  %v9034_v22 = vld [vmem:[#allocation7 + $0x3d4] ss:$40 sps:$4 sm:$0xff]  }
0x2100   :  { %v5531_v25 = vpack.c.bf16 %v5530_v23, %v5530_v23  ;;  %v9036_v23 = vld [vmem:[#allocation7 + $0x428] ss:$40 sps:$4 sm:$0xff]  }
0x2102   :  { %8453 = vmatmul.mubr.msk.bf16.vlgmr.msra.gmra.mrb[124].mxu0 %vm683_vm3, %v5531_v25  ;;  %v9041_v25 = vld [vmem:[#allocation7 + $0x478] ss:$40 sps:$4 sm:$0xff]  }
0x2103   :  { %8465 = vmatpush3.bf16.msra.mxu0 %v5644_v26  ;;  %8466 = vmatprep.mubr.msk.bf16.mxu0 %vm9380_vm0, %v9379_v0  ;;  %v9044_v26 = vld [vmem:[#allocation7 + $0x474] ss:$40 sps:$4 sm:$0xff]  }
0x2104   :  { %8478 = vmatprep.subr.bf16.mxu0 %v9379_v0 }
0x2165   :  { %v5519_v29 = vpop.xlane.xlu0 %5518 }
0x2166   :  { %9189 = vrcp.f32 %v5519_v29 }
0x2169   :  { %v5522_v30 = vpop.xlane.xlu1 %5521 }
0x216a   :  { %9191 = vrcp.f32 %v5522_v30 }
0x216d   :  { %v5525_v31 = vpop.xlane.xlu0 %5524  ;;  %v5841_v36 = vpop.permute.xlu1 %5840 }
0x216e   :  { %9193 = vrcp.f32 %v5525_v31  ;;  %v5846_v40 = vsel %vm735_vm2, %v5841_v36, 0 }
0x2170   :  { %v9190_v32 = vpop.eup %9189 }
0x2171   :  { %v5532_v28 = vmul.f32 %v9190_v32, %v9182_v16  ;;  %v5740_v38 = vpop.permute.xlu0 %5739 }
0x2172   :  { %v5745_v33 = vsel %vm735_vm2, %v5740_v38, 0  ;;  %v9052_v38 = vld [vmem:[#allocation7 + $0x2e0] ss:$40 sps:$4 sm:$0xff]  }
0x2173   :  { %v5533_v12 = vpack.c.bf16 %v5532_v28, %v5532_v28  ;;  %v9051_v28 = vld [vmem:[#allocation7 + $0x290] ss:$40 sps:$4 sm:$0xff]  }
0x2174   :  { %v9192_v5 = vpop.eup %9191 }
0x2175   :  { %8467 = vmatmul.mubr.msk.bf16.vlgmr.msra.gmra.mrb[128].mxu0 %vm683_vm3, %v5533_v12  ;;  %v5534_v34 = vmul.f32 %v9192_v5, %v9184_v17  ;;  %v9021_v17 = vld [vmem:[#allocation7 + $0x338] ss:$40 sps:$4 sm:$0xff]  }
0x2176   :  { %8479 = vmatpush3.bf16.msra.mxu0 %v5745_v33  ;;  %8480 = vmatprep.mubr.msk.bf16.mxu0 %vm9380_vm0, %v9379_v0  ;;  %v9053_v12 = vld [vmem:[#allocation7 + $0x330] ss:$40 sps:$4 sm:$0xff]  }
0x2177   :  { %8492 = vmatprep.subr.bf16.mxu0 %v9379_v0  ;;  %v5535_v37 = vpack.c.bf16 %v5534_v34, %v5534_v34 }
0x2178   :  { %v9194_v39 = vpop.eup %9193 }
0x2179   :  { %v5536_v62 = vmul.f32 %v9194_v39, %v9186_v19  ;;  %v9026_v19 = vld [vmem:[#allocation7 + $0x388] ss:$40 sps:$4 sm:$0xff]  }
0x217b   :  { %v5537_v41 = vpack.c.bf16 %v5536_v62, %v5536_v62 }
0x217d   :  { %8481 = vmatmul.mubr.msk.bf16.vlgmr.msra.gmra.mrb[132].mxu0 %vm683_vm3, %v5535_v37 }
0x217e   :  { %8493 = vmatpush3.bf16.msra.mxu0 %v5846_v40  ;;  %8494 = vmatprep.mubr.msk.bf16.mxu0 %vm9380_vm0, %v9379_v0 }
0x217f   :  { %8506 = vmatprep.subr.bf16.mxu0 %v9379_v0 }
0x2185   :  { %8495 = vmatmul.mubr.msk.bf16.vlgmr.msra.gmra.mrb[136].mxu0 %vm683_vm3, %v5537_v41 }
0x2186   :  { %8522 = vmatprep.mubr.msk.bf16.mxu0 %vm9380_vm0, %v9379_v0  ;;  %8507 = vmatpush3.bf16.msra.mxu0 %v9051_v28 }
0x2187   :  { %8508 = vmatprep.subr.bf16.mxu0 %v9379_v0 }
0x218a   :  { %8509 = vmatpush3.bf16.msra.mxu0 %v9052_v38 }
0x218b   :  { %8510 = vmatprep.subr.bf16.mxu0 %v9379_v0 }
0x218e   :  { %8511 = vmatpush3.bf16.msra.mxu0 %v9053_v12 }
0x218f   :  { %8512 = vmatprep.subr.bf16.mxu0 %v9379_v0 }
0x21d5   :  { %v5578_v42 = vpop.f32.mrb[124].mxu0 }
0x21d6   :  { %v5584_v44 = vpack.c.bf16 %v5578_v42, %v5578_v42  ;;  %v8454_v46 = vpop.f32.mrb[125].mxu0 }
0x21d7   :  { %v5581_v48 = vpop.f32.mrb[126].mxu0 }
0x21d8   :  { %v8455_v49 = vpop.f32.mrb[127].mxu0  ;;  %8461 = vmatmul.mubr.msk.bf16.vlgmr.msra.gmra.mrb[152].mxu1 %vm484_vm1, %v5584_v44 }
0x21d9   :  { %8471 = vmatpush3.bf16.msra.mxu1 %v9005_v43  ;;  %8474 = vmatprep.mubr.msk.bf16.mxu1 %vm9380_vm0, %v9379_v0 }
0x21da   :  { %8472 = vmatprep.subr.bf16.mxu1 %v9379_v0 }
0x21dd   :  { %8473 = vmatpush3.bf16.msra.mxu1 %v9006_v50 }
0x21de   :  { %8484 = vmatprep.subr.bf16.mxu1 %v9379_v0 }
0x2248   :  { %v5680_v51 = vpop.f32.mrb[128].mxu0 }
0x2249   :  { %v5686_v53 = vpack.c.bf16 %v5680_v51, %v5680_v51  ;;  %v8468_v54 = vpop.f32.mrb[129].mxu0 }
0x224a   :  { %v5683_v55 = vpop.f32.mrb[130].mxu0  ;;  %v9055_v54 = vld [vmem:[#allocation7 + $0x3d0] ss:$40 sps:$4 sm:$0xff]  }
0x224b   :  { %v8469_v56 = vpop.f32.mrb[131].mxu0  ;;  %8475 = vmatmul.mubr.msk.bf16.vlgmr.msra.gmra.mrb[156].mxu1 %vm484_vm1, %v5686_v53  ;;  %v9054_v53 = vld [vmem:[#allocation7 + $0x380] ss:$40 sps:$4 sm:$0xff]   ;;  %v6050_v55 = vld [vmem:[#allocation10 + $0x65] ss:$8 sm:$0x3] }
0x224c   :  { %8485 = vmatpush3.bf16.msra.mxu1 %v9007_v52  ;;  %8488 = vmatprep.mubr.msk.bf16.mxu1 %vm9380_vm0, %v9379_v0  ;;  %v9056_v56 = vld [vmem:[#allocation7 + $0x420] ss:$40 sps:$4 sm:$0xff]  }
0x224d   :  { %8486 = vmatprep.subr.bf16.mxu1 %v9379_v0  ;;  %8513 = vmatpush3.bf16.msra.mxu0 %v9054_v53 }
0x224e   :  { %8514 = vmatprep.subr.bf16.mxu0 %v9379_v0 }
0x2250   :  { %8487 = vmatpush3.bf16.msra.mxu1 %v9008_v58  ;;  %v5781_v59 = vpop.f32.mrb[132].mxu0  ;;  %v6055_v58 = vrot.slane %v6050_v55, %v9529_v45 }
0x2251   :  { %v5787_v63 = vpack.c.bf16 %v5781_v59, %v5781_v59  ;;  %v8482_v1 = vpop.f32.mrb[133].mxu0  ;;  %8498 = vmatprep.subr.bf16.mxu1 %v9379_v0  ;;  %8515 = vmatpush3.bf16.msra.mxu0 %v9055_v54  ;;  %v6059_v59 = vrot.slane %v6050_v55, %v9531_v47 }
0x2252   :  { %v5784_v2 = vpop.f32.mrb[134].mxu0  ;;  %8516 = vmatprep.subr.bf16.mxu0 %v9379_v0 }
0x2253   :  { %v8483_v3 = vpop.f32.mrb[135].mxu0  ;;  %8489 = vmatmul.mubr.msk.bf16.vlgmr.msra.gmra.mrb[160].mxu1 %vm484_vm1, %v5787_v63 }
0x2254   :  { %8499 = vmatpush3.bf16.msra.mxu1 %v9009_v61  ;;  %8502 = vmatprep.mubr.msk.bf16.mxu1 %vm9380_vm0, %v9379_v0 }
0x2255   :  { %8500 = vmatprep.subr.bf16.mxu1 %v9379_v0  ;;  %8517 = vmatpush3.bf16.msra.mxu0 %v9056_v56 }
0x2256   :  { %8518 = vmatprep.subr.bf16.mxu0 %v9379_v0 }
0x2258   :  { %8501 = vmatpush3.bf16.msra.mxu1 %v9010_v4  ;;  %v5882_v8 = vpop.f32.mrb[136].mxu0  ;;  %v9058_v4 = vld [vmem:[#allocation7 + $0x4c0] ss:$40 sps:$4 sm:$0xff]  }
0x2259   :  { %v5888_v10 = vpack.c.bf16 %v5882_v8, %v5882_v8  ;;  %v8496_v11 = vpop.f32.mrb[137].mxu0  ;;  %6142 = vmatprep.subr.bf16.mxu1 %v9011_v7 }
0x225a   :  { %v5885_v15 = vpop.f32.mrb[138].mxu0 }
0x225b   :  { %v8497_v16 = vpop.f32.mrb[139].mxu0  ;;  %8503 = vmatmul.mubr.msk.bf16.vlgmr.msra.gmra.mrb[164].mxu1 %vm484_vm1, %v5888_v10 }
0x225c   :  { %6143 = vmatpush1.bf16.msra.mxu1 %v9014_v9  ;;  %6174 = vmatprep.mubr.bf16.mxu1 %v9381_v35 }
0x225d   :  { %6144 = vmatprep.subr.bf16.mxu1 %v9016_v14 }
0x2260   :  { %6145 = vmatpush1.bf16.msra.mxu1 %v9019_v13 }
0x2261   :  { %6146 = vmatprep.subr.bf16.mxu1 %v9021_v17 }
0x2264   :  { %6147 = vmatpush1.bf16.msra.mxu1 %v9024_v18 }
0x2265   :  { %6148 = vmatprep.subr.bf16.mxu1 %v9026_v19 }
0x2268   :  { %6149 = vmatpush1.bf16.msra.mxu1 %v9029_v20 }
0x2269   :  { %6150 = vmatprep.subr.bf16.mxu1 %v9031_v21  ;;  %v5942_v21 = vld [vmem:[#allocation10 + $0x62] ss:$0 sm:$0xff] }
0x226c   :  { %6151 = vmatpush1.bf16.msra.mxu1 %v9034_v22 }
0x226d   :  { %6152 = vmatprep.subr.bf16.mxu1 %v9036_v23  ;;  %v5943_v23 = vld [vmem:[#allocation10 + $0x63] ss:$0 sm:$0xff] }
0x2270   :  { %6153 = vmatpush1.bf16.msra.mxu1 %v9039_v24 }
0x2271   :  { %6154 = vmatprep.subr.bf16.mxu1 %v9041_v25 }
0x2274   :  { %6155 = vmatpush1.bf16.msra.mxu1 %v9044_v26 }
0x2275   :  { %6156 = vmatprep.subr.bf16.mxu1 %v9046_v57 }
0x2278   :  { %6157 = vmatpush1.bf16.msra.mxu1 %v9049_v27  ;;  %v5959_v27 = vld [vmem:[#allocation10 + $0x64] ss:$0 sm:$0xff] }
0x2279   :  { %8532 = vmatprep.subr.bf16.mxu1 %v9379_v0 }
0x227b   :  { %6175 = vmatmul.mubr.bf16.vlgmr.msra.gmra.mrb[168].mxu1 %v9861_v60  ;;  %v5287_v60 = vld [vmem:[#allocation10 + $0x61] ss:$0 sm:$0xff] }
0x227c   :  { %8534 = vmatprep.mubr.msk.bf16.mxu1 %vm9380_vm0, %v9379_v0 }
0x22ab   :  { %v5630_v29 = vpop.f32.mrb[152].mxu1 }
0x22ac   :  { %v8462_v30 = vpop.f32.mrb[153].mxu1  ;;  %v5636_v5 = vadd.f32 %v5630_v29, %v5287_v60 }
0x22ad   :  { %v5633_v31 = vpop.f32.mrb[154].mxu1 }
0x22ae   :  { %v8463_v32 = vpop.f32.mrb[155].mxu1 }
0x231e   :  { %v5732_v33 = vpop.f32.mrb[156].mxu1 }
0x231f   :  { %v5738_v34 = vadd.f32 %v5732_v33, %v5636_v5  ;;  %v8476_v36 = vpop.f32.mrb[157].mxu1 }
0x2320   :  { %v5735_v37 = vpop.f32.mrb[158].mxu1 }
0x2321   :  { %v8477_v39 = vpop.f32.mrb[159].mxu1 }
0x2326   :  { %v5833_v40 = vpop.f32.mrb[160].mxu1 }
0x2327   :  { %v5839_v62 = vadd.f32 %v5833_v40, %v5738_v34  ;;  %v8490_v41 = vpop.f32.mrb[161].mxu1 }
0x2328   :  { %v5836_v42 = vpop.f32.mrb[162].mxu1 }
0x2329   :  { %v8491_v43 = vpop.f32.mrb[163].mxu1  ;;  %v9018_v42 = vld [vmem:[#allocation7 + $0x2ec] ss:$40 sps:$4 sm:$0xff]  }
0x232e   :  { %v5934_v44 = vpop.f32.mrb[164].mxu1 }
0x232f   :  { %v5940_v46 = vadd.f32 %v5934_v44, %v5839_v62  ;;  %v8504_v48 = vpop.f32.mrb[165].mxu1  ;;  %v9013_v62 = vld [vmem:[#allocation7 + $0x29c] ss:$40 sps:$4 sm:$0xff]  }
0x2330   :  { %v5937_v49 = vpop.f32.mrb[166].mxu1 }
0x2331   :  { %v5941_v50 = vadd.f32 %v5940_v46, %v9990_v6  ;;  %v8505_v51 = vpop.f32.mrb[167].mxu1  ;;  %v9057_v6 = vld [vmem:[#allocation7 + $0x470] ss:$40 sps:$4 sm:$0xff]  }
0x2332   :  { %8519 = vmatpush3.bf16.msra.mxu0 %v9057_v6 }
0x2333   :  { %5944 = vadd.xlane.f32.xlu1 %v5941_v50  ;;  %v5946_v52 = vmul.f32 %v5941_v50, %v5941_v50  ;;  %8520 = vmatprep.subr.bf16.mxu0 %v9379_v0 }
0x2335   :  { %5947 = vadd.xlane.f32.xlu0 %v5946_v52 }
0x2336   :  { %8521 = vmatpush3.bf16.msra.mxu0 %v9058_v4 }
0x2337   :  { %8526 = vmatprep.subr.bf16.mxu0 %v9379_v0 }
0x234e   :  { %v6176_v61 = vpop.f32.mrb[168].mxu1 }
0x234f   :  { %v6177_v63 = vadd.f32 %v6176_v61, %v6055_v58  ;;  %v6178_v1 = vpop.f32.mrb[169].mxu1 }
0x2350   :  { %v6179_v2 = vadd.f32 %v6178_v1, %v6059_v59  ;;  %v6180_v3 = vpop.f32.mrb[170].mxu1 }
0x2351   :  { %v6186_v7 = vpack.c.bf16 %v6177_v63, %v6177_v63  ;;  %v6181_v8 = vpop.f32.mrb[171].mxu1 }
0x2352   :  { %v10121_v36 = vpack.c.bf16 %v6179_v2, %v6179_v2 }
0x2353   :  { %6238 = vrot.lane.b32.xlu0 %v6186_v7, %s9382_s0  ;;  %v6192_v57 = vsel %vm484_vm1, %v6186_v7, 0 }
0x2354   :  { %v6438_v40 = vsel %vm735_vm2, %v10121_v36, 0 }
0x23c0   :  { %v5945_v9 = vpop.xlane.xlu1 %5944 }
0x23c1   :  { %v5949_v10 = vmul.f32 0.0078125, %v5945_v9 }
0x23c2   :  { %v5948_v11 = vpop.xlane.xlu0 %5947 }
0x23c3   :  { %v5951_v14 = vmul.f32 %v5949_v10, %v5949_v10  ;;  %v5950_v15 = vmul.f32 0.0078125, %v5948_v11  ;;  %v5953_v19 = vsub.f32 %v5941_v50, %v5949_v10 }
0x23c5   :  { %v5952_v16 = vsub.f32 %v5950_v15, %v5951_v14 }
0x23c6   :  { %v6239_v13 = vpop.permute.xlu0 %6238 }
0x23c7   :  { %v5954_v17 = vadd.f32 1e-05, %v5952_v16  ;;  %v6244_v18 = vsel %vm484_vm1, %v6239_v13, 0 }
0x23c8   :  { %8533 = vmatpush3.bf16.xpose.msra.mxu1 %v6244_v18 }
0x23c9   :  { %9195 = vrsqrt.f32 %v5954_v17  ;;  %8544 = vmatprep.subr.bf16.mxu1 %v9379_v0 }
0x23d3   :  { %v9196_v20 = vpop.eup %9195 }
0x23d4   :  { %v5956_v22 = vmul.f32 %v9196_v20, %v5953_v19 }
0x23d6   :  { %v5957_v24 = vmul.f32 %v5956_v22, %v5942_v21 }
0x23d8   :  { %v10100_v25 = vadd.f32 %v5957_v24, %v5943_v23 }
0x23da   :  { %v5960_v26 = vpack.c.bf16 %v10100_v25, %v10100_v25 }
0x23dc   :  { %8523 = vmatmul.mubr.bf16.vlgmr.msra.gmra.mrb[140].mxu0 %v5960_v26 }
0x23dd   :  { %8527 = vmatpush3.bf16.xpose.msra.mxu0 %v6192_v57  ;;  %8528 = vmatprep.mubr.msk.bf16.mxu0 %vm9380_vm0, %v9379_v0 }
0x23de   :  { %8538 = vmatprep.subr.bf16.mxu0 %v9379_v0 }
0x24af   :  { %v6043_v29 = vpop.f32.mrb[140].mxu0 }
0x24b0   :  { %v6044_v30 = vadd.f32 %v6043_v29, %v5959_v27  ;;  %v8524_v31 = vpop.f32.mrb[141].mxu0 }
0x24b1   :  { %v6046_v32 = vpop.f32.mrb[142].mxu0 }
0x24b2   :  { %v6184_v28 = vmul.f32 0.17677669, %v6044_v30  ;;  %v8525_v38 = vpop.f32.mrb[143].mxu0 }
0x24b4   :  { %v6185_v12 = vpack.c.bf16 %v6184_v28, %v6184_v28 }
0x24b6   :  { %6286 = vrot.lane.b32.xlu0 %v6185_v12, %s9373_s25  ;;  %6235 = vrot.lane.b32.xlu1 %v6185_v12, %s9382_s0 }
0x24b7   :  { %8529 = vmatmul.mubr.msk.bf16.vlgmr.msra.gmra.mrb[144].mxu0 %vm484_vm1, %v6185_v12 }
0x24b8   :  { %8540 = vmatprep.mubr.msk.bf16.mxu0 %vm9380_vm0, %v9379_v0 }
0x24ba   :  { %6336 = vrot.lane.b32.xlu0 %v6185_v12, %s9383_s12  ;;  %6288 = vrot.lane.b32.xlu1 %v6186_v7, %s9373_s25 }
0x24be   :  { %6338 = vrot.lane.b32.xlu1 %v6186_v7, %s9383_s12 }
0x2528   :  { %v6236_v60 = vpop.permute.xlu1 %6235  ;;  %v6287_v39 = vpop.permute.xlu0 %6286 }
0x2529   :  { %8535 = vmatmul.mubr.msk.bf16.vlgmr.msra.gmra.mrb[172].mxu1 %vm484_vm1, %v6236_v60 }
0x252a   :  { %8546 = vmatprep.mubr.msk.bf16.mxu1 %vm9380_vm0, %v9379_v0 }
0x252c   :  { %v6289_v5 = vpop.permute.xlu1 %6288  ;;  %v6337_v41 = vpop.permute.xlu0 %6336 }
0x252d   :  { %v6294_v33 = vsel %vm484_vm1, %v6289_v5, 0 }
0x252e   :  { %8539 = vmatpush3.bf16.xpose.msra.mxu0 %v6294_v33 }
0x252f   :  { %8550 = vmatprep.subr.bf16.mxu0 %v9379_v0 }
0x2530   :  { %v6339_v34 = vpop.permute.xlu1 %6338 }
0x2531   :  { %v6344_v37 = vsel %vm484_vm1, %v6339_v34, 0 }
0x2532   :  { %8545 = vmatpush3.bf16.xpose.msra.mxu1 %v6344_v37 }
0x2533   :  { %8556 = vmatprep.subr.bf16.mxu1 %v9379_v0 }
0x2535   :  { %8541 = vmatmul.mubr.msk.bf16.vlgmr.msra.gmra.mrb[148].mxu0 %vm484_vm1, %v6287_v39 }
0x2536   :  { %8551 = vmatpush3.bf16.msra.mxu0 %v6438_v40  ;;  %8552 = vmatprep.mubr.msk.bf16.mxu0 %vm9380_vm0, %v9379_v0 }
0x2537   :  { %8564 = vmatprep.subr.bf16.mxu0 %v9379_v0 }
0x2539   :  { %8547 = vmatmul.mubr.msk.bf16.vlgmr.msra.gmra.mrb[176].mxu1 %vm484_vm1, %v6337_v41 }
0x253a   :  { %8557 = vmatpush3.bf16.msra.mxu1 %v9013_v62  ;;  %8560 = vmatprep.mubr.msk.bf16.mxu1 %vm9380_vm0, %v9379_v0 }
0x253b   :  { %8558 = vmatprep.subr.bf16.mxu1 %v9379_v0 }
0x253e   :  { %8559 = vmatpush3.bf16.msra.mxu1 %v9018_v42 }
0x253f   :  { %8570 = vmatprep.subr.bf16.mxu1 %v9379_v0 }
0x258a   :  { %v6228_v43 = vpop.f32.mrb[144].mxu0 }
0x258b   :  { %v8530_v44 = vpop.f32.mrb[145].mxu0  ;;  %v6386_v46 = vsel %vm683_vm3, %v6228_v43, -inf }
0x258c   :  { %6387 = vmax.xlane.f32.xlu1 %v6386_v46  ;;  %v6231_v48 = vpop.f32.mrb[146].mxu0 }
0x258d   :  { %v8531_v49 = vpop.f32.mrb[147].mxu0  ;;  %v9023_v48 = vld [vmem:[#allocation7 + $0x33c] ss:$40 sps:$4 sm:$0xff]  }
0x25fc   :  { %v6280_v50 = vpop.f32.mrb[172].mxu1 }
0x25fd   :  { %v8536_v51 = vpop.f32.mrb[173].mxu1  ;;  %v6389_v52 = vsel %vm683_vm3, %v6280_v50, -inf }
0x25fe   :  { %6390 = vmax.xlane.f32.xlu0 %v6389_v52  ;;  %v6283_v53 = vpop.f32.mrb[174].mxu1 }
0x25ff   :  { %v8537_v54 = vpop.f32.mrb[175].mxu1 }
0x2600   :  { %v9028_v54 = vld [vmem:[#allocation7 + $0x38c] ss:$40 sps:$4 sm:$0xff]  }
0x2608   :  { %v6330_v55 = vpop.f32.mrb[148].mxu0 }
0x2609   :  { %v8542_v56 = vpop.f32.mrb[149].mxu0  ;;  %v6392_v58 = vsel %vm683_vm3, %v6330_v55, -inf }
0x260a   :  { %6393 = vmax.xlane.f32.xlu0 %v6392_v58  ;;  %v6333_v59 = vpop.f32.mrb[150].mxu0 }
0x260b   :  { %v8543_v6 = vpop.f32.mrb[151].mxu0 }
0x260c   :  { %v6380_v61 = vpop.f32.mrb[176].mxu1 }
0x260d   :  { %v8548_v63 = vpop.f32.mrb[177].mxu1  ;;  %v6395_v1 = vsel %vm683_vm3, %v6380_v61, -inf }
0x260e   :  { %v6383_v2 = vpop.f32.mrb[178].mxu1  ;;  %6396 = vmax.xlane.f32.xlu1 %v6395_v1  ;;  %v9043_v63 = vld [vmem:[#allocation7 + $0x47c] ss:$40 sps:$4 sm:$0xff]  }
0x260f   :  { %v8549_v3 = vpop.f32.mrb[179].mxu1 }
0x2619   :  { %v6388_v4 = vpop.xlane.xlu1 %6387 }
0x261a   :  { %v6398_v7 = vsub.f32 %v6228_v43, %v6388_v4 }
0x261c   :  { %v6399_v8 = vmul.f32 1.442695, %v6398_v7 }
0x261e   :  { %9197 = vpow2.f32 %v6399_v8  ;;  %v9048_v8 = vld [vmem:[#allocation7 + $0x4cc] ss:$40 sps:$4 sm:$0xff]  }
0x2628   :  { %v9198_v9 = vpop.eup %9197 }
0x2629   :  { %v6410_v10 = vsel %vm683_vm3, %v9198_v9, 0.0 }
0x262a   :  { %6411 = vadd.xlane.f32.xlu0 %v6410_v10 }
0x268b   :  { %v6391_v11 = vpop.xlane.xlu0 %6390 }
0x268c   :  { %v6401_v14 = vsub.f32 %v6280_v50, %v6391_v11 }
0x268e   :  { %v6402_v15 = vmul.f32 1.442695, %v6401_v14 }
0x2690   :  { %9199 = vpow2.f32 %v6402_v15 }
0x2697   :  { %v6394_v16 = vpop.xlane.xlu0 %6393 }
0x2698   :  { %v6404_v13 = vsub.f32 %v6330_v55, %v6394_v16  ;;  %v9033_v55 = vld [vmem:[#allocation7 + $0x3dc] ss:$40 sps:$4 sm:$0xff]  }
0x269a   :  { %v9200_v17 = vpop.eup %9199  ;;  %v6405_v18 = vmul.f32 1.442695, %v6404_v13 }
0x269b   :  { %v6413_v19 = vsel %vm683_vm3, %v9200_v17, 0.0  ;;  %v6397_v23 = vpop.xlane.xlu1 %6396 }
0x269c   :  { %9201 = vpow2.f32 %v6405_v18  ;;  %6414 = vadd.xlane.f32.xlu1 %v6413_v19  ;;  %v6407_v24 = vsub.f32 %v6380_v61, %v6397_v23  ;;  %v9038_v61 = vld [vmem:[#allocation7 + $0x42c] ss:$40 sps:$4 sm:$0xff]   ;;  %v9059_v19 = vld [vmem:[#allocation7 + $0x2a0] ss:$40 sps:$4 sm:$0xff]   ;;  %v6183_v23 = vld [vmem:[#allocation10 + $0x66] ss:$0 sm:$0xff] }
0x269e   :  { %v6408_v26 = vmul.f32 1.442695, %v6407_v24 }
0x26a6   :  { %v9202_v20 = vpop.eup %9201 }
0x26a7   :  { %v6416_v21 = vsel %vm683_vm3, %v9202_v20, 0.0 }
0x26a8   :  { %6417 = vadd.xlane.f32.xlu0 %v6416_v21  ;;  %v9064_v21 = vld [vmem:[#allocation7 + $0x2f4] ss:$40 sps:$4 sm:$0xff]  }
0x26ad   :  { %6635 = vrot.lane.b32.xlu1 %v10121_v36, %s9373_s25  ;;  %s7247_s25 = sshll.u32 %s9384_s1, 4  ;;  %s7248_s25 = int_to_ptr.vmem [resolvable:$true] %s7247_s25 }
0x26ae   :  { %s9338_s23 = scalar_lea.vmem %s7248_s25, 128  ;;  %p9343_p13 = scmp.lt.s32.totalorder %s7248_s25, %s7248_s25 }
0x26af   :  { %p9339_p12 = scmp.ne.s32.totalorder %s7248_s25, %s9338_s23  ;;  %p9344_p0 = scmp.lt.s32.totalorder %s9338_s23, %s9338_s23 }
0x26b1   :  { %p9345_p1 = por %p9344_p0, %p9343_p13 }
0x26b3   :  { %p9346_p2 = pnand %p9345_p1, %p9339_p12 }
0x26b7   :  { %v6412_v22 = vpop.xlane.xlu0 %6411 }
0x26b8   :  { %9203 = vrcp.f32 %v6412_v22  ;;  %v9062_v22 = vld [vmem:[#allocation7 + $0x2f0] ss:$40 sps:$4 sm:$0xff]  }
0x26b9   :  { %9205 = vpow2.f32 %v6408_v26 }
0x26be   :  { %6534 = vrot.lane.b32.xlu0 %v10121_v36, %s9382_s0 }
0x26c2   :  { %v9204_v57 = vpop.eup %9203 }
0x26c3   :  { %v6426_v27 = vmul.f32 %v9204_v57, %v9198_v9  ;;  %v9206_v30 = vpop.eup %9205 }
0x26c4   :  { %v6419_v31 = vsel %vm683_vm3, %v9206_v30, 0.0 }
0x26c5   :  { %v6427_v29 = vpack.c.bf16 %v6426_v27, %v6426_v27 }
0x26c7   :  { %8553 = vmatmul.mubr.msk.bf16.vlgmr.msra.gmra.mrb[152].mxu0 %vm683_vm3, %v6427_v29 }
0x26c8   :  { %8566 = vmatprep.mubr.msk.bf16.mxu0 %vm9380_vm0, %v9379_v0 }
0x26d1   :  { %6420 = vadd.xlane.f32.xlu1 %v6419_v31 }
0x26e2   :  { %6736 = vrot.lane.b32.xlu1 %v10121_v36, %s9383_s12 }
0x2729   :  { %v6415_v32 = vpop.xlane.xlu1 %6414 }
0x272a   :  { %9207 = vrcp.f32 %v6415_v32 }
0x272d   :  { %v6636_v33 = vpop.permute.xlu1 %6635 }
0x272e   :  { %v6641_v37 = vsel %vm735_vm2, %v6636_v33, 0 }
0x2734   :  { %v9208_v28 = vpop.eup %9207 }
0x2735   :  { %v6418_v38 = vpop.xlane.xlu0 %6417  ;;  %v6428_v12 = vmul.f32 %v9208_v28, %v9200_v17 }
0x2736   :  { %9209 = vrcp.f32 %v6418_v38 }
0x2737   :  { %v6429_v34 = vpack.c.bf16 %v6428_v12, %v6428_v12 }
0x2739   :  { %v6535_v60 = vpop.permute.xlu0 %6534 }
0x273a   :  { %v6540_v5 = vsel %vm735_vm2, %v6535_v60, 0 }
0x273b   :  { %8565 = vmatpush3.bf16.msra.mxu0 %v6540_v5 }
0x273c   :  { %8578 = vmatprep.subr.bf16.mxu0 %v9379_v0 }
0x273e   :  { %8567 = vmatmul.mubr.msk.bf16.vlgmr.msra.gmra.mrb[156].mxu0 %vm683_vm3, %v6429_v34 }
0x273f   :  { %8579 = vmatpush3.bf16.msra.mxu0 %v6641_v37  ;;  %8580 = vmatprep.mubr.msk.bf16.mxu0 %vm9380_vm0, %v9379_v0 }
0x2740   :  { %v9210_v36 = vpop.eup %9209  ;;  %8592 = vmatprep.subr.bf16.mxu0 %v9379_v0 }
0x2741   :  { %v6430_v39 = vmul.f32 %v9210_v36, %v9202_v20  ;;  %v9061_v20 = vld [vmem:[#allocation7 + $0x2a4] ss:$40 sps:$4 sm:$0xff]  }
0x2743   :  { %v6431_v40 = vpack.c.bf16 %v6430_v39, %v6430_v39 }
0x2746   :  { %8581 = vmatmul.mubr.msk.bf16.vlgmr.msra.gmra.mrb[160].mxu0 %vm683_vm3, %v6431_v40  ;;  %v9067_v40 = vld [vmem:[#allocation7 + $0x344] ss:$40 sps:$4 sm:$0xff]  }
0x2747   :  { %8594 = vmatprep.mubr.msk.bf16.mxu0 %vm9380_vm0, %v9379_v0 }
0x275e   :  { %v6421_v62 = vpop.xlane.xlu1 %6420 }
0x275f   :  { %9211 = vrcp.f32 %v6421_v62  ;;  %v9065_v62 = vld [vmem:[#allocation7 + $0x340] ss:$40 sps:$4 sm:$0xff]  }
0x2762   :  { %v6737_v41 = vpop.permute.xlu1 %6736 }
0x2763   :  { %v6742_v42 = vsel %vm735_vm2, %v6737_v41, 0  ;;  %v9070_v41 = vld [vmem:[#allocation7 + $0x394] ss:$40 sps:$4 sm:$0xff]  }
0x2764   :  { %8593 = vmatpush3.bf16.msra.mxu0 %v6742_v42  ;;  %v9068_v42 = vld [vmem:[#allocation7 + $0x390] ss:$40 sps:$4 sm:$0xff]  }
0x2765   :  { %6949 = vmatprep.subr.bf16.mxu0 %v9061_v20  ;;  %v9219_v20 = vld [vmem:[#allocation2] sm:$0xff]  }
0x2769   :  { %v9212_v43 = vpop.eup %9211 }
0x276a   :  { %v6432_v44 = vmul.f32 %v9212_v43, %v9206_v30  ;;  %v9073_v43 = vld [vmem:[#allocation7 + $0x3e4] ss:$40 sps:$4 sm:$0xff]  }
0x276c   :  { %v6433_v46 = vpack.c.bf16 %v6432_v44, %v6432_v44  ;;  %v9071_v44 = vld [vmem:[#allocation7 + $0x3e0] ss:$40 sps:$4 sm:$0xff]  }
0x276e   :  { %8595 = vmatmul.mubr.msk.bf16.vlgmr.msra.gmra.mrb[164].mxu0 %vm683_vm3, %v6433_v46  ;;  %v9074_v46 = vld [vmem:[#allocation7 + $0x430] ss:$40 sps:$4 sm:$0xff]  }
0x276f   :  { %6981 = vmatprep.mubr.bf16.mxu0 %v9381_v35  ;;  %6950 = vmatpush1.bf16.msra.mxu0 %v9059_v19 }
0x2770   :  { %6951 = vmatprep.subr.bf16.mxu0 %v9064_v21  ;;  %v9220_v21 = vld [vmem:[#allocation2 + $0x8] sm:$0xff]  }
0x2773   :  { %6952 = vmatpush1.bf16.msra.mxu0 %v9062_v22  ;;  %v9221_v22 = vld [vmem:[#allocation2 + $0x10] sm:$0xff]  }
0x2774   :  { %6953 = vmatprep.subr.bf16.mxu0 %v9067_v40 }
0x2777   :  { %6954 = vmatpush1.bf16.msra.mxu0 %v9065_v62 }
0x2778   :  { %6955 = vmatprep.subr.bf16.mxu0 %v9070_v41 }
0x277b   :  { %6956 = vmatpush1.bf16.msra.mxu0 %v9068_v42  ;;  %v7025_v42 = vld [vmem:[#allocation10 + $0x7a] ss:$0 sm:$0xff] }
0x277c   :  { %6957 = vmatprep.subr.bf16.mxu0 %v9073_v43 }
0x277f   :  { %6958 = vmatpush1.bf16.msra.mxu0 %v9071_v44 }
0x279a   :  { %v6474_v49 = vpop.f32.mrb[152].mxu0 }
0x279b   :  { %v6480_v50 = vpack.c.bf16 %v6474_v49, %v6474_v49  ;;  %v8554_v51 = vpop.f32.mrb[153].mxu0  ;;  %v9077_v49 = vld [vmem:[#allocation7 + $0x480] ss:$40 sps:$4 sm:$0xff]  }
0x279c   :  { %v6477_v52 = vpop.f32.mrb[154].mxu0  ;;  %v9080_v51 = vld [vmem:[#allocation7 + $0x4d0] ss:$40 sps:$4 sm:$0xff]  }
0x279d   :  { %v8555_v53 = vpop.f32.mrb[155].mxu0  ;;  %8561 = vmatmul.mubr.msk.bf16.vlgmr.msra.gmra.mrb[180].mxu1 %vm484_vm1, %v6480_v50  ;;  %v9082_v50 = vld [vmem:[#allocation7 + $0x4d4] ss:$40 sps:$4 sm:$0xff]   ;;  %v9083_v52 = vld [vmem:[#allocation8 + $0x1c0] sm:$0xff]  }
0x279e   :  { %8571 = vmatpush3.bf16.msra.mxu1 %v9023_v48  ;;  %8574 = vmatprep.mubr.msk.bf16.mxu1 %vm9380_vm0, %v9379_v0  ;;  %v9079_v48 = vld [vmem:[#allocation7 + $0x484] ss:$40 sps:$4 sm:$0xff]  }
0x279f   :  { %8572 = vmatprep.subr.bf16.mxu1 %v9379_v0  ;;  %v9084_v53 = vld [vmem:[#allocation8 + $0x180] sm:$0xff]  }
0x27a2   :  { %8573 = vmatpush3.bf16.msra.mxu1 %v9028_v54  ;;  %v9085_v54 = vld [vmem:[#allocation8 + $0x1c8] sm:$0xff]  }
0x27a3   :  { %8584 = vmatprep.subr.bf16.mxu1 %v9379_v0 }
0x2811   :  { %v6576_v35 = vpop.f32.mrb[156].mxu0 }
0x2812   :  { %v6582_v56 = vpack.c.bf16 %v6576_v35, %v6576_v35  ;;  %v8568_v58 = vpop.f32.mrb[157].mxu0  ;;  %v9087_v35 = vld [vmem:[#allocation8 + $0x1d0] sm:$0xff]  }
0x2813   :  { %v6579_v59 = vpop.f32.mrb[158].mxu0  ;;  %v9089_v58 = vld [vmem:[#allocation8 + $0x1d8] sm:$0xff]  }
0x2814   :  { %v8569_v6 = vpop.f32.mrb[159].mxu0  ;;  %8575 = vmatmul.mubr.msk.bf16.vlgmr.msra.gmra.mrb[184].mxu1 %vm484_vm1, %v6582_v56  ;;  %v9088_v56 = vld [vmem:[#allocation8 + $0x190] sm:$0xff]   ;;  %v9090_v59 = vld [vmem:[#allocation8 + $0x198] sm:$0xff]  }
0x2815   :  { %8585 = vmatpush3.bf16.msra.mxu1 %v9033_v55  ;;  %8588 = vmatprep.mubr.msk.bf16.mxu1 %vm9380_vm0, %v9379_v0  ;;  %v9086_v55 = vld [vmem:[#allocation8 + $0x188] sm:$0xff]   ;;  %v9091_v6 = vld [vmem:[#allocation8 + $0x1e0] sm:$0xff]  }
0x2816   :  { %8586 = vmatprep.subr.bf16.mxu1 %v9379_v0 }
0x2819   :  { %v6677_v1 = vpop.f32.mrb[160].mxu0  ;;  %8587 = vmatpush3.bf16.msra.mxu1 %v9038_v61  ;;  %v9092_v61 = vld [vmem:[#allocation8 + $0x1a0] sm:$0xff]  }
0x281a   :  { %v6683_v2 = vpack.c.bf16 %v6677_v1, %v6677_v1  ;;  %v8582_v3 = vpop.f32.mrb[161].mxu0  ;;  %8598 = vmatprep.subr.bf16.mxu1 %v9379_v0  ;;  %v9094_v1 = vld [vmem:[#allocation8 + $0x1a8] sm:$0xff]  }
0x281b   :  { %v6680_v4 = vpop.f32.mrb[162].mxu0 }
0x281c   :  { %v8583_v7 = vpop.f32.mrb[163].mxu0  ;;  %8589 = vmatmul.mubr.msk.bf16.vlgmr.msra.gmra.mrb[188].mxu1 %vm484_vm1, %v6683_v2 }
0x281d   :  { %8599 = vmatpush3.bf16.msra.mxu1 %v9043_v63  ;;  %8602 = vmatprep.mubr.msk.bf16.mxu1 %vm9380_vm0, %v9379_v0  ;;  %v9093_v63 = vld [vmem:[#allocation8 + $0x1e8] sm:$0xff]  }
0x281e   :  { %8600 = vmatprep.subr.bf16.mxu1 %v9379_v0 }
0x2821   :  { %8601 = vmatpush3.bf16.msra.mxu1 %v9048_v8 }
0x2822   :  { %7955 = vmatprep.subr.bf16.mxu1 %v9083_v52 }
0x2841   :  { %v6778_v9 = vpop.f32.mrb[164].mxu0 }
0x2842   :  { %v6784_v10 = vpack.c.bf16 %v6778_v9, %v6778_v9  ;;  %v8596_v11 = vpop.f32.mrb[165].mxu0 }
0x2843   :  { %v6781_v14 = vpop.f32.mrb[166].mxu0 }
0x2844   :  { %v8597_v15 = vpop.f32.mrb[167].mxu0  ;;  %8603 = vmatmul.mubr.msk.bf16.vlgmr.msra.gmra.mrb[192].mxu1 %vm484_vm1, %v6784_v10 }
0x2845   :  { %7956 = vmatpush3.bf16.msra.mxu1 %v9084_v53  ;;  %v6838_v15 = vld [vmem:[#allocation10 + $0x67] ss:$0 sm:$0xff] }
0x2846   :  { %7957 = vmatprep.subr.bf16.mxu1 %v9085_v54 }
0x2849   :  { %7958 = vmatpush3.bf16.msra.mxu1 %v9086_v55 }
0x284a   :  { %7959 = vmatprep.subr.bf16.mxu1 %v9087_v35 }
0x284d   :  { %7960 = vmatpush3.bf16.msra.mxu1 %v9088_v56 }
0x284e   :  { %7961 = vmatprep.subr.bf16.mxu1 %v9089_v58  ;;  %v7165_v58 = vld [vmem:[#allocation10 + $0x7b] ss:$0 sm:$0xff] }
0x2851   :  { %7962 = vmatpush3.bf16.msra.mxu1 %v9090_v59 }
0x2852   :  { %7963 = vmatprep.subr.bf16.mxu1 %v9091_v6  ;;  %v7166_v6 = vld [vmem:[#allocation10 + $0x7c] ss:$0 sm:$0xff] }
0x2855   :  { %7964 = vmatpush3.bf16.msra.mxu1 %v9092_v61 }
0x2856   :  { %7965 = vmatprep.subr.bf16.mxu1 %v9093_v63 }
0x2859   :  { %7966 = vmatpush3.bf16.msra.mxu1 %v9094_v1 }
0x2870   :  { %v6526_v16 = vpop.f32.mrb[180].mxu1 }
0x2871   :  { %v8562_v13 = vpop.f32.mrb[181].mxu1  ;;  %v6532_v24 = vadd.f32 %v6526_v16, %v6183_v23  ;;  %v9222_v23 = vld [vmem:[#allocation2 + $0x18] sm:$0xff]  }
0x2872   :  { %v6529_v17 = vpop.f32.mrb[182].mxu1  ;;  %v6839_v13 = vld [vmem:[#allocation10 + $0x78] ss:$0 sm:$0xff] }
0x2873   :  { %v8563_v18 = vpop.f32.mrb[183].mxu1 }
0x28e7   :  { %v6628_v26 = vpop.f32.mrb[184].mxu1 }
0x28e8   :  { %v6634_v57 = vadd.f32 %v6628_v26, %v6532_v24  ;;  %v8576_v27 = vpop.f32.mrb[185].mxu1  ;;  %v9223_v24 = vld [vmem:[#allocation2 + $0x20] sm:$0xff]   ;;  %v9224_v26 = vld [vmem:[#allocation2 + $0x28] sm:$0xff]  }
0x28e9   :  { %v6631_v29 = vpop.f32.mrb[186].mxu1  ;;  %v9226_v27 = vld [vmem:[#allocation2 + $0x38] sm:$0xff]  }
0x28ea   :  { %v8577_v30 = vpop.f32.mrb[187].mxu1  ;;  %v9095_v29 = vld [vmem:[#allocation8 + $0x1f0] sm:$0xff]  }
0x28eb   :  { %v9096_v30 = vld [vmem:[#allocation8 + $0x1b0] sm:$0xff]   ;;  %7967 = vmatprep.subr.bf16.mxu1 %v9095_v29 }
0x28ec   :  { %7968 = vmatpush3.bf16.msra.mxu1 %v9096_v30 }
0x28ef   :  { %v6729_v31 = vpop.f32.mrb[188].mxu1 }
0x28f0   :  { %v6735_v32 = vadd.f32 %v6729_v31, %v6634_v57  ;;  %v8590_v28 = vpop.f32.mrb[189].mxu1  ;;  %v9225_v57 = vld [vmem:[#allocation2 + $0x30] sm:$0xff]   ;;  %v9097_v31 = vld [vmem:[#allocation8 + $0x1f8] sm:$0xff]  }
0x28f1   :  { %v6732_v38 = vpop.f32.mrb[190].mxu1  ;;  %7969 = vmatprep.subr.bf16.mxu1 %v9097_v31  ;;  %v6856_v28 = vld [vmem:[#allocation10 + $0x79] ss:$8 sm:$0x3] }
0x28f2   :  { %v8591_v12 = vpop.f32.mrb[191].mxu1  ;;  %v6862_v38 = vrot.slane %v6856_v28, %v9529_v45 }
0x28f3   :  { %v6866_v12 = vrot.slane %v6856_v28, %v9531_v47 }
0x2917   :  { %v6830_v60 = vpop.f32.mrb[192].mxu1 }
0x2918   :  { %v6836_v5 = vadd.f32 %v6830_v60, %v6735_v32  ;;  %v8604_v33 = vpop.f32.mrb[193].mxu1  ;;  %v9098_v32 = vld [vmem:[#allocation8 + $0x1b8] sm:$0xff]  }
0x2919   :  { %v6833_v34 = vpop.f32.mrb[194].mxu1  ;;  %7970 = vmatpush3.bf16.msra.mxu1 %v9098_v32 }
0x291a   :  { %v10182_v37 = vadd.f32 %v6836_v5, %v10100_v25  ;;  %v8605_v36 = vpop.f32.mrb[195].mxu1  ;;  %v9076_v25 = vld [vmem:[#allocation7 + $0x434] ss:$40 sps:$4 sm:$0xff]  }
0x291b   :  { %6959 = vmatprep.subr.bf16.mxu0 %v9076_v25 }
0x291c   :  { %6840 = vadd.xlane.f32.xlu0 %v10182_v37  ;;  %v6842_v39 = vmul.f32 %v10182_v37, %v10182_v37  ;;  %6960 = vmatpush1.bf16.msra.mxu0 %v9074_v46 }
0x291d   :  { %6961 = vmatprep.subr.bf16.mxu0 %v9079_v48 }
0x291e   :  { %6843 = vadd.xlane.f32.xlu1 %v6842_v39 }
0x2920   :  { %6962 = vmatpush1.bf16.msra.mxu0 %v9077_v49 }
0x2921   :  { %6963 = vmatprep.subr.bf16.mxu0 %v9082_v50 }
0x2924   :  { %6964 = vmatpush1.bf16.msra.mxu0 %v9080_v51 }
0x2925   :  { %8606 = vmatprep.subr.bf16.mxu0 %v9379_v0 }
0x29a9   :  { %v6841_v2 = vpop.xlane.xlu0 %6840 }
0x29aa   :  { %v6845_v3 = vmul.f32 0.0078125, %v6841_v2 }
0x29ab   :  { %v6844_v4 = vpop.xlane.xlu1 %6843 }
0x29ac   :  { %v6847_v7 = vmul.f32 %v6845_v3, %v6845_v3  ;;  %v6846_v8 = vmul.f32 0.0078125, %v6844_v4  ;;  %v6849_v11 = vsub.f32 %v10182_v37, %v6845_v3 }
0x29ae   :  { %v6848_v9 = vsub.f32 %v6846_v8, %v6847_v7 }
0x29b0   :  { %v6850_v10 = vadd.f32 1e-05, %v6848_v9 }
0x29b2   :  { %9213 = vrsqrt.f32 %v6850_v10 }
0x29bc   :  { %v9214_v14 = vpop.eup %9213 }
0x29bd   :  { %v6852_v16 = vmul.f32 %v9214_v14, %v6849_v11 }
0x29bf   :  { %v6853_v17 = vmul.f32 %v6852_v16, %v6838_v15  ;;  %v7182_v15 = vld [vmem:[#allocation10 + $0x7d] ss:$0 sm:$0xff] }
0x29c1   :  { %v6854_v18 = vadd.f32 %v6853_v17, %v6839_v13  ;;  %v7183_v13 = vld [vmem:[#allocation10 + $0x7e] ss:$0 sm:$0xff] }
0x29c3   :  { %v6857_v19 = vpack.c.bf16 %v6854_v18, %v6854_v18 }
0x29c5   :  { %6982 = vmatmul.mubr.bf16.vlgmr.msra.gmra.mrb[168].mxu0 %v6857_v19 }
0x29c6   :  { %8607 = vmatpush3.bf16.msra.mxu0 %v9219_v20  ;;  %8622 = vmatprep.mubr.msk.bf16.mxu0 %vm9380_vm0, %v9379_v0 }
0x29c7   :  { %8608 = vmatprep.subr.bf16.mxu0 %v9379_v0 }
0x29ca   :  { %8609 = vmatpush3.bf16.msra.mxu0 %v9220_v21  ;;  %v9227_v21 = vld [vmem:[#allocation10] ss:$0 sm:$0xff] }
0x29cb   :  { %8610 = vmatprep.subr.bf16.mxu0 %v9379_v0 }
0x29ce   :  { %8611 = vmatpush3.bf16.msra.mxu0 %v9221_v22 }
0x29cf   :  { %8612 = vmatprep.subr.bf16.mxu0 %v9379_v0 }
0x29d2   :  { %8613 = vmatpush3.bf16.msra.mxu0 %v9222_v23 }
0x29d3   :  { %8614 = vmatprep.subr.bf16.mxu0 %v9379_v0 }
0x29d6   :  { %8615 = vmatpush3.bf16.msra.mxu0 %v9223_v24 }
0x29d7   :  { %8616 = vmatprep.subr.bf16.mxu0 %v9379_v0 }
0x29da   :  { %8617 = vmatpush3.bf16.msra.mxu0 %v9224_v26 }
0x29db   :  { %8618 = vmatprep.subr.bf16.mxu0 %v9379_v0 }
0x29de   :  { %8619 = vmatpush3.bf16.msra.mxu0 %v9225_v57 }
0x29df   :  { %8620 = vmatprep.subr.bf16.mxu0 %v9379_v0 }
0x29e2   :  { %8621 = vmatpush3.bf16.msra.mxu0 %v9226_v27 }
0x2a98   :  { %v6983_v60 = vpop.f32.mrb[168].mxu0 }
0x2a99   :  { %v6984_v5 = vadd.f32 %v6983_v60, %v6862_v38  ;;  %v6985_v33 = vpop.f32.mrb[169].mxu0 }
0x2a9a   :  { %v6986_v34 = vadd.f32 %v6985_v33, %v6866_v12  ;;  %v6987_v0 = vpop.f32.mrb[170].mxu0 }
0x2a9b   :  { %v6990_v37 = vmax.f32 %v6984_v5, 0.0  ;;  %v6988_v36 = vpop.f32.mrb[171].mxu0 }
0x2a9c   :  { %v6991_v39 = vmax.f32 %v6986_v34, 0.0 }
0x2a9d   :  { %v7026_v62 = vpack.c.bf16 %v6990_v37, %v6990_v37 }
0x2a9e   :  { %v7027_v40 = vpack.c.bf16 %v6991_v39, %v6991_v39 }
0x2aa0   :  { %7156 = vmatprep.mubr.bf16.mxu1 %v7027_v40 }
0x2aa1   :  { %7157 = vmatmul.mubr.bf16.vlgmr.msra.gmra.mrb[196].mxu1 %v7026_v62 }
0x2b74   :  { %v7971_v41 = vpop.f32.mrb[196].mxu1 }
0x2b75   :  { %v7972_v43 = vpop.f32.mrb[197].mxu1 }
0x2b76   :  { %v7973_v44 = vadd.f32 %v7972_v43, %v7971_v41  ;;  %v7974_v25 = vpop.f32.mrb[198].mxu1 }
0x2b77   :  { %v7975_v45 = vpop.f32.mrb[199].mxu1 }
0x2b78   :  { %v7159_v46 = vadd.f32 %v7973_v44, %v7025_v42 }
0x2b7a   :  { %v7164_v47 = vadd.f32 %v7159_v46, %v6854_v18 }
0x2b7c   :  { %7167 = vadd.xlane.f32.xlu0 %v7164_v47  ;;  %v7169_v48 = vmul.f32 %v7164_v47, %v7164_v47 }
0x2b80   :  { %7170 = vadd.xlane.f32.xlu0 %v7169_v48 }
0x2c09   :  { %v7168_v49 = vpop.xlane.xlu0 %7167 }
0x2c0a   :  { %v7172_v50 = vmul.f32 0.0078125, %v7168_v49 }
0x2c0c   :  { %v7174_v52 = vmul.f32 %v7172_v50, %v7172_v50  ;;  %v7176_v35 = vsub.f32 %v7164_v47, %v7172_v50 }
0x2c0d   :  { %v7171_v51 = vpop.xlane.xlu0 %7170 }
0x2c0e   :  { %v7173_v53 = vmul.f32 0.0078125, %v7171_v51 }
0x2c10   :  { %v7175_v54 = vsub.f32 %v7173_v53, %v7174_v52 }
0x2c12   :  { %v7177_v55 = vadd.f32 1e-05, %v7175_v54 }
0x2c14   :  { %9215 = vrsqrt.f32 %v7177_v55 }
0x2c1e   :  { %v9216_v56 = vpop.eup %9215 }
0x2c1f   :  { %v7179_v59 = vmul.f32 %v9216_v56, %v7176_v35 }
0x2c21   :  { %v7180_v61 = vmul.f32 %v7179_v59, %v7165_v58 }
0x2c23   :  { %v7181_v63 = vadd.f32 %v7180_v61, %v7166_v6 }
0x2c25   :  { %7184 = vadd.xlane.f32.xlu1 %v7181_v63  ;;  %v7186_v1 = vmul.f32 %v7181_v63, %v7181_v63 }
0x2c27   :  { %7187 = vadd.xlane.f32.xlu0 %v7186_v1 }
0x2cb2   :  { %v7185_v2 = vpop.xlane.xlu1 %7184 }
0x2cb3   :  { %v7189_v3 = vmul.f32 0.0078125, %v7185_v2 }
0x2cb4   :  { %v7188_v4 = vpop.xlane.xlu0 %7187 }
0x2cb5   :  { %v7191_v7 = vmul.f32 %v7189_v3, %v7189_v3  ;;  %v7190_v8 = vmul.f32 0.0078125, %v7188_v4  ;;  %v7193_v11 = vsub.f32 %v7181_v63, %v7189_v3 }
0x2cb7   :  { %v7192_v9 = vsub.f32 %v7190_v8, %v7191_v7 }
0x2cb9   :  { %v7194_v10 = vadd.f32 1e-05, %v7192_v9 }
0x2cbb   :  { %9217 = vrsqrt.f32 %v7194_v10 }
0x2cc5   :  { %v9218_v14 = vpop.eup %9217 }
0x2cc6   :  { %v7196_v16 = vmul.f32 %v9218_v14, %v7193_v11 }
0x2cc8   :  { %v7197_v17 = vmul.f32 %v7196_v16, %v7182_v15 }
0x2cca   :  { %v7198_v18 = vadd.f32 %v7197_v17, %v7183_v13 }
0x2ccc   :  { %v7199_v19 = vpack.c.bf16 %v7198_v18, %v7198_v18 }
0x2cce   :  { %8623 = vmatmul.mubr.bf16.vlgmr.msra.gmra.mrb[172].mxu0 %v7199_v19 }
0x2da1   :  { %v7234_v20 = vpop.f32.mrb[172].mxu0 }
0x2da2   :  { %v7235_v22 = vadd.f32 %v9227_v21, %v7234_v20  ;;  %v8624_v23 = vpop.f32.mrb[173].mxu0 }
0x2da3   :  { %v7237_v24 = vpop.f32.mrb[174].mxu0 }
0x2da4   :  { %7240 = vst [vmem:[#allocation11] sm:$0xff] %v7235_v22  ;;  %v8625_v26 = vpop.f32.mrb[175].mxu0 }
0x2da5   :  { %9349 = shalt.err (!%p9346_p2)
}
0x2da6   :  { %s9350_s3 = scalar_lea.hbm %s10219_s7, 128 }
0x2da7   :  { %p9351_p3 = scmp.ne.s32.totalorder %s10219_s7, %s9350_s3  ;;  %p9354_p4 = scmp.lt.u32.totalorder %s9350_s3, %s10219_s7 }
0x2da9   :  { %p9356_p5 = pnand %p9354_p4, %p9351_p3 }
0x2dab   :  { %9359 = shalt.err (!%p9356_p5)
}
0x2dac   :  { %7250 = dma.vmem_to_hbm [thread:$0]  %s7248_s25, 128, %s10219_s7, [#allocation4]  }
0x2dad   :  { %9366 = dma.done.wait [#allocation4], 128  }
0x2dae   :  { %9367 = vsyncadd [#allocation4], 4294967168 }
0x2daf   :  { %7254 = vsyncpa [#allocation3], 1 }
0x2db0   :  { %7255 = vsyncpa [#allocation6], 1 }
0x2db1   :  { %7256 = vsyncpa [#allocation9], 1 }
0x2db2   :  { %7257 = vsyncpa [#allocation4], 1 }

</bundles_post_ra>
